<compile_context>
chip_gen: v7x
topology: tpu7x:2x2x1
jax: 0.10.0
libtpu: 0.0.40
codegen_flags: <defaults>
</compile_context>

<pallas_src>
import jax
import jax.numpy as jnp
import numpy as np
from jax.experimental import pallas as pl
from jax.experimental.pallas import tpu as pltpu

_EPS = 1e-5  # PyTorch BatchNorm default eps


# ---------------------------------------------------------------------------
# Host-side constant-operator builders (run once at parameter-init time).
# ---------------------------------------------------------------------------
def _build_row_op(batch, h_in, h_out, hn_order):
    """R[dy] @ X = vertical nearest-2x upsample + pad=1 + vertical tap dy."""
    r = np.zeros((3, batch * h_out, batch * h_in), np.float32)
    for dy in range(3):
        for n in range(batch):
            for yo in range(h_out):
                yu = yo + dy - 1
                if 0 <= yu < h_out:
                    yi = yu // 2
                    src = (yi * batch + n) if hn_order else (n * h_in + yi)
                    r[dy, n * h_out + yo, src] = 1.0
    return r


def _build_col_op(w_conv, w_in, w_out):
    """Fused banded matrix (3*W_in*Cin, 2*W_out*Cout): horizontal nearest-2x
    upsample + pad=1 + 3 horizontal taps + channel mixing, with both GLU
    halves side by side so ONE MXU matmul yields [za | zb]."""
    k2, cin, _, _ = w_conv.shape          # torch layout (2*Cout, Cin, 3, 3)
    cout = k2 // 2
    wa = np.zeros((3, w_in * cin, w_out * cout), np.float32)
    wb = np.zeros_like(wa)
    for dy in range(3):
        for xo in range(w_out):
            for dx in range(3):
                xu = xo + dx - 1
                if not 0 <= xu < w_out:
                    continue
                xi = xu // 2
                wa[dy, xi * cin:(xi + 1) * cin, xo * cout:(xo + 1) * cout] += \
                    w_conv[:cout, :, dy, dx].T
                wb[dy, xi * cin:(xi + 1) * cin, xo * cout:(xo + 1) * cout] += \
                    w_conv[cout:, :, dy, dx].T
    wa = wa.reshape(3 * w_in * cin, w_out * cout)
    wb = wb.reshape(3 * w_in * cin, w_out * cout)
    return np.concatenate([wa, wb], axis=1)


def _build_chan_proj(w_out, cout, count):
    """P[i,j] = 1/count if lanes i and j belong to the same channel.
    (lane-sums @ P) = per-channel mean, already broadcast onto the lanes."""
    lane_ch = np.arange(w_out * cout) % cout
    return (lane_ch[:, None] == lane_ch[None, :]).astype(np.float32) / count


# ---------------------------------------------------------------------------
# In-kernel helpers (pure value math, all shapes static).
# ---------------------------------------------------------------------------
def _bn_rows(h, gamma, beta, count):
    """BatchNorm1d: per-lane (feature) stats over rows, one pass, biased var."""
    inv = 1.0 / count
    m = jnp.sum(h, axis=0, keepdims=True) * inv
    v = jnp.maximum(jnp.sum(h * h, axis=0, keepdims=True) * inv - m * m, 0.0)
    s = gamma * jax.lax.rsqrt(v + _EPS)
    return h * s + (beta - m * s)


def _up_stage(x, r_ref, wab, p_mat, bn_tab):
    """Upsample(2x nearest) -> conv3x3(pad=1) -> BatchNorm2d -> GLU on the
    (N*H, W*C) layout.  5 MXU matmuls: 3 small row ops, 1 fused column op for
    both GLU halves, 1 f32 BN channel projection for all four statistics."""
    xb = x.astype(jnp.bfloat16)
    # Vertical upsample / pad / tap select: 3 small 0/1 row-operator matmuls.
    v = [jnp.dot(r_ref[dy], xb,
                 preferred_element_type=jnp.float32).astype(jnp.bfloat16)
         for dy in range(3)]
    vcat = jnp.concatenate(v, axis=1)                  # (N*Hout, 3*Win*Cin)
    # Horizontal upsample / pad / taps + channel mixing, both GLU halves.
    zab = jnp.dot(vcat, wab, preferred_element_type=jnp.float32)
    wc = zab.shape[1] // 2                             # Wout*Cout
    za, zb = zab[:, :wc], zab[:, wc:]
    # BatchNorm2d (training batch stats): one projection matmul replaces the
    # per-channel reduce + broadcast; 1/count is folded into p_mat.
    stats = jnp.concatenate(
        [jnp.sum(za, axis=0, keepdims=True),
         jnp.sum(za * za, axis=0, keepdims=True),
         jnp.sum(zb, axis=0, keepdims=True),
         jnp.sum(zb * zb, axis=0, keepdims=True)], axis=0)       # (4, wc) f32
    mom = jnp.dot(stats, p_mat, preferred_element_type=jnp.float32)
    m_a, e2_a, m_b, e2_b = mom[0:1], mom[1:2], mom[2:3], mom[3:4]
    v_a = jnp.maximum(e2_a - m_a * m_a, 0.0)
    v_b = jnp.maximum(e2_b - m_b * m_b, 0.0)
    g_a, b_a, g_b, b_b = bn_tab[0:1], bn_tab[1:2], bn_tab[2:3], bn_tab[3:4]
    s_a = g_a * jax.lax.rsqrt(v_a + _EPS)
    s_b = g_b * jax.lax.rsqrt(v_b + _EPS)
    ya = za * s_a + (b_a - m_a * s_a)
    yb = zb * s_b + (b_b - m_b * s_b)
    return ya * jax.nn.sigmoid(yb)                     # GLU, (N*Hout, Wout*Cout)


# ---------------------------------------------------------------------------
# The single fused kernel: fc + 5 up blocks, everything resident in VMEM.
# ---------------------------------------------------------------------------
def _fused_kernel(in_code_ref, fc_w_ref, fc_bn_ref,
                  r1_ref, r2_ref, r3_ref, r4_ref,
                  wab14_ref, p14_ref, bn_ref,
                  r5_hbm, wab5_hbm, p5_hbm,
                  o_ref,
                  r5_buf, wab5_buf, p5_buf, dma_sem):
    # Prefetch the heavy stage-5 operators (HBM -> VMEM); their DMA overlaps
    # the fc + stage-1..4 compute and is awaited just before stage 5.
    cp_r5 = pltpu.make_async_copy(r5_hbm, r5_buf, dma_sem.at[0])
    cp_w5 = pltpu.make_async_copy(wab5_hbm, wab5_buf, dma_sem.at[1])
    cp_p5 = pltpu.make_async_copy(p5_hbm, p5_buf, dma_sem.at[2])
    cp_r5.start()
    cp_w5.start()
    cp_p5.start()

    batch = in_code_ref.shape[0]

    # ---- fc: Linear(bias=False) -> BatchNorm1d -> GLU, one fused matmul ----
    h = jnp.dot(in_code_ref[...].astype(jnp.bfloat16), fc_w_ref[...],
                preferred_element_type=jnp.float32)     # (B, 2*feat)
    fbn = fc_bn_ref[...]
    hn = _bn_rows(h, fbn[0:1, :], fbn[1:2, :], batch)
    feat = hn.shape[1] // 2
    g = hn[:, :feat] * jax.nn.sigmoid(hn[:, feat:])     # GLU, (B, feat)

    # (B, H1*W1*C1) columns -> (H1*B, W1*C1) rows: 128-aligned lane slices +
    # sublane concat.  up1's row operator expects this (h, n) row order.
    h1 = 4
    blk = feat // h1
    x = jnp.concatenate([g[:, i * blk:(i + 1) * blk] for i in range(h1)],
                        axis=0)

    # ---- upsample1 .. upsample4 (constants sliced from lane-dense slabs) ---
    w_wab = wab14_ref.shape[1] // 4       # 2*Wout*Cout per stage (equal 1..4)
    w_p = p14_ref.shape[1] // 4           # Wout*Cout per stage (equal 1..4)
    for i, r_ref in enumerate((r1_ref, r2_ref, r3_ref, r4_ref)):
        x = _up_stage(x, r_ref,
                      wab14_ref[:, i * w_wab:(i + 1) * w_wab],
                      p14_ref[:, i * w_p:(i + 1) * w_p],
                      bn_ref[:, i * w_p:(i + 1) * w_p])

    # ---- upsample5 (prefetched operators) ----------------------------------
    cp_r5.wait()
    cp_w5.wait()
    cp_p5.wait()
    x = _up_stage(x, r5_buf, wab5_buf[...], p5_buf[...], bn_ref[:, 4 * w_p:])

    o_ref[...] = x                        # (N*128, 128*Cfinal), lane-dense


# ---------------------------------------------------------------------------
# Parameters: synthesize PyTorch-layout weights, convert to kernel operators.
# ---------------------------------------------------------------------------
def init_params(key, ngf, z_dim, c_dim, batch):
    in_dim = z_dim + c_dim
    keys = jax.random.split(key, 18)
    p = {}

    # fc ---------------------------------------------------------------------
    feat = ngf * 4 * 4                                  # per GLU half
    w_fc = np.asarray(0.05 * jax.random.normal(keys[0], (2 * feat, in_dim),
                                               jnp.float32))
    g_fc = np.asarray(1.0 + 0.1 * jax.random.normal(keys[1], (2 * feat,),
                                                    jnp.float32))
    b_fc = np.asarray(0.1 * jax.random.normal(keys[2], (2 * feat,),
                                              jnp.float32))
    # torch feature (after .view(-1, ngf, 4, 4)): f = c*16 + h*4 + w
    # kernel lane order:                         col = h*(4*ngf) + w*ngf + c
    perm = np.empty(feat, np.int64)
    for hh in range(4):
        for ww in range(4):
            for cc in range(ngf):
                perm[hh * 4 * ngf + ww * ngf + cc] = cc * 16 + hh * 4 + ww
    wa = w_fc[perm, :].T                                # (in_dim, feat), half a
    wb = w_fc[feat + perm, :].T                         # half b
    p['fc_w'] = jnp.asarray(np.concatenate([wa, wb], axis=1), jnp.bfloat16)
    p['fc_bn'] = jnp.asarray(
        np.stack([np.concatenate([g_fc[perm], g_fc[feat + perm]]),
                  np.concatenate([b_fc[perm], b_fc[feat + perm]])]),
        jnp.float32)                                    # (2, 2*feat)

    # 5 up blocks --------------------------------------------------------------
    in_ch = [ngf, ngf // 2, ngf // 4, ngf // 8, ngf // 16]
    out_ch = [ngf // 2, ngf // 4, ngf // 8, ngf // 16, ngf // 16]
    sp = 4
    r_list, wab_list, p_list, bn_list = [], [], [], []
    for i in range(5):
        cin, cout = in_ch[i], out_ch[i]
        sp_out = 2 * sp
        w_conv = np.asarray(0.05 * jax.random.normal(
            keys[3 + 3 * i], (2 * cout, cin, 3, 3), jnp.float32))
        gam = np.asarray(1.0 + 0.1 * jax.random.normal(
            keys[4 + 3 * i], (2 * cout,), jnp.float32))
        bet = np.asarray(0.1 * jax.random.normal(
            keys[5 + 3 * i], (2 * cout,), jnp.float32))
        r_list.append(_build_row_op(batch, sp, sp_out, hn_order=(i == 0)))
        wab_list.append(_build_col_op(w_conv, sp, sp_out))
        p_list.append(_build_chan_proj(sp_out, cout, batch * sp_out * sp_out))
        # Lane-dense gamma/beta tables (x, c interleave, c fastest).
        bn_list.append(np.stack([np.tile(gam[:cout], sp_out),
                                 np.tile(bet[:cout], sp_out),
                                 np.tile(gam[cout:], sp_out),
                                 np.tile(bet[cout:], sp_out)]))
        sp = sp_out

    # Row operators: stages 1-4 small individual inputs, stage 5 prefetched.
    for i in range(4):
        p[f'r{i + 1}'] = jnp.asarray(r_list[i], jnp.bfloat16)
    p['r5'] = jnp.asarray(r_list[4], jnp.bfloat16)
    # Lane-dense slabs (stages 1-4 share identical row / lane widths by
    # construction: 3*Win*Cin and Wout*Cout are constant across them).
    p['wab14'] = jnp.asarray(np.concatenate(wab_list[:4], axis=1), jnp.bfloat16)
    p['wab5'] = jnp.asarray(wab_list[4], jnp.bfloat16)
    p['p14'] = jnp.asarray(np.concatenate(p_list[:4], axis=1), jnp.float32)
    p['p5'] = jnp.asarray(p_list[4], jnp.float32)
    p['bn_tab'] = jnp.asarray(np.concatenate(bn_list, axis=1), jnp.float32)
    return p


# ---------------------------------------------------------------------------
# Forward pass: one pallas_call + the final NCHW reshape.
# ---------------------------------------------------------------------------
@jax.jit
def init_stage_g_forward(z_code, code, params):
    batch = z_code.shape[0]
    in_code = jnp.concatenate([code, z_code], axis=1)   # torch.cat((code, z), 1)

    inputs = [in_code, params['fc_w'], params['fc_bn'],
              params['r1'], params['r2'], params['r3'], params['r4'],
              params['wab14'], params['p14'], params['bn_tab'],
              params['r5'], params['wab5'], params['p5']]

    rows = params['r5'].shape[1]              # batch * H_final
    lanes = params['wab5'].shape[1] // 2      # W_final * C_final
    h_fin = rows // batch
    w_fin = h_fin                             # square maps throughout
    c_fin = lanes // w_fin

    vmem = pl.BlockSpec(memory_space=pltpu.MemorySpace.VMEM)
    hbm = pl.BlockSpec(memory_space=pl.ANY)   # stage-5 operators: manual DMA
    out2d = pl.pallas_call(
        _fused_kernel,
        out_shape=jax.ShapeDtypeStruct((rows, lanes), jnp.float32),
        in_specs=[vmem] * 10 + [hbm] * 3,
        out_specs=vmem,
        scratch_shapes=[
            pltpu.VMEM(params['r5'].shape, jnp.bfloat16),
            pltpu.VMEM(params['wab5'].shape, jnp.bfloat16),
            pltpu.VMEM(params['p5'].shape, jnp.float32),
            pltpu.SemaphoreType.DMA((3,)),
        ],
        compiler_params=pltpu.CompilerParams(
            vmem_limit_bytes=32 * 1024 * 1024),
    )(*inputs)

    # (N*H, W*C) -> (N, C, H, W): the only layout op outside the kernel.
    return out2d.reshape(batch, h_fin, w_fin, c_fin).transpose(0, 3, 1, 2)


if __name__ == "__main__":
    key = jax.random.PRNGKey(0)
    ngf = 32
    Z_DIM = 16
    SUPER_CATEGORIES = 8      # c_flag == 1 -> in_dim = Z_DIM + SUPER_CATEGORIES
    B = 2

    k_param, k_z, k_c = jax.random.split(key, 3)
    params = init_params(k_param, ngf, Z_DIM, SUPER_CATEGORIES, B)
    z_code = jax.random.normal(k_z, (B, Z_DIM), jnp.float32)
    code = jax.random.normal(k_c, (B, SUPER_CATEGORIES), jnp.float32)

    out = jax.block_until_ready(init_stage_g_forward(z_code, code, params))
    assert out.shape == (B, ngf // 16, 128, 128), out.shape
    assert bool(jnp.all(jnp.isfinite(out)))
    print("KERNEL_OK")
</pallas_src>

<mosaic_0001>
module attributes {stable_mosaic.version = 11 : i64} {
  func.func @_fused_kernel(%arg0: memref<2x24xf32, #tpu.memory_space<vmem>>, %arg1: memref<24x1024xbf16, #tpu.memory_space<vmem>>, %arg2: memref<2x1024xf32, #tpu.memory_space<vmem>>, %arg3: memref<3x16x8xbf16, #tpu.memory_space<vmem>>, %arg4: memref<3x32x16xbf16, #tpu.memory_space<vmem>>, %arg5: memref<3x64x32xbf16, #tpu.memory_space<vmem>>, %arg6: memref<3x128x64xbf16, #tpu.memory_space<vmem>>, %arg7: memref<384x1024xbf16, #tpu.memory_space<vmem>>, %arg8: memref<128x512xf32, #tpu.memory_space<vmem>>, %arg9: memref<4x768xf32, #tpu.memory_space<vmem>>, %arg10: memref<3x256x128xbf16, #tpu.memory_space<any>>, %arg11: memref<384x512xbf16, #tpu.memory_space<any>>, %arg12: memref<256x256xf32, #tpu.memory_space<any>>, %arg13: memref<256x256xf32, #tpu.memory_space<vmem>>, %arg14: memref<3x256x128xbf16, #tpu.memory_space<vmem>>, %arg15: memref<384x512xbf16, #tpu.memory_space<vmem>>, %arg16: memref<256x256xf32, #tpu.memory_space<vmem>>, %arg17: memref<3x!tpu.dma_semaphore, #tpu.memory_space<semaphore_mem>>) attributes {dimension_semantics = [], scalar_prefetch = 0 : i64, scratch_operands = 4 : i64, tpu.core_type = #tpu.core_type<tc>} {
    %c0_i32 = arith.constant 0 : i32
    %0 = tpu.memref_slice %arg17[%c0_i32] : memref<3x!tpu.dma_semaphore, #tpu.memory_space<semaphore_mem>> -> memref<1x!tpu.dma_semaphore, #tpu.memory_space<semaphore_mem>>
    %1 = tpu.memref_squeeze %0 : memref<1x!tpu.dma_semaphore, #tpu.memory_space<semaphore_mem>> -> memref<!tpu.dma_semaphore, #tpu.memory_space<semaphore_mem>>
    tpu.enqueue_dma source(%arg10 : memref<3x256x128xbf16, #tpu.memory_space<any>>) target(%arg14 : memref<3x256x128xbf16, #tpu.memory_space<vmem>>) target_semaphore(%1 : memref<!tpu.dma_semaphore, #tpu.memory_space<semaphore_mem>>)
    %c1_i32 = arith.constant 1 : i32
    %2 = tpu.memref_slice %arg17[%c1_i32] : memref<3x!tpu.dma_semaphore, #tpu.memory_space<semaphore_mem>> -> memref<1x!tpu.dma_semaphore, #tpu.memory_space<semaphore_mem>>
    %3 = tpu.memref_squeeze %2 : memref<1x!tpu.dma_semaphore, #tpu.memory_space<semaphore_mem>> -> memref<!tpu.dma_semaphore, #tpu.memory_space<semaphore_mem>>
    tpu.enqueue_dma source(%arg11 : memref<384x512xbf16, #tpu.memory_space<any>>) target(%arg15 : memref<384x512xbf16, #tpu.memory_space<vmem>>) target_semaphore(%3 : memref<!tpu.dma_semaphore, #tpu.memory_space<semaphore_mem>>)
    %c2_i32 = arith.constant 2 : i32
    %4 = tpu.memref_slice %arg17[%c2_i32] : memref<3x!tpu.dma_semaphore, #tpu.memory_space<semaphore_mem>> -> memref<1x!tpu.dma_semaphore, #tpu.memory_space<semaphore_mem>>
    %5 = tpu.memref_squeeze %4 : memref<1x!tpu.dma_semaphore, #tpu.memory_space<semaphore_mem>> -> memref<!tpu.dma_semaphore, #tpu.memory_space<semaphore_mem>>
    tpu.enqueue_dma source(%arg12 : memref<256x256xf32, #tpu.memory_space<any>>) target(%arg16 : memref<256x256xf32, #tpu.memory_space<vmem>>) target_semaphore(%5 : memref<!tpu.dma_semaphore, #tpu.memory_space<semaphore_mem>>)
    %c0 = arith.constant 0 : index
    %c0_0 = arith.constant 0 : index
    %6 = vector.load %arg0[%c0, %c0_0] : memref<2x24xf32, #tpu.memory_space<vmem>>, vector<2x24xf32>
    %7 = arith.truncf %6 : vector<2x24xf32> to vector<2x24xbf16>
    %c0_1 = arith.constant 0 : index
    %c0_2 = arith.constant 0 : index
    %8 = vector.load %arg1[%c0_1, %c0_2] : memref<24x1024xbf16, #tpu.memory_space<vmem>>, vector<24x1024xbf16>
    %cst = arith.constant dense<0.000000e+00> : vector<2x1024xf32>
    %9 = tpu.matmul %7, %8, %cst {dimension_numbers = #tpu.dot_dimension_numbers<[1], [0], [0], [1], [0, 0, 1, 1], [], []>} : vector<2x24xbf16>, vector<24x1024xbf16>, vector<2x1024xf32> -> vector<2x1024xf32>
    %c0_3 = arith.constant 0 : index
    %c0_4 = arith.constant 0 : index
    %10 = vector.load %arg2[%c0_3, %c0_4] : memref<2x1024xf32, #tpu.memory_space<vmem>>, vector<2x1024xf32>
    %11 = vector.extract_strided_slice %10 {offsets = [0, 0], sizes = [1, 1024], strides = [1, 1]} : vector<2x1024xf32> to vector<1x1024xf32>
    %12 = vector.extract_strided_slice %10 {offsets = [1, 0], sizes = [1, 1024], strides = [1, 1]} : vector<2x1024xf32> to vector<1x1024xf32>
    %cst_5 = arith.constant dense<0.000000e+00> : vector<1024xf32>
    %13 = vector.multi_reduction <add>, %9, %cst_5 [0] : vector<2x1024xf32> to vector<1024xf32>
    %14 = vector.shape_cast %13 : vector<1024xf32> to vector<1x1024xf32>
    %cst_6 = arith.constant 5.000000e-01 : f32
    %15 = vector.broadcast %cst_6 : f32 to vector<1x1024xf32>
    %16 = arith.mulf %14, %15 : vector<1x1024xf32>
    %17 = arith.mulf %9, %9 : vector<2x1024xf32>
    %cst_7 = arith.constant dense<0.000000e+00> : vector<1024xf32>
    %18 = vector.multi_reduction <add>, %17, %cst_7 [0] : vector<2x1024xf32> to vector<1024xf32>
    %19 = vector.shape_cast %18 : vector<1024xf32> to vector<1x1024xf32>
    %cst_8 = arith.constant 5.000000e-01 : f32
    %20 = vector.broadcast %cst_8 : f32 to vector<1x1024xf32>
    %21 = arith.mulf %19, %20 : vector<1x1024xf32>
    %22 = arith.mulf %16, %16 : vector<1x1024xf32>
    %23 = arith.subf %21, %22 : vector<1x1024xf32>
    %cst_9 = arith.constant 0.000000e+00 : f32
    %24 = vector.broadcast %cst_9 : f32 to vector<1x1024xf32>
    %25 = arith.maximumf %23, %24 : vector<1x1024xf32>
    %cst_10 = arith.constant 9.99999974E-6 : f32
    %26 = vector.broadcast %cst_10 : f32 to vector<1x1024xf32>
    %27 = arith.addf %25, %26 : vector<1x1024xf32>
    %28 = math.rsqrt %27 : vector<1x1024xf32>
    %29 = arith.mulf %11, %28 : vector<1x1024xf32>
    %30 = vector.broadcast %29 : vector<1x1024xf32> to vector<2x1024xf32>
    %31 = arith.mulf %9, %30 : vector<2x1024xf32>
    %32 = arith.mulf %16, %29 : vector<1x1024xf32>
    %33 = arith.subf %12, %32 : vector<1x1024xf32>
    %34 = vector.broadcast %33 : vector<1x1024xf32> to vector<2x1024xf32>
    %35 = arith.addf %31, %34 : vector<2x1024xf32>
    %36 = vector.extract_strided_slice %35 {offsets = [0, 0], sizes = [2, 512], strides = [1, 1]} : vector<2x1024xf32> to vector<2x512xf32>
    %37 = vector.extract_strided_slice %35 {offsets = [0, 512], sizes = [2, 512], strides = [1, 1]} : vector<2x1024xf32> to vector<2x512xf32>
    %38 = arith.negf %37 : vector<2x512xf32>
    %39 = math.exp %38 : vector<2x512xf32>
    %cst_11 = arith.constant 1.000000e+00 : f32
    %40 = vector.broadcast %cst_11 : f32 to vector<2x512xf32>
    %41 = arith.addf %40, %39 : vector<2x512xf32>
    %42 = arith.divf %40, %41 : vector<2x512xf32>
    %43 = arith.mulf %36, %42 : vector<2x512xf32>
    %44 = vector.extract_strided_slice %43 {offsets = [0, 0], sizes = [2, 128], strides = [1, 1]} : vector<2x512xf32> to vector<2x128xf32>
    %45 = vector.extract_strided_slice %43 {offsets = [0, 128], sizes = [2, 128], strides = [1, 1]} : vector<2x512xf32> to vector<2x128xf32>
    %46 = vector.extract_strided_slice %43 {offsets = [0, 256], sizes = [2, 128], strides = [1, 1]} : vector<2x512xf32> to vector<2x128xf32>
    %47 = vector.extract_strided_slice %43 {offsets = [0, 384], sizes = [2, 128], strides = [1, 1]} : vector<2x512xf32> to vector<2x128xf32>
    %48 = tpu.concatenate %44, %45, %46, %47 in 0 : vector<2x128xf32>, vector<2x128xf32>, vector<2x128xf32>, vector<2x128xf32> -> vector<8x128xf32>
    %c0_12 = arith.constant 0 : index
    %c0_13 = arith.constant 0 : index
    %49 = vector.load %arg7[%c0_12, %c0_13] : memref<384x1024xbf16, #tpu.memory_space<vmem>>, vector<384x256xbf16>
    %c0_14 = arith.constant 0 : index
    %c0_15 = arith.constant 0 : index
    %50 = vector.load %arg8[%c0_14, %c0_15] : memref<128x512xf32, #tpu.memory_space<vmem>>, vector<128x128xf32>
    %c0_16 = arith.constant 0 : index
    %c0_17 = arith.constant 0 : index
    %51 = vector.load %arg9[%c0_16, %c0_17] : memref<4x768xf32, #tpu.memory_space<vmem>>, vector<4x128xf32>
    %52 = arith.truncf %48 : vector<8x128xf32> to vector<8x128xbf16>
    %c0_18 = arith.constant 0 : index
    %c0_19 = arith.constant 0 : index
    %c0_20 = arith.constant 0 : index
    %53 = vector.load %arg3[%c0_18, %c0_19, %c0_20] : memref<3x16x8xbf16, #tpu.memory_space<vmem>>, vector<1x16x8xbf16>
    %54 = vector.shape_cast %53 : vector<1x16x8xbf16> to vector<16x8xbf16>
    %cst_21 = arith.constant dense<0.000000e+00> : vector<16x128xf32>
    %55 = tpu.matmul %54, %52, %cst_21 {dimension_numbers = #tpu.dot_dimension_numbers<[1], [0], [0], [1], [0, 0, 1, 1], [], []>} : vector<16x8xbf16>, vector<8x128xbf16>, vector<16x128xf32> -> vector<16x128xf32>
    %56 = arith.truncf %55 : vector<16x128xf32> to vector<16x128xbf16>
    %c1 = arith.constant 1 : index
    %c0_22 = arith.constant 0 : index
    %c0_23 = arith.constant 0 : index
    %57 = vector.load %arg3[%c1, %c0_22, %c0_23] : memref<3x16x8xbf16, #tpu.memory_space<vmem>>, vector<1x16x8xbf16>
    %58 = vector.shape_cast %57 : vector<1x16x8xbf16> to vector<16x8xbf16>
    %cst_24 = arith.constant dense<0.000000e+00> : vector<16x128xf32>
    %59 = tpu.matmul %58, %52, %cst_24 {dimension_numbers = #tpu.dot_dimension_numbers<[1], [0], [0], [1], [0, 0, 1, 1], [], []>} : vector<16x8xbf16>, vector<8x128xbf16>, vector<16x128xf32> -> vector<16x128xf32>
    %60 = arith.truncf %59 : vector<16x128xf32> to vector<16x128xbf16>
    %c2 = arith.constant 2 : index
    %c0_25 = arith.constant 0 : index
    %c0_26 = arith.constant 0 : index
    %61 = vector.load %arg3[%c2, %c0_25, %c0_26] : memref<3x16x8xbf16, #tpu.memory_space<vmem>>, vector<1x16x8xbf16>
    %62 = vector.shape_cast %61 : vector<1x16x8xbf16> to vector<16x8xbf16>
    %cst_27 = arith.constant dense<0.000000e+00> : vector<16x128xf32>
    %63 = tpu.matmul %62, %52, %cst_27 {dimension_numbers = #tpu.dot_dimension_numbers<[1], [0], [0], [1], [0, 0, 1, 1], [], []>} : vector<16x8xbf16>, vector<8x128xbf16>, vector<16x128xf32> -> vector<16x128xf32>
    %64 = arith.truncf %63 : vector<16x128xf32> to vector<16x128xbf16>
    %65 = tpu.concatenate %56, %60, %64 in 1 : vector<16x128xbf16>, vector<16x128xbf16>, vector<16x128xbf16> -> vector<16x384xbf16>
    %cst_28 = arith.constant dense<0.000000e+00> : vector<16x256xf32>
    %66 = tpu.matmul %65, %49, %cst_28 {dimension_numbers = #tpu.dot_dimension_numbers<[1], [0], [0], [1], [0, 0, 1, 1], [], []>} : vector<16x384xbf16>, vector<384x256xbf16>, vector<16x256xf32> -> vector<16x256xf32>
    %67 = vector.extract_strided_slice %66 {offsets = [0, 0], sizes = [16, 128], strides = [1, 1]} : vector<16x256xf32> to vector<16x128xf32>
    %68 = vector.extract_strided_slice %66 {offsets = [0, 128], sizes = [16, 128], strides = [1, 1]} : vector<16x256xf32> to vector<16x128xf32>
    %cst_29 = arith.constant dense<0.000000e+00> : vector<128xf32>
    %69 = vector.multi_reduction <add>, %67, %cst_29 [0] : vector<16x128xf32> to vector<128xf32>
    %70 = vector.shape_cast %69 : vector<128xf32> to vector<1x128xf32>
    %71 = arith.mulf %67, %67 : vector<16x128xf32>
    %cst_30 = arith.constant dense<0.000000e+00> : vector<128xf32>
    %72 = vector.multi_reduction <add>, %71, %cst_30 [0] : vector<16x128xf32> to vector<128xf32>
    %73 = vector.shape_cast %72 : vector<128xf32> to vector<1x128xf32>
    %cst_31 = arith.constant dense<0.000000e+00> : vector<128xf32>
    %74 = vector.multi_reduction <add>, %68, %cst_31 [0] : vector<16x128xf32> to vector<128xf32>
    %75 = vector.shape_cast %74 : vector<128xf32> to vector<1x128xf32>
    %76 = arith.mulf %68, %68 : vector<16x128xf32>
    %cst_32 = arith.constant dense<0.000000e+00> : vector<128xf32>
    %77 = vector.multi_reduction <add>, %76, %cst_32 [0] : vector<16x128xf32> to vector<128xf32>
    %78 = vector.shape_cast %77 : vector<128xf32> to vector<1x128xf32>
    %79 = tpu.concatenate %70, %73, %75, %78 in 0 : vector<1x128xf32>, vector<1x128xf32>, vector<1x128xf32>, vector<1x128xf32> -> vector<4x128xf32>
    %cst_33 = arith.constant dense<0.000000e+00> : vector<4x128xf32>
    %80 = tpu.matmul %79, %50, %cst_33 {dimension_numbers = #tpu.dot_dimension_numbers<[1], [0], [0], [1], [0, 0, 1, 1], [], []>} : vector<4x128xf32>, vector<128x128xf32>, vector<4x128xf32> -> vector<4x128xf32>
    %81 = vector.extract_strided_slice %80 {offsets = [0, 0], sizes = [1, 128], strides = [1, 1]} : vector<4x128xf32> to vector<1x128xf32>
    %82 = vector.extract_strided_slice %80 {offsets = [1, 0], sizes = [1, 128], strides = [1, 1]} : vector<4x128xf32> to vector<1x128xf32>
    %83 = vector.extract_strided_slice %80 {offsets = [2, 0], sizes = [1, 128], strides = [1, 1]} : vector<4x128xf32> to vector<1x128xf32>
    %84 = vector.extract_strided_slice %80 {offsets = [3, 0], sizes = [1, 128], strides = [1, 1]} : vector<4x128xf32> to vector<1x128xf32>
    %85 = arith.mulf %81, %81 : vector<1x128xf32>
    %86 = arith.subf %82, %85 : vector<1x128xf32>
    %cst_34 = arith.constant 0.000000e+00 : f32
    %87 = vector.broadcast %cst_34 : f32 to vector<1x128xf32>
    %88 = arith.maximumf %86, %87 : vector<1x128xf32>
    %89 = arith.mulf %83, %83 : vector<1x128xf32>
    %90 = arith.subf %84, %89 : vector<1x128xf32>
    %cst_35 = arith.constant 0.000000e+00 : f32
    %91 = vector.broadcast %cst_35 : f32 to vector<1x128xf32>
    %92 = arith.maximumf %90, %91 : vector<1x128xf32>
    %93 = vector.extract_strided_slice %51 {offsets = [0, 0], sizes = [1, 128], strides = [1, 1]} : vector<4x128xf32> to vector<1x128xf32>
    %94 = vector.extract_strided_slice %51 {offsets = [1, 0], sizes = [1, 128], strides = [1, 1]} : vector<4x128xf32> to vector<1x128xf32>
    %95 = vector.extract_strided_slice %51 {offsets = [2, 0], sizes = [1, 128], strides = [1, 1]} : vector<4x128xf32> to vector<1x128xf32>
    %96 = vector.extract_strided_slice %51 {offsets = [3, 0], sizes = [1, 128], strides = [1, 1]} : vector<4x128xf32> to vector<1x128xf32>
    %cst_36 = arith.constant 9.99999974E-6 : f32
    %97 = vector.broadcast %cst_36 : f32 to vector<1x128xf32>
    %98 = arith.addf %88, %97 : vector<1x128xf32>
    %99 = math.rsqrt %98 : vector<1x128xf32>
    %100 = arith.mulf %93, %99 : vector<1x128xf32>
    %cst_37 = arith.constant 9.99999974E-6 : f32
    %101 = vector.broadcast %cst_37 : f32 to vector<1x128xf32>
    %102 = arith.addf %92, %101 : vector<1x128xf32>
    %103 = math.rsqrt %102 : vector<1x128xf32>
    %104 = arith.mulf %95, %103 : vector<1x128xf32>
    %105 = vector.broadcast %100 : vector<1x128xf32> to vector<16x128xf32>
    %106 = arith.mulf %67, %105 : vector<16x128xf32>
    %107 = arith.mulf %81, %100 : vector<1x128xf32>
    %108 = arith.subf %94, %107 : vector<1x128xf32>
    %109 = vector.broadcast %108 : vector<1x128xf32> to vector<16x128xf32>
    %110 = arith.addf %106, %109 : vector<16x128xf32>
    %111 = vector.broadcast %104 : vector<1x128xf32> to vector<16x128xf32>
    %112 = arith.mulf %68, %111 : vector<16x128xf32>
    %113 = arith.mulf %83, %104 : vector<1x128xf32>
    %114 = arith.subf %96, %113 : vector<1x128xf32>
    %115 = vector.broadcast %114 : vector<1x128xf32> to vector<16x128xf32>
    %116 = arith.addf %112, %115 : vector<16x128xf32>
    %117 = arith.negf %116 : vector<16x128xf32>
    %118 = math.exp %117 : vector<16x128xf32>
    %cst_38 = arith.constant 1.000000e+00 : f32
    %119 = vector.broadcast %cst_38 : f32 to vector<16x128xf32>
    %120 = arith.addf %119, %118 : vector<16x128xf32>
    %121 = arith.divf %119, %120 : vector<16x128xf32>
    %122 = arith.mulf %110, %121 : vector<16x128xf32>
    %c0_39 = arith.constant 0 : index
    %c256 = arith.constant 256 : index
    %123 = vector.load %arg7[%c0_39, %c256] : memref<384x1024xbf16, #tpu.memory_space<vmem>>, vector<384x256xbf16>
    %c0_40 = arith.constant 0 : index
    %c128 = arith.constant 128 : index
    %124 = vector.load %arg8[%c0_40, %c128] : memref<128x512xf32, #tpu.memory_space<vmem>>, vector<128x128xf32>
    %c0_41 = arith.constant 0 : index
    %c128_42 = arith.constant 128 : index
    %125 = vector.load %arg9[%c0_41, %c128_42] : memref<4x768xf32, #tpu.memory_space<vmem>>, vector<4x128xf32>
    %126 = arith.truncf %122 : vector<16x128xf32> to vector<16x128xbf16>
    %c0_43 = arith.constant 0 : index
    %c0_44 = arith.constant 0 : index
    %c0_45 = arith.constant 0 : index
    %127 = vector.load %arg4[%c0_43, %c0_44, %c0_45] : memref<3x32x16xbf16, #tpu.memory_space<vmem>>, vector<1x32x16xbf16>
    %128 = vector.shape_cast %127 : vector<1x32x16xbf16> to vector<32x16xbf16>
    %cst_46 = arith.constant dense<0.000000e+00> : vector<32x128xf32>
    %129 = tpu.matmul %128, %126, %cst_46 {dimension_numbers = #tpu.dot_dimension_numbers<[1], [0], [0], [1], [0, 0, 1, 1], [], []>} : vector<32x16xbf16>, vector<16x128xbf16>, vector<32x128xf32> -> vector<32x128xf32>
    %130 = arith.truncf %129 : vector<32x128xf32> to vector<32x128xbf16>
    %c1_47 = arith.constant 1 : index
    %c0_48 = arith.constant 0 : index
    %c0_49 = arith.constant 0 : index
    %131 = vector.load %arg4[%c1_47, %c0_48, %c0_49] : memref<3x32x16xbf16, #tpu.memory_space<vmem>>, vector<1x32x16xbf16>
    %132 = vector.shape_cast %131 : vector<1x32x16xbf16> to vector<32x16xbf16>
    %cst_50 = arith.constant dense<0.000000e+00> : vector<32x128xf32>
    %133 = tpu.matmul %132, %126, %cst_50 {dimension_numbers = #tpu.dot_dimension_numbers<[1], [0], [0], [1], [0, 0, 1, 1], [], []>} : vector<32x16xbf16>, vector<16x128xbf16>, vector<32x128xf32> -> vector<32x128xf32>
    %134 = arith.truncf %133 : vector<32x128xf32> to vector<32x128xbf16>
    %c2_51 = arith.constant 2 : index
    %c0_52 = arith.constant 0 : index
    %c0_53 = arith.constant 0 : index
    %135 = vector.load %arg4[%c2_51, %c0_52, %c0_53] : memref<3x32x16xbf16, #tpu.memory_space<vmem>>, vector<1x32x16xbf16>
    %136 = vector.shape_cast %135 : vector<1x32x16xbf16> to vector<32x16xbf16>
    %cst_54 = arith.constant dense<0.000000e+00> : vector<32x128xf32>
    %137 = tpu.matmul %136, %126, %cst_54 {dimension_numbers = #tpu.dot_dimension_numbers<[1], [0], [0], [1], [0, 0, 1, 1], [], []>} : vector<32x16xbf16>, vector<16x128xbf16>, vector<32x128xf32> -> vector<32x128xf32>
    %138 = arith.truncf %137 : vector<32x128xf32> to vector<32x128xbf16>
    %139 = tpu.concatenate %130, %134, %138 in 1 : vector<32x128xbf16>, vector<32x128xbf16>, vector<32x128xbf16> -> vector<32x384xbf16>
    %cst_55 = arith.constant dense<0.000000e+00> : vector<32x256xf32>
    %140 = tpu.matmul %139, %123, %cst_55 {dimension_numbers = #tpu.dot_dimension_numbers<[1], [0], [0], [1], [0, 0, 1, 1], [], []>} : vector<32x384xbf16>, vector<384x256xbf16>, vector<32x256xf32> -> vector<32x256xf32>
    %141 = vector.extract_strided_slice %140 {offsets = [0, 0], sizes = [32, 128], strides = [1, 1]} : vector<32x256xf32> to vector<32x128xf32>
    %142 = vector.extract_strided_slice %140 {offsets = [0, 128], sizes = [32, 128], strides = [1, 1]} : vector<32x256xf32> to vector<32x128xf32>
    %cst_56 = arith.constant dense<0.000000e+00> : vector<128xf32>
    %143 = vector.multi_reduction <add>, %141, %cst_56 [0] : vector<32x128xf32> to vector<128xf32>
    %144 = vector.shape_cast %143 : vector<128xf32> to vector<1x128xf32>
    %145 = arith.mulf %141, %141 : vector<32x128xf32>
    %cst_57 = arith.constant dense<0.000000e+00> : vector<128xf32>
    %146 = vector.multi_reduction <add>, %145, %cst_57 [0] : vector<32x128xf32> to vector<128xf32>
    %147 = vector.shape_cast %146 : vector<128xf32> to vector<1x128xf32>
    %cst_58 = arith.constant dense<0.000000e+00> : vector<128xf32>
    %148 = vector.multi_reduction <add>, %142, %cst_58 [0] : vector<32x128xf32> to vector<128xf32>
    %149 = vector.shape_cast %148 : vector<128xf32> to vector<1x128xf32>
    %150 = arith.mulf %142, %142 : vector<32x128xf32>
    %cst_59 = arith.constant dense<0.000000e+00> : vector<128xf32>
    %151 = vector.multi_reduction <add>, %150, %cst_59 [0] : vector<32x128xf32> to vector<128xf32>
    %152 = vector.shape_cast %151 : vector<128xf32> to vector<1x128xf32>
    %153 = tpu.concatenate %144, %147, %149, %152 in 0 : vector<1x128xf32>, vector<1x128xf32>, vector<1x128xf32>, vector<1x128xf32> -> vector<4x128xf32>
    %cst_60 = arith.constant dense<0.000000e+00> : vector<4x128xf32>
    %154 = tpu.matmul %153, %124, %cst_60 {dimension_numbers = #tpu.dot_dimension_numbers<[1], [0], [0], [1], [0, 0, 1, 1], [], []>} : vector<4x128xf32>, vector<128x128xf32>, vector<4x128xf32> -> vector<4x128xf32>
    %155 = vector.extract_strided_slice %154 {offsets = [0, 0], sizes = [1, 128], strides = [1, 1]} : vector<4x128xf32> to vector<1x128xf32>
    %156 = vector.extract_strided_slice %154 {offsets = [1, 0], sizes = [1, 128], strides = [1, 1]} : vector<4x128xf32> to vector<1x128xf32>
    %157 = vector.extract_strided_slice %154 {offsets = [2, 0], sizes = [1, 128], strides = [1, 1]} : vector<4x128xf32> to vector<1x128xf32>
    %158 = vector.extract_strided_slice %154 {offsets = [3, 0], sizes = [1, 128], strides = [1, 1]} : vector<4x128xf32> to vector<1x128xf32>
    %159 = arith.mulf %155, %155 : vector<1x128xf32>
    %160 = arith.subf %156, %159 : vector<1x128xf32>
    %cst_61 = arith.constant 0.000000e+00 : f32
    %161 = vector.broadcast %cst_61 : f32 to vector<1x128xf32>
    %162 = arith.maximumf %160, %161 : vector<1x128xf32>
    %163 = arith.mulf %157, %157 : vector<1x128xf32>
    %164 = arith.subf %158, %163 : vector<1x128xf32>
    %cst_62 = arith.constant 0.000000e+00 : f32
    %165 = vector.broadcast %cst_62 : f32 to vector<1x128xf32>
    %166 = arith.maximumf %164, %165 : vector<1x128xf32>
    %167 = vector.extract_strided_slice %125 {offsets = [0, 0], sizes = [1, 128], strides = [1, 1]} : vector<4x128xf32> to vector<1x128xf32>
    %168 = vector.extract_strided_slice %125 {offsets = [1, 0], sizes = [1, 128], strides = [1, 1]} : vector<4x128xf32> to vector<1x128xf32>
    %169 = vector.extract_strided_slice %125 {offsets = [2, 0], sizes = [1, 128], strides = [1, 1]} : vector<4x128xf32> to vector<1x128xf32>
    %170 = vector.extract_strided_slice %125 {offsets = [3, 0], sizes = [1, 128], strides = [1, 1]} : vector<4x128xf32> to vector<1x128xf32>
    %cst_63 = arith.constant 9.99999974E-6 : f32
    %171 = vector.broadcast %cst_63 : f32 to vector<1x128xf32>
    %172 = arith.addf %162, %171 : vector<1x128xf32>
    %173 = math.rsqrt %172 : vector<1x128xf32>
    %174 = arith.mulf %167, %173 : vector<1x128xf32>
    %cst_64 = arith.constant 9.99999974E-6 : f32
    %175 = vector.broadcast %cst_64 : f32 to vector<1x128xf32>
    %176 = arith.addf %166, %175 : vector<1x128xf32>
    %177 = math.rsqrt %176 : vector<1x128xf32>
    %178 = arith.mulf %169, %177 : vector<1x128xf32>
    %179 = vector.broadcast %174 : vector<1x128xf32> to vector<32x128xf32>
    %180 = arith.mulf %141, %179 : vector<32x128xf32>
    %181 = arith.mulf %155, %174 : vector<1x128xf32>
    %182 = arith.subf %168, %181 : vector<1x128xf32>
    %183 = vector.broadcast %182 : vector<1x128xf32> to vector<32x128xf32>
    %184 = arith.addf %180, %183 : vector<32x128xf32>
    %185 = vector.broadcast %178 : vector<1x128xf32> to vector<32x128xf32>
    %186 = arith.mulf %142, %185 : vector<32x128xf32>
    %187 = arith.mulf %157, %178 : vector<1x128xf32>
    %188 = arith.subf %170, %187 : vector<1x128xf32>
    %189 = vector.broadcast %188 : vector<1x128xf32> to vector<32x128xf32>
    %190 = arith.addf %186, %189 : vector<32x128xf32>
    %191 = arith.negf %190 : vector<32x128xf32>
    %192 = math.exp %191 : vector<32x128xf32>
    %cst_65 = arith.constant 1.000000e+00 : f32
    %193 = vector.broadcast %cst_65 : f32 to vector<32x128xf32>
    %194 = arith.addf %193, %192 : vector<32x128xf32>
    %195 = arith.divf %193, %194 : vector<32x128xf32>
    %196 = arith.mulf %184, %195 : vector<32x128xf32>
    %c0_66 = arith.constant 0 : index
    %c512 = arith.constant 512 : index
    %197 = vector.load %arg7[%c0_66, %c512] : memref<384x1024xbf16, #tpu.memory_space<vmem>>, vector<384x256xbf16>
    %c0_67 = arith.constant 0 : index
    %c256_68 = arith.constant 256 : index
    %198 = vector.load %arg8[%c0_67, %c256_68] : memref<128x512xf32, #tpu.memory_space<vmem>>, vector<128x128xf32>
    %c0_69 = arith.constant 0 : index
    %c256_70 = arith.constant 256 : index
    %199 = vector.load %arg9[%c0_69, %c256_70] : memref<4x768xf32, #tpu.memory_space<vmem>>, vector<4x128xf32>
    %200 = arith.truncf %196 : vector<32x128xf32> to vector<32x128xbf16>
    %c0_71 = arith.constant 0 : index
    %c0_72 = arith.constant 0 : index
    %c0_73 = arith.constant 0 : index
    %201 = vector.load %arg5[%c0_71, %c0_72, %c0_73] : memref<3x64x32xbf16, #tpu.memory_space<vmem>>, vector<1x64x32xbf16>
    %202 = vector.shape_cast %201 : vector<1x64x32xbf16> to vector<64x32xbf16>
    %cst_74 = arith.constant dense<0.000000e+00> : vector<64x128xf32>
    %203 = tpu.matmul %202, %200, %cst_74 {dimension_numbers = #tpu.dot_dimension_numbers<[1], [0], [0], [1], [0, 0, 1, 1], [], []>} : vector<64x32xbf16>, vector<32x128xbf16>, vector<64x128xf32> -> vector<64x128xf32>
    %204 = arith.truncf %203 : vector<64x128xf32> to vector<64x128xbf16>
    %c1_75 = arith.constant 1 : index
    %c0_76 = arith.constant 0 : index
    %c0_77 = arith.constant 0 : index
    %205 = vector.load %arg5[%c1_75, %c0_76, %c0_77] : memref<3x64x32xbf16, #tpu.memory_space<vmem>>, vector<1x64x32xbf16>
    %206 = vector.shape_cast %205 : vector<1x64x32xbf16> to vector<64x32xbf16>
    %cst_78 = arith.constant dense<0.000000e+00> : vector<64x128xf32>
    %207 = tpu.matmul %206, %200, %cst_78 {dimension_numbers = #tpu.dot_dimension_numbers<[1], [0], [0], [1], [0, 0, 1, 1], [], []>} : vector<64x32xbf16>, vector<32x128xbf16>, vector<64x128xf32> -> vector<64x128xf32>
    %208 = arith.truncf %207 : vector<64x128xf32> to vector<64x128xbf16>
    %c2_79 = arith.constant 2 : index
    %c0_80 = arith.constant 0 : index
    %c0_81 = arith.constant 0 : index
    %209 = vector.load %arg5[%c2_79, %c0_80, %c0_81] : memref<3x64x32xbf16, #tpu.memory_space<vmem>>, vector<1x64x32xbf16>
    %210 = vector.shape_cast %209 : vector<1x64x32xbf16> to vector<64x32xbf16>
    %cst_82 = arith.constant dense<0.000000e+00> : vector<64x128xf32>
    %211 = tpu.matmul %210, %200, %cst_82 {dimension_numbers = #tpu.dot_dimension_numbers<[1], [0], [0], [1], [0, 0, 1, 1], [], []>} : vector<64x32xbf16>, vector<32x128xbf16>, vector<64x128xf32> -> vector<64x128xf32>
    %212 = arith.truncf %211 : vector<64x128xf32> to vector<64x128xbf16>
    %213 = tpu.concatenate %204, %208, %212 in 1 : vector<64x128xbf16>, vector<64x128xbf16>, vector<64x128xbf16> -> vector<64x384xbf16>
    %cst_83 = arith.constant dense<0.000000e+00> : vector<64x256xf32>
    %214 = tpu.matmul %213, %197, %cst_83 {dimension_numbers = #tpu.dot_dimension_numbers<[1], [0], [0], [1], [0, 0, 1, 1], [], []>} : vector<64x384xbf16>, vector<384x256xbf16>, vector<64x256xf32> -> vector<64x256xf32>
    %215 = vector.extract_strided_slice %214 {offsets = [0, 0], sizes = [64, 128], strides = [1, 1]} : vector<64x256xf32> to vector<64x128xf32>
    %216 = vector.extract_strided_slice %214 {offsets = [0, 128], sizes = [64, 128], strides = [1, 1]} : vector<64x256xf32> to vector<64x128xf32>
    %cst_84 = arith.constant dense<0.000000e+00> : vector<128xf32>
    %217 = vector.multi_reduction <add>, %215, %cst_84 [0] : vector<64x128xf32> to vector<128xf32>
    %218 = vector.shape_cast %217 : vector<128xf32> to vector<1x128xf32>
    %219 = arith.mulf %215, %215 : vector<64x128xf32>
    %cst_85 = arith.constant dense<0.000000e+00> : vector<128xf32>
    %220 = vector.multi_reduction <add>, %219, %cst_85 [0] : vector<64x128xf32> to vector<128xf32>
    %221 = vector.shape_cast %220 : vector<128xf32> to vector<1x128xf32>
    %cst_86 = arith.constant dense<0.000000e+00> : vector<128xf32>
    %222 = vector.multi_reduction <add>, %216, %cst_86 [0] : vector<64x128xf32> to vector<128xf32>
    %223 = vector.shape_cast %222 : vector<128xf32> to vector<1x128xf32>
    %224 = arith.mulf %216, %216 : vector<64x128xf32>
    %cst_87 = arith.constant dense<0.000000e+00> : vector<128xf32>
    %225 = vector.multi_reduction <add>, %224, %cst_87 [0] : vector<64x128xf32> to vector<128xf32>
    %226 = vector.shape_cast %225 : vector<128xf32> to vector<1x128xf32>
    %227 = tpu.concatenate %218, %221, %223, %226 in 0 : vector<1x128xf32>, vector<1x128xf32>, vector<1x128xf32>, vector<1x128xf32> -> vector<4x128xf32>
    %cst_88 = arith.constant dense<0.000000e+00> : vector<4x128xf32>
    %228 = tpu.matmul %227, %198, %cst_88 {dimension_numbers = #tpu.dot_dimension_numbers<[1], [0], [0], [1], [0, 0, 1, 1], [], []>} : vector<4x128xf32>, vector<128x128xf32>, vector<4x128xf32> -> vector<4x128xf32>
    %229 = vector.extract_strided_slice %228 {offsets = [0, 0], sizes = [1, 128], strides = [1, 1]} : vector<4x128xf32> to vector<1x128xf32>
    %230 = vector.extract_strided_slice %228 {offsets = [1, 0], sizes = [1, 128], strides = [1, 1]} : vector<4x128xf32> to vector<1x128xf32>
    %231 = vector.extract_strided_slice %228 {offsets = [2, 0], sizes = [1, 128], strides = [1, 1]} : vector<4x128xf32> to vector<1x128xf32>
    %232 = vector.extract_strided_slice %228 {offsets = [3, 0], sizes = [1, 128], strides = [1, 1]} : vector<4x128xf32> to vector<1x128xf32>
    %233 = arith.mulf %229, %229 : vector<1x128xf32>
    %234 = arith.subf %230, %233 : vector<1x128xf32>
    %cst_89 = arith.constant 0.000000e+00 : f32
    %235 = vector.broadcast %cst_89 : f32 to vector<1x128xf32>
    %236 = arith.maximumf %234, %235 : vector<1x128xf32>
    %237 = arith.mulf %231, %231 : vector<1x128xf32>
    %238 = arith.subf %232, %237 : vector<1x128xf32>
    %cst_90 = arith.constant 0.000000e+00 : f32
    %239 = vector.broadcast %cst_90 : f32 to vector<1x128xf32>
    %240 = arith.maximumf %238, %239 : vector<1x128xf32>
    %241 = vector.extract_strided_slice %199 {offsets = [0, 0], sizes = [1, 128], strides = [1, 1]} : vector<4x128xf32> to vector<1x128xf32>
    %242 = vector.extract_strided_slice %199 {offsets = [1, 0], sizes = [1, 128], strides = [1, 1]} : vector<4x128xf32> to vector<1x128xf32>
    %243 = vector.extract_strided_slice %199 {offsets = [2, 0], sizes = [1, 128], strides = [1, 1]} : vector<4x128xf32> to vector<1x128xf32>
    %244 = vector.extract_strided_slice %199 {offsets = [3, 0], sizes = [1, 128], strides = [1, 1]} : vector<4x128xf32> to vector<1x128xf32>
    %cst_91 = arith.constant 9.99999974E-6 : f32
    %245 = vector.broadcast %cst_91 : f32 to vector<1x128xf32>
    %246 = arith.addf %236, %245 : vector<1x128xf32>
    %247 = math.rsqrt %246 : vector<1x128xf32>
    %248 = arith.mulf %241, %247 : vector<1x128xf32>
    %cst_92 = arith.constant 9.99999974E-6 : f32
    %249 = vector.broadcast %cst_92 : f32 to vector<1x128xf32>
    %250 = arith.addf %240, %249 : vector<1x128xf32>
    %251 = math.rsqrt %250 : vector<1x128xf32>
    %252 = arith.mulf %243, %251 : vector<1x128xf32>
    %253 = vector.broadcast %248 : vector<1x128xf32> to vector<64x128xf32>
    %254 = arith.mulf %215, %253 : vector<64x128xf32>
    %255 = arith.mulf %229, %248 : vector<1x128xf32>
    %256 = arith.subf %242, %255 : vector<1x128xf32>
    %257 = vector.broadcast %256 : vector<1x128xf32> to vector<64x128xf32>
    %258 = arith.addf %254, %257 : vector<64x128xf32>
    %259 = vector.broadcast %252 : vector<1x128xf32> to vector<64x128xf32>
    %260 = arith.mulf %216, %259 : vector<64x128xf32>
    %261 = arith.mulf %231, %252 : vector<1x128xf32>
    %262 = arith.subf %244, %261 : vector<1x128xf32>
    %263 = vector.broadcast %262 : vector<1x128xf32> to vector<64x128xf32>
    %264 = arith.addf %260, %263 : vector<64x128xf32>
    %265 = arith.negf %264 : vector<64x128xf32>
    %266 = math.exp %265 : vector<64x128xf32>
    %cst_93 = arith.constant 1.000000e+00 : f32
    %267 = vector.broadcast %cst_93 : f32 to vector<64x128xf32>
    %268 = arith.addf %267, %266 : vector<64x128xf32>
    %269 = arith.divf %267, %268 : vector<64x128xf32>
    %270 = arith.mulf %258, %269 : vector<64x128xf32>
    %c0_94 = arith.constant 0 : index
    %c768 = arith.constant 768 : index
    %271 = vector.load %arg7[%c0_94, %c768] : memref<384x1024xbf16, #tpu.memory_space<vmem>>, vector<384x256xbf16>
    %c0_95 = arith.constant 0 : index
    %c384 = arith.constant 384 : index
    %272 = vector.load %arg8[%c0_95, %c384] : memref<128x512xf32, #tpu.memory_space<vmem>>, vector<128x128xf32>
    %c0_96 = arith.constant 0 : index
    %c384_97 = arith.constant 384 : index
    %273 = vector.load %arg9[%c0_96, %c384_97] : memref<4x768xf32, #tpu.memory_space<vmem>>, vector<4x128xf32>
    %274 = arith.truncf %270 : vector<64x128xf32> to vector<64x128xbf16>
    %c0_98 = arith.constant 0 : index
    %c0_99 = arith.constant 0 : index
    %c0_100 = arith.constant 0 : index
    %275 = vector.load %arg6[%c0_98, %c0_99, %c0_100] : memref<3x128x64xbf16, #tpu.memory_space<vmem>>, vector<1x128x64xbf16>
    %276 = vector.shape_cast %275 : vector<1x128x64xbf16> to vector<128x64xbf16>
    %cst_101 = arith.constant dense<0.000000e+00> : vector<128x128xf32>
    %277 = tpu.matmul %276, %274, %cst_101 {dimension_numbers = #tpu.dot_dimension_numbers<[1], [0], [0], [1], [0, 0, 1, 1], [], []>} : vector<128x64xbf16>, vector<64x128xbf16>, vector<128x128xf32> -> vector<128x128xf32>
    %278 = arith.truncf %277 : vector<128x128xf32> to vector<128x128xbf16>
    %c1_102 = arith.constant 1 : index
    %c0_103 = arith.constant 0 : index
    %c0_104 = arith.constant 0 : index
    %279 = vector.load %arg6[%c1_102, %c0_103, %c0_104] : memref<3x128x64xbf16, #tpu.memory_space<vmem>>, vector<1x128x64xbf16>
    %280 = vector.shape_cast %279 : vector<1x128x64xbf16> to vector<128x64xbf16>
    %cst_105 = arith.constant dense<0.000000e+00> : vector<128x128xf32>
    %281 = tpu.matmul %280, %274, %cst_105 {dimension_numbers = #tpu.dot_dimension_numbers<[1], [0], [0], [1], [0, 0, 1, 1], [], []>} : vector<128x64xbf16>, vector<64x128xbf16>, vector<128x128xf32> -> vector<128x128xf32>
    %282 = arith.truncf %281 : vector<128x128xf32> to vector<128x128xbf16>
    %c2_106 = arith.constant 2 : index
    %c0_107 = arith.constant 0 : index
    %c0_108 = arith.constant 0 : index
    %283 = vector.load %arg6[%c2_106, %c0_107, %c0_108] : memref<3x128x64xbf16, #tpu.memory_space<vmem>>, vector<1x128x64xbf16>
    %284 = vector.shape_cast %283 : vector<1x128x64xbf16> to vector<128x64xbf16>
    %cst_109 = arith.constant dense<0.000000e+00> : vector<128x128xf32>
    %285 = tpu.matmul %284, %274, %cst_109 {dimension_numbers = #tpu.dot_dimension_numbers<[1], [0], [0], [1], [0, 0, 1, 1], [], []>} : vector<128x64xbf16>, vector<64x128xbf16>, vector<128x128xf32> -> vector<128x128xf32>
    %286 = arith.truncf %285 : vector<128x128xf32> to vector<128x128xbf16>
    %287 = tpu.concatenate %278, %282, %286 in 1 : vector<128x128xbf16>, vector<128x128xbf16>, vector<128x128xbf16> -> vector<128x384xbf16>
    %cst_110 = arith.constant dense<0.000000e+00> : vector<128x256xf32>
    %288 = tpu.matmul %287, %271, %cst_110 {dimension_numbers = #tpu.dot_dimension_numbers<[1], [0], [0], [1], [0, 0, 1, 1], [], []>} : vector<128x384xbf16>, vector<384x256xbf16>, vector<128x256xf32> -> vector<128x256xf32>
    %289 = vector.extract_strided_slice %288 {offsets = [0, 0], sizes = [128, 128], strides = [1, 1]} : vector<128x256xf32> to vector<128x128xf32>
    %290 = vector.extract_strided_slice %288 {offsets = [0, 128], sizes = [128, 128], strides = [1, 1]} : vector<128x256xf32> to vector<128x128xf32>
    %cst_111 = arith.constant dense<0.000000e+00> : vector<128xf32>
    %291 = vector.multi_reduction <add>, %289, %cst_111 [0] : vector<128x128xf32> to vector<128xf32>
    %292 = vector.shape_cast %291 : vector<128xf32> to vector<1x128xf32>
    %293 = arith.mulf %289, %289 : vector<128x128xf32>
    %cst_112 = arith.constant dense<0.000000e+00> : vector<128xf32>
    %294 = vector.multi_reduction <add>, %293, %cst_112 [0] : vector<128x128xf32> to vector<128xf32>
    %295 = vector.shape_cast %294 : vector<128xf32> to vector<1x128xf32>
    %cst_113 = arith.constant dense<0.000000e+00> : vector<128xf32>
    %296 = vector.multi_reduction <add>, %290, %cst_113 [0] : vector<128x128xf32> to vector<128xf32>
    %297 = vector.shape_cast %296 : vector<128xf32> to vector<1x128xf32>
    %298 = arith.mulf %290, %290 : vector<128x128xf32>
    %cst_114 = arith.constant dense<0.000000e+00> : vector<128xf32>
    %299 = vector.multi_reduction <add>, %298, %cst_114 [0] : vector<128x128xf32> to vector<128xf32>
    %300 = vector.shape_cast %299 : vector<128xf32> to vector<1x128xf32>
    %301 = tpu.concatenate %292, %295, %297, %300 in 0 : vector<1x128xf32>, vector<1x128xf32>, vector<1x128xf32>, vector<1x128xf32> -> vector<4x128xf32>
    %cst_115 = arith.constant dense<0.000000e+00> : vector<4x128xf32>
    %302 = tpu.matmul %301, %272, %cst_115 {dimension_numbers = #tpu.dot_dimension_numbers<[1], [0], [0], [1], [0, 0, 1, 1], [], []>} : vector<4x128xf32>, vector<128x128xf32>, vector<4x128xf32> -> vector<4x128xf32>
    %303 = vector.extract_strided_slice %302 {offsets = [0, 0], sizes = [1, 128], strides = [1, 1]} : vector<4x128xf32> to vector<1x128xf32>
    %304 = vector.extract_strided_slice %302 {offsets = [1, 0], sizes = [1, 128], strides = [1, 1]} : vector<4x128xf32> to vector<1x128xf32>
    %305 = vector.extract_strided_slice %302 {offsets = [2, 0], sizes = [1, 128], strides = [1, 1]} : vector<4x128xf32> to vector<1x128xf32>
    %306 = vector.extract_strided_slice %302 {offsets = [3, 0], sizes = [1, 128], strides = [1, 1]} : vector<4x128xf32> to vector<1x128xf32>
    %307 = arith.mulf %303, %303 : vector<1x128xf32>
    %308 = arith.subf %304, %307 : vector<1x128xf32>
    %cst_116 = arith.constant 0.000000e+00 : f32
    %309 = vector.broadcast %cst_116 : f32 to vector<1x128xf32>
    %310 = arith.maximumf %308, %309 : vector<1x128xf32>
    %311 = arith.mulf %305, %305 : vector<1x128xf32>
    %312 = arith.subf %306, %311 : vector<1x128xf32>
    %cst_117 = arith.constant 0.000000e+00 : f32
    %313 = vector.broadcast %cst_117 : f32 to vector<1x128xf32>
    %314 = arith.maximumf %312, %313 : vector<1x128xf32>
    %315 = vector.extract_strided_slice %273 {offsets = [0, 0], sizes = [1, 128], strides = [1, 1]} : vector<4x128xf32> to vector<1x128xf32>
    %316 = vector.extract_strided_slice %273 {offsets = [1, 0], sizes = [1, 128], strides = [1, 1]} : vector<4x128xf32> to vector<1x128xf32>
    %317 = vector.extract_strided_slice %273 {offsets = [2, 0], sizes = [1, 128], strides = [1, 1]} : vector<4x128xf32> to vector<1x128xf32>
    %318 = vector.extract_strided_slice %273 {offsets = [3, 0], sizes = [1, 128], strides = [1, 1]} : vector<4x128xf32> to vector<1x128xf32>
    %cst_118 = arith.constant 9.99999974E-6 : f32
    %319 = vector.broadcast %cst_118 : f32 to vector<1x128xf32>
    %320 = arith.addf %310, %319 : vector<1x128xf32>
    %321 = math.rsqrt %320 : vector<1x128xf32>
    %322 = arith.mulf %315, %321 : vector<1x128xf32>
    %cst_119 = arith.constant 9.99999974E-6 : f32
    %323 = vector.broadcast %cst_119 : f32 to vector<1x128xf32>
    %324 = arith.addf %314, %323 : vector<1x128xf32>
    %325 = math.rsqrt %324 : vector<1x128xf32>
    %326 = arith.mulf %317, %325 : vector<1x128xf32>
    %327 = vector.broadcast %322 : vector<1x128xf32> to vector<128x128xf32>
    %328 = arith.mulf %289, %327 : vector<128x128xf32>
    %329 = arith.mulf %303, %322 : vector<1x128xf32>
    %330 = arith.subf %316, %329 : vector<1x128xf32>
    %331 = vector.broadcast %330 : vector<1x128xf32> to vector<128x128xf32>
    %332 = arith.addf %328, %331 : vector<128x128xf32>
    %333 = vector.broadcast %326 : vector<1x128xf32> to vector<128x128xf32>
    %334 = arith.mulf %290, %333 : vector<128x128xf32>
    %335 = arith.mulf %305, %326 : vector<1x128xf32>
    %336 = arith.subf %318, %335 : vector<1x128xf32>
    %337 = vector.broadcast %336 : vector<1x128xf32> to vector<128x128xf32>
    %338 = arith.addf %334, %337 : vector<128x128xf32>
    %339 = arith.negf %338 : vector<128x128xf32>
    %340 = math.exp %339 : vector<128x128xf32>
    %cst_120 = arith.constant 1.000000e+00 : f32
    %341 = vector.broadcast %cst_120 : f32 to vector<128x128xf32>
    %342 = arith.addf %341, %340 : vector<128x128xf32>
    %343 = arith.divf %341, %342 : vector<128x128xf32>
    %344 = arith.mulf %332, %343 : vector<128x128xf32>
    %c0_i32_121 = arith.constant 0 : i32
    %345 = tpu.memref_slice %arg17[%c0_i32_121] : memref<3x!tpu.dma_semaphore, #tpu.memory_space<semaphore_mem>> -> memref<1x!tpu.dma_semaphore, #tpu.memory_space<semaphore_mem>>
    %346 = tpu.memref_squeeze %345 : memref<1x!tpu.dma_semaphore, #tpu.memory_space<semaphore_mem>> -> memref<!tpu.dma_semaphore, #tpu.memory_space<semaphore_mem>>
    tpu.wait_dma2 semaphore(%346 : memref<!tpu.dma_semaphore, #tpu.memory_space<semaphore_mem>>) src(%arg10 : memref<3x256x128xbf16, #tpu.memory_space<any>>) dst(%arg14 : memref<3x256x128xbf16, #tpu.memory_space<vmem>>)
    %c1_i32_122 = arith.constant 1 : i32
    %347 = tpu.memref_slice %arg17[%c1_i32_122] : memref<3x!tpu.dma_semaphore, #tpu.memory_space<semaphore_mem>> -> memref<1x!tpu.dma_semaphore, #tpu.memory_space<semaphore_mem>>
    %348 = tpu.memref_squeeze %347 : memref<1x!tpu.dma_semaphore, #tpu.memory_space<semaphore_mem>> -> memref<!tpu.dma_semaphore, #tpu.memory_space<semaphore_mem>>
    tpu.wait_dma2 semaphore(%348 : memref<!tpu.dma_semaphore, #tpu.memory_space<semaphore_mem>>) src(%arg11 : memref<384x512xbf16, #tpu.memory_space<any>>) dst(%arg15 : memref<384x512xbf16, #tpu.memory_space<vmem>>)
    %c2_i32_123 = arith.constant 2 : i32
    %349 = tpu.memref_slice %arg17[%c2_i32_123] : memref<3x!tpu.dma_semaphore, #tpu.memory_space<semaphore_mem>> -> memref<1x!tpu.dma_semaphore, #tpu.memory_space<semaphore_mem>>
    %350 = tpu.memref_squeeze %349 : memref<1x!tpu.dma_semaphore, #tpu.memory_space<semaphore_mem>> -> memref<!tpu.dma_semaphore, #tpu.memory_space<semaphore_mem>>
    tpu.wait_dma2 semaphore(%350 : memref<!tpu.dma_semaphore, #tpu.memory_space<semaphore_mem>>) src(%arg12 : memref<256x256xf32, #tpu.memory_space<any>>) dst(%arg16 : memref<256x256xf32, #tpu.memory_space<vmem>>)
    %c0_124 = arith.constant 0 : index
    %c0_125 = arith.constant 0 : index
    %351 = vector.load %arg15[%c0_124, %c0_125] : memref<384x512xbf16, #tpu.memory_space<vmem>>, vector<384x512xbf16>
    %c0_126 = arith.constant 0 : index
    %c0_127 = arith.constant 0 : index
    %352 = vector.load %arg16[%c0_126, %c0_127] : memref<256x256xf32, #tpu.memory_space<vmem>>, vector<256x256xf32>
    %c0_128 = arith.constant 0 : index
    %c512_129 = arith.constant 512 : index
    %353 = vector.load %arg9[%c0_128, %c512_129] : memref<4x768xf32, #tpu.memory_space<vmem>>, vector<4x256xf32>
    %354 = arith.truncf %344 : vector<128x128xf32> to vector<128x128xbf16>
    %c0_130 = arith.constant 0 : index
    %c0_131 = arith.constant 0 : index
    %c0_132 = arith.constant 0 : index
    %355 = vector.load %arg14[%c0_130, %c0_131, %c0_132] : memref<3x256x128xbf16, #tpu.memory_space<vmem>>, vector<1x256x128xbf16>
    %356 = vector.shape_cast %355 : vector<1x256x128xbf16> to vector<256x128xbf16>
    %cst_133 = arith.constant dense<0.000000e+00> : vector<256x128xf32>
    %357 = tpu.matmul %356, %354, %cst_133 {dimension_numbers = #tpu.dot_dimension_numbers<[1], [0], [0], [1], [0, 0, 1, 1], [], []>} : vector<256x128xbf16>, vector<128x128xbf16>, vector<256x128xf32> -> vector<256x128xf32>
    %358 = arith.truncf %357 : vector<256x128xf32> to vector<256x128xbf16>
    %c1_134 = arith.constant 1 : index
    %c0_135 = arith.constant 0 : index
    %c0_136 = arith.constant 0 : index
    %359 = vector.load %arg14[%c1_134, %c0_135, %c0_136] : memref<3x256x128xbf16, #tpu.memory_space<vmem>>, vector<1x256x128xbf16>
    %360 = vector.shape_cast %359 : vector<1x256x128xbf16> to vector<256x128xbf16>
    %cst_137 = arith.constant dense<0.000000e+00> : vector<256x128xf32>
    %361 = tpu.matmul %360, %354, %cst_137 {dimension_numbers = #tpu.dot_dimension_numbers<[1], [0], [0], [1], [0, 0, 1, 1], [], []>} : vector<256x128xbf16>, vector<128x128xbf16>, vector<256x128xf32> -> vector<256x128xf32>
    %362 = arith.truncf %361 : vector<256x128xf32> to vector<256x128xbf16>
    %c2_138 = arith.constant 2 : index
    %c0_139 = arith.constant 0 : index
    %c0_140 = arith.constant 0 : index
    %363 = vector.load %arg14[%c2_138, %c0_139, %c0_140] : memref<3x256x128xbf16, #tpu.memory_space<vmem>>, vector<1x256x128xbf16>
    %364 = vector.shape_cast %363 : vector<1x256x128xbf16> to vector<256x128xbf16>
    %cst_141 = arith.constant dense<0.000000e+00> : vector<256x128xf32>
    %365 = tpu.matmul %364, %354, %cst_141 {dimension_numbers = #tpu.dot_dimension_numbers<[1], [0], [0], [1], [0, 0, 1, 1], [], []>} : vector<256x128xbf16>, vector<128x128xbf16>, vector<256x128xf32> -> vector<256x128xf32>
    %366 = arith.truncf %365 : vector<256x128xf32> to vector<256x128xbf16>
    %367 = tpu.concatenate %358, %362, %366 in 1 : vector<256x128xbf16>, vector<256x128xbf16>, vector<256x128xbf16> -> vector<256x384xbf16>
    %cst_142 = arith.constant dense<0.000000e+00> : vector<256x512xf32>
    %368 = tpu.matmul %367, %351, %cst_142 {dimension_numbers = #tpu.dot_dimension_numbers<[1], [0], [0], [1], [0, 0, 1, 1], [], []>} : vector<256x384xbf16>, vector<384x512xbf16>, vector<256x512xf32> -> vector<256x512xf32>
    %369 = vector.extract_strided_slice %368 {offsets = [0, 0], sizes = [256, 256], strides = [1, 1]} : vector<256x512xf32> to vector<256x256xf32>
    %370 = vector.extract_strided_slice %368 {offsets = [0, 256], sizes = [256, 256], strides = [1, 1]} : vector<256x512xf32> to vector<256x256xf32>
    %cst_143 = arith.constant dense<0.000000e+00> : vector<256xf32>
    %371 = vector.multi_reduction <add>, %369, %cst_143 [0] : vector<256x256xf32> to vector<256xf32>
    %372 = vector.shape_cast %371 : vector<256xf32> to vector<1x256xf32>
    %373 = arith.mulf %369, %369 : vector<256x256xf32>
    %cst_144 = arith.constant dense<0.000000e+00> : vector<256xf32>
    %374 = vector.multi_reduction <add>, %373, %cst_144 [0] : vector<256x256xf32> to vector<256xf32>
    %375 = vector.shape_cast %374 : vector<256xf32> to vector<1x256xf32>
    %cst_145 = arith.constant dense<0.000000e+00> : vector<256xf32>
    %376 = vector.multi_reduction <add>, %370, %cst_145 [0] : vector<256x256xf32> to vector<256xf32>
    %377 = vector.shape_cast %376 : vector<256xf32> to vector<1x256xf32>
    %378 = arith.mulf %370, %370 : vector<256x256xf32>
    %cst_146 = arith.constant dense<0.000000e+00> : vector<256xf32>
    %379 = vector.multi_reduction <add>, %378, %cst_146 [0] : vector<256x256xf32> to vector<256xf32>
    %380 = vector.shape_cast %379 : vector<256xf32> to vector<1x256xf32>
    %381 = tpu.concatenate %372, %375, %377, %380 in 0 : vector<1x256xf32>, vector<1x256xf32>, vector<1x256xf32>, vector<1x256xf32> -> vector<4x256xf32>
    %cst_147 = arith.constant dense<0.000000e+00> : vector<4x256xf32>
    %382 = tpu.matmul %381, %352, %cst_147 {dimension_numbers = #tpu.dot_dimension_numbers<[1], [0], [0], [1], [0, 0, 1, 1], [], []>} : vector<4x256xf32>, vector<256x256xf32>, vector<4x256xf32> -> vector<4x256xf32>
    %383 = vector.extract_strided_slice %382 {offsets = [0, 0], sizes = [1, 256], strides = [1, 1]} : vector<4x256xf32> to vector<1x256xf32>
    %384 = vector.extract_strided_slice %382 {offsets = [1, 0], sizes = [1, 256], strides = [1, 1]} : vector<4x256xf32> to vector<1x256xf32>
    %385 = vector.extract_strided_slice %382 {offsets = [2, 0], sizes = [1, 256], strides = [1, 1]} : vector<4x256xf32> to vector<1x256xf32>
    %386 = vector.extract_strided_slice %382 {offsets = [3, 0], sizes = [1, 256], strides = [1, 1]} : vector<4x256xf32> to vector<1x256xf32>
    %387 = arith.mulf %383, %383 : vector<1x256xf32>
    %388 = arith.subf %384, %387 : vector<1x256xf32>
    %cst_148 = arith.constant 0.000000e+00 : f32
    %389 = vector.broadcast %cst_148 : f32 to vector<1x256xf32>
    %390 = arith.maximumf %388, %389 : vector<1x256xf32>
    %391 = arith.mulf %385, %385 : vector<1x256xf32>
    %392 = arith.subf %386, %391 : vector<1x256xf32>
    %cst_149 = arith.constant 0.000000e+00 : f32
    %393 = vector.broadcast %cst_149 : f32 to vector<1x256xf32>
    %394 = arith.maximumf %392, %393 : vector<1x256xf32>
    %395 = vector.extract_strided_slice %353 {offsets = [0, 0], sizes = [1, 256], strides = [1, 1]} : vector<4x256xf32> to vector<1x256xf32>
    %396 = vector.extract_strided_slice %353 {offsets = [1, 0], sizes = [1, 256], strides = [1, 1]} : vector<4x256xf32> to vector<1x256xf32>
    %397 = vector.extract_strided_slice %353 {offsets = [2, 0], sizes = [1, 256], strides = [1, 1]} : vector<4x256xf32> to vector<1x256xf32>
    %398 = vector.extract_strided_slice %353 {offsets = [3, 0], sizes = [1, 256], strides = [1, 1]} : vector<4x256xf32> to vector<1x256xf32>
    %cst_150 = arith.constant 9.99999974E-6 : f32
    %399 = vector.broadcast %cst_150 : f32 to vector<1x256xf32>
    %400 = arith.addf %390, %399 : vector<1x256xf32>
    %401 = math.rsqrt %400 : vector<1x256xf32>
    %402 = arith.mulf %395, %401 : vector<1x256xf32>
    %cst_151 = arith.constant 9.99999974E-6 : f32
    %403 = vector.broadcast %cst_151 : f32 to vector<1x256xf32>
    %404 = arith.addf %394, %403 : vector<1x256xf32>
    %405 = math.rsqrt %404 : vector<1x256xf32>
    %406 = arith.mulf %397, %405 : vector<1x256xf32>
    %407 = vector.broadcast %402 : vector<1x256xf32> to vector<256x256xf32>
    %408 = arith.mulf %369, %407 : vector<256x256xf32>
    %409 = arith.mulf %383, %402 : vector<1x256xf32>
    %410 = arith.subf %396, %409 : vector<1x256xf32>
    %411 = vector.broadcast %410 : vector<1x256xf32> to vector<256x256xf32>
    %412 = arith.addf %408, %411 : vector<256x256xf32>
    %413 = vector.broadcast %406 : vector<1x256xf32> to vector<256x256xf32>
    %414 = arith.mulf %370, %413 : vector<256x256xf32>
    %415 = arith.mulf %385, %406 : vector<1x256xf32>
    %416 = arith.subf %398, %415 : vector<1x256xf32>
    %417 = vector.broadcast %416 : vector<1x256xf32> to vector<256x256xf32>
    %418 = arith.addf %414, %417 : vector<256x256xf32>
    %419 = arith.negf %418 : vector<256x256xf32>
    %420 = math.exp %419 : vector<256x256xf32>
    %cst_152 = arith.constant 1.000000e+00 : f32
    %421 = vector.broadcast %cst_152 : f32 to vector<256x256xf32>
    %422 = arith.addf %421, %420 : vector<256x256xf32>
    %423 = arith.divf %421, %422 : vector<256x256xf32>
    %424 = arith.mulf %412, %423 : vector<256x256xf32>
    %c0_153 = arith.constant 0 : index
    %c0_154 = arith.constant 0 : index
    %425 = vector.load %arg13[%c0_153, %c0_154] : memref<256x256xf32, #tpu.memory_space<vmem>>, vector<256x256xf32>
    tpu.vector_store %arg13[%c0_153, %c0_154], %424 {strides = array<i32>} : memref<256x256xf32, #tpu.memory_space<vmem>>, vector<256x256xf32>,
    return
  }
}

</mosaic_0001>

<bundles_post_ra>
// kernel: init_stage_g_forward.1
= control target key start
LH: loop header
LB: loop body
LE: loop exit
PB: predicated region body
PF: predicated region fallthrough
CT: control target
= control target key end

     0   :  { %18 = vsyncpa [#allocation7], 0  ;;  %s13745_s0 = inlined_call_operand.vmem [shape: f32[2,24], index: 0, kind: input, shape index: {}]   ;;  %s13746_s1 = inlined_call_operand.hbm [shape: bf16[24,1024], index: 1, kind: input, shape index: {}]   ;;  %s13747_s2 = inlined_call_operand.hbm [shape: f32[2,1024], index: 2, kind: input, shape index: {}]   ;;  %s13748_s3 = inlined_call_operand.vmem [shape: bf16[3,16,8], index: 3, kind: input, shape index: {}]   ;;  %s13749_s4 = inlined_call_operand.vmem [shape: bf16[3,32,16], index: 4, kind: input, shape index: {}]   ;;  %s13750_s5 = inlined_call_operand.vmem [shape: bf16[3,64,32], index: 5, kind: input, shape index: {}]   ;;  %s13751_s6 = inlined_call_operand.vmem [shape: bf16[3,128,64], index: 6, kind: input, shape index: {}]   ;;  %s13752_s7 = inlined_call_operand.hbm [shape: bf16[384,1024], index: 7, kind: input, shape index: {}]   ;;  %s13753_s8 = inlined_call_operand.vmem [shape: f32[128,512], index: 8, kind: input, shape index: {}]   ;;  %s13754_s9 = inlined_call_operand.hbm [shape: f32[4,768], index: 9, kind: input, shape index: {}]   ;;  %s13755_s10 = inlined_call_operand.hbm [shape: bf16[3,256,128], index: 10, kind: input, shape index: {}]   ;;  %s13756_s11 = inlined_call_operand.hbm [shape: bf16[384,512], index: 11, kind: input, shape index: {}]   ;;  %s13757_s12 = inlined_call_operand.hbm [shape: f32[256,256], index: 12, kind: input, shape index: {}]   ;;  %s13758_s13 = inlined_call_operand.vmem [shape: f32[256,256], index: 13, kind: output, shape index: {}]  }
   0x1   :  { %19 = vsyncpa [#allocation9], 0 }
   0x2   :  { %20 = vsyncpa [#allocation12], 0  ;;  %s10022_s25 = smov [#allocation8]   ;;  %s10023_s27 = smov [#allocation6]  }
   0x3   :  { %s41_s26 = sshll.u32 %s10022_s25, 4  ;;  %s28_s28 = sshll.u32 %s10023_s27, 4  ;;  %s42_s26 = int_to_ptr.vmem [resolvable:$true] %s41_s26  ;;  %s10113_s28 = int_to_ptr.vmem [resolvable:$true] %s28_s28 }
   0x4   :  { %s9878_s14 = scalar_lea.hbm %s13747_s2, 256 }
   0x5   :  { %p9879_p0 = scmp.ne.s32.totalorder %s13747_s2, %s9878_s14  ;;  %p9882_p1 = scmp.lt.u32.totalorder %s9878_s14, %s13747_s2 }
   0x7   :  { %p9884_p2 = pnand %p9882_p1, %p9879_p0 }
   0x9   :  { %9887 = shalt.err (!%p9884_p2)
}
   0xa   :  { %s9888_s19 = scalar_lea.vmem %s42_s26, 256  ;;  %p9893_p4 = scmp.lt.s32.totalorder %s42_s26, %s42_s26 }
   0xb   :  { %p9889_p3 = scmp.ne.s32.totalorder %s42_s26, %s9888_s19  ;;  %p9894_p5 = scmp.lt.s32.totalorder %s9888_s19, %s9888_s19 }
   0xd   :  { %p9895_p6 = por %p9894_p5, %p9893_p4 }
   0xf   :  { %p9896_p7 = pnand %p9895_p6, %p9889_p3 }
  0x11   :  { %9899 = shalt.err (!%p9896_p7)
}
  0x12   :  { %44 = dma.hbm_to_vmem [thread:$0]  %s13747_s2, 256, %s42_s26, [#allocation9]  }
  0x13   :  { %s9900_s24 = scalar_lea.hbm %s13746_s1, 1536 }
  0x14   :  { %p9901_p8 = scmp.ne.s32.totalorder %s13746_s1, %s9900_s24  ;;  %p9904_p9 = scmp.lt.u32.totalorder %s9900_s24, %s13746_s1 }
  0x16   :  { %p9906_p10 = pnand %p9904_p9, %p9901_p8 }
  0x18   :  { %9909 = shalt.err (!%p9906_p10)
}
  0x19   :  { %s9910_s14 = scalar_lea.vmem %s10113_s28, 1536  ;;  %p9915_p12 = scmp.lt.s32.totalorder %s10113_s28, %s10113_s28 }
  0x1a   :  { %p9911_p11 = scmp.ne.s32.totalorder %s10113_s28, %s9910_s14  ;;  %p9916_p13 = scmp.lt.s32.totalorder %s9910_s14, %s9910_s14 }
  0x1c   :  { %p9917_p0 = por %p9916_p13, %p9915_p12 }
  0x1e   :  { %p9918_p1 = pnand %p9917_p0, %p9911_p11 }
  0x20   :  { %9921 = shalt.err (!%p9918_p1)
}
  0x21   :  { %s10024_s2 = smov 512   ;;  %s10025_s26 = smov 32  }
  0x22   :  { %34 = dma.hbm_to_vmem [thread:$0]  %s13746_s1, 1536, %s10113_s28, [#allocation7], %s10024_s2, %s10024_s2, %s10025_s26  }
  0x23   :  { %s10026_s17 = smov [#allocation10]   ;;  %s10027_s19 = smov [#allocation11]  }
  0x24   :  { %s58_s18 = sshll.u32 %s10026_s17, 4  ;;  %s73_s20 = sshll.u32 %s10027_s19, 4  ;;  %s59_s18 = int_to_ptr.vmem [resolvable:$true] %s58_s18  ;;  %s74_s20 = int_to_ptr.vmem [resolvable:$true] %s73_s20 }
  0x25   :  { %s9922_s23 = scalar_lea.hbm %s13752_s7, 24576 }
  0x26   :  { %p9923_p2 = scmp.ne.s32.totalorder %s13752_s7, %s9922_s23  ;;  %p9926_p3 = scmp.lt.u32.totalorder %s9922_s23, %s13752_s7 }
  0x28   :  { %p9928_p4 = pnand %p9926_p3, %p9923_p2 }
  0x2a   :  { %9931 = shalt.err (!%p9928_p4)
}
  0x2b   :  { %s9932_s1 = scalar_lea.vmem %s59_s18, 24576  ;;  %p9937_p6 = scmp.lt.s32.totalorder %s59_s18, %s59_s18 }
  0x2c   :  { %p9933_p5 = scmp.ne.s32.totalorder %s59_s18, %s9932_s1  ;;  %p9938_p7 = scmp.lt.s32.totalorder %s9932_s1, %s9932_s1 }
  0x2e   :  { %p9939_p8 = por %p9938_p7, %p9937_p6 }
  0x30   :  { %p9940_p9 = pnand %p9939_p8, %p9933_p5 }
  0x32   :  { %9943 = shalt.err (!%p9940_p9)
}
  0x33   :  { %64 = dma.hbm_to_vmem [thread:$0]  %s13752_s7, 24576, %s59_s18, [#allocation9], %s10024_s2, %s10024_s2, %s10025_s26  }
  0x34   :  { %s9944_s16 = scalar_lea.hbm %s13754_s9, 384 }
  0x35   :  { %p9945_p10 = scmp.ne.s32.totalorder %s13754_s9, %s9944_s16  ;;  %p9948_p11 = scmp.lt.u32.totalorder %s9944_s16, %s13754_s9 }
  0x37   :  { %p9950_p12 = pnand %p9948_p11, %p9945_p10 }
  0x39   :  { %9953 = shalt.err (!%p9950_p12)
}
  0x3a   :  { %s9954_s23 = scalar_lea.vmem %s74_s20, 384  ;;  %p9959_p0 = scmp.lt.s32.totalorder %s74_s20, %s74_s20 }
  0x3b   :  { %p9955_p13 = scmp.ne.s32.totalorder %s74_s20, %s9954_s23  ;;  %p9960_p1 = scmp.lt.s32.totalorder %s9954_s23, %s9954_s23 }
  0x3d   :  { %p9961_p2 = por %p9960_p1, %p9959_p0 }
  0x3f   :  { %p9962_p3 = pnand %p9961_p2, %p9955_p13 }
  0x41   :  { %9965 = shalt.err (!%p9962_p3)
}
  0x42   :  { %76 = dma.hbm_to_vmem [thread:$0]  %s13754_s9, 384, %s74_s20, [#allocation12]  }
  0x43   :  { %10010 = dma.done.wait [#allocation7], 1536  }
  0x44   :  { %10011 = vsyncadd [#allocation7], 4294965760 }
  0x45   :  { %10012 = dma.done.wait [#allocation9], 24832  }
  0x46   :  { %10013 = vsyncadd [#allocation9], 4294942464 }
  0x47   :  { %10014 = dma.done.wait [#allocation12], 384  }
  0x48   :  { %10015 = vsyncadd [#allocation12], 4294966912  ;;  %s106_s18 = sld [smem:[#allocation0]]   ;;  %118 = sst [smem:[#allocation18]] %s10024_s2  ;;  %v13759_v0 = vmov 0  }
  0x49   :  { %284 = vmatprep.mubr.bf16.mxu1 %v13759_v0  ;;  %120 = sst [smem:[#allocation18 + $0x1]] %s10024_s2  ;;  %s10029_s24 = smov 4  }
  0x4a   :  { %122 = sst [smem:[#allocation18 + $0x2]] %s10029_s24  ;;  %s10030_s25 = smov 64  }
  0x4b   :  { %124 = sst [smem:[#allocation18 + $0x3]] %s10030_s25  ;;  %s10031_s27 = smov 128  }
  0x4c   :  { %126 = sst [smem:[#allocation18 + $0x4]] %s10031_s27  ;;  %s10032_s9 = smov 2  }
  0x4d   :  { %128 = sst [smem:[#allocation18 + $0x5]] %s10032_s9  ;;  %s10033_s20 = smov [#allocation2]  }
  0x4e   :  { %s97_s29 = sshll.u32 %s10033_s20, 4  ;;  %s7925_s1 = sshll.u32 %s106_s18, 26  ;;  %s98_s29 = int_to_ptr.vmem [resolvable:$true] %s97_s29 }
  0x4f   :  { %s10034_s28 = smov 256   ;;  %s7926_s30 = sadd.s32 134217728, %s7925_s1 }
  0x50   :  { %130 = sst [smem:[#allocation18 + $0x6]] %s10034_s28  ;;  %s9966_s2 = scalar_lea.hbm %s13755_s10, 6144 }
  0x51   :  { %132 = sst [smem:[#allocation18 + $0x7]] %s10030_s25  ;;  %p9967_p4 = scmp.ne.s32.totalorder %s13755_s10, %s9966_s2 }
  0x52   :  { %134 = sst [smem:[#allocation18 + $0x8]] %s10029_s24  ;;  %p9970_p5 = scmp.lt.u32.totalorder %s9966_s2, %s13755_s10 }
  0x54   :  { %p9972_p6 = pnand %p9970_p5, %p9967_p4 }
  0x56   :  { %9975 = shalt.err (!%p9972_p6)  }
  0x57   :  { %s9976_s22 = scalar_lea.vmem %s98_s29, 6144  ;;  %p9981_p8 = scmp.lt.s32.totalorder %s98_s29, %s98_s29 }
  0x58   :  { %p9977_p7 = scmp.ne.s32.totalorder %s98_s29, %s9976_s22  ;;  %p9982_p9 = scmp.lt.s32.totalorder %s9976_s22, %s9976_s22 }
  0x5a   :  { %p9983_p10 = por %p9982_p9, %p9981_p8 }
  0x5c   :  { %p9984_p11 = pnand %p9983_p10, %p9977_p7 }
  0x5e   :  { %9987 = shalt.err (!%p9984_p11)  }
  0x5f   :  { %100 = dma.hbm_to_vmem [thread:$0]  %s13755_s10, 6144, %s98_s29, [#allocation5]  ;;  %vm227_vm0 = vcmask 1043456   ;;  %vm223_vm1 = vcmask 195584   ;;  %v10038_v35 = vmov 0.0   ;;  %vm418_vm2 = vcmask 1041408  }
  0x60   :  { %s10035_s26 = smov [#allocation3]   ;;  %s10036_s24 = smov [#allocation5 + $0x1]   ;;  %8608 = vmatprep.subr.bf16.mxu0 %v10038_v35  ;;  %v10039_v59 = vmov 1983009808   ;;  %vm10040_vm3 = vmmov 0   ;;  %vm900_vm4 = vcmask 1045504  }
  0x61   :  { %s114_s18 = sshll.u32 %s10035_s26, 4  ;;  %s10037_s25 = smov [#allocation17]   ;;  %v10226_v60 = vunpack.c.l.s4 %v10039_v59  ;;  %8610 = vmatprep.mubr.msk.bf16.mxu0 %vm10040_vm3, %v10038_v35  ;;  %vm975_vm5 = vcmask 64512   ;;  %vm1488_vm6 = vcmask 1040384   ;;  %vm1491_vm7 = vcmask 1042432   ;;  %s115_s18 = int_to_ptr.vmem [resolvable:$true] %s114_s18 }
  0x62   :  { %136 = dma.general %s13756_s11, 12288, %s115_s18, %s10036_s24, %s10037_s25, [#allocation18], %s7926_s30, 0   ;;  %vm1699_vm8 = vcmask 130048   ;;  %vm2537_vm9 = vcmask 261120   ;;  %vm3613_vm10 = vcmask 523264  }
  0x63   :  { %v151_v1 = vld [vmem:[#allocation6] sm:$0xff]  ;;  %v152_v8 = vld [vmem:[#allocation6 + $0x8] sm:$0xff]  ;;  %v161_v13 = vld [vmem:[#allocation6 + $0x50] sm:$0xff]  ;;  %s9988_s14 = scalar_lea.hbm %s13757_s12, 8192 }
  0x64   :  { %v155_v2 = vld [vmem:[#allocation6 + $0x20] sm:$0xff]  ;;  %v156_v9 = vld [vmem:[#allocation6 + $0x28] sm:$0xff]  ;;  %v7939_v14 = vcombine.low %v161_v13, %v161_v13  ;;  %v162_v15 = vld [vmem:[#allocation6 + $0x58] sm:$0xff]  ;;  %v7940_v31 = vcombine.high %v161_v13, %v161_v13  ;;  %p9989_p12 = scmp.ne.s32.totalorder %s13757_s12, %s9988_s14  ;;  %p9992_p13 = scmp.lt.u32.totalorder %s9988_s14, %s13757_s12 }
  0x65   :  { %v159_v3 = vld [vmem:[#allocation6 + $0x40] sm:$0xff]  ;;  %v7928_v4 = vcombine.high %v151_v1, %v155_v2  ;;  %v7927_v5 = vcombine.low %v151_v1, %v155_v2  ;;  %v160_v10 = vld [vmem:[#allocation6 + $0x48] sm:$0xff]  ;;  %v7930_v17 = vcombine.high %v152_v8, %v156_v9  ;;  %v7941_v18 = vcombine.low %v162_v15, %v162_v15  ;;  %v153_v24 = vld [vmem:[#allocation6 + $0x10] sm:$0xff] }
  0x66   :  { %v7936_v6 = vcombine.high %v159_v3, %v159_v3  ;;  %v7935_v7 = vcombine.low %v159_v3, %v159_v3  ;;  %v149_v11 = vld [vmem:[%s13745_s0] sm:$0x3]  ;;  %v7937_v12 = vcombine.low %v160_v10, %v160_v10  ;;  %v241_v21 = vsel %vm227_vm0, %v7939_v14, 0  ;;  %v157_v25 = vld [vmem:[#allocation6 + $0x30] sm:$0xff]  ;;  %v154_v29 = vld [vmem:[#allocation6 + $0x18] sm:$0xff]  ;;  %p9994_p0 = pnand %p9992_p13, %p9989_p12 }
  0x67   :  { %252 = vmatprep.subr.bf16.mxu1 %v7928_v4  ;;  %v150_v20 = vpack.c.bf16 %v149_v11, %v149_v11  ;;  %v247_v22 = vsel %vm227_vm0, %v7941_v18, 0  ;;  %v7929_v23 = vcombine.low %v152_v8, %v156_v9  ;;  %v7938_v26 = vcombine.high %v160_v10, %v160_v10  ;;  %v158_v30 = vld [vmem:[#allocation6 + $0x38] sm:$0xff] }
  0x68   :  { %253 = vmatpush1.bf16.msra.mxu1 %v7927_v5  ;;  %v229_v16 = vsel %vm227_vm0, %v7935_v7, 0  ;;  %v235_v19 = vsel %vm227_vm0, %v7937_v12, 0  ;;  %v7932_v27 = vcombine.high %v153_v24, %v157_v25  ;;  %v7931_v28 = vcombine.low %v153_v24, %v157_v25 }
  0x69   :  { %7943 = vmatprep.subr.msk.bf16.mxu1 %vm227_vm0, %v7936_v6  ;;  %v7934_v32 = vcombine.high %v154_v29, %v158_v30  ;;  %v7933_v33 = vcombine.low %v154_v29, %v158_v30  ;;  %v7942_v34 = vcombine.high %v162_v15, %v162_v15 }
  0x6c   :  { %255 = vmatpush1.bf16.msra.mxu1 %v229_v16 }
  0x6d   :  { %293 = vmatprep.subr.bf16.mxu1 %v7930_v17 }
  0x6f   :  { %7944 = vmatmul.mubr.msk.bf16.vlgmr.msra.gmra.mrb[0].mxu1 %vm223_vm1, %v150_v20 }
  0x70   :  { %294 = vmatpush1.bf16.msra.mxu1 %v7929_v23  ;;  %325 = vmatprep.mubr.bf16.mxu1 %v13759_v0 }
  0x71   :  { %7945 = vmatprep.subr.msk.bf16.mxu1 %vm227_vm0, %v7938_v26 }
  0x74   :  { %296 = vmatpush1.bf16.msra.mxu1 %v235_v19 }
  0x75   :  { %334 = vmatprep.subr.bf16.mxu1 %v7932_v27 }
  0x77   :  { %7946 = vmatmul.mubr.msk.bf16.vlgmr.msra.gmra.mrb[4].mxu1 %vm223_vm1, %v150_v20 }
  0x78   :  { %335 = vmatpush1.bf16.msra.mxu1 %v7931_v28  ;;  %366 = vmatprep.mubr.bf16.mxu1 %v13759_v0 }
  0x79   :  { %7947 = vmatprep.subr.msk.bf16.mxu1 %vm227_vm0, %v7940_v31 }
  0x7c   :  { %337 = vmatpush1.bf16.msra.mxu1 %v241_v21 }
  0x7d   :  { %375 = vmatprep.subr.bf16.mxu1 %v7934_v32 }
  0x7f   :  { %7948 = vmatmul.mubr.msk.bf16.vlgmr.msra.gmra.mrb[8].mxu1 %vm223_vm1, %v150_v20 }
  0x80   :  { %376 = vmatpush1.bf16.msra.mxu1 %v7933_v33  ;;  %407 = vmatprep.mubr.bf16.mxu1 %v13759_v0 }
  0x81   :  { %7949 = vmatprep.subr.msk.bf16.mxu1 %vm227_vm0, %v7942_v34 }
  0x84   :  { %378 = vmatpush1.bf16.msra.mxu1 %v247_v22 }
  0x85   :  { %8614 = vmatprep.subr.bf16.mxu1 %v10038_v35 }
  0x87   :  { %7950 = vmatmul.mubr.msk.bf16.vlgmr.msra.gmra.mrb[12].mxu1 %vm223_vm1, %v150_v20 }
  0x88   :  { %8616 = vmatprep.mubr.msk.bf16.mxu1 %vm10040_vm3, %v10038_v35 }
 0x142   :  { %v10210_v36 = vpop.f32.mrb[0].mxu1 }
 0x143   :  { %v419_v37 = vsel %vm418_vm2, %v10210_v36, 0.0  ;;  %v483_v38 = vmul.f32 %v10210_v36, %v10210_v36  ;;  %v10216_v39 = vpop.f32.mrb[1].mxu1 }
 0x144   :  { %v420_v40 = vrot.slane %v419_v37, 4  ;;  %v426_v41 = vsel %vm418_vm2, %v10216_v39, 0.0  ;;  %v484_v42 = vmul.f32 %v10216_v39, %v10216_v39  ;;  %v290_v43 = vpop.f32.mrb[2].mxu1 }
 0x145   :  { %v491_v44 = vsel %vm418_vm2, %v483_v38, 0.0  ;;  %v427_v45 = vrot.slane %v426_v41, 4  ;;  %v291_v46 = vpop.f32.mrb[3].mxu1 }
 0x146   :  { %v421_v47 = vadd.f32 %v420_v40, %v419_v37  ;;  %v492_v48 = vrot.slane %v491_v44, 4  ;;  %v498_v49 = vsel %vm418_vm2, %v484_v42, 0.0 }
 0x147   :  { %v428_v50 = vadd.f32 %v427_v45, %v426_v41  ;;  %v499_v51 = vrot.slane %v498_v49, 4 }
 0x148   :  { %v422_v52 = vrot.slane %v421_v47, 2  ;;  %v493_v53 = vadd.f32 %v492_v48, %v491_v44 }
 0x149   :  { %v429_v54 = vrot.slane %v428_v50, 2  ;;  %v500_v55 = vadd.f32 %v499_v51, %v498_v49 }
 0x14a   :  { %v423_v56 = vadd.f32 %v422_v52, %v421_v47  ;;  %v494_v57 = vrot.slane %v493_v53, 2  ;;  %v10224_v58 = vpop.f32.mrb[4].mxu1 }
 0x14b   :  { %v430_v61 = vadd.f32 %v429_v54, %v428_v50  ;;  %v501_v62 = vrot.slane %v500_v55, 2  ;;  %v433_v63 = vsel %vm418_vm2, %v10224_v58, 0.0  ;;  %v485_v1 = vmul.f32 %v10224_v58, %v10224_v58  ;;  %v10232_v2 = vpop.f32.mrb[5].mxu1 }
 0x14c   :  { %v424_v3 = vrot.slane %v423_v56, 1  ;;  %v495_v4 = vadd.f32 %v494_v57, %v493_v53  ;;  %v434_v5 = vrot.slane %v433_v63, 4  ;;  %v440_v6 = vsel %vm418_vm2, %v10232_v2, 0.0  ;;  %v331_v7 = vpop.f32.mrb[6].mxu1 }
 0x14d   :  { %v431_v8 = vrot.slane %v430_v61, 1  ;;  %v502_v9 = vadd.f32 %v501_v62, %v500_v55  ;;  %v505_v10 = vsel %vm418_vm2, %v485_v1, 0.0  ;;  %v441_v11 = vrot.slane %v440_v6, 4  ;;  %v332_v12 = vpop.f32.mrb[7].mxu1 }
 0x14e   :  { %v425_v13 = vadd.f32 %v424_v3, %v423_v56  ;;  %v496_v14 = vrot.slane %v495_v4, 1  ;;  %v435_v15 = vadd.f32 %v434_v5, %v433_v63  ;;  %v506_v16 = vrot.slane %v505_v10, 4 }
 0x14f   :  { %v432_v17 = vadd.f32 %v431_v8, %v430_v61  ;;  %v503_v18 = vrot.slane %v502_v9, 1  ;;  %v442_v19 = vadd.f32 %v441_v11, %v440_v6  ;;  %v486_v20 = vmul.f32 %v10232_v2, %v10232_v2 }
 0x150   :  { %v10239_v21 = vmul.f32 0.5, %v425_v13  ;;  %v497_v22 = vadd.f32 %v496_v14, %v495_v4  ;;  %v436_v23 = vrot.slane %v435_v15, 2  ;;  %v507_v24 = vadd.f32 %v506_v16, %v505_v10 }
 0x151   :  { %v10241_v25 = vmul.f32 0.5, %v432_v17  ;;  %v504_v26 = vadd.f32 %v503_v18, %v502_v9  ;;  %v443_v27 = vrot.slane %v442_v19, 2  ;;  %v512_v28 = vsel %vm418_vm2, %v486_v20, 0.0 }
 0x152   :  { %v547_v29 = vmul.f32 0.5, %v497_v22  ;;  %v555_v30 = vmul.f32 %v10239_v21, %v10239_v21  ;;  %v437_v31 = vadd.f32 %v436_v23, %v435_v15  ;;  %v508_v32 = vrot.slane %v507_v24, 2  ;;  %v10246_v33 = vpop.f32.mrb[8].mxu1 }
 0x153   :  { %v548_v34 = vmul.f32 0.5, %v504_v26  ;;  %v556_v37 = vmul.f32 %v10241_v25, %v10241_v25  ;;  %v444_v38 = vadd.f32 %v443_v27, %v442_v19  ;;  %v513_v40 = vrot.slane %v512_v28, 4  ;;  %v10250_v41 = vpop.f32.mrb[9].mxu1 }
 0x154   :  { %v563_v42 = vsub.f32 %v547_v29, %v555_v30  ;;  %v438_v43 = vrot.slane %v437_v31, 1  ;;  %v509_v44 = vadd.f32 %v508_v32, %v507_v24  ;;  %v447_v45 = vsel %vm418_vm2, %v10246_v33, 0.0  ;;  %v372_v46 = vpop.f32.mrb[10].mxu1 }
 0x155   :  { %v564_v47 = vsub.f32 %v548_v34, %v556_v37  ;;  %v445_v48 = vrot.slane %v444_v38, 1  ;;  %v514_v49 = vadd.f32 %v513_v40, %v512_v28  ;;  %v448_v50 = vrot.slane %v447_v45, 4  ;;  %v373_v51 = vpop.f32.mrb[11].mxu1 }
 0x156   :  { %v571_v52 = vmax.f32 %v563_v42, 0.0  ;;  %v439_v53 = vadd.f32 %v438_v43, %v437_v31  ;;  %v510_v54 = vrot.slane %v509_v44, 1  ;;  %v487_v55 = vmul.f32 %v10246_v33, %v10246_v33 }
 0x157   :  { %v572_v56 = vmax.f32 %v564_v47, 0.0  ;;  %v446_v57 = vadd.f32 %v445_v48, %v444_v38  ;;  %v515_v59 = vrot.slane %v514_v49, 2  ;;  %v449_v61 = vadd.f32 %v448_v50, %v447_v45 }
 0x158   :  { %v579_v62 = vadd.f32 1e-05, %v571_v52  ;;  %v10256_v63 = vmul.f32 0.5, %v439_v53  ;;  %v511_v1 = vadd.f32 %v510_v54, %v509_v44  ;;  %v519_v3 = vsel %vm418_vm2, %v487_v55, 0.0 }
 0x159   :  { %v580_v4 = vadd.f32 1e-05, %v572_v56  ;;  %v10259_v5 = vmul.f32 0.5, %v446_v57  ;;  %v516_v6 = vadd.f32 %v515_v59, %v514_v49  ;;  %v450_v7 = vrot.slane %v449_v61, 2 }
 0x15a   :  { %9458 = vrsqrt.f32 %v579_v62  ;;  %v549_v8 = vmul.f32 0.5, %v511_v1  ;;  %v557_v9 = vmul.f32 %v10256_v63, %v10256_v63  ;;  %v520_v10 = vrot.slane %v519_v3, 4  ;;  %v10263_v11 = vpop.f32.mrb[12].mxu1 }
 0x15b   :  { %9460 = vrsqrt.f32 %v580_v4  ;;  %v517_v12 = vrot.slane %v516_v6, 1  ;;  %v558_v13 = vmul.f32 %v10259_v5, %v10259_v5  ;;  %v451_v14 = vadd.f32 %v450_v7, %v449_v61  ;;  %v10267_v15 = vpop.f32.mrb[13].mxu1 }
 0x15c   :  { %v565_v16 = vsub.f32 %v549_v8, %v557_v9  ;;  %v521_v17 = vadd.f32 %v520_v10, %v519_v3  ;;  %v454_v18 = vsel %vm418_vm2, %v10250_v41, 0.0  ;;  %v488_v19 = vmul.f32 %v10250_v41, %v10250_v41  ;;  %v413_v20 = vpop.f32.mrb[14].mxu1 }
 0x15d   :  { %v518_v22 = vadd.f32 %v517_v12, %v516_v6  ;;  %v452_v23 = vrot.slane %v451_v14, 1  ;;  %v455_v24 = vrot.slane %v454_v18, 4  ;;  %v461_v26 = vsel %vm418_vm2, %v10263_v11, 0.0  ;;  %v414_v27 = vpop.f32.mrb[15].mxu1 }
 0x15e   :  { %v573_v28 = vmax.f32 %v565_v16, 0.0  ;;  %v522_v29 = vrot.slane %v521_v17, 2  ;;  %v526_v30 = vsel %vm418_vm2, %v488_v19, 0.0  ;;  %v462_v31 = vrot.slane %v461_v26, 4 }
 0x15f   :  { %v550_v32 = vmul.f32 0.5, %v518_v22  ;;  %v453_v34 = vadd.f32 %v452_v23, %v451_v14  ;;  %v456_v37 = vadd.f32 %v455_v24, %v454_v18  ;;  %v527_v38 = vrot.slane %v526_v30, 4 }
 0x160   :  { %v581_v40 = vadd.f32 1e-05, %v573_v28  ;;  %v523_v42 = vadd.f32 %v522_v29, %v521_v17  ;;  %v463_v43 = vadd.f32 %v462_v31, %v461_v26  ;;  %v489_v44 = vmul.f32 %v10263_v11, %v10263_v11 }
 0x161   :  { %v566_v45 = vsub.f32 %v550_v32, %v558_v13  ;;  %v10278_v46 = vmul.f32 0.5, %v453_v34  ;;  %v457_v47 = vrot.slane %v456_v37, 2  ;;  %v528_v48 = vadd.f32 %v527_v38, %v526_v30 }
 0x162   :  { %9462 = vrsqrt.f32 %v581_v40  ;;  %v524_v49 = vrot.slane %v523_v42, 1  ;;  %v464_v50 = vrot.slane %v463_v43, 2  ;;  %v533_v51 = vsel %vm418_vm2, %v489_v44, 0.0 }
 0x163   :  { %v574_v52 = vmax.f32 %v566_v45, 0.0  ;;  %v559_v53 = vmul.f32 %v10278_v46, %v10278_v46  ;;  %v458_v54 = vadd.f32 %v457_v47, %v456_v37  ;;  %v529_v55 = vrot.slane %v528_v48, 2 }
 0x164   :  { %v9459_v56 = vpop.eup %9458  ;;  %v525_v57 = vadd.f32 %v524_v49, %v523_v42  ;;  %v465_v59 = vadd.f32 %v464_v50, %v463_v43  ;;  %v534_v61 = vrot.slane %v533_v51, 4  ;;  %v468_v62 = vsel %vm418_vm2, %v10267_v15, 0.0 }
 0x165   :  { %v9461_v1 = vpop.eup %9460  ;;  %v582_v3 = vadd.f32 1e-05, %v574_v52  ;;  %v459_v4 = vrot.slane %v458_v54, 1  ;;  %v530_v6 = vadd.f32 %v529_v55, %v528_v48  ;;  %v469_v7 = vrot.slane %v468_v62, 4 }
 0x166   :  { %v603_v8 = vcombine.low %v9459_v56, %v9461_v1  ;;  %v551_v9 = vmul.f32 0.5, %v525_v57  ;;  %v466_v10 = vrot.slane %v465_v59, 1  ;;  %v535_v12 = vadd.f32 %v534_v61, %v533_v51 }
 0x167   :  { %9464 = vrsqrt.f32 %v582_v3  ;;  %v460_v13 = vadd.f32 %v459_v4, %v458_v54  ;;  %v531_v14 = vrot.slane %v530_v6, 1  ;;  %v470_v16 = vadd.f32 %v469_v7, %v468_v62  ;;  %v416_v7 = vld [vmem:[#allocation8] sm:$0xff] }
 0x168   :  { %v608_v17 = vlaneseq  ;;  %v567_v18 = vsub.f32 %v551_v9, %v559_v53  ;;  %v467_v19 = vadd.f32 %v466_v10, %v465_v59  ;;  %v536_v20 = vrot.slane %v535_v12, 2 }
 0x169   :  { %v10285_v22 = vmul.f32 0.5, %v460_v13  ;;  %v532_v23 = vadd.f32 %v531_v14, %v530_v6  ;;  %v471_v24 = vrot.slane %v470_v16, 2  ;;  %v490_v26 = vmul.f32 %v10267_v15, %v10267_v15 }
 0x16a   :  { %v575_v27 = vmax.f32 %v567_v18, 0.0  ;;  %v10289_v28 = vmul.f32 0.5, %v467_v19  ;;  %v537_v29 = vadd.f32 %v536_v20, %v535_v12  ;;  %v607_v38 = vunpack.c.0.s8 %v10226_v60 }
 0x16b   :  { %v552_v30 = vmul.f32 0.5, %v532_v23  ;;  %v560_v31 = vmul.f32 %v10285_v22, %v10285_v22  ;;  %v472_v32 = vadd.f32 %v471_v24, %v470_v16  ;;  %v540_v34 = vsel %vm418_vm2, %v490_v26, 0.0 }
 0x16c   :  { %v9463_v37 = vpop.eup %9462  ;;  %v10299_v40 = vshrl.u32 %v608_v17, 7  ;;  %v538_v42 = vrot.slane %v537_v29, 1  ;;  %v541_v43 = vrot.slane %v540_v34, 4  ;;  %v583_v44 = vadd.f32 1e-05, %v575_v27 }
 0x16d   :  { %v568_v45 = vsub.f32 %v552_v30, %v560_v31  ;;  %v473_v47 = vrot.slane %v472_v32, 1  ;;  %v561_v49 = vmul.f32 %v10289_v28, %v10289_v28 }
 0x16e   :  { %v539_v48 = vadd.f32 %v538_v42, %v537_v29  ;;  %v542_v50 = vadd.f32 %v541_v43, %v540_v34  ;;  %v10304_v53 = vsub.s32 %v607_v38, %v10299_v40  ;;  %9466 = vrsqrt.f32 %v583_v44 }
 0x16f   :  { %v576_v51 = vmax.f32 %v568_v45, 0.0  ;;  %v474_v52 = vadd.f32 %v473_v47, %v472_v32  ;;  %v10311_v9 = vsub.s32 0, %v10299_v40  ;;  %v10314_v10 = vsub.s32 2, %v10299_v40 }
 0x170   :  { %v553_v54 = vmul.f32 0.5, %v539_v48  ;;  %v543_v55 = vrot.slane %v542_v50, 2  ;;  %v611_v1 = vrot.slane %v603_v8, %v10304_v53  ;;  %v10317_v13 = vsub.s32 4, %v10299_v40 }
 0x171   :  { %v9465_v60 = vpop.eup %9464  ;;  %v584_v56 = vadd.f32 1e-05, %v576_v51  ;;  %v10306_v62 = vmul.f32 0.5, %v474_v52  ;;  %v10320_v14 = vsub.s32 6, %v10299_v40 }
 0x172   :  { %v604_v57 = vcombine.low %v9463_v37, %v9465_v60  ;;  %v569_v59 = vsub.f32 %v553_v54, %v561_v49  ;;  %v544_v61 = vadd.f32 %v543_v55, %v542_v50 }
 0x173   :  { %9468 = vrsqrt.f32 %v584_v56  ;;  %13869 = vst [vmem:[#allocation27_spill] sm:$0xff] %v10320_v14  ;;  %v562_v17 = vmul.f32 %v10306_v62, %v10306_v62  ;;  %v10346_v56 = vsub.s32 7, %v10299_v40 }
 0x174   :  { %v618_v3 = vrot.slane %v604_v57, %v10304_v53  ;;  %v577_v4 = vmax.f32 %v569_v59, 0.0  ;;  %v545_v6 = vrot.slane %v544_v61, 1 }
 0x175   :  { %13871 = vst [vmem:[#allocation29_spill] sm:$0xff] %v10346_v56 }
 0x176   :  { %v619_v12 = vcombine.low %v611_v1, %v618_v3  ;;  %v546_v16 = vadd.f32 %v545_v6, %v544_v61  ;;  %v585_v8 = vadd.f32 1e-05, %v577_v4 }
 0x178   :  { %v639_v18 = vmul.f32 %v619_v12, %v416_v7  ;;  %v554_v19 = vmul.f32 0.5, %v546_v16  ;;  %v9467_v27 = vpop.eup %9466  ;;  %9470 = vrsqrt.f32 %v585_v8 }
 0x17a   :  { %v646_v20 = vrot.slane %v639_v18, %v10311_v9  ;;  %v650_v23 = vrot.slane %v639_v18, %v10314_v10  ;;  %v654_v24 = vrot.slane %v639_v18, %v10317_v13  ;;  %v658_v26 = vrot.slane %v639_v18, %v10320_v14 }
 0x17b   :  { %v570_v29 = vsub.f32 %v554_v19, %v562_v17 }
 0x17c   :  { %v698_v30 = vrot.slane %v658_v26, %v10311_v9  ;;  %v723_v31 = vmul.f32 %v646_v20, %v10239_v21  ;;  %v724_v32 = vmul.f32 %v650_v23, %v10241_v25  ;;  %v725_v34 = vmul.f32 %v654_v24, %v10256_v63 }
 0x17d   :  { %v9469_v37 = vpop.eup %9468  ;;  %v726_v38 = vmul.f32 %v658_v26, %v10259_v5  ;;  %v578_v42 = vmax.f32 %v570_v29, 0.0  ;;  %v686_v43 = vrot.slane %v646_v20, %v10311_v9  ;;  %v690_v44 = vrot.slane %v650_v23, %v10311_v9  ;;  %v417_v23 = vld [vmem:[#allocation8 + $0x8] sm:$0xff] }
 0x17e   :  { %v718_v45 = vmul.f32 %v698_v30, %v10232_v2  ;;  %v739_v47 = vcombine.low %v723_v31, %v724_v32  ;;  %v620_v48 = vcombine.low %v9467_v27, %v9469_v37  ;;  %v694_v49 = vrot.slane %v654_v24, %v10311_v9 }
 0x17f   :  { %v740_v50 = vcombine.low %v725_v34, %v726_v38  ;;  %v586_v21 = vadd.f32 1e-05, %v578_v42  ;;  %v715_v25 = vmul.f32 %v686_v43, %v10210_v36  ;;  %v716_v63 = vmul.f32 %v690_v44, %v10216_v39 }
 0x180   :  { %v747_v51 = vrot.slane %v739_v47, %v10304_v53  ;;  %v717_v5 = vmul.f32 %v694_v49, %v10224_v58  ;;  %v10343_v2 = vsub.s32 1, %v10299_v40  ;;  %v10349_v36 = vsub.s32 3, %v10299_v40 }
 0x181   :  { %v754_v52 = vrot.slane %v740_v50, %v10304_v53  ;;  %9472 = vrsqrt.f32 %v586_v21  ;;  %v10352_v39 = vsub.s32 5, %v10299_v40  ;;  %v628_v19 = vrot.slane %v620_v48, %v10304_v53 }
 0x182   :  { %13870 = vst [vmem:[#allocation28_spill] sm:$0xff] %v10343_v2  ;;  %v9471_v55 = vpop.eup %9470  ;;  %13872 = vst [vmem:[#allocation30_spill] sm:$0xff] %v10349_v36 }
 0x183   :  { %v755_v54 = vcombine.low %v747_v51, %v754_v52  ;;  %13873 = vst [vmem:[#allocation31_spill] sm:$0xff] %v10352_v39 }
 0x185   :  { %v773_v60 = vrot.slane %v755_v54, 7 }
 0x187   :  { %v777_v57 = vsub.f32 %v416_v7, %v773_v60 }
 0x189   :  { %v796_v58 = vrot.slane %v777_v57, %v10346_v56  ;;  %v784_v59 = vrot.slane %v777_v57, %v10343_v2  ;;  %v788_v61 = vrot.slane %v777_v57, %v10349_v36  ;;  %v792_v1 = vrot.slane %v777_v57, %v10352_v39 }
 0x18b   :  { %v9473_v3 = vpop.eup %9472  ;;  %v836_v4 = vrot.slane %v796_v58, %v10343_v2  ;;  %v824_v6 = vrot.slane %v784_v59, %v10343_v2  ;;  %v828_v12 = vrot.slane %v788_v61, %v10343_v2  ;;  %v832_v16 = vrot.slane %v792_v1, %v10343_v2 }
 0x18c   :  { %v621_v40 = vcombine.low %v9471_v55, %v9473_v3 }
 0x18d   :  { %v10362_v8 = vadd.f32 %v836_v4, %v718_v45  ;;  %v10364_v7 = vadd.f32 %v824_v6, %v715_v25  ;;  %v10366_v17 = vadd.f32 %v828_v12, %v716_v63  ;;  %v10368_v18 = vadd.f32 %v832_v16, %v717_v5 }
 0x18e   :  { %v635_v20 = vrot.slane %v621_v40, %v10304_v53 }
 0x190   :  { %v636_v24 = vcombine.low %v628_v19, %v635_v20 }
 0x192   :  { %v640_v26 = vmul.f32 %v636_v24, %v417_v23 }
 0x194   :  { %v662_v27 = vrot.slane %v640_v26, %v10311_v9  ;;  %v666_v29 = vrot.slane %v640_v26, %v10314_v10  ;;  %v670_v30 = vrot.slane %v640_v26, %v10317_v13  ;;  %v674_v31 = vrot.slane %v640_v26, %v10320_v14 }
 0x196   :  { %v702_v32 = vrot.slane %v662_v27, %v10311_v9  ;;  %v706_v34 = vrot.slane %v666_v29, %v10311_v9  ;;  %v710_v37 = vrot.slane %v670_v30, %v10311_v9  ;;  %v714_v38 = vrot.slane %v674_v31, %v10311_v9 }
 0x197   :  { %v727_v42 = vmul.f32 %v662_v27, %v10278_v46  ;;  %v728_v43 = vmul.f32 %v666_v29, %v10285_v22  ;;  %v729_v44 = vmul.f32 %v670_v30, %v10289_v28  ;;  %v730_v45 = vmul.f32 %v674_v31, %v10306_v62 }
 0x198   :  { %v719_v47 = vmul.f32 %v702_v32, %v10246_v33  ;;  %v720_v48 = vmul.f32 %v706_v34, %v10250_v41  ;;  %v721_v49 = vmul.f32 %v710_v37, %v10263_v11  ;;  %v722_v50 = vmul.f32 %v714_v38, %v10267_v15 }
 0x199   :  { %v756_v21 = vcombine.low %v727_v42, %v728_v43  ;;  %v757_v25 = vcombine.low %v729_v44, %v730_v45  ;;  %v902_v43 = vld [vmem:[#allocation10] sm:$0xff] }
 0x19a   :  { %v903_v44 = vld [vmem:[#allocation10 + $0x20] sm:$0xff] }
 0x19b   :  { %v764_v63 = vrot.slane %v756_v21, %v10304_v53  ;;  %v771_v46 = vrot.slane %v757_v25, %v10304_v53  ;;  %v7965_v21 = vcombine.low %v902_v43, %v903_v44 }
 0x19d   :  { %v772_v51 = vcombine.low %v764_v63, %v771_v46  ;;  %v906_v63 = vld [vmem:[#allocation10 + $0x80] sm:$0xff] }
 0x19e   :  { %v907_v46 = vld [vmem:[#allocation10 + $0xa0] sm:$0xff] }
 0x19f   :  { %v774_v22 = vrot.slane %v772_v51, 7 }
 0x1a1   :  { %v778_v5 = vsub.f32 %v417_v23, %v774_v22  ;;  %v7970_v22 = vcombine.high %v906_v63, %v907_v46 }
 0x1a3   :  { %v800_v28 = vrot.slane %v778_v5, %v10343_v2  ;;  %v804_v62 = vrot.slane %v778_v5, %v10349_v36  ;;  %v812_v33 = vrot.slane %v778_v5, %v10346_v56  ;;  %v808_v41 = vrot.slane %v778_v5, %v10352_v39  ;;  %v9415_v5 = vld [vmem:[%s13748_s3 + $0x10] sm:$0xff]  }
 0x1a5   :  { %v840_v11 = vrot.slane %v800_v28, %v10343_v2  ;;  %v844_v15 = vrot.slane %v804_v62, %v10343_v2  ;;  %v852_v52 = vrot.slane %v812_v33, %v10343_v2  ;;  %v848_v54 = vrot.slane %v808_v41, %v10343_v2  ;;  %v908_v28 = vld [vmem:[#allocation10 + $0xc0] sm:$0xff] }
 0x1a6   :  { %v909_v62 = vld [vmem:[#allocation10 + $0xe0] sm:$0xff]  ;;  %v7969_v33 = vcombine.low %v906_v63, %v907_v46 }
 0x1a7   :  { %v860_v53 = vadd.f32 %v852_v52, %v722_v50  ;;  %v857_v55 = vadd.f32 %v840_v11, %v719_v47  ;;  %v858_v60 = vadd.f32 %v844_v15, %v720_v48  ;;  %v859_v57 = vadd.f32 %v848_v54, %v721_v49  ;;  %v904_v49 = vld [vmem:[#allocation10 + $0x40] sm:$0xff] }
 0x1a8   :  { %v7966_v48 = vcombine.high %v902_v43, %v903_v44  ;;  %v905_v50 = vld [vmem:[#allocation10 + $0x60] sm:$0xff]  ;;  %v7972_v41 = vcombine.high %v908_v28, %v909_v62  ;;  %v7971_v52 = vcombine.low %v908_v28, %v909_v62 }
 0x1a9   :  { %v7954_v58 = vmul.f32 -1.442695, %v860_v53  ;;  %v7951_v59 = vmul.f32 -1.442695, %v857_v55  ;;  %v7952_v61 = vmul.f32 -1.442695, %v858_v60  ;;  %v7968_v25 = vcombine.high %v904_v49, %v905_v50 }
 0x1aa   :  { %v7953_v1 = vmul.f32 -1.442695, %v859_v57  ;;  %v7967_v51 = vcombine.low %v904_v49, %v905_v50  ;;  %v910_v11 = vld [vmem:[#allocation10 + $0x100] sm:$0xff] }
 0x1ab   :  { %9474 = vpow2.f32 %v7954_v58  ;;  %v911_v15 = vld [vmem:[#allocation10 + $0x120] sm:$0xff] }
 0x1ac   :  { %9476 = vpow2.f32 %v7951_v59  ;;  %v7974_v54 = vcombine.high %v910_v11, %v911_v15  ;;  %v912_v53 = vld [vmem:[#allocation10 + $0x140] sm:$0xff]  ;;  %v7973_v60 = vcombine.low %v910_v11, %v911_v15  ;;  %v951_v11 = vld [vmem:[%s13753_s8 + $0x20] sm:$0xff] }
 0x1ad   :  { %9478 = vpow2.f32 %v7952_v61  ;;  %v913_v55 = vld [vmem:[#allocation10 + $0x160] sm:$0xff]  ;;  %v952_v15 = vld [vmem:[%s13753_s8 + $0x40] sm:$0xff] }
 0x1ae   :  { %9480 = vpow2.f32 %v7953_v1  ;;  %v7976_v57 = vcombine.high %v912_v53, %v913_v55  ;;  %v914_v58 = vld [vmem:[#allocation10 + $0x180] sm:$0xff]  ;;  %v7975_v61 = vcombine.low %v912_v53, %v913_v55  ;;  %v953_v53 = vld [vmem:[%s13753_s8 + $0x60] sm:$0xff] }
 0x1af   :  { %v915_v59 = vld [vmem:[#allocation10 + $0x1a0] sm:$0xff]  ;;  %v9040_v55 = vpack.c.bf16 %v953_v53, %v952_v15  ;;  %v958_v15 = vld [vmem:[%s13753_s8 + $0x100] sm:$0xff] }
 0x1b0   :  { %v7978_v1 = vcombine.high %v914_v58, %v915_v59  ;;  %v926_v43 = vld [vmem:[#allocation10 + $0x300] sm:$0xff] }
 0x1b1   :  { %v927_v44 = vld [vmem:[#allocation10 + $0x320] sm:$0xff] }
 0x1b2   :  { %v931_v49 = vld [vmem:[#allocation10 + $0x3a0] sm:$0xff] }
 0x1b3   :  { %v932_v63 = vld [vmem:[#allocation10 + $0x3c0] sm:$0xff] }
 0x1b4   :  { %v933_v46 = vld [vmem:[#allocation10 + $0x3e0] sm:$0xff] }
 0x1b5   :  { %v9475_v3 = vpop.eup %9474  ;;  %v935_v28 = vld [vmem:[#allocation10 + $0x420] sm:$0xff] }
 0x1b6   :  { %v9477_v4 = vpop.eup %9476  ;;  %v876_v6 = vadd.f32 1.0, %v9475_v3  ;;  %v916_v3 = vld [vmem:[#allocation10 + $0x1c0] sm:$0xff] }
 0x1b7   :  { %v9479_v12 = vpop.eup %9478  ;;  %v873_v16 = vadd.f32 1.0, %v9477_v4  ;;  %v917_v4 = vld [vmem:[#allocation10 + $0x1e0] sm:$0xff] }
 0x1b8   :  { %v9481_v40 = vpop.eup %9480  ;;  %9482 = vrcp.f32 %v876_v6  ;;  %v874_v19 = vadd.f32 1.0, %v9479_v12  ;;  %v7977_v6 = vcombine.low %v914_v58, %v915_v59  ;;  %v7980_v12 = vcombine.high %v916_v3, %v917_v4 }
 0x1b9   :  { %v875_v20 = vadd.f32 1.0, %v9481_v40  ;;  %9484 = vrcp.f32 %v873_v16  ;;  %v918_v16 = vld [vmem:[#allocation10 + $0x200] sm:$0xff] }
 0x1ba   :  { %9486 = vrcp.f32 %v874_v19  ;;  %v919_v40 = vld [vmem:[#allocation10 + $0x220] sm:$0xff]  ;;  %v7979_v19 = vcombine.low %v916_v3, %v917_v4 }
 0x1bb   :  { %9488 = vrcp.f32 %v875_v20  ;;  %v7982_v20 = vcombine.high %v918_v16, %v919_v40  ;;  %v936_v4 = vld [vmem:[#allocation10 + $0x440] sm:$0xff] }
 0x1c2   :  { %v9483_v23 = vpop.eup %9482 }
 0x1c3   :  { %v9485_v24 = vpop.eup %9484  ;;  %v888_v26 = vmul.f32 %v9483_v23, %v10362_v8  ;;  %v920_v23 = vld [vmem:[#allocation10 + $0x240] sm:$0xff] }
 0x1c4   :  { %v9487_v27 = vpop.eup %9486  ;;  %v885_v29 = vmul.f32 %v9485_v24, %v10364_v7  ;;  %v9413_v7 = vld [vmem:[%s13748_s3 + $0x8] sm:$0xff]   ;;  %v921_v24 = vld [vmem:[#allocation10 + $0x260] sm:$0xff] }
 0x1c5   :  { %v9489_v30 = vpop.eup %9488  ;;  %v886_v31 = vmul.f32 %v9487_v27, %v10366_v17  ;;  %v896_v38 = vrot.slane %v888_v26, 2  ;;  %v7981_v26 = vcombine.low %v918_v16, %v919_v40  ;;  %v7984_v27 = vcombine.high %v920_v23, %v921_v24 }
 0x1c6   :  { %v887_v32 = vmul.f32 %v9489_v30, %v10368_v18  ;;  %v9414_v18 = vld [vmem:[%s13748_s3] sm:$0xff]   ;;  %v923_v30 = vld [vmem:[#allocation10 + $0x2a0] sm:$0xff] }
 0x1c7   :  { %v890_v34 = vrot.slane %v886_v31, 6  ;;  %v7983_v31 = vcombine.low %v920_v23, %v921_v24 }
 0x1c8   :  { %v893_v37 = vrot.slane %v887_v32, 4 }
 0x1c9   :  { %v898_v42 = vsel %vm418_vm2, %v885_v29, %v890_v34  ;;  %v922_v29 = vld [vmem:[#allocation10 + $0x280] sm:$0xff] }
 0x1ca   :  { %v899_v45 = vsel %vm227_vm0, %v898_v42, %v893_v37  ;;  %v7986_v32 = vcombine.high %v922_v29, %v923_v30  ;;  %v924_v34 = vld [vmem:[#allocation10 + $0x2c0] sm:$0xff] }
 0x1cb   :  { %v901_v47 = vsel %vm900_vm4, %v899_v45, %v896_v38  ;;  %v925_v37 = vld [vmem:[#allocation10 + $0x2e0] sm:$0xff]  ;;  %v7985_v38 = vcombine.low %v922_v29, %v923_v30 }
 0x1cc   :  { %v967_v8 = vpack.c.bf16 %v901_v47, %v901_v47  ;;  %v7988_v42 = vcombine.high %v924_v34, %v925_v37  ;;  %v7987_v45 = vcombine.low %v924_v34, %v925_v37  ;;  %v7990_v47 = vcombine.high %v926_v43, %v927_v44  ;;  %v941_v34 = vld [vmem:[#allocation10 + $0x4e0] sm:$0xff] }
 0x1ce   :  { %v980_v17 = vsel %vm227_vm0, %v967_v8, 0  ;;  %v928_v8 = vld [vmem:[#allocation10 + $0x340] sm:$0xff] }
 0x1cf   :  { %8609 = vmatpush3.bf16.msra.mxu0 %v980_v17  ;;  %8615 = vmatpush3.bf16.msra.mxu1 %v980_v17 }
 0x1d0   :  { %8620 = vmatprep.subr.bf16.mxu0 %v10038_v35  ;;  %1370 = vmatprep.subr.bf16.mxu1 %v7966_v48  ;;  %v929_v48 = vld [vmem:[#allocation10 + $0x360] sm:$0xff] }
 0x1d1   :  { %v7991_v50 = vcombine.low %v928_v8, %v929_v48 }
 0x1d2   :  { %8617 = vmatmul.mubr.msk.bf16.vlgmr.msra.gmra.mrb[16].mxu1 %vm975_vm5, %v9413_v7  ;;  %8611 = vmatmul.mubr.msk.bf16.vlgmr.msra.gmra.mrb[0].mxu0 %vm975_vm5, %v9414_v18  ;;  %v7989_v7 = vcombine.low %v926_v43, %v927_v44  ;;  %v930_v18 = vld [vmem:[#allocation10 + $0x380] sm:$0xff] }
 0x1d3   :  { %8621 = vmatpush3.bf16.msra.mxu0 %v980_v17  ;;  %8622 = vmatprep.mubr.msk.bf16.mxu0 %vm10040_vm3, %v10038_v35  ;;  %v7992_v17 = vcombine.high %v928_v8, %v929_v48  ;;  %v943_v8 = vld [vmem:[#allocation10 + $0x520] sm:$0xff] }
 0x1d4   :  { %1371 = vmatpush1.bf16.msra.mxu1 %v7965_v21  ;;  %v7994_v21 = vcombine.high %v930_v18, %v931_v49 }
 0x1d5   :  { %1372 = vmatprep.subr.bf16.mxu1 %v7968_v25  ;;  %v7993_v25 = vcombine.low %v930_v18, %v931_v49  ;;  %v945_v18 = vld [vmem:[#allocation10 + $0x560] sm:$0xff] }
 0x1d8   :  { %1373 = vmatpush1.bf16.msra.mxu1 %v7967_v51  ;;  %v7996_v51 = vcombine.high %v932_v63, %v933_v46 }
 0x1d9   :  { %1374 = vmatprep.subr.bf16.mxu1 %v7970_v22  ;;  %v7995_v22 = vcombine.low %v932_v63, %v933_v46 }
 0x1da   :  { %8623 = vmatmul.mubr.msk.bf16.vlgmr.msra.gmra.mrb[4].mxu0 %vm975_vm5, %v9415_v5  ;;  %v934_v5 = vld [vmem:[#allocation10 + $0x400] sm:$0xff] }
 0x1db   :  { %8658 = vmatprep.mubr.msk.f32.mxu0 %vm10040_vm3, %v10038_v35  ;;  %v7998_v62 = vcombine.high %v934_v5, %v935_v28 }
 0x1dc   :  { %1375 = vmatpush1.bf16.msra.mxu1 %v7969_v33  ;;  %v7997_v33 = vcombine.low %v934_v5, %v935_v28 }
 0x1dd   :  { %1376 = vmatprep.subr.bf16.mxu1 %v7972_v41  ;;  %v950_v41 = vld [vmem:[%s13753_s8] sm:$0xff] }
 0x1e0   :  { %1377 = vmatpush1.bf16.msra.mxu1 %v7971_v52  ;;  %v10041_v52 = vmov 0.0|0.0  }
 0x1e1   :  { %1378 = vmatprep.subr.bf16.mxu1 %v7974_v54  ;;  %9036 = vmatprep.subr.bf16.mxu0 %v10041_v52  ;;  %v9037_v54 = vpack.c.bf16 %v951_v11, %v950_v41  ;;  %v957_v41 = vld [vmem:[%s13753_s8 + $0xe0] sm:$0xff] }
 0x1e3   :  { %9038 = vmatpush3.bf16.msra.mxu0 %v9037_v54  ;;  %v959_v54 = vld [vmem:[%s13753_s8 + $0x120] sm:$0xff] }
 0x1e4   :  { %1379 = vmatpush1.bf16.msra.mxu1 %v7973_v60  ;;  %9039 = vmatprep.subr.bf16.mxu0 %v10041_v52  ;;  %v954_v60 = vld [vmem:[%s13753_s8 + $0x80] sm:$0xff]  ;;  %v9049_v53 = vpack.c.bf16 %v959_v54, %v958_v15 }
 0x1e5   :  { %1380 = vmatprep.subr.bf16.mxu1 %v7976_v57  ;;  %v955_v57 = vld [vmem:[%s13753_s8 + $0xa0] sm:$0xff] }
 0x1e6   :  { %v9043_v58 = vpack.c.bf16 %v955_v57, %v954_v60  ;;  %v961_v60 = vld [vmem:[%s13753_s8 + $0x160] sm:$0xff] }
 0x1e7   :  { %9041 = vmatpush3.bf16.msra.mxu0 %v9040_v55  ;;  %v960_v55 = vld [vmem:[%s13753_s8 + $0x140] sm:$0xff] }
 0x1e8   :  { %1381 = vmatpush1.bf16.msra.mxu1 %v7975_v61  ;;  %9042 = vmatprep.subr.bf16.mxu0 %v10041_v52  ;;  %v9052_v57 = vpack.c.bf16 %v961_v60, %v960_v55 }
 0x1e9   :  { %1382 = vmatprep.subr.bf16.mxu1 %v7978_v1 }
 0x1eb   :  { %9044 = vmatpush3.bf16.msra.mxu0 %v9043_v58  ;;  %v962_v58 = vld [vmem:[%s13753_s8 + $0x180] sm:$0xff] }
 0x1ec   :  { %1383 = vmatpush1.bf16.msra.mxu1 %v7977_v6  ;;  %9045 = vmatprep.subr.bf16.mxu0 %v10041_v52  ;;  %v937_v6 = vld [vmem:[#allocation10 + $0x460] sm:$0xff] }
 0x1ed   :  { %1384 = vmatprep.subr.bf16.mxu1 %v7980_v12  ;;  %v8000_v24 = vcombine.high %v936_v4, %v937_v6  ;;  %v7999_v29 = vcombine.low %v936_v4, %v937_v6 }
 0x1f0   :  { %1385 = vmatpush1.bf16.msra.mxu1 %v7979_v19 }
 0x1f1   :  { %1386 = vmatprep.subr.bf16.mxu1 %v7982_v20 }
 0x1f4   :  { %1387 = vmatpush1.bf16.msra.mxu1 %v7981_v26  ;;  %v938_v26 = vld [vmem:[#allocation10 + $0x480] sm:$0xff] }
 0x1f5   :  { %1388 = vmatprep.subr.bf16.mxu1 %v7984_v27  ;;  %v939_v27 = vld [vmem:[#allocation10 + $0x4a0] sm:$0xff] }
 0x1f6   :  { %v8002_v30 = vcombine.high %v938_v26, %v939_v27 }
 0x1f8   :  { %1389 = vmatpush1.bf16.msra.mxu1 %v7983_v31 }
 0x1f9   :  { %1390 = vmatprep.subr.bf16.mxu1 %v7986_v32  ;;  %v940_v32 = vld [vmem:[#allocation10 + $0x4c0] sm:$0xff] }
 0x1fa   :  { %v8003_v48 = vcombine.low %v940_v32, %v941_v34 }
 0x1fc   :  { %1391 = vmatpush1.bf16.msra.mxu1 %v7985_v38 }
 0x1fd   :  { %1392 = vmatprep.subr.bf16.mxu1 %v7988_v42  ;;  %v8001_v42 = vcombine.low %v938_v26, %v939_v27 }
 0x200   :  { %1393 = vmatpush1.bf16.msra.mxu1 %v7987_v45  ;;  %v8004_v45 = vcombine.high %v940_v32, %v941_v34 }
 0x201   :  { %1394 = vmatprep.subr.bf16.mxu1 %v7990_v47  ;;  %v942_v47 = vld [vmem:[#allocation10 + $0x500] sm:$0xff] }
 0x202   :  { %v8005_v49 = vcombine.low %v942_v47, %v943_v8 }
 0x204   :  { %1395 = vmatpush1.bf16.msra.mxu1 %v7989_v7  ;;  %v8006_v7 = vcombine.high %v942_v47, %v943_v8 }
 0x205   :  { %1396 = vmatprep.subr.bf16.mxu1 %v7992_v17  ;;  %v944_v17 = vld [vmem:[#allocation10 + $0x540] sm:$0xff] }
 0x206   :  { %v8007_v63 = vcombine.low %v944_v17, %v945_v18 }
 0x208   :  { %1397 = vmatpush1.bf16.msra.mxu1 %v7991_v50  ;;  %v8008_v50 = vcombine.high %v944_v17, %v945_v18 }
 0x209   :  { %1398 = vmatprep.subr.bf16.mxu1 %v7994_v21  ;;  %v946_v21 = vld [vmem:[#allocation10 + $0x580] sm:$0xff] }
 0x20c   :  { %1399 = vmatpush1.bf16.msra.mxu1 %v7993_v25  ;;  %v947_v25 = vld [vmem:[#allocation10 + $0x5a0] sm:$0xff] }
 0x20d   :  { %1400 = vmatprep.subr.bf16.mxu1 %v7996_v51  ;;  %v8010_v46 = vcombine.high %v946_v21, %v947_v25  ;;  %v948_v51 = vld [vmem:[#allocation10 + $0x5c0] sm:$0xff]  ;;  %v8009_v5 = vcombine.low %v946_v21, %v947_v25 }
 0x210   :  { %1401 = vmatpush1.bf16.msra.mxu1 %v7995_v22  ;;  %v949_v22 = vld [vmem:[#allocation10 + $0x5e0] sm:$0xff] }
 0x211   :  { %1413 = vmatprep.subr.bf16.mxu1 %v7998_v62  ;;  %v8012_v28 = vcombine.high %v948_v51, %v949_v22  ;;  %v8011_v62 = vcombine.low %v948_v51, %v949_v22 }
 0x2a5   :  { %v1069_v59 = vpop.f32.mrb[16].mxu1  ;;  %v1016_v61 = vpop.f32.mrb[0].mxu0 }
 0x2a6   :  { %v8618_v1 = vpop.f32.mrb[17].mxu1  ;;  %v8612_v3 = vpop.f32.mrb[1].mxu0 }
 0x2a7   :  { %v1072_v12 = vpop.f32.mrb[18].mxu1  ;;  %v1019_v16 = vpop.f32.mrb[2].mxu0  ;;  %v964_v1 = vld [vmem:[%s13753_s8 + $0x1c0] sm:$0xff] }
 0x2a8   :  { %v1076_v40 = vpack.c.bf16 %v1072_v12, %v1069_v59  ;;  %v1023_v19 = vpack.c.bf16 %v1019_v16, %v1016_v61  ;;  %v8619_v20 = vpop.f32.mrb[19].mxu1  ;;  %v8613_v23 = vpop.f32.mrb[3].mxu0  ;;  %v963_v59 = vld [vmem:[%s13753_s8 + $0x1a0] sm:$0xff] }
 0x2a9   :  { %v9055_v61 = vpack.c.bf16 %v963_v59, %v962_v58  ;;  %v965_v3 = vld [vmem:[%s13753_s8 + $0x1e0] sm:$0xff]  ;;  %v966_v59 = vld [vmem:[#allocation11] sm:$0xf] }
 0x2aa   :  { %1402 = vmatprep.mubr.bf16.mxu1 %v1076_v40  ;;  %v9058_v4 = vpack.c.bf16 %v965_v3, %v964_v1 }
 0x2ab   :  { %1403 = vmatmul.mubr.bf16.vlgmr.msra.gmra.mrb[20].mxu1 %v1023_v19 }
 0x2ac   :  { %1414 = vmatpush1.bf16.msra.mxu1 %v7997_v33  ;;  %1445 = vmatprep.mubr.bf16.mxu1 %v13759_v0  ;;  %v956_v33 = vld [vmem:[%s13753_s8 + $0xc0] sm:$0xff] }
 0x2ad   :  { %1415 = vmatprep.subr.bf16.mxu1 %v8000_v24  ;;  %v1122_v31 = vpop.f32.mrb[4].mxu0  ;;  %v9046_v11 = vpack.c.bf16 %v957_v41, %v956_v33  ;;  %v9416_v41 = vld [vmem:[%s13749_s4] sm:$0xff]  }
 0x2ae   :  { %v8624_v37 = vpop.f32.mrb[5].mxu0 }
 0x2af   :  { %v1125_v38 = vpop.f32.mrb[6].mxu0  ;;  %9047 = vmatpush3.bf16.msra.mxu0 %v9046_v11 }
 0x2b0   :  { %1416 = vmatpush1.bf16.msra.mxu1 %v7999_v29  ;;  %v1129_v43 = vpack.c.bf16 %v1125_v38, %v1122_v31  ;;  %v8625_v44 = vpop.f32.mrb[7].mxu0  ;;  %9048 = vmatprep.subr.bf16.mxu0 %v10041_v52 }
 0x2b1   :  { %1417 = vmatprep.subr.bf16.mxu1 %v8002_v30 }
 0x2b3   :  { %9050 = vmatpush3.bf16.msra.mxu0 %v9049_v53 }
 0x2b4   :  { %1418 = vmatpush1.bf16.msra.mxu1 %v8001_v42  ;;  %9051 = vmatprep.subr.bf16.mxu0 %v10041_v52 }
 0x2b5   :  { %1419 = vmatprep.subr.bf16.mxu1 %v8004_v45 }
 0x2b7   :  { %9053 = vmatpush3.bf16.msra.mxu0 %v9052_v57 }
 0x2b8   :  { %1420 = vmatpush1.bf16.msra.mxu1 %v8003_v48  ;;  %9054 = vmatprep.subr.bf16.mxu0 %v10041_v52 }
 0x2b9   :  { %1421 = vmatprep.subr.bf16.mxu1 %v8006_v7 }
 0x2bb   :  { %9056 = vmatpush3.bf16.msra.mxu0 %v9055_v61 }
 0x2bc   :  { %1422 = vmatpush1.bf16.msra.mxu1 %v8005_v49  ;;  %9057 = vmatprep.subr.bf16.mxu0 %v10041_v52 }
 0x2bd   :  { %1423 = vmatprep.subr.bf16.mxu1 %v8008_v50 }
 0x2bf   :  { %9059 = vmatpush3.bf16.msra.mxu0 %v9058_v4 }
 0x2c0   :  { %1424 = vmatpush1.bf16.msra.mxu1 %v8007_v63 }
 0x2c1   :  { %1425 = vmatprep.subr.bf16.mxu1 %v8010_v46 }
 0x2c4   :  { %1426 = vmatpush1.bf16.msra.mxu1 %v8009_v5 }
 0x2c5   :  { %1427 = vmatprep.subr.bf16.mxu1 %v8012_v28 }
 0x2c8   :  { %1428 = vmatpush1.bf16.msra.mxu1 %v8011_v62 }
 0x2c9   :  { %9060 = vmatprep.subr.bf16.mxu1 %v10041_v52 }
 0x2cb   :  { %1446 = vmatmul.mubr.bf16.vlgmr.msra.gmra.mrb[20].mxu1 %v1129_v43 }
 0x2cc   :  { %8711 = vmatprep.mubr.msk.f32.mxu1 %vm10040_vm3, %v10038_v35 }
 0x39e   :  { %v1447_v6 = vpop.f32.mrb[20].mxu1 }
 0x39f   :  { %v1449_v12 = vpop.f32.mrb[21].mxu1  ;;  %v1463_v40 = vmul.f32 %v1447_v6, %v1447_v6 }
 0x3a0   :  { %v1451_v16 = vpop.f32.mrb[22].mxu1  ;;  %v1479_v24 = vmul.f32 %v1449_v12, %v1449_v12 }
 0x3a1   :  { %v1456_v19 = vadd.f32 %v1451_v16, %v1447_v6  ;;  %v1464_v20 = vmul.f32 %v1451_v16, %v1451_v16  ;;  %v1453_v23 = vpop.f32.mrb[23].mxu1 }
 0x3a2   :  { %v1472_v26 = vadd.f32 %v1453_v23, %v1449_v12  ;;  %v1480_v27 = vmul.f32 %v1453_v23, %v1453_v23 }
 0x3a3   :  { %v1457_v29 = vrot.slane %v1456_v19, 4  ;;  %v1465_v30 = vadd.f32 %v1464_v20, %v1463_v40 }
 0x3a4   :  { %v1473_v31 = vrot.slane %v1472_v26, 4  ;;  %v1481_v32 = vadd.f32 %v1480_v27, %v1479_v24 }
 0x3a5   :  { %v1458_v34 = vadd.f32 %v1457_v29, %v1456_v19  ;;  %v1466_v37 = vrot.slane %v1465_v30, 4 }
 0x3a6   :  { %v1474_v38 = vadd.f32 %v1473_v31, %v1472_v26  ;;  %v1482_v42 = vrot.slane %v1481_v32, 4 }
 0x3a7   :  { %v1459_v43 = vrot.slane %v1458_v34, 2  ;;  %v1467_v44 = vadd.f32 %v1466_v37, %v1465_v30 }
 0x3a8   :  { %v1475_v45 = vrot.slane %v1474_v38, 2  ;;  %v1483_v47 = vadd.f32 %v1482_v42, %v1481_v32 }
 0x3a9   :  { %v1460_v8 = vadd.f32 %v1459_v43, %v1458_v34  ;;  %v1468_v48 = vrot.slane %v1467_v44, 2 }
 0x3aa   :  { %v1476_v7 = vadd.f32 %v1475_v45, %v1474_v38  ;;  %v1484_v17 = vrot.slane %v1483_v47, 2 }
 0x3ab   :  { %v1461_v18 = vrot.slane %v1460_v8, 1  ;;  %v1469_v49 = vadd.f32 %v1468_v48, %v1467_v44 }
 0x3ac   :  { %v1477_v50 = vrot.slane %v1476_v7, 1  ;;  %v1485_v21 = vadd.f32 %v1484_v17, %v1483_v47  ;;  %v9418_v17 = vld [vmem:[%s13749_s4 + $0x10] sm:$0xff]  }
 0x3ad   :  { %v1470_v25 = vrot.slane %v1469_v49, 1  ;;  %v1462_v46 = vadd.f32 %v1461_v18, %v1460_v8  ;;  %v1619_v18 = vld [vmem:[#allocation10 + $0x8] sm:$0xff] }
 0x3ae   :  { %v1486_v63 = vrot.slane %v1485_v21, 1  ;;  %v1478_v22 = vadd.f32 %v1477_v50, %v1476_v7  ;;  %v9417_v7 = vld [vmem:[%s13749_s4 + $0x8] sm:$0xff]   ;;  %v9419_v50 = vld [vmem:[%s13749_s4 + $0x18] sm:$0xff]  }
 0x3af   :  { %v1471_v51 = vadd.f32 %v1470_v25, %v1469_v49  ;;  %v1620_v49 = vld [vmem:[#allocation10 + $0x28] sm:$0xff] }
 0x3b0   :  { %v1487_v5 = vadd.f32 %v1486_v63, %v1485_v21  ;;  %v9420_v21 = vld [vmem:[%s13749_s4 + $0x20] sm:$0xff]   ;;  %v8037_v25 = vcombine.high %v1619_v18, %v1620_v49  ;;  %v1621_v63 = vld [vmem:[#allocation10 + $0x48] sm:$0xff] }
 0x3b1   :  { %v1489_v28 = vsel %vm1488_vm6, %v1462_v46, %v1471_v51  ;;  %v1622_v46 = vld [vmem:[#allocation10 + $0x68] sm:$0xff]  ;;  %v9421_v51 = vld [vmem:[%s13749_s4 + $0x28] sm:$0xff]  }
 0x3b2   :  { %v1490_v62 = vsel %vm418_vm2, %v1489_v28, %v1478_v22  ;;  %v8036_v22 = vcombine.low %v1619_v18, %v1620_v49  ;;  %v1623_v28 = vld [vmem:[#allocation10 + $0x88] sm:$0xff] }
 0x3b3   :  { %v1492_v33 = vsel %vm1491_vm7, %v1490_v62, %v1487_v5  ;;  %v8039_v5 = vcombine.high %v1621_v63, %v1622_v46  ;;  %v1624_v62 = vld [vmem:[#allocation10 + $0xa8] sm:$0xff] }
 0x3b4   :  { %8659 = vmatmul.mubr.f32.vlgmr.msra.gmra.mrb[8].mxu0 %v1492_v33  ;;  %v8038_v33 = vcombine.low %v1621_v63, %v1622_v46  ;;  %v1647_v46 = vld [vmem:[#allocation10 + $0x388] sm:$0xff] }
 0x3b5   :  { %8663 = vmatprep.mubr.msk.bf16.mxu0 %vm1699_vm8, %v9416_v41  ;;  %v8041_v41 = vcombine.high %v1623_v28, %v1624_v62 }
 0x487   :  { %v1559_v11 = vpop.f32.mrb[8].mxu0 }
 0x488   :  { %v1563_v15 = vmul.f32 %v1559_v11, %v1559_v11  ;;  %v8660_v54 = vpop.f32.mrb[9].mxu0 }
 0x489   :  { %v8040_v54 = vcombine.low %v1623_v28, %v1624_v62  ;;  %v1649_v28 = vld [vmem:[#allocation10 + $0x3c8] sm:$0xff] }
 0x48a   :  { %v1565_v53 = vrot.slane %v1563_v15, 7  ;;  %v1626_v15 = vld [vmem:[#allocation10 + $0xe8] sm:$0xff] }
 0x48b   :  { %v1650_v62 = vld [vmem:[#allocation10 + $0x3e8] sm:$0xff] }
 0x48c   :  { %v1567_v55 = vsub.f32 %v1559_v11, %v1565_v53 }
 0x48e   :  { %v1568_v60 = vmax.f32 %v1567_v55, 0.0  ;;  %v1627_v55 = vld [vmem:[#allocation10 + $0x108] sm:$0xff] }
 0x490   :  { %v1569_v57 = vadd.f32 1e-05, %v1568_v60  ;;  %v1628_v60 = vld [vmem:[#allocation10 + $0x128] sm:$0xff] }
 0x492   :  { %9490 = vrsqrt.f32 %v1569_v57 }
 0x49c   :  { %v9491_v58 = vpop.eup %9490 }
 0x49d   :  { %v8013_v61 = vrot.slane %v9491_v58, 9  ;;  %v8045_v58 = vcombine.high %v1627_v55, %v1628_v60 }
 0x49f   :  { %v1575_v1 = vmul.f32 %v8013_v61, %v966_v59  ;;  %v1630_v61 = vld [vmem:[#allocation10 + $0x168] sm:$0xff] }
 0x4a1   :  { %v1579_v3 = vrot.slane %v1575_v1, %v10311_v9  ;;  %v1582_v4 = vmul.f32 %v1575_v1, %v1559_v11  ;;  %v1596_v40 = vrot.slane %v1575_v1, %v10314_v10  ;;  %v1625_v11 = vld [vmem:[#allocation10 + $0xc8] sm:$0xff]  ;;  %v8044_v1 = vcombine.low %v1627_v55, %v1628_v60  ;;  %v1667_v55 = vld [vmem:[%s13753_s8 + $0x8] sm:$0xff] }
 0x4a2   :  { %v8043_v53 = vcombine.high %v1625_v11, %v1626_v15  ;;  %v8042_v57 = vcombine.low %v1625_v11, %v1626_v15  ;;  %v1651_v11 = vld [vmem:[#allocation10 + $0x408] sm:$0xff]  ;;  %v1668_v60 = vld [vmem:[%s13753_s8 + $0x28] sm:$0xff] }
 0x4a3   :  { %v1580_v19 = vmul.f32 %v1579_v3, %v1447_v6  ;;  %v1581_v20 = vmul.f32 %v1579_v3, %v1451_v16  ;;  %v1584_v24 = vrot.slane %v1582_v4, 7  ;;  %v1597_v26 = vmul.f32 %v1596_v40, %v1449_v12  ;;  %v1631_v4 = vld [vmem:[#allocation10 + $0x188] sm:$0xff] }
 0x4a4   :  { %v1598_v27 = vmul.f32 %v1596_v40, %v1453_v23  ;;  %v1632_v40 = vld [vmem:[#allocation10 + $0x1a8] sm:$0xff] }
 0x4a5   :  { %v1586_v29 = vsub.f32 %v966_v59, %v1584_v24  ;;  %v1629_v59 = vld [vmem:[#allocation10 + $0x148] sm:$0xff] }
 0x4a6   :  { %v8047_v3 = vcombine.high %v1629_v59, %v1630_v61  ;;  %v1633_v24 = vld [vmem:[#allocation10 + $0x1c8] sm:$0xff] }
 0x4a7   :  { %v1590_v30 = vrot.slane %v1586_v29, %v10343_v2  ;;  %v1602_v31 = vrot.slane %v1586_v29, %v10349_v36  ;;  %v1652_v15 = vld [vmem:[#allocation10 + $0x428] sm:$0xff] }
 0x4a9   :  { %v1591_v32 = vadd.f32 %v1590_v30, %v1580_v19  ;;  %v1592_v34 = vadd.f32 %v1590_v30, %v1581_v20  ;;  %v1603_v37 = vadd.f32 %v1602_v31, %v1597_v26  ;;  %v1604_v38 = vadd.f32 %v1602_v31, %v1598_v27  ;;  %v1634_v26 = vld [vmem:[#allocation10 + $0x1e8] sm:$0xff] }
 0x4aa   :  { %v8046_v19 = vcombine.low %v1629_v59, %v1630_v61  ;;  %v8049_v20 = vcombine.high %v1631_v4, %v1632_v40  ;;  %v8048_v27 = vcombine.low %v1631_v4, %v1632_v40  ;;  %v8051_v29 = vcombine.high %v1633_v24, %v1634_v26  ;;  %v1635_v30 = vld [vmem:[#allocation10 + $0x208] sm:$0xff] }
 0x4ab   :  { %v8014_v42 = vmul.f32 -1.442695, %v1603_v37  ;;  %v8015_v43 = vmul.f32 -1.442695, %v1604_v38  ;;  %v1636_v31 = vld [vmem:[#allocation10 + $0x228] sm:$0xff] }
 0x4ac   :  { %v1637_v37 = vld [vmem:[#allocation10 + $0x248] sm:$0xff] }
 0x4ad   :  { %9492 = vpow2.f32 %v8014_v42  ;;  %v1638_v38 = vld [vmem:[#allocation10 + $0x268] sm:$0xff]  ;;  %v8052_v42 = vcombine.low %v1635_v30, %v1636_v31 }
 0x4ae   :  { %9494 = vpow2.f32 %v8015_v43  ;;  %v8055_v43 = vcombine.high %v1637_v37, %v1638_v38 }
 0x4b7   :  { %v9493_v44 = vpop.eup %9492 }
 0x4b8   :  { %v9495_v45 = vpop.eup %9494  ;;  %v1611_v6 = vadd.f32 1.0, %v9493_v44  ;;  %v1639_v44 = vld [vmem:[#allocation10 + $0x288] sm:$0xff] }
 0x4b9   :  { %v1612_v16 = vadd.f32 1.0, %v9495_v45  ;;  %v1640_v45 = vld [vmem:[#allocation10 + $0x2a8] sm:$0xff] }
 0x4ba   :  { %9496 = vrcp.f32 %v1611_v6  ;;  %v8054_v6 = vcombine.low %v1637_v37, %v1638_v38 }
 0x4bb   :  { %9498 = vrcp.f32 %v1612_v16  ;;  %v8057_v16 = vcombine.high %v1639_v44, %v1640_v45 }
 0x4c4   :  { %v9497_v12 = vpop.eup %9496 }
 0x4c5   :  { %v9499_v23 = vpop.eup %9498  ;;  %v1617_v47 = vmul.f32 %v9497_v12, %v1591_v32  ;;  %v8050_v32 = vcombine.low %v1633_v24, %v1634_v26  ;;  %v1641_v12 = vld [vmem:[#allocation10 + $0x2c8] sm:$0xff] }
 0x4c6   :  { %v1618_v8 = vmul.f32 %v9499_v23, %v1592_v34  ;;  %v8053_v34 = vcombine.high %v1635_v30, %v1636_v31  ;;  %v1642_v23 = vld [vmem:[#allocation10 + $0x2e8] sm:$0xff] }
 0x4c7   :  { %v1653_v24 = vld [vmem:[#allocation10 + $0x448] sm:$0xff] }
 0x4c8   :  { %v1684_v48 = vpack.c.bf16 %v1618_v8, %v1617_v47  ;;  %v8056_v47 = vcombine.low %v1639_v44, %v1640_v45  ;;  %v8059_v8 = vcombine.high %v1641_v12, %v1642_v23  ;;  %v1654_v26 = vld [vmem:[#allocation10 + $0x468] sm:$0xff] }
 0x4c9   :  { %v8071_v31 = vcombine.high %v1653_v24, %v1654_v26  ;;  %v8070_v37 = vcombine.low %v1653_v24, %v1654_v26  ;;  %v1657_v44 = vld [vmem:[#allocation10 + $0x4c8] sm:$0xff]  ;;  %v1680_v24 = vld [vmem:[%s13753_s8 + $0x1a8] sm:$0xff] }
 0x4ca   :  { %8661 = vmatprep.subr.bf16.mxu0 %v1684_v48  ;;  %v1658_v45 = vld [vmem:[#allocation10 + $0x4e8] sm:$0xff] }
 0x4cb   :  { %8662 = vmatpush3.bf16.msra.mxu0 %v1684_v48 }
 0x4cc   :  { %8667 = vmatprep.subr.bf16.mxu0 %v1684_v48 }
 0x4ce   :  { %8664 = vmatmul.mubr.msk.bf16.vlgmr.msra.gmra.mrb[12].mxu0 %vm1699_vm8, %v9417_v7  ;;  %v1644_v7 = vld [vmem:[#allocation10 + $0x328] sm:$0xff] }
 0x4cf   :  { %8668 = vmatpush3.bf16.msra.mxu0 %v1684_v48  ;;  %8669 = vmatprep.mubr.msk.bf16.mxu0 %vm1699_vm8, %v9418_v17  ;;  %v8058_v17 = vcombine.low %v1641_v12, %v1642_v23 }
 0x4d0   :  { %8673 = vmatprep.subr.bf16.mxu0 %v1684_v48 }
 0x4d6   :  { %8670 = vmatmul.mubr.msk.bf16.vlgmr.msra.gmra.mrb[16].mxu0 %vm1699_vm8, %v9419_v50  ;;  %v1645_v50 = vld [vmem:[#allocation10 + $0x348] sm:$0xff] }
 0x4d7   :  { %8674 = vmatpush3.bf16.msra.mxu0 %v1684_v48  ;;  %8675 = vmatprep.mubr.msk.bf16.mxu0 %vm1699_vm8, %v9420_v21  ;;  %v1643_v48 = vld [vmem:[#allocation10 + $0x308] sm:$0xff] }
 0x4d8   :  { %2141 = vmatprep.subr.bf16.mxu0 %v8037_v25  ;;  %v8061_v18 = vcombine.high %v1643_v48, %v1644_v7  ;;  %v8060_v49 = vcombine.low %v1643_v48, %v1644_v7  ;;  %v1646_v21 = vld [vmem:[#allocation10 + $0x368] sm:$0xff] }
 0x4d9   :  { %v8062_v25 = vcombine.low %v1645_v50, %v1646_v21  ;;  %v8063_v63 = vcombine.high %v1645_v50, %v1646_v21  ;;  %v1659_v48 = vld [vmem:[#allocation10 + $0x508] sm:$0xff] }
 0x4da   :  { %v1660_v7 = vld [vmem:[#allocation10 + $0x528] sm:$0xff] }
 0x4db   :  { %v1662_v50 = vld [vmem:[#allocation10 + $0x568] sm:$0xff]  ;;  %v8076_v21 = vcombine.low %v1659_v48, %v1660_v7 }
 0x4de   :  { %8676 = vmatmul.mubr.msk.bf16.vlgmr.msra.gmra.mrb[20].mxu0 %vm1699_vm8, %v9421_v51  ;;  %v1648_v51 = vld [vmem:[#allocation10 + $0x3a8] sm:$0xff] }
 0x4df   :  { %2142 = vmatpush1.bf16.msra.mxu0 %v8036_v22  ;;  %v8064_v22 = vcombine.low %v1647_v46, %v1648_v51 }
 0x4e0   :  { %2143 = vmatprep.subr.bf16.mxu0 %v8039_v5  ;;  %v8065_v5 = vcombine.high %v1647_v46, %v1648_v51  ;;  %v1664_v46 = vld [vmem:[#allocation10 + $0x5a8] sm:$0xff] }
 0x4e3   :  { %2144 = vmatpush1.bf16.msra.mxu0 %v8038_v33  ;;  %v8067_v33 = vcombine.high %v1649_v28, %v1650_v62 }
 0x4e4   :  { %2145 = vmatprep.subr.bf16.mxu0 %v8041_v41  ;;  %v8066_v41 = vcombine.low %v1649_v28, %v1650_v62  ;;  %v1666_v28 = vld [vmem:[#allocation10 + $0x5e8] sm:$0xff] }
 0x4e7   :  { %2146 = vmatpush1.bf16.msra.mxu0 %v8040_v54  ;;  %v8069_v54 = vcombine.high %v1651_v11, %v1652_v15 }
 0x4e8   :  { %2147 = vmatprep.subr.bf16.mxu0 %v8043_v53  ;;  %v8068_v53 = vcombine.low %v1651_v11, %v1652_v15  ;;  %v1669_v11 = vld [vmem:[%s13753_s8 + $0x48] sm:$0xff] }
 0x4e9   :  { %v1670_v15 = vld [vmem:[%s13753_s8 + $0x68] sm:$0xff] }
 0x4eb   :  { %2148 = vmatpush1.bf16.msra.mxu0 %v8042_v57  ;;  %v9061_v57 = vpack.c.bf16 %v1668_v60, %v1667_v55  ;;  %v1672_v55 = vld [vmem:[%s13753_s8 + $0xa8] sm:$0xff] }
 0x4ec   :  { %2149 = vmatprep.subr.bf16.mxu0 %v8045_v58 }
 0x4ed   :  { %9062 = vmatpush3.bf16.msra.mxu1 %v9061_v57  ;;  %v1673_v57 = vld [vmem:[%s13753_s8 + $0xc8] sm:$0xff] }
 0x4ee   :  { %9063 = vmatprep.subr.bf16.mxu1 %v10041_v52 }
 0x4ef   :  { %2150 = vmatpush1.bf16.msra.mxu0 %v8044_v1 }
 0x4f0   :  { %2151 = vmatprep.subr.bf16.mxu0 %v8047_v3 }
 0x4f3   :  { %2152 = vmatpush1.bf16.msra.mxu0 %v8046_v19 }
 0x4f4   :  { %2153 = vmatprep.subr.bf16.mxu0 %v8049_v20 }
 0x4f7   :  { %2154 = vmatpush1.bf16.msra.mxu0 %v8048_v27 }
 0x4f8   :  { %2155 = vmatprep.subr.bf16.mxu0 %v8051_v29 }
 0x4fb   :  { %2156 = vmatpush1.bf16.msra.mxu0 %v8050_v32  ;;  %v1655_v32 = vld [vmem:[#allocation10 + $0x488] sm:$0xff] }
 0x4fc   :  { %2157 = vmatprep.subr.bf16.mxu0 %v8053_v34  ;;  %v1656_v34 = vld [vmem:[#allocation10 + $0x4a8] sm:$0xff] }
 0x4fd   :  { %v8072_v23 = vcombine.low %v1655_v32, %v1656_v34 }
 0x4ff   :  { %2158 = vmatpush1.bf16.msra.mxu0 %v8052_v42  ;;  %v8073_v42 = vcombine.high %v1655_v32, %v1656_v34 }
 0x500   :  { %2159 = vmatprep.subr.bf16.mxu0 %v8055_v43 }
 0x503   :  { %2160 = vmatpush1.bf16.msra.mxu0 %v8054_v6 }
 0x504   :  { %2161 = vmatprep.subr.bf16.mxu0 %v8057_v16 }
 0x507   :  { %2162 = vmatpush1.bf16.msra.mxu0 %v8056_v47 }
 0x508   :  { %2163 = vmatprep.subr.bf16.mxu0 %v8059_v8  ;;  %v8075_v8 = vcombine.high %v1657_v44, %v1658_v45 }
 0x50b   :  { %2164 = vmatpush1.bf16.msra.mxu0 %v8058_v17  ;;  %v8074_v17 = vcombine.low %v1657_v44, %v1658_v45 }
 0x50c   :  { %2165 = vmatprep.subr.bf16.mxu0 %v8061_v18  ;;  %v8077_v18 = vcombine.high %v1659_v48, %v1660_v7 }
 0x50f   :  { %2166 = vmatpush1.bf16.msra.mxu0 %v8060_v49  ;;  %v1661_v49 = vld [vmem:[#allocation10 + $0x548] sm:$0xff] }
 0x510   :  { %2167 = vmatprep.subr.bf16.mxu0 %v8063_v63  ;;  %v1663_v63 = vld [vmem:[#allocation10 + $0x588] sm:$0xff]  ;;  %v8078_v51 = vcombine.low %v1661_v49, %v1662_v50 }
 0x511   :  { %v8080_v62 = vcombine.low %v1663_v63, %v1664_v46 }
 0x513   :  { %2168 = vmatpush1.bf16.msra.mxu0 %v8062_v25  ;;  %v8079_v25 = vcombine.high %v1661_v49, %v1662_v50 }
 0x514   :  { %2169 = vmatprep.subr.bf16.mxu0 %v8065_v5  ;;  %v1665_v5 = vld [vmem:[#allocation10 + $0x5c8] sm:$0xff] }
 0x517   :  { %2170 = vmatpush1.bf16.msra.mxu0 %v8064_v22  ;;  %v8081_v22 = vcombine.high %v1663_v63, %v1664_v46 }
 0x518   :  { %2171 = vmatprep.subr.bf16.mxu0 %v8067_v33  ;;  %v8083_v33 = vcombine.high %v1665_v5, %v1666_v28 }
 0x51b   :  { %2172 = vmatpush1.bf16.msra.mxu0 %v8066_v41  ;;  %v8082_v41 = vcombine.low %v1665_v5, %v1666_v28 }
 0x51c   :  { %2194 = vmatprep.subr.bf16.mxu0 %v8069_v54  ;;  %v9064_v54 = vpack.c.bf16 %v1670_v15, %v1669_v11 }
 0x51e   :  { %9065 = vmatpush3.bf16.msra.mxu1 %v9064_v54 }
 0x51f   :  { %9066 = vmatprep.subr.bf16.mxu1 %v10041_v52 }
 0x5a1   :  { %v8665_v58 = vpop.f32.mrb[12].mxu0 }
 0x5a2   :  { %v1740_v59 = vpop.f32.mrb[13].mxu0 }
 0x5a3   :  { %v8666_v61 = vpop.f32.mrb[14].mxu0 }
 0x5a4   :  { %v1756_v1 = vpack.c.bf16 %v8666_v61, %v8665_v58  ;;  %v1743_v3 = vpop.f32.mrb[15].mxu0  ;;  %v1674_v58 = vld [vmem:[%s13753_s8 + $0xe8] sm:$0xff] }
 0x5a5   :  { %v1755_v4 = vpack.c.bf16 %v1743_v3, %v1740_v59  ;;  %v9070_v59 = vpack.c.bf16 %v1674_v58, %v1673_v57  ;;  %v1675_v61 = vld [vmem:[%s13753_s8 + $0x108] sm:$0xff] }
 0x5a9   :  { %v8671_v40 = vpop.f32.mrb[16].mxu0 }
 0x5aa   :  { %v1812_v19 = vpop.f32.mrb[17].mxu0 }
 0x5ab   :  { %v8672_v20 = vpop.f32.mrb[18].mxu0 }
 0x5ac   :  { %v1828_v27 = vpack.c.bf16 %v8672_v20, %v8671_v40  ;;  %v1815_v29 = vpop.f32.mrb[19].mxu0  ;;  %v1678_v40 = vld [vmem:[%s13753_s8 + $0x168] sm:$0xff] }
 0x5ad   :  { %v1827_v30 = vpack.c.bf16 %v1815_v29, %v1812_v19  ;;  %v1679_v20 = vld [vmem:[%s13753_s8 + $0x188] sm:$0xff] }
 0x5ae   :  { %v9079_v26 = vpack.c.bf16 %v1680_v24, %v1679_v20  ;;  %v1682_v29 = vld [vmem:[%s13753_s8 + $0x1e8] sm:$0xff] }
 0x5af   :  { %2173 = vmatprep.mubr.bf16.mxu0 %v1827_v30 }
 0x5b0   :  { %2174 = vmatmul.mubr.bf16.vlgmr.msra.gmra.mrb[24].mxu0 %v1755_v4  ;;  %v1677_v4 = vld [vmem:[%s13753_s8 + $0x148] sm:$0xff] }
 0x5b1   :  { %2195 = vmatpush1.bf16.msra.mxu0 %v8068_v53  ;;  %2183 = vmatprep.mubr.bf16.mxu0 %v1828_v27  ;;  %v8677_v38 = vpop.f32.mrb[20].mxu0  ;;  %v1671_v53 = vld [vmem:[%s13753_s8 + $0x88] sm:$0xff]  ;;  %v9076_v19 = vpack.c.bf16 %v1678_v40, %v1677_v4 }
 0x5b2   :  { %2196 = vmatprep.subr.bf16.mxu0 %v8071_v31  ;;  %v1884_v43 = vpop.f32.mrb[21].mxu0  ;;  %v9067_v60 = vpack.c.bf16 %v1672_v55, %v1671_v53  ;;  %v1681_v27 = vld [vmem:[%s13753_s8 + $0x1c8] sm:$0xff] }
 0x5b3   :  { %v8678_v6 = vpop.f32.mrb[22].mxu0  ;;  %v9082_v30 = vpack.c.bf16 %v1682_v29, %v1681_v27 }
 0x5b4   :  { %v1900_v16 = vpack.c.bf16 %v8678_v6, %v8677_v38  ;;  %v1887_v12 = vpop.f32.mrb[23].mxu0  ;;  %9068 = vmatpush3.bf16.msra.mxu1 %v9067_v60 }
 0x5b5   :  { %2197 = vmatpush1.bf16.msra.mxu0 %v8070_v37  ;;  %v1899_v47 = vpack.c.bf16 %v1887_v12, %v1884_v43  ;;  %9069 = vmatprep.subr.bf16.mxu1 %v10041_v52 }
 0x5b6   :  { %2198 = vmatprep.subr.bf16.mxu0 %v8073_v42 }
 0x5b8   :  { %2184 = vmatmul.mubr.bf16.gmra.mrb[28].mxu0 %v1756_v1  ;;  %9071 = vmatpush3.bf16.msra.mxu1 %v9070_v59  ;;  %v1676_v1 = vld [vmem:[%s13753_s8 + $0x128] sm:$0xff] }
 0x5b9   :  { %2199 = vmatpush1.bf16.msra.mxu0 %v8072_v23  ;;  %2226 = vmatprep.mubr.bf16.mxu0 %v13759_v0  ;;  %v9073_v3 = vpack.c.bf16 %v1676_v1, %v1675_v61 }
 0x5ba   :  { %2200 = vmatprep.subr.bf16.mxu0 %v8075_v8  ;;  %9072 = vmatprep.subr.bf16.mxu1 %v10041_v52 }
 0x5bc   :  { %9074 = vmatpush3.bf16.msra.mxu1 %v9073_v3 }
 0x5bd   :  { %2201 = vmatpush1.bf16.msra.mxu0 %v8074_v17  ;;  %9075 = vmatprep.subr.bf16.mxu1 %v10041_v52 }
 0x5be   :  { %2202 = vmatprep.subr.bf16.mxu0 %v8077_v18 }
 0x5c0   :  { %9077 = vmatpush3.bf16.msra.mxu1 %v9076_v19 }
 0x5c1   :  { %2203 = vmatpush1.bf16.msra.mxu0 %v8076_v21  ;;  %9078 = vmatprep.subr.bf16.mxu1 %v10041_v52 }
 0x5c2   :  { %2204 = vmatprep.subr.bf16.mxu0 %v8079_v25 }
 0x5c4   :  { %9080 = vmatpush3.bf16.msra.mxu1 %v9079_v26 }
 0x5c5   :  { %2205 = vmatpush1.bf16.msra.mxu0 %v8078_v51  ;;  %9081 = vmatprep.subr.bf16.mxu1 %v10041_v52 }
 0x5c6   :  { %2206 = vmatprep.subr.bf16.mxu0 %v8081_v22 }
 0x5c8   :  { %9083 = vmatpush3.bf16.msra.mxu1 %v9082_v30 }
 0x5c9   :  { %2207 = vmatpush1.bf16.msra.mxu0 %v8080_v62 }
 0x5ca   :  { %2208 = vmatprep.subr.bf16.mxu0 %v8083_v33 }
 0x5cd   :  { %2209 = vmatpush1.bf16.msra.mxu0 %v8082_v41 }
 0x5d0   :  { %2227 = vmatmul.mubr.bf16.vlgmr.msra.gmra.mrb[24].mxu0 %v1899_v47 }
 0x5d1   :  { %2236 = vmatprep.mubr.bf16.mxu0 %v13759_v0 }
 0x5d8   :  { %2237 = vmatmul.mubr.bf16.gmra.mrb[28].mxu0 %v1900_v16 }
 0x6a3   :  { %v10570_v31 = vpop.f32.mrb[24].mxu0 }
 0x6a4   :  { %v10572_v32 = vpop.f32.mrb[25].mxu0  ;;  %v2256_v37 = vmul.f32 %v10570_v31, %v10570_v31 }
 0x6a5   :  { %v10574_v34 = vpop.f32.mrb[26].mxu0  ;;  %v2278_v44 = vmul.f32 %v10572_v32, %v10572_v32 }
 0x6a6   :  { %v2247_v38 = vadd.f32 %v10574_v34, %v10570_v31  ;;  %v2257_v42 = vmul.f32 %v10574_v34, %v10574_v34  ;;  %v10582_v43 = vpop.f32.mrb[27].mxu0 }
 0x6a7   :  { %v2269_v45 = vadd.f32 %v10582_v43, %v10572_v32  ;;  %v2279_v6 = vmul.f32 %v10582_v43, %v10582_v43 }
 0x6a8   :  { %v2260_v16 = vadd.f32 %v2257_v42, %v2256_v37  ;;  %v9422_v42 = vld [vmem:[%s13750_s5] sm:$0xff]  }
 0x6a9   :  { %v2282_v12 = vadd.f32 %v2279_v6, %v2278_v44  ;;  %v2442_v44 = vld [vmem:[#allocation10 + $0x10] sm:$0xff] }
 0x6aa   :  { %v2444_v6 = vld [vmem:[#allocation10 + $0x50] sm:$0xff] }
 0x6ab   :  { %v10590_v23 = vpop.f32.mrb[28].mxu0 }
 0x6ac   :  { %v2248_v47 = vadd.f32 %v2247_v38, %v10590_v23  ;;  %v2258_v8 = vmul.f32 %v10590_v23, %v10590_v23  ;;  %v10595_v48 = vpop.f32.mrb[29].mxu0 }
 0x6ad   :  { %v2270_v7 = vadd.f32 %v2269_v45, %v10595_v48  ;;  %v2280_v17 = vmul.f32 %v10595_v48, %v10595_v48  ;;  %v10600_v18 = vpop.f32.mrb[30].mxu0  ;;  %v2443_v45 = vld [vmem:[#allocation10 + $0x30] sm:$0xff] }
 0x6ae   :  { %v2261_v49 = vadd.f32 %v2260_v16, %v2258_v8  ;;  %v2249_v50 = vadd.f32 %v2248_v47, %v10600_v18  ;;  %v2259_v21 = vmul.f32 %v10600_v18, %v10600_v18  ;;  %v10605_v25 = vpop.f32.mrb[31].mxu0  ;;  %v8129_v16 = vcombine.low %v2442_v44, %v2443_v45  ;;  %v2445_v47 = vld [vmem:[#allocation10 + $0x70] sm:$0xff] }
 0x6af   :  { %v2283_v63 = vadd.f32 %v2282_v12, %v2280_v17  ;;  %v2271_v46 = vadd.f32 %v2270_v7, %v10605_v25  ;;  %v2281_v51 = vmul.f32 %v10605_v25, %v10605_v25  ;;  %v8130_v12 = vcombine.high %v2442_v44, %v2443_v45  ;;  %v2446_v7 = vld [vmem:[#allocation10 + $0x90] sm:$0xff]  ;;  %v1683_v44 = vld [vmem:[#allocation11 + $0x4] sm:$0xf] }
 0x6b0   :  { %v2250_v22 = vrot.slane %v2249_v50, 4  ;;  %v2262_v5 = vadd.f32 %v2261_v49, %v2259_v21  ;;  %v8132_v8 = vcombine.high %v2444_v6, %v2445_v47  ;;  %v2447_v17 = vld [vmem:[#allocation10 + $0xb0] sm:$0xff]  ;;  %v8131_v49 = vcombine.low %v2444_v6, %v2445_v47 }
 0x6b1   :  { %v2272_v28 = vrot.slane %v2271_v46, 4  ;;  %v2284_v62 = vadd.f32 %v2283_v63, %v2281_v51  ;;  %3079 = vmatprep.subr.bf16.mxu0 %v8130_v12  ;;  %v2448_v21 = vld [vmem:[#allocation10 + $0xd0] sm:$0xff] }
 0x6b2   :  { %v2251_v33 = vadd.f32 %v2250_v22, %v2249_v50  ;;  %v2263_v41 = vrot.slane %v2262_v5, 4  ;;  %3080 = vmatpush1.bf16.msra.mxu0 %v8129_v16  ;;  %v8134_v50 = vcombine.high %v2446_v7, %v2447_v17  ;;  %v2449_v63 = vld [vmem:[#allocation10 + $0xf0] sm:$0xff] }
 0x6b3   :  { %v2273_v11 = vadd.f32 %v2272_v28, %v2271_v46  ;;  %v2285_v15 = vrot.slane %v2284_v62, 4  ;;  %3081 = vmatprep.subr.bf16.mxu0 %v8132_v8  ;;  %v8133_v46 = vcombine.low %v2446_v7, %v2447_v17  ;;  %v8136_v51 = vcombine.high %v2448_v21, %v2449_v63  ;;  %v2450_v22 = vld [vmem:[#allocation10 + $0x110] sm:$0xff] }
 0x6b4   :  { %v2252_v54 = vrot.slane %v2251_v33, 2  ;;  %v2264_v53 = vadd.f32 %v2263_v41, %v2262_v5  ;;  %v2451_v5 = vld [vmem:[#allocation10 + $0x130] sm:$0xff]  ;;  %v8135_v41 = vcombine.low %v2448_v21, %v2449_v63 }
 0x6b5   :  { %v2274_v55 = vrot.slane %v2273_v11, 2  ;;  %v2286_v60 = vadd.f32 %v2285_v15, %v2284_v62  ;;  %v2462_v12 = vld [vmem:[#allocation10 + $0x290] sm:$0xff] }
 0x6b6   :  { %v2253_v57 = vadd.f32 %v2252_v54, %v2251_v33  ;;  %v2265_v58 = vrot.slane %v2264_v53, 2  ;;  %3082 = vmatpush1.bf16.msra.mxu0 %v8131_v49  ;;  %v2452_v54 = vld [vmem:[#allocation10 + $0x150] sm:$0xff] }
 0x6b7   :  { %v2275_v59 = vadd.f32 %v2274_v55, %v2273_v11  ;;  %v2287_v61 = vrot.slane %v2286_v60, 2  ;;  %3083 = vmatprep.subr.bf16.mxu0 %v8134_v50  ;;  %v8138_v11 = vcombine.high %v2450_v22, %v2451_v5  ;;  %v2463_v47 = vld [vmem:[#allocation10 + $0x2b0] sm:$0xff] }
 0x6b8   :  { %v2254_v1 = vrot.slane %v2253_v57, 1  ;;  %v2266_v3 = vadd.f32 %v2265_v58, %v2264_v53  ;;  %v2453_v53 = vld [vmem:[#allocation10 + $0x170] sm:$0xff]  ;;  %v8150_v21 = vcombine.high %v2462_v12, %v2463_v47  ;;  %v8149_v63 = vcombine.low %v2462_v12, %v2463_v47  ;;  %v9425_v12 = vld [vmem:[%s13750_s5 + $0x18] sm:$0xff]  }
 0x6b9   :  { %v2276_v4 = vrot.slane %v2275_v59, 1  ;;  %v2288_v40 = vadd.f32 %v2287_v61, %v2286_v60  ;;  %v8137_v60 = vcombine.low %v2450_v22, %v2451_v5  ;;  %v2455_v61 = vld [vmem:[#allocation10 + $0x1b0] sm:$0xff] }
 0x6ba   :  { %v2267_v19 = vrot.slane %v2266_v3, 1  ;;  %v2255_v24 = vadd.f32 %v2254_v1, %v2253_v57  ;;  %3084 = vmatpush1.bf16.msra.mxu0 %v8133_v46  ;;  %v8140_v57 = vcombine.high %v2452_v54, %v2453_v53  ;;  %v9426_v47 = vld [vmem:[%s13750_s5 + $0x20] sm:$0xff]  }
 0x6bb   :  { %v2289_v20 = vrot.slane %v2288_v40, 1  ;;  %v2277_v27 = vadd.f32 %v2276_v4, %v2275_v59  ;;  %3085 = vmatprep.subr.bf16.mxu0 %v8136_v51  ;;  %v2454_v59 = vld [vmem:[#allocation10 + $0x190] sm:$0xff] }
 0x6bc   :  { %v2268_v26 = vadd.f32 %v2267_v19, %v2266_v3  ;;  %v8139_v3 = vcombine.low %v2452_v54, %v2453_v53  ;;  %v8142_v4 = vcombine.high %v2454_v59, %v2455_v61  ;;  %v2457_v19 = vld [vmem:[#allocation10 + $0x1f0] sm:$0xff] }
 0x6bd   :  { %v2290_v29 = vadd.f32 %v2289_v20, %v2288_v40  ;;  %v2456_v40 = vld [vmem:[#allocation10 + $0x1d0] sm:$0xff]  ;;  %v8141_v20 = vcombine.low %v2454_v59, %v2455_v61 }
 0x6be   :  { %v2291_v30 = vsel %vm1488_vm6, %v2255_v24, %v2268_v26  ;;  %3086 = vmatpush1.bf16.msra.mxu0 %v8135_v41  ;;  %v8144_v24 = vcombine.high %v2456_v40, %v2457_v19  ;;  %v2458_v26 = vld [vmem:[#allocation10 + $0x210] sm:$0xff] }
 0x6bf   :  { %v2292_v37 = vsel %vm418_vm2, %v2291_v30, %v2277_v27  ;;  %3087 = vmatprep.subr.bf16.mxu0 %v8138_v11  ;;  %v2459_v27 = vld [vmem:[#allocation10 + $0x230] sm:$0xff] }
 0x6c0   :  { %v2293_v38 = vsel %vm1491_vm7, %v2292_v37, %v2290_v29  ;;  %v8143_v29 = vcombine.low %v2456_v40, %v2457_v19  ;;  %v8146_v30 = vcombine.high %v2458_v26, %v2459_v27  ;;  %v2460_v37 = vld [vmem:[#allocation10 + $0x250] sm:$0xff]  ;;  %v8145_v45 = vcombine.low %v2458_v26, %v2459_v27 }
 0x6c1   :  { %8712 = vmatmul.mubr.f32.vlgmr.msra.gmra.mrb[24].mxu1 %v2293_v38  ;;  %v2461_v38 = vld [vmem:[#allocation10 + $0x270] sm:$0xff] }
 0x6c2   :  { %8718 = vmatprep.mubr.msk.bf16.mxu1 %vm2537_vm9, %v9422_v42  ;;  %3088 = vmatpush1.bf16.msra.mxu0 %v8137_v60  ;;  %v8148_v16 = vcombine.high %v2460_v37, %v2461_v38  ;;  %v8147_v7 = vcombine.low %v2460_v37, %v2461_v38 }
 0x6c3   :  { %3089 = vmatprep.subr.bf16.mxu0 %v8140_v57 }
 0x6c6   :  { %3090 = vmatpush1.bf16.msra.mxu0 %v8139_v3 }
 0x6c7   :  { %3091 = vmatprep.subr.bf16.mxu0 %v8142_v4 }
 0x6ca   :  { %3092 = vmatpush1.bf16.msra.mxu0 %v8141_v20 }
 0x6cb   :  { %3093 = vmatprep.subr.bf16.mxu0 %v8144_v24 }
 0x6ce   :  { %3094 = vmatpush1.bf16.msra.mxu0 %v8143_v29 }
 0x6cf   :  { %3095 = vmatprep.subr.bf16.mxu0 %v8146_v30 }
 0x6d2   :  { %3096 = vmatpush1.bf16.msra.mxu0 %v8145_v45 }
 0x6d3   :  { %3097 = vmatprep.subr.bf16.mxu0 %v8148_v16  ;;  %v9424_v16 = vld [vmem:[%s13750_s5 + $0x10] sm:$0xff]  }
 0x6d6   :  { %3098 = vmatpush1.bf16.msra.mxu0 %v8147_v7  ;;  %v9428_v7 = vld [vmem:[%s13750_s5 + $0x30] sm:$0xff]  }
 0x6d7   :  { %3099 = vmatprep.subr.bf16.mxu0 %v8150_v21  ;;  %v9432_v21 = vld [vmem:[%s13750_s5 + $0x50] sm:$0xff]  }
 0x6da   :  { %3100 = vmatpush1.bf16.msra.mxu0 %v8149_v63  ;;  %v9433_v63 = vld [vmem:[%s13750_s5 + $0x58] sm:$0xff]  }
 0x794   :  { %v2360_v28 = vpop.f32.mrb[24].mxu1 }
 0x795   :  { %v2364_v62 = vmul.f32 %v2360_v28, %v2360_v28  ;;  %v8713_v33 = vpop.f32.mrb[25].mxu1 }
 0x797   :  { %v2366_v15 = vrot.slane %v2364_v62, 7 }
 0x799   :  { %v2368_v55 = vsub.f32 %v2360_v28, %v2366_v15 }
 0x79b   :  { %v2369_v58 = vmax.f32 %v2368_v55, 0.0 }
 0x79d   :  { %v2370_v1 = vadd.f32 1e-05, %v2369_v58 }
 0x79f   :  { %9500 = vrsqrt.f32 %v2370_v1 }
 0x7a9   :  { %v9501_v42 = vpop.eup %9500 }
 0x7aa   :  { %v8084_v6 = vrot.slane %v9501_v42, 9 }
 0x7ac   :  { %v2376_v8 = vmul.f32 %v8084_v6, %v1683_v44  ;;  %v9423_v6 = vld [vmem:[%s13750_s5 + $0x8] sm:$0xff]  }
 0x7ae   :  { %v2380_v17 = vrot.slane %v2376_v8, %v10311_v9  ;;  %v2385_v49 = vmul.f32 %v2376_v8, %v2360_v28  ;;  %v2401_v50 = vrot.slane %v2376_v8, %v10314_v10  ;;  %v9427_v8 = vld [vmem:[%s13750_s5 + $0x28] sm:$0xff]  }
 0x7b0   :  { %v2381_v46 = vmul.f32 %v2380_v17, %v10570_v31  ;;  %v2382_v51 = vmul.f32 %v2380_v17, %v10574_v34  ;;  %v2383_v22 = vmul.f32 %v2380_v17, %v10590_v23  ;;  %v2384_v5 = vmul.f32 %v2380_v17, %v10600_v18  ;;  %v9429_v17 = vld [vmem:[%s13750_s5 + $0x38] sm:$0xff]  }
 0x7b1   :  { %v2387_v62 = vrot.slane %v2385_v49, 7  ;;  %v2402_v33 = vmul.f32 %v2401_v50, %v10572_v32  ;;  %v2403_v41 = vmul.f32 %v2401_v50, %v10582_v43  ;;  %v2404_v28 = vmul.f32 %v2401_v50, %v10595_v48  ;;  %v9430_v49 = vld [vmem:[%s13750_s5 + $0x40] sm:$0xff]  }
 0x7b2   :  { %v2405_v11 = vmul.f32 %v2401_v50, %v10605_v25  ;;  %v9431_v50 = vld [vmem:[%s13750_s5 + $0x48] sm:$0xff]  }
 0x7b3   :  { %v2389_v15 = vsub.f32 %v1683_v44, %v2387_v62  ;;  %v2466_v62 = vld [vmem:[#allocation10 + $0x310] sm:$0xff] }
 0x7b5   :  { %v2393_v31 = vrot.slane %v2389_v15, %v10343_v2  ;;  %v2409_v34 = vrot.slane %v2389_v15, %v10349_v36  ;;  %v2469_v15 = vld [vmem:[#allocation10 + $0x370] sm:$0xff] }
 0x7b7   :  { %v2394_v23 = vadd.f32 %v2393_v31, %v2381_v46  ;;  %v2395_v54 = vadd.f32 %v2393_v31, %v2382_v51  ;;  %v2396_v18 = vadd.f32 %v2393_v31, %v2383_v22  ;;  %v2397_v53 = vadd.f32 %v2393_v31, %v2384_v5  ;;  %v2464_v46 = vld [vmem:[#allocation10 + $0x2d0] sm:$0xff] }
 0x7b8   :  { %v2410_v55 = vadd.f32 %v2409_v34, %v2402_v33  ;;  %v2411_v32 = vadd.f32 %v2409_v34, %v2403_v41  ;;  %v2412_v60 = vadd.f32 %v2409_v34, %v2404_v28  ;;  %v2413_v43 = vadd.f32 %v2409_v34, %v2405_v11  ;;  %v2465_v51 = vld [vmem:[#allocation10 + $0x2f0] sm:$0xff] }
 0x7b9   :  { %v8151_v22 = vcombine.low %v2464_v46, %v2465_v51  ;;  %v8152_v5 = vcombine.high %v2464_v46, %v2465_v51  ;;  %v2467_v33 = vld [vmem:[#allocation10 + $0x330] sm:$0xff] }
 0x7ba   :  { %v8085_v57 = vmul.f32 -1.442695, %v2410_v55  ;;  %v8086_v48 = vmul.f32 -1.442695, %v2411_v32  ;;  %v8087_v58 = vmul.f32 -1.442695, %v2412_v60  ;;  %v8154_v41 = vcombine.high %v2466_v62, %v2467_v33 }
 0x7bb   :  { %v8088_v59 = vmul.f32 -1.442695, %v2413_v43  ;;  %3101 = vmatprep.subr.bf16.mxu0 %v8152_v5  ;;  %v8153_v28 = vcombine.low %v2466_v62, %v2467_v33  ;;  %v2468_v11 = vld [vmem:[#allocation10 + $0x350] sm:$0xff] }
 0x7bc   :  { %9502 = vpow2.f32 %v8085_v57  ;;  %3102 = vmatpush1.bf16.msra.mxu0 %v8151_v22  ;;  %v8155_v31 = vcombine.low %v2468_v11, %v2469_v15  ;;  %v8156_v34 = vcombine.high %v2468_v11, %v2469_v15  ;;  %v2472_v55 = vld [vmem:[#allocation10 + $0x3d0] sm:$0xff] }
 0x7bd   :  { %9504 = vpow2.f32 %v8086_v48  ;;  %3103 = vmatprep.subr.bf16.mxu0 %v8154_v41  ;;  %v2473_v32 = vld [vmem:[#allocation10 + $0x3f0] sm:$0xff] }
 0x7be   :  { %9506 = vpow2.f32 %v8087_v58  ;;  %v8160_v60 = vcombine.high %v2472_v55, %v2473_v32  ;;  %v8159_v43 = vcombine.low %v2472_v55, %v2473_v32  ;;  %v2474_v57 = vld [vmem:[#allocation10 + $0x410] sm:$0xff] }
 0x7bf   :  { %9508 = vpow2.f32 %v8088_v59  ;;  %v2475_v48 = vld [vmem:[#allocation10 + $0x430] sm:$0xff] }
 0x7c0   :  { %3104 = vmatpush1.bf16.msra.mxu0 %v8153_v28  ;;  %v8161_v58 = vcombine.low %v2474_v57, %v2475_v48  ;;  %v8162_v59 = vcombine.high %v2474_v57, %v2475_v48  ;;  %v2481_v46 = vld [vmem:[#allocation10 + $0x4f0] sm:$0xff] }
 0x7c1   :  { %3105 = vmatprep.subr.bf16.mxu0 %v8156_v34  ;;  %v2482_v41 = vld [vmem:[#allocation10 + $0x510] sm:$0xff] }
 0x7c2   :  { %v2483_v28 = vld [vmem:[#allocation10 + $0x530] sm:$0xff] }
 0x7c3   :  { %v8169_v32 = vcombine.low %v2482_v41, %v2483_v28  ;;  %v2486_v57 = vld [vmem:[#allocation10 + $0x590] sm:$0xff] }
 0x7c4   :  { %3106 = vmatpush1.bf16.msra.mxu0 %v8155_v31  ;;  %v8170_v31 = vcombine.high %v2482_v41, %v2483_v28  ;;  %v2487_v48 = vld [vmem:[#allocation10 + $0x5b0] sm:$0xff] }
 0x7c6   :  { %v9503_v25 = vpop.eup %9502 }
 0x7c7   :  { %v9505_v61 = vpop.eup %9504  ;;  %v2426_v1 = vadd.f32 1.0, %v9503_v25 }
 0x7c8   :  { %v9507_v3 = vpop.eup %9506  ;;  %v2427_v4 = vadd.f32 1.0, %v9505_v61 }
 0x7c9   :  { %v9509_v40 = vpop.eup %9508  ;;  %v2428_v19 = vadd.f32 1.0, %v9507_v3  ;;  %9510 = vrcp.f32 %v2426_v1 }
 0x7ca   :  { %v2429_v20 = vadd.f32 1.0, %v9509_v40  ;;  %9512 = vrcp.f32 %v2427_v4 }
 0x7cb   :  { %9514 = vrcp.f32 %v2428_v19 }
 0x7cc   :  { %9516 = vrcp.f32 %v2429_v20 }
 0x7d3   :  { %v9511_v24 = vpop.eup %9510 }
 0x7d4   :  { %v9513_v26 = vpop.eup %9512  ;;  %v2438_v27 = vmul.f32 %v9511_v24, %v2394_v23  ;;  %v2470_v23 = vld [vmem:[#allocation10 + $0x390] sm:$0xff] }
 0x7d5   :  { %v9515_v29 = vpop.eup %9514  ;;  %v2439_v30 = vmul.f32 %v9513_v26, %v2395_v54  ;;  %v2471_v54 = vld [vmem:[#allocation10 + $0x3b0] sm:$0xff] }
 0x7d6   :  { %v9517_v37 = vpop.eup %9516  ;;  %v2440_v38 = vmul.f32 %v9515_v29, %v2396_v18  ;;  %v8158_v18 = vcombine.high %v2470_v23, %v2471_v54 }
 0x7d7   :  { %v2441_v42 = vmul.f32 %v9517_v37, %v2397_v53  ;;  %v2507_v44 = vpack.c.bf16 %v2439_v30, %v2438_v27  ;;  %v8157_v53 = vcombine.low %v2470_v23, %v2471_v54  ;;  %v2484_v23 = vld [vmem:[#allocation10 + $0x550] sm:$0xff] }
 0x7d8   :  { %3107 = vmatprep.subr.bf16.mxu0 %v8158_v18  ;;  %v2485_v54 = vld [vmem:[#allocation10 + $0x570] sm:$0xff] }
 0x7d9   :  { %8714 = vmatprep.subr.bf16.mxu1 %v2507_v44  ;;  %v2508_v45 = vpack.c.bf16 %v2441_v42, %v2440_v38  ;;  %3108 = vmatpush1.bf16.msra.mxu0 %v8157_v53  ;;  %v2476_v42 = vld [vmem:[#allocation10 + $0x450] sm:$0xff] }
 0x7da   :  { %8715 = vmatpush3.bf16.msra.mxu1 %v2507_v44  ;;  %3109 = vmatprep.subr.bf16.mxu0 %v8160_v60 }
 0x7db   :  { %8716 = vmatprep.subr.bf16.mxu1 %v2508_v45 }
 0x7dd   :  { %3110 = vmatpush1.bf16.msra.mxu0 %v8159_v43  ;;  %v8172_v43 = vcombine.high %v2484_v23, %v2485_v54 }
 0x7de   :  { %8717 = vmatpush3.bf16.msra.mxu1 %v2508_v45  ;;  %3152 = vmatprep.subr.bf16.mxu0 %v8162_v59 }
 0x7df   :  { %8726 = vmatprep.subr.bf16.mxu1 %v2507_v44 }
 0x7e1   :  { %8719 = vmatmul.mubr.msk.bf16.vlgmr.msra.gmra.mrb[28].mxu1 %vm2537_vm9, %v9423_v6 }
 0x7e2   :  { %8727 = vmatpush3.bf16.msra.mxu1 %v2507_v44  ;;  %8722 = vmatprep.mubr.msk.bf16.mxu1 %vm2537_vm9, %v9424_v16 }
 0x7e3   :  { %8728 = vmatprep.subr.bf16.mxu1 %v2508_v45 }
 0x7e6   :  { %8729 = vmatpush3.bf16.msra.mxu1 %v2508_v45 }
 0x7e7   :  { %8738 = vmatprep.subr.bf16.mxu1 %v2507_v44 }
 0x7e9   :  { %8723 = vmatmul.mubr.msk.bf16.gmra.mrb[32].mxu1 %vm2537_vm9, %v9425_v12 }
 0x7ea   :  { %8730 = vmatprep.mubr.msk.bf16.mxu1 %vm2537_vm9, %v9426_v47  ;;  %v2478_v47 = vld [vmem:[#allocation10 + $0x490] sm:$0xff] }
 0x7f1   :  { %8731 = vmatmul.mubr.msk.bf16.vlgmr.msra.gmra.mrb[36].mxu1 %vm2537_vm9, %v9427_v8  ;;  %v2479_v8 = vld [vmem:[#allocation10 + $0x4b0] sm:$0xff] }
 0x7f2   :  { %8739 = vmatpush3.bf16.msra.mxu1 %v2507_v44  ;;  %8734 = vmatprep.mubr.msk.bf16.mxu1 %vm2537_vm9, %v9428_v7  ;;  %v2477_v44 = vld [vmem:[#allocation10 + $0x470] sm:$0xff]  ;;  %v8165_v5 = vcombine.low %v2478_v47, %v2479_v8 }
 0x7f3   :  { %8740 = vmatprep.subr.bf16.mxu1 %v2508_v45  ;;  %v8164_v12 = vcombine.high %v2476_v42, %v2477_v44  ;;  %v8163_v7 = vcombine.low %v2476_v42, %v2477_v44  ;;  %v2493_v42 = vld [vmem:[%s13753_s8 + $0x70] sm:$0xff] }
 0x7f6   :  { %8741 = vmatpush3.bf16.msra.mxu1 %v2508_v45 }
 0x7f7   :  { %9084 = vmatprep.subr.bf16.mxu1 %v10041_v52 }
 0x7f9   :  { %8735 = vmatmul.mubr.msk.bf16.gmra.mrb[40].mxu1 %vm2537_vm9, %v9429_v17 }
 0x7fa   :  { %8742 = vmatprep.mubr.msk.bf16.mxu1 %vm2537_vm9, %v9430_v49  ;;  %v8166_v49 = vcombine.high %v2478_v47, %v2479_v8  ;;  %v2497_v47 = vld [vmem:[%s13753_s8 + $0xf0] sm:$0xff] }
 0x801   :  { %8743 = vmatmul.mubr.msk.bf16.vlgmr.msra.gmra.mrb[44].mxu1 %vm2537_vm9, %v9431_v50 }
 0x802   :  { %8746 = vmatprep.mubr.msk.bf16.mxu1 %vm2537_vm9, %v9432_v21 }
 0x809   :  { %8747 = vmatmul.mubr.msk.bf16.gmra.mrb[48].mxu1 %vm2537_vm9, %v9433_v63  ;;  %v2480_v63 = vld [vmem:[#allocation10 + $0x4d0] sm:$0xff] }
 0x80a   :  { %8782 = vmatprep.mubr.msk.f32.mxu1 %vm10040_vm3, %v10038_v35  ;;  %v8168_v33 = vcombine.high %v2480_v63, %v2481_v46  ;;  %v8167_v11 = vcombine.low %v2480_v63, %v2481_v46  ;;  %v2502_v46 = vld [vmem:[%s13753_s8 + $0x190] sm:$0xff] }
 0x8b4   :  { %v8720_v25 = vpop.f32.mrb[28].mxu1 }
 0x8b5   :  { %v2584_v61 = vpop.f32.mrb[29].mxu1 }
 0x8b6   :  { %v8721_v1 = vpop.f32.mrb[30].mxu1 }
 0x8b7   :  { %v2616_v3 = vpack.c.bf16 %v8721_v1, %v8720_v25  ;;  %v2587_v4 = vpop.f32.mrb[31].mxu1  ;;  %v8174_v25 = vcombine.high %v2486_v57, %v2487_v48  ;;  %v2488_v1 = vld [vmem:[#allocation10 + $0x5d0] sm:$0xff] }
 0x8b8   :  { %v2615_v40 = vpack.c.bf16 %v2587_v4, %v2584_v61 }
 0x8bc   :  { %v10676_v19 = vpop.f32.mrb[32].mxu1 }
 0x8bd   :  { %v2600_v20 = vpop.f32.mrb[33].mxu1 }
 0x8be   :  { %v10678_v24 = vpop.f32.mrb[34].mxu1 }
 0x8bf   :  { %v2618_v26 = vpack.c.bf16 %v10678_v24, %v10676_v19  ;;  %v2603_v27 = vpop.f32.mrb[35].mxu1  ;;  %v2490_v19 = vld [vmem:[%s13753_s8 + $0x10] sm:$0xff] }
 0x8c0   :  { %v2617_v29 = vpack.c.bf16 %v2603_v27, %v2600_v20  ;;  %v8173_v27 = vcombine.low %v2486_v57, %v2487_v48  ;;  %v2491_v24 = vld [vmem:[%s13753_s8 + $0x30] sm:$0xff] }
 0x8c4   :  { %v8732_v30 = vpop.f32.mrb[36].mxu1 }
 0x8c5   :  { %v2694_v37 = vpop.f32.mrb[37].mxu1 }
 0x8c6   :  { %v8733_v38 = vpop.f32.mrb[38].mxu1 }
 0x8c7   :  { %v2726_v45 = vpack.c.bf16 %v8733_v38, %v8732_v30  ;;  %v2697_v6 = vpop.f32.mrb[39].mxu1  ;;  %v2492_v38 = vld [vmem:[%s13753_s8 + $0x50] sm:$0xff] }
 0x8c8   :  { %v2725_v16 = vpack.c.bf16 %v2697_v6, %v2694_v37  ;;  %v9088_v44 = vpack.c.bf16 %v2493_v42, %v2492_v38  ;;  %v2495_v6 = vld [vmem:[%s13753_s8 + $0xb0] sm:$0xff] }
 0x8ca   :  { %3111 = vmatprep.mubr.bf16.mxu0 %v2725_v16 }
 0x8cb   :  { %3112 = vmatmul.mubr.bf16.vlgmr.msra.gmra.mrb[32].mxu0 %v2615_v40 }
 0x8cc   :  { %3121 = vmatprep.mubr.bf16.mxu0 %v2726_v45  ;;  %3153 = vmatpush1.bf16.msra.mxu0 %v8161_v58  ;;  %v8736_v17 = vpop.f32.mrb[40].mxu1  ;;  %v8171_v58 = vcombine.low %v2484_v23, %v2485_v54  ;;  %v2494_v45 = vld [vmem:[%s13753_s8 + $0x90] sm:$0xff] }
 0x8cd   :  { %3154 = vmatprep.subr.bf16.mxu0 %v8164_v12  ;;  %v2710_v50 = vpop.f32.mrb[41].mxu1  ;;  %v9091_v16 = vpack.c.bf16 %v2495_v6, %v2494_v45  ;;  %v2496_v12 = vld [vmem:[%s13753_s8 + $0xd0] sm:$0xff] }
 0x8ce   :  { %v8737_v21 = vpop.f32.mrb[42].mxu1  ;;  %v9094_v8 = vpack.c.bf16 %v2497_v47, %v2496_v12 }
 0x8cf   :  { %v2728_v51 = vpack.c.bf16 %v8737_v21, %v8736_v17  ;;  %v2713_v22 = vpop.f32.mrb[43].mxu1  ;;  %v2499_v17 = vld [vmem:[%s13753_s8 + $0x130] sm:$0xff] }
 0x8d0   :  { %3155 = vmatpush1.bf16.msra.mxu0 %v8163_v7  ;;  %v2727_v62 = vpack.c.bf16 %v2713_v22, %v2710_v50  ;;  %v2498_v7 = vld [vmem:[%s13753_s8 + $0x110] sm:$0xff] }
 0x8d1   :  { %3156 = vmatprep.subr.bf16.mxu0 %v8166_v49  ;;  %v9097_v49 = vpack.c.bf16 %v2499_v17, %v2498_v7  ;;  %v2500_v50 = vld [vmem:[%s13753_s8 + $0x150] sm:$0xff] }
 0x8d2   :  { %v2501_v21 = vld [vmem:[%s13753_s8 + $0x170] sm:$0xff] }
 0x8d3   :  { %3122 = vmatmul.mubr.bf16.gmra.mrb[36].mxu0 %v2616_v3  ;;  %v2489_v3 = vld [vmem:[#allocation10 + $0x5f0] sm:$0xff]  ;;  %v9100_v63 = vpack.c.bf16 %v2501_v21, %v2500_v50 }
 0x8d4   :  { %3157 = vmatpush1.bf16.msra.mxu0 %v8165_v5  ;;  %3131 = vmatprep.mubr.bf16.mxu0 %v2727_v62  ;;  %v8744_v15 = vpop.f32.mrb[44].mxu1  ;;  %v8176_v37 = vcombine.high %v2488_v1, %v2489_v3  ;;  %v2504_v5 = vld [vmem:[%s13753_s8 + $0x1d0] sm:$0xff] }
 0x8d5   :  { %3158 = vmatprep.subr.bf16.mxu0 %v8168_v33  ;;  %v2804_v34 = vpop.f32.mrb[45].mxu1  ;;  %v2505_v62 = vld [vmem:[%s13753_s8 + $0x1f0] sm:$0xff] }
 0x8d6   :  { %v8745_v18 = vpop.f32.mrb[46].mxu1  ;;  %v9106_v33 = vpack.c.bf16 %v2505_v62, %v2504_v5 }
 0x8d7   :  { %v2836_v53 = vpack.c.bf16 %v8745_v18, %v8744_v15  ;;  %v2807_v55 = vpop.f32.mrb[47].mxu1 }
 0x8d8   :  { %3159 = vmatpush1.bf16.msra.mxu0 %v8167_v11  ;;  %v2835_v60 = vpack.c.bf16 %v2807_v55, %v2804_v34 }
 0x8d9   :  { %3160 = vmatprep.subr.bf16.mxu0 %v8170_v31 }
 0x8db   :  { %3132 = vmatmul.mubr.bf16.gmra.mrb[40].mxu0 %v2617_v29  ;;  %v8175_v29 = vcombine.low %v2488_v1, %v2489_v3 }
 0x8dc   :  { %3141 = vmatprep.mubr.bf16.mxu0 %v2728_v51  ;;  %3161 = vmatpush1.bf16.msra.mxu0 %v8169_v32  ;;  %v8748_v59 = vpop.f32.mrb[48].mxu1  ;;  %v2503_v51 = vld [vmem:[%s13753_s8 + $0x1b0] sm:$0xff] }
 0x8dd   :  { %3162 = vmatprep.subr.bf16.mxu0 %v8172_v43  ;;  %v2820_v61 = vpop.f32.mrb[49].mxu1  ;;  %v9103_v22 = vpack.c.bf16 %v2503_v51, %v2502_v46 }
 0x8de   :  { %v8749_v4 = vpop.f32.mrb[50].mxu1 }
 0x8df   :  { %v2838_v40 = vpack.c.bf16 %v8749_v4, %v8748_v59  ;;  %v2823_v20 = vpop.f32.mrb[51].mxu1 }
 0x8e0   :  { %3163 = vmatpush1.bf16.msra.mxu0 %v8171_v58  ;;  %v2837_v30 = vpack.c.bf16 %v2823_v20, %v2820_v61 }
 0x8e1   :  { %3164 = vmatprep.subr.bf16.mxu0 %v8174_v25 }
 0x8e3   :  { %3142 = vmatmul.mubr.bf16.gmra.mrb[44].mxu0 %v2618_v26  ;;  %v9085_v26 = vpack.c.bf16 %v2491_v24, %v2490_v19 }
 0x8e4   :  { %3165 = vmatpush1.bf16.msra.mxu0 %v8173_v27  ;;  %3184 = vmatprep.mubr.bf16.mxu0 %v13759_v0 }
 0x8e5   :  { %3166 = vmatprep.subr.bf16.mxu0 %v8176_v37  ;;  %9086 = vmatpush3.bf16.msra.mxu1 %v9085_v26 }
 0x8e6   :  { %9087 = vmatprep.subr.bf16.mxu1 %v10041_v52 }
 0x8e8   :  { %3167 = vmatpush1.bf16.msra.mxu0 %v8175_v29 }
 0x8e9   :  { %9089 = vmatpush3.bf16.msra.mxu1 %v9088_v44 }
 0x8ea   :  { %9090 = vmatprep.subr.bf16.mxu1 %v10041_v52 }
 0x8eb   :  { %3185 = vmatmul.mubr.bf16.vlgmr.msra.gmra.mrb[32].mxu0 %v2835_v60 }
 0x8ec   :  { %3194 = vmatprep.mubr.bf16.mxu0 %v13759_v0 }
 0x8ed   :  { %9092 = vmatpush3.bf16.msra.mxu1 %v9091_v16 }
 0x8ee   :  { %9093 = vmatprep.subr.bf16.mxu1 %v10041_v52 }
 0x8f1   :  { %9095 = vmatpush3.bf16.msra.mxu1 %v9094_v8 }
 0x8f2   :  { %9096 = vmatprep.subr.bf16.mxu1 %v10041_v52 }
 0x8f3   :  { %3195 = vmatmul.mubr.bf16.gmra.mrb[36].mxu0 %v2836_v53 }
 0x8f4   :  { %3204 = vmatprep.mubr.bf16.mxu0 %v13759_v0 }
 0x8f5   :  { %9098 = vmatpush3.bf16.msra.mxu1 %v9097_v49 }
 0x8f6   :  { %9099 = vmatprep.subr.bf16.mxu1 %v10041_v52 }
 0x8f9   :  { %9101 = vmatpush3.bf16.msra.mxu1 %v9100_v63 }
 0x8fa   :  { %9102 = vmatprep.subr.bf16.mxu1 %v10041_v52 }
 0x8fb   :  { %3205 = vmatmul.mubr.bf16.gmra.mrb[40].mxu0 %v2837_v30 }
 0x8fc   :  { %3214 = vmatprep.mubr.bf16.mxu0 %v13759_v0 }
 0x8fd   :  { %9104 = vmatpush3.bf16.msra.mxu1 %v9103_v22 }
 0x8fe   :  { %9105 = vmatprep.subr.bf16.mxu1 %v10041_v52 }
 0x901   :  { %9107 = vmatpush3.bf16.msra.mxu1 %v9106_v33 }
 0x903   :  { %3215 = vmatmul.mubr.bf16.gmra.mrb[44].mxu0 %v2838_v40 }
 0x9be   :  { %v10744_v41 = vpop.f32.mrb[32].mxu0 }
 0x9bf   :  { %v10746_v28 = vpop.f32.mrb[33].mxu0  ;;  %v3238_v15 = vmul.f32 %v10744_v41, %v10744_v41 }
 0x9c0   :  { %v10748_v11 = vpop.f32.mrb[34].mxu0  ;;  %v3272_v54 = vmul.f32 %v10746_v28, %v10746_v28 }
 0x9c1   :  { %v3225_v31 = vadd.f32 %v10748_v11, %v10744_v41  ;;  %v3239_v34 = vmul.f32 %v10748_v11, %v10748_v11  ;;  %v10756_v23 = vpop.f32.mrb[35].mxu0 }
 0x9c2   :  { %v3259_v18 = vadd.f32 %v10756_v23, %v10746_v28  ;;  %v3273_v53 = vmul.f32 %v10756_v23, %v10756_v23 }
 0x9c3   :  { %v3246_v55 = vadd.f32 %v3239_v34, %v3238_v15 }
 0x9c4   :  { %v3280_v32 = vadd.f32 %v3273_v53, %v3272_v54 }
 0x9c6   :  { %v10764_v60 = vpop.f32.mrb[36].mxu0 }
 0x9c7   :  { %v3226_v43 = vadd.f32 %v3225_v31, %v10764_v60  ;;  %v3240_v57 = vmul.f32 %v10764_v60, %v10764_v60  ;;  %v10769_v48 = vpop.f32.mrb[37].mxu0 }
 0x9c8   :  { %v3260_v58 = vadd.f32 %v3259_v18, %v10769_v48  ;;  %v3274_v59 = vmul.f32 %v10769_v48, %v10769_v48  ;;  %v10774_v25 = vpop.f32.mrb[38].mxu0 }
 0x9c9   :  { %v3247_v61 = vadd.f32 %v3246_v55, %v3240_v57  ;;  %v3227_v1 = vadd.f32 %v3226_v43, %v10774_v25  ;;  %v3241_v3 = vmul.f32 %v10774_v25, %v10774_v25  ;;  %v10779_v4 = vpop.f32.mrb[39].mxu0 }
 0x9ca   :  { %v3281_v40 = vadd.f32 %v3280_v32, %v3274_v59  ;;  %v3261_v20 = vadd.f32 %v3260_v58, %v10779_v4  ;;  %v3275_v27 = vmul.f32 %v10779_v4, %v10779_v4 }
 0x9cb   :  { %v3248_v30 = vadd.f32 %v3247_v61, %v3241_v3 }
 0x9cc   :  { %v3282_v37 = vadd.f32 %v3281_v40, %v3275_v27 }
 0x9ce   :  { %v10784_v29 = vpop.f32.mrb[40].mxu0 }
 0x9cf   :  { %v3228_v19 = vadd.f32 %v3227_v1, %v10784_v29  ;;  %v3242_v24 = vmul.f32 %v10784_v29, %v10784_v29  ;;  %v10789_v26 = vpop.f32.mrb[41].mxu0 }
 0x9d0   :  { %v3262_v38 = vadd.f32 %v3261_v20, %v10789_v26  ;;  %v3276_v42 = vmul.f32 %v10789_v26, %v10789_v26  ;;  %v10794_v44 = vpop.f32.mrb[42].mxu0 }
 0x9d1   :  { %v3249_v45 = vadd.f32 %v3248_v30, %v3242_v24  ;;  %v3229_v6 = vadd.f32 %v3228_v19, %v10794_v44  ;;  %v3243_v16 = vmul.f32 %v10794_v44, %v10794_v44  ;;  %v10799_v12 = vpop.f32.mrb[43].mxu0 }
 0x9d2   :  { %v3283_v47 = vadd.f32 %v3282_v37, %v3276_v42  ;;  %v3263_v8 = vadd.f32 %v3262_v38, %v10799_v12  ;;  %v3277_v7 = vmul.f32 %v10799_v12, %v10799_v12 }
 0x9d3   :  { %v3250_v17 = vadd.f32 %v3249_v45, %v3243_v16 }
 0x9d4   :  { %v3284_v49 = vadd.f32 %v3283_v47, %v3277_v7 }
 0x9d6   :  { %v10804_v50 = vpop.f32.mrb[44].mxu0 }
 0x9d7   :  { %v3230_v21 = vadd.f32 %v3229_v6, %v10804_v50  ;;  %v3244_v63 = vmul.f32 %v10804_v50, %v10804_v50  ;;  %v10809_v46 = vpop.f32.mrb[45].mxu0 }
 0x9d8   :  { %v3264_v51 = vadd.f32 %v3263_v8, %v10809_v46  ;;  %v3278_v22 = vmul.f32 %v10809_v46, %v10809_v46  ;;  %v10814_v5 = vpop.f32.mrb[46].mxu0 }
 0x9d9   :  { %v3251_v62 = vadd.f32 %v3250_v17, %v3244_v63  ;;  %v3231_v33 = vadd.f32 %v3230_v21, %v10814_v5  ;;  %v3245_v15 = vmul.f32 %v10814_v5, %v10814_v5  ;;  %v10819_v31 = vpop.f32.mrb[47].mxu0 }
 0x9da   :  { %v3285_v34 = vadd.f32 %v3284_v49, %v3278_v22  ;;  %v3265_v54 = vadd.f32 %v3264_v51, %v10819_v31  ;;  %v3279_v18 = vmul.f32 %v10819_v31, %v10819_v31  ;;  %v9434_v51 = vld [vmem:[%s13751_s6] sm:$0xff]  }
 0x9db   :  { %v3232_v53 = vrot.slane %v3231_v33, 4  ;;  %v3252_v55 = vadd.f32 %v3251_v62, %v3245_v15 }
 0x9dc   :  { %v3266_v32 = vrot.slane %v3265_v54, 4  ;;  %v3286_v43 = vadd.f32 %v3285_v34, %v3279_v18 }
 0x9dd   :  { %v3233_v57 = vadd.f32 %v3232_v53, %v3231_v33  ;;  %v3253_v58 = vrot.slane %v3252_v55, 4 }
 0x9de   :  { %v3267_v59 = vadd.f32 %v3266_v32, %v3265_v54  ;;  %v3287_v61 = vrot.slane %v3286_v43, 4 }
 0x9df   :  { %v3234_v1 = vrot.slane %v3233_v57, 2  ;;  %v3254_v3 = vadd.f32 %v3253_v58, %v3252_v55  ;;  %v2506_v55 = vld [vmem:[#allocation11 + $0x8] sm:$0xf] }
 0x9e0   :  { %v3268_v40 = vrot.slane %v3267_v59, 2  ;;  %v3288_v20 = vadd.f32 %v3287_v61, %v3286_v43 }
 0x9e1   :  { %v3235_v27 = vadd.f32 %v3234_v1, %v3233_v57  ;;  %v3255_v30 = vrot.slane %v3254_v3, 2 }
 0x9e2   :  { %v3269_v37 = vadd.f32 %v3268_v40, %v3267_v59  ;;  %v3289_v19 = vrot.slane %v3288_v20, 2 }
 0x9e3   :  { %v3236_v24 = vrot.slane %v3235_v27, 1  ;;  %v3256_v38 = vadd.f32 %v3255_v30, %v3254_v3 }
 0x9e4   :  { %v3270_v42 = vrot.slane %v3269_v37, 1  ;;  %v3290_v45 = vadd.f32 %v3289_v19, %v3288_v20 }
 0x9e5   :  { %v3257_v6 = vrot.slane %v3256_v38, 1  ;;  %v3237_v47 = vadd.f32 %v3236_v24, %v3235_v27 }
 0x9e6   :  { %v3291_v16 = vrot.slane %v3290_v45, 1  ;;  %v3271_v7 = vadd.f32 %v3270_v42, %v3269_v37 }
 0x9e7   :  { %v3258_v8 = vadd.f32 %v3257_v6, %v3256_v38 }
 0x9e8   :  { %v3292_v17 = vadd.f32 %v3291_v16, %v3290_v45 }
 0x9e9   :  { %v3293_v49 = vsel %vm1488_vm6, %v3237_v47, %v3258_v8 }
 0x9ea   :  { %v3294_v21 = vsel %vm418_vm2, %v3293_v49, %v3271_v7 }
 0x9eb   :  { %v3295_v63 = vsel %vm1491_vm7, %v3294_v21, %v3292_v17 }
 0x9ec   :  { %8783 = vmatmul.mubr.f32.vlgmr.msra.gmra.mrb[26].mxu1 %v3295_v63 }
 0x9ed   :  { %8793 = vmatprep.mubr.msk.bf16.mxu1 %vm3613_vm10, %v9434_v51 }
 0xabf   :  { %v3362_v22 = vpop.f32.mrb[26].mxu1 }
 0xac0   :  { %v3366_v62 = vmul.f32 %v3362_v22, %v3362_v22  ;;  %v8784_v33 = vpop.f32.mrb[27].mxu1 }
 0xac2   :  { %v3368_v15 = vrot.slane %v3366_v62, 7 }
 0xac4   :  { %v3370_v34 = vsub.f32 %v3362_v22, %v3368_v15 }
 0xac6   :  { %v3371_v54 = vmax.f32 %v3370_v34, 0.0 }
 0xac8   :  { %v3372_v18 = vadd.f32 1e-05, %v3371_v54  ;;  %v3488_v54 = vld [vmem:[#allocation10 + $0x18] sm:$0xff] }
 0xaca   :  { %9518 = vrsqrt.f32 %v3372_v18  ;;  %v3489_v18 = vld [vmem:[#allocation10 + $0x38] sm:$0xff] }
 0xad4   :  { %v9519_v53 = vpop.eup %9518 }
 0xad5   :  { %v8177_v32 = vrot.slane %v9519_v53, 9  ;;  %v3490_v53 = vld [vmem:[#allocation10 + $0x58] sm:$0xff] }
 0xad7   :  { %v3378_v43 = vmul.f32 %v8177_v32, %v2506_v55  ;;  %v8267_v32 = vcombine.high %v3488_v54, %v3489_v18 }
 0xad9   :  { %v3382_v57 = vrot.slane %v3378_v43, %v10311_v9  ;;  %v3391_v58 = vmul.f32 %v3378_v43, %v3362_v22  ;;  %v3411_v59 = vrot.slane %v3378_v43, %v10314_v10  ;;  %v3491_v43 = vld [vmem:[#allocation10 + $0x78] sm:$0xff]  ;;  %4355 = vmatprep.subr.bf16.mxu0 %v8267_v32 }
 0xadb   :  { %v3393_v61 = vrot.slane %v3391_v58, 7  ;;  %v3383_v1 = vmul.f32 %v3382_v57, %v10744_v41  ;;  %v3384_v3 = vmul.f32 %v3382_v57, %v10748_v11  ;;  %v3412_v40 = vmul.f32 %v3411_v59, %v10746_v28  ;;  %v3492_v58 = vld [vmem:[#allocation10 + $0x98] sm:$0xff] }
 0xadc   :  { %v3413_v20 = vmul.f32 %v3411_v59, %v10756_v23  ;;  %v3385_v27 = vmul.f32 %v3382_v57, %v10764_v60  ;;  %v3386_v30 = vmul.f32 %v3382_v57, %v10774_v25  ;;  %v3414_v37 = vmul.f32 %v3411_v59, %v10769_v48 }
 0xadd   :  { %v3395_v19 = vsub.f32 %v2506_v55, %v3393_v61  ;;  %v3415_v24 = vmul.f32 %v3411_v59, %v10779_v4  ;;  %v3387_v38 = vmul.f32 %v3382_v57, %v10784_v29  ;;  %v3388_v42 = vmul.f32 %v3382_v57, %v10794_v44 }
 0xade   :  { %v3416_v41 = vmul.f32 %v3411_v59, %v10789_v26  ;;  %v3417_v11 = vmul.f32 %v3411_v59, %v10799_v12  ;;  %v3389_v28 = vmul.f32 %v3382_v57, %v10804_v50  ;;  %v3390_v23 = vmul.f32 %v3382_v57, %v10814_v5 }
 0xadf   :  { %v3399_v60 = vrot.slane %v3395_v19, %v10343_v2  ;;  %v3423_v25 = vrot.slane %v3395_v19, %v10349_v36  ;;  %v3418_v48 = vmul.f32 %v3411_v59, %v10809_v46  ;;  %v3419_v4 = vmul.f32 %v3411_v59, %v10819_v31  ;;  %v3493_v59 = vld [vmem:[#allocation10 + $0xb8] sm:$0xff] }
 0xae0   :  { %v8266_v55 = vcombine.low %v3488_v54, %v3489_v18  ;;  %v8269_v57 = vcombine.high %v3490_v53, %v3491_v43  ;;  %v8268_v61 = vcombine.low %v3490_v53, %v3491_v43 }
 0xae1   :  { %v10851_v45 = vadd.f32 %v3399_v60, %v3383_v1  ;;  %v10853_v29 = vadd.f32 %v3399_v60, %v3384_v3  ;;  %v3424_v44 = vadd.f32 %v3423_v25, %v3412_v40  ;;  %v3425_v26 = vadd.f32 %v3423_v25, %v3413_v20 }
 0xae2   :  { %v10855_v6 = vadd.f32 %v3399_v60, %v3385_v27  ;;  %v10857_v12 = vadd.f32 %v3399_v60, %v3386_v30  ;;  %v3426_v50 = vadd.f32 %v3423_v25, %v3414_v37  ;;  %v3427_v5 = vadd.f32 %v3423_v25, %v3415_v24  ;;  %4356 = vmatpush1.bf16.msra.mxu0 %v8266_v55  ;;  %v3494_v27 = vld [vmem:[#allocation10 + $0xd8] sm:$0xff] }
 0xae3   :  { %v8178_v16 = vmul.f32 -1.442695, %v3424_v44  ;;  %v8179_v47 = vmul.f32 -1.442695, %v3425_v26  ;;  %v10859_v8 = vadd.f32 %v3399_v60, %v3387_v38  ;;  %v10861_v7 = vadd.f32 %v3399_v60, %v3388_v42  ;;  %4357 = vmatprep.subr.bf16.mxu0 %v8269_v57  ;;  %v3495_v30 = vld [vmem:[#allocation10 + $0xf8] sm:$0xff] }
 0xae4   :  { %v8180_v46 = vmul.f32 -1.442695, %v3426_v50  ;;  %v8181_v31 = vmul.f32 -1.442695, %v3427_v5  ;;  %v3428_v17 = vadd.f32 %v3423_v25, %v3416_v41  ;;  %v3429_v49 = vadd.f32 %v3423_v25, %v3417_v11 }
 0xae5   :  { %9520 = vpow2.f32 %v8178_v16  ;;  %v10863_v21 = vadd.f32 %v3399_v60, %v3389_v28  ;;  %v10865_v63 = vadd.f32 %v3399_v60, %v3390_v23  ;;  %v3430_v51 = vadd.f32 %v3423_v25, %v3418_v48  ;;  %v3497_v48 = vld [vmem:[#allocation10 + $0x138] sm:$0xff] }
 0xae6   :  { %9522 = vpow2.f32 %v8179_v47  ;;  %v8182_v22 = vmul.f32 -1.442695, %v3428_v17  ;;  %v8183_v62 = vmul.f32 -1.442695, %v3429_v49  ;;  %v3431_v33 = vadd.f32 %v3423_v25, %v3419_v4  ;;  %4358 = vmatpush1.bf16.msra.mxu0 %v8268_v61  ;;  %v3496_v25 = vld [vmem:[#allocation10 + $0x118] sm:$0xff] }
 0xae7   :  { %9524 = vpow2.f32 %v8180_v46  ;;  %v8184_v15 = vmul.f32 -1.442695, %v3430_v51  ;;  %v8271_v3 = vcombine.high %v3492_v58, %v3493_v59  ;;  %v8270_v42 = vcombine.low %v3492_v58, %v3493_v59  ;;  %v3498_v46 = vld [vmem:[#allocation10 + $0x158] sm:$0xff] }
 0xae8   :  { %9526 = vpow2.f32 %v8181_v31  ;;  %v8185_v34 = vmul.f32 -1.442695, %v3431_v33  ;;  %v8273_v28 = vcombine.high %v3494_v27, %v3495_v30  ;;  %v8272_v5 = vcombine.low %v3494_v27, %v3495_v30  ;;  %v3499_v31 = vld [vmem:[#allocation10 + $0x178] sm:$0xff] }
 0xae9   :  { %9528 = vpow2.f32 %v8182_v22  ;;  %4359 = vmatprep.subr.bf16.mxu0 %v8271_v3  ;;  %v8275_v47 = vcombine.high %v3496_v25, %v3497_v48  ;;  %v8274_v17 = vcombine.low %v3496_v25, %v3497_v48  ;;  %v8277_v49 = vcombine.high %v3498_v46, %v3499_v31  ;;  %v3500_v22 = vld [vmem:[#allocation10 + $0x198] sm:$0xff]  ;;  %v9450_v25 = vld [vmem:[%s13751_s6 + $0x80] sm:$0xff]  }
 0xaea   :  { %9530 = vpow2.f32 %v8183_v62  ;;  %4360 = vmatpush1.bf16.msra.mxu0 %v8270_v42  ;;  %v3501_v62 = vld [vmem:[#allocation10 + $0x1b8] sm:$0xff]  ;;  %v8276_v18 = vcombine.low %v3498_v46, %v3499_v31  ;;  %v9444_v42 = vld [vmem:[%s13751_s6 + $0x50] sm:$0xff]  }
 0xaeb   :  { %9532 = vpow2.f32 %v8184_v15  ;;  %4361 = vmatprep.subr.bf16.mxu0 %v8273_v28  ;;  %v8279_v32 = vcombine.high %v3500_v22, %v3501_v62  ;;  %v9439_v30 = vld [vmem:[%s13751_s6 + $0x28] sm:$0xff]  }
 0xaec   :  { %9534 = vpow2.f32 %v8185_v34  ;;  %v9447_v28 = vld [vmem:[%s13751_s6 + $0x68] sm:$0xff]  }
 0xaed   :  { %v9451_v48 = vld [vmem:[%s13751_s6 + $0x88] sm:$0xff]  }
 0xaee   :  { %4362 = vmatpush1.bf16.msra.mxu0 %v8272_v5  ;;  %v9456_v5 = vld [vmem:[%s13751_s6 + $0xb0] sm:$0xff]   ;;  %v3503_v46 = vld [vmem:[#allocation10 + $0x1f8] sm:$0xff] }
 0xaef   :  { %v9521_v1 = vpop.eup %9520  ;;  %4363 = vmatprep.subr.bf16.mxu0 %v8275_v47  ;;  %v3502_v47 = vld [vmem:[#allocation10 + $0x1d8] sm:$0xff] }
 0xaf0   :  { %v9523_v40 = vpop.eup %9522  ;;  %v3456_v20 = vadd.f32 1.0, %v9521_v1  ;;  %v8280_v31 = vcombine.low %v3502_v47, %v3503_v46 }
 0xaf1   :  { %v9525_v37 = vpop.eup %9524  ;;  %v3457_v19 = vadd.f32 1.0, %v9523_v40 }
 0xaf2   :  { %v9527_v24 = vpop.eup %9526  ;;  %9536 = vrcp.f32 %v3456_v20  ;;  %v3458_v38 = vadd.f32 1.0, %v9525_v37  ;;  %4364 = vmatpush1.bf16.msra.mxu0 %v8274_v17  ;;  %v9440_v37 = vld [vmem:[%s13751_s6 + $0x30] sm:$0xff]   ;;  %v8281_v17 = vcombine.high %v3502_v47, %v3503_v46 }
 0xaf3   :  { %v9529_v41 = vpop.eup %9528  ;;  %9538 = vrcp.f32 %v3457_v19  ;;  %v3459_v11 = vadd.f32 1.0, %v9527_v24  ;;  %4365 = vmatprep.subr.bf16.mxu0 %v8277_v49  ;;  %v9441_v19 = vld [vmem:[%s13751_s6 + $0x38] sm:$0xff]   ;;  %v9442_v24 = vld [vmem:[%s13751_s6 + $0x40] sm:$0xff]   ;;  %v3504_v49 = vld [vmem:[#allocation10 + $0x218] sm:$0xff] }
 0xaf4   :  { %v9531_v23 = vpop.eup %9530  ;;  %9540 = vrcp.f32 %v3458_v38  ;;  %v3460_v60 = vadd.f32 1.0, %v9529_v41  ;;  %v9443_v38 = vld [vmem:[%s13751_s6 + $0x48] sm:$0xff]   ;;  %v9445_v41 = vld [vmem:[%s13751_s6 + $0x58] sm:$0xff]  }
 0xaf5   :  { %v9533_v4 = vpop.eup %9532  ;;  %9542 = vrcp.f32 %v3459_v11  ;;  %v3461_v44 = vadd.f32 1.0, %v9531_v23  ;;  %v9446_v11 = vld [vmem:[%s13751_s6 + $0x60] sm:$0xff]   ;;  %v9448_v23 = vld [vmem:[%s13751_s6 + $0x70] sm:$0xff]  }
 0xaf6   :  { %v9535_v26 = vpop.eup %9534  ;;  %9544 = vrcp.f32 %v3460_v60  ;;  %v3462_v50 = vadd.f32 1.0, %v9533_v4  ;;  %4366 = vmatpush1.bf16.msra.mxu0 %v8276_v18  ;;  %v9449_v60 = vld [vmem:[%s13751_s6 + $0x78] sm:$0xff]   ;;  %v9452_v4 = vld [vmem:[%s13751_s6 + $0x90] sm:$0xff]   ;;  %v3508_v18 = vld [vmem:[#allocation10 + $0x298] sm:$0xff] }
 0xaf7   :  { %9546 = vrcp.f32 %v3461_v44  ;;  %v3463_v16 = vadd.f32 1.0, %v9535_v26  ;;  %4367 = vmatprep.subr.bf16.mxu0 %v8279_v32  ;;  %v9453_v44 = vld [vmem:[%s13751_s6 + $0x98] sm:$0xff]   ;;  %v9454_v26 = vld [vmem:[%s13751_s6 + $0xa0] sm:$0xff]  }
 0xaf8   :  { %9548 = vrcp.f32 %v3462_v50  ;;  %v9455_v50 = vld [vmem:[%s13751_s6 + $0xa8] sm:$0xff]  }
 0xaf9   :  { %9550 = vrcp.f32 %v3463_v16  ;;  %v9457_v16 = vld [vmem:[%s13751_s6 + $0xb8] sm:$0xff]  }
 0xafc   :  { %v9537_v51 = vpop.eup %9536 }
 0xafd   :  { %v9539_v33 = vpop.eup %9538  ;;  %v3480_v15 = vmul.f32 %v9537_v51, %v10851_v45  ;;  %v3505_v51 = vld [vmem:[#allocation10 + $0x238] sm:$0xff] }
 0xafe   :  { %v9541_v34 = vpop.eup %9540  ;;  %v3481_v54 = vmul.f32 %v9539_v33, %v10853_v29  ;;  %v8278_v29 = vcombine.low %v3500_v22, %v3501_v62  ;;  %v8282_v22 = vcombine.low %v3504_v49, %v3505_v51  ;;  %v8283_v62 = vcombine.high %v3504_v49, %v3505_v51  ;;  %v3506_v33 = vld [vmem:[#allocation10 + $0x258] sm:$0xff] }
 0xaff   :  { %v9543_v53 = vpop.eup %9542  ;;  %v3482_v55 = vmul.f32 %v9541_v34, %v10855_v6 }
 0xb00   :  { %v9545_v43 = vpop.eup %9544  ;;  %v3553_v57 = vpack.c.bf16 %v3481_v54, %v3480_v15  ;;  %v3483_v58 = vmul.f32 %v9543_v53, %v10857_v12  ;;  %4368 = vmatpush1.bf16.msra.mxu0 %v8278_v29  ;;  %v3507_v15 = vld [vmem:[#allocation10 + $0x278] sm:$0xff] }
 0xb01   :  { %v9547_v59 = vpop.eup %9546  ;;  %v3484_v61 = vmul.f32 %v9545_v43, %v10859_v8  ;;  %v9435_v8 = vld [vmem:[%s13751_s6 + $0x8] sm:$0xff]   ;;  %4369 = vmatprep.subr.bf16.mxu0 %v8281_v17  ;;  %v8284_v34 = vcombine.low %v3506_v33, %v3507_v15  ;;  %v8285_v54 = vcombine.high %v3506_v33, %v3507_v15 }
 0xb02   :  { %v9549_v1 = vpop.eup %9548  ;;  %8785 = vmatprep.subr.bf16.mxu1 %v3553_v57  ;;  %v3554_v45 = vpack.c.bf16 %v3483_v58, %v3482_v55  ;;  %v3485_v3 = vmul.f32 %v9547_v59, %v10861_v7  ;;  %v9436_v7 = vld [vmem:[%s13751_s6 + $0x10] sm:$0xff]   ;;  %v3509_v53 = vld [vmem:[#allocation10 + $0x2b8] sm:$0xff] }
 0xb03   :  { %v9551_v40 = vpop.eup %9550  ;;  %8786 = vmatpush3.bf16.msra.mxu1 %v3553_v57  ;;  %v3486_v6 = vmul.f32 %v9549_v1, %v10863_v21  ;;  %v9437_v21 = vld [vmem:[%s13751_s6 + $0x18] sm:$0xff]   ;;  %v8286_v55 = vcombine.low %v3508_v18, %v3509_v53  ;;  %v8287_v32 = vcombine.high %v3508_v18, %v3509_v53  ;;  %v3510_v43 = vld [vmem:[#allocation10 + $0x2d8] sm:$0xff] }
 0xb04   :  { %8787 = vmatprep.subr.bf16.mxu1 %v3554_v45  ;;  %v3555_v20 = vpack.c.bf16 %v3485_v3, %v3484_v61  ;;  %v3487_v27 = vmul.f32 %v9551_v40, %v10865_v63  ;;  %v9438_v63 = vld [vmem:[%s13751_s6 + $0x20] sm:$0xff]   ;;  %4370 = vmatpush1.bf16.msra.mxu0 %v8280_v31  ;;  %v3513_v61 = vld [vmem:[#allocation10 + $0x338] sm:$0xff] }
 0xb05   :  { %4371 = vmatprep.subr.bf16.mxu0 %v8283_v62  ;;  %v3514_v3 = vld [vmem:[#allocation10 + $0x358] sm:$0xff] }
 0xb06   :  { %v3556_v12 = vpack.c.bf16 %v3487_v27, %v3486_v6  ;;  %v3515_v29 = vld [vmem:[#allocation10 + $0x378] sm:$0xff] }
 0xb07   :  { %8788 = vmatpush3.bf16.msra.mxu1 %v3554_v45  ;;  %v8292_v40 = vcombine.low %v3514_v3, %v3515_v29  ;;  %v8293_v6 = vcombine.high %v3514_v3, %v3515_v29  ;;  %v3517_v27 = vld [vmem:[#allocation10 + $0x3b8] sm:$0xff] }
 0xb08   :  { %8789 = vmatprep.subr.bf16.mxu1 %v3555_v20  ;;  %4372 = vmatpush1.bf16.msra.mxu0 %v8282_v22  ;;  %v3522_v53 = vld [vmem:[#allocation10 + $0x458] sm:$0xff] }
 0xb09   :  { %4373 = vmatprep.subr.bf16.mxu0 %v8285_v54 }
 0xb0b   :  { %8790 = vmatpush3.bf16.msra.mxu1 %v3555_v20 }
 0xb0c   :  { %8791 = vmatprep.subr.bf16.mxu1 %v3556_v12  ;;  %4374 = vmatpush1.bf16.msra.mxu0 %v8284_v34 }
 0xb0d   :  { %4375 = vmatprep.subr.bf16.mxu0 %v8287_v32 }
 0xb0f   :  { %8792 = vmatpush3.bf16.msra.mxu1 %v3556_v12 }
 0xb10   :  { %8809 = vmatprep.subr.bf16.mxu1 %v3553_v57  ;;  %4376 = vmatpush1.bf16.msra.mxu0 %v8286_v55  ;;  %v3523_v55 = vld [vmem:[#allocation10 + $0x478] sm:$0xff] }
 0xb12   :  { %8794 = vmatmul.mubr.msk.bf16.vlgmr.msra.gmra.mrb[52].mxu1 %vm3613_vm10, %v9435_v8 }
 0xb13   :  { %8810 = vmatpush3.bf16.msra.mxu1 %v3553_v57  ;;  %8797 = vmatprep.mubr.msk.bf16.mxu1 %vm3613_vm10, %v9436_v7  ;;  %v3518_v7 = vld [vmem:[#allocation10 + $0x3d8] sm:$0xff] }
 0xb14   :  { %8811 = vmatprep.subr.bf16.mxu1 %v3554_v45 }
 0xb17   :  { %8812 = vmatpush3.bf16.msra.mxu1 %v3554_v45 }
 0xb18   :  { %8813 = vmatprep.subr.bf16.mxu1 %v3555_v20 }
 0xb1a   :  { %8798 = vmatmul.mubr.msk.bf16.gmra.mrb[56].mxu1 %vm3613_vm10, %v9437_v21  ;;  %v3519_v21 = vld [vmem:[#allocation10 + $0x3f8] sm:$0xff] }
 0xb1b   :  { %8814 = vmatpush3.bf16.msra.mxu1 %v3555_v20  ;;  %8801 = vmatprep.mubr.msk.bf16.mxu1 %vm3613_vm10, %v9438_v63  ;;  %v8296_v63 = vcombine.low %v3518_v7, %v3519_v21 }
 0xb1c   :  { %8815 = vmatprep.subr.bf16.mxu1 %v3556_v12 }
 0xb1f   :  { %8816 = vmatpush3.bf16.msra.mxu1 %v3556_v12 }
 0xb20   :  { %8833 = vmatprep.subr.bf16.mxu1 %v3553_v57 }
 0xb22   :  { %8802 = vmatmul.mubr.msk.bf16.gmra.mrb[60].mxu1 %vm3613_vm10, %v9439_v30  ;;  %v8297_v30 = vcombine.high %v3518_v7, %v3519_v21  ;;  %v3528_v21 = vld [vmem:[#allocation10 + $0x518] sm:$0xff] }
 0xb23   :  { %8805 = vmatprep.mubr.msk.bf16.mxu1 %vm3613_vm10, %v9440_v37  ;;  %v3520_v37 = vld [vmem:[#allocation10 + $0x418] sm:$0xff] }
 0xb2a   :  { %8806 = vmatmul.mubr.msk.bf16.gmra.mrb[64].mxu1 %vm3613_vm10, %v9441_v19  ;;  %v3521_v19 = vld [vmem:[#allocation10 + $0x438] sm:$0xff] }
 0xb2b   :  { %8817 = vmatprep.mubr.msk.bf16.mxu1 %vm3613_vm10, %v9442_v24  ;;  %v8298_v24 = vcombine.low %v3520_v37, %v3521_v19 }
 0xb32   :  { %8818 = vmatmul.mubr.msk.bf16.vlgmr.msra.gmra.mrb[68].mxu1 %vm3613_vm10, %v9443_v38  ;;  %v8299_v38 = vcombine.high %v3520_v37, %v3521_v19 }
 0xb33   :  { %8834 = vmatpush3.bf16.msra.mxu1 %v3553_v57  ;;  %8821 = vmatprep.mubr.msk.bf16.mxu1 %vm3613_vm10, %v9444_v42  ;;  %v3511_v57 = vld [vmem:[#allocation10 + $0x2f8] sm:$0xff] }
 0xb34   :  { %8835 = vmatprep.subr.bf16.mxu1 %v3554_v45  ;;  %v8288_v58 = vcombine.low %v3510_v43, %v3511_v57  ;;  %v8289_v59 = vcombine.high %v3510_v43, %v3511_v57 }
 0xb36   :  { %4377 = vmatprep.subr.bf16.mxu0 %v8289_v59  ;;  %v3524_v59 = vld [vmem:[#allocation10 + $0x498] sm:$0xff] }
 0xb37   :  { %8836 = vmatpush3.bf16.msra.mxu1 %v3554_v45  ;;  %4378 = vmatpush1.bf16.msra.mxu0 %v8288_v58  ;;  %v8301_v58 = vcombine.high %v3522_v53, %v3523_v55 }
 0xb38   :  { %8837 = vmatprep.subr.bf16.mxu1 %v3555_v20 }
 0xb3a   :  { %8822 = vmatmul.mubr.msk.bf16.gmra.mrb[72].mxu1 %vm3613_vm10, %v9445_v41 }
 0xb3b   :  { %8838 = vmatpush3.bf16.msra.mxu1 %v3555_v20  ;;  %8825 = vmatprep.mubr.msk.bf16.mxu1 %vm3613_vm10, %v9446_v11  ;;  %v3516_v20 = vld [vmem:[#allocation10 + $0x398] sm:$0xff] }
 0xb3c   :  { %8839 = vmatprep.subr.bf16.mxu1 %v3556_v12  ;;  %v8295_v8 = vcombine.high %v3516_v20, %v3517_v27 }
 0xb3f   :  { %8840 = vmatpush3.bf16.msra.mxu1 %v3556_v12  ;;  %v8294_v12 = vcombine.low %v3516_v20, %v3517_v27 }
 0xb40   :  { %9108 = vmatprep.subr.bf16.mxu1 %v10041_v52 }
 0xb42   :  { %8826 = vmatmul.mubr.msk.bf16.gmra.mrb[76].mxu1 %vm3613_vm10, %v9447_v28 }
 0xb43   :  { %8829 = vmatprep.mubr.msk.bf16.mxu1 %vm3613_vm10, %v9448_v23 }
 0xb4a   :  { %8830 = vmatmul.mubr.msk.bf16.gmra.mrb[80].mxu1 %vm3613_vm10, %v9449_v60 }
 0xb4b   :  { %8841 = vmatprep.mubr.msk.bf16.mxu1 %vm3613_vm10, %v9450_v25 }
 0xb52   :  { %8842 = vmatmul.mubr.msk.bf16.vlgmr.msra.gmra.mrb[84].mxu1 %vm3613_vm10, %v9451_v48 }
 0xb53   :  { %8845 = vmatprep.mubr.msk.bf16.mxu1 %vm3613_vm10, %v9452_v4 }
 0xb5a   :  { %8846 = vmatmul.mubr.msk.bf16.gmra.mrb[88].mxu1 %vm3613_vm10, %v9453_v44 }
 0xb5b   :  { %8849 = vmatprep.mubr.msk.bf16.mxu1 %vm3613_vm10, %v9454_v26 }
 0xb62   :  { %8850 = vmatmul.mubr.msk.bf16.gmra.mrb[92].mxu1 %vm3613_vm10, %v9455_v50 }
 0xb63   :  { %8853 = vmatprep.mubr.msk.bf16.mxu1 %vm3613_vm10, %v9456_v5 }
 0xb6a   :  { %8854 = vmatmul.mubr.msk.bf16.gmra.mrb[96].mxu1 %vm3613_vm10, %v9457_v16 }
 0xb6b   :  { %8889 = vmatprep.mubr.msk.f32.mxu1 %vm10040_vm3, %v10038_v35  ;;  %v3512_v35 = vld [vmem:[#allocation10 + $0x318] sm:$0xff] }
 0xb6c   :  { %v8290_v1 = vcombine.low %v3512_v35, %v3513_v61  ;;  %v8291_v45 = vcombine.high %v3512_v35, %v3513_v61  ;;  %v3525_v35 = vld [vmem:[#allocation10 + $0x4b8] sm:$0xff] }
 0xb6d   :  { %v8303_v3 = vcombine.high %v3524_v59, %v3525_v35 }
 0xb6e   :  { %4379 = vmatprep.subr.bf16.mxu0 %v8291_v45 }
 0xb6f   :  { %4380 = vmatpush1.bf16.msra.mxu0 %v8290_v1  ;;  %v8300_v1 = vcombine.low %v3522_v53, %v3523_v55  ;;  %v3533_v53 = vld [vmem:[#allocation10 + $0x5b8] sm:$0xff] }
 0xb70   :  { %4381 = vmatprep.subr.bf16.mxu0 %v8293_v6  ;;  %v3527_v6 = vld [vmem:[#allocation10 + $0x4f8] sm:$0xff] }
 0xb73   :  { %4382 = vmatpush1.bf16.msra.mxu0 %v8292_v40  ;;  %v3526_v40 = vld [vmem:[#allocation10 + $0x4d8] sm:$0xff] }
 0xb74   :  { %4383 = vmatprep.subr.bf16.mxu0 %v8295_v8  ;;  %v8302_v8 = vcombine.low %v3524_v59, %v3525_v35  ;;  %v8305_v7 = vcombine.high %v3526_v40, %v3527_v6  ;;  %v8304_v37 = vcombine.low %v3526_v40, %v3527_v6  ;;  %v3535_v59 = vld [vmem:[#allocation10 + $0x5f8] sm:$0xff] }
 0xb77   :  { %4384 = vmatpush1.bf16.msra.mxu0 %v8294_v12 }
 0xb78   :  { %4385 = vmatprep.subr.bf16.mxu0 %v8297_v30 }
 0xb7b   :  { %4386 = vmatpush1.bf16.msra.mxu0 %v8296_v63  ;;  %v3529_v63 = vld [vmem:[#allocation10 + $0x538] sm:$0xff] }
 0xb7c   :  { %4468 = vmatprep.subr.bf16.mxu0 %v8299_v38 }
 0xbe5   :  { %v8795_v42 = vpop.f32.mrb[52].mxu1 }
 0xbe6   :  { %v3672_v41 = vpop.f32.mrb[53].mxu1 }
 0xbe7   :  { %v8796_v11 = vpop.f32.mrb[54].mxu1 }
 0xbe8   :  { %v3736_v28 = vpack.c.bf16 %v8796_v11, %v8795_v42  ;;  %v3675_v23 = vpop.f32.mrb[55].mxu1  ;;  %v3530_v42 = vld [vmem:[#allocation10 + $0x558] sm:$0xff] }
 0xbe9   :  { %v3735_v60 = vpack.c.bf16 %v3675_v23, %v3672_v41  ;;  %v3531_v41 = vld [vmem:[#allocation10 + $0x578] sm:$0xff] }
 0xbea   :  { %v8308_v55 = vcombine.low %v3530_v42, %v3531_v41 }
 0xbed   :  { %v10970_v25 = vpop.f32.mrb[56].mxu1 }
 0xbee   :  { %v10972_v48 = vpop.f32.mrb[57].mxu1 }
 0xbef   :  { %v10974_v4 = vpop.f32.mrb[58].mxu1 }
 0xbf0   :  { %v3738_v44 = vpack.c.bf16 %v10974_v4, %v10970_v25  ;;  %v10978_v26 = vpop.f32.mrb[59].mxu1 }
 0xbf1   :  { %v3737_v50 = vpack.c.bf16 %v10978_v26, %v10972_v48 }
 0xbf5   :  { %v10982_v5 = vpop.f32.mrb[60].mxu1 }
 0xbf6   :  { %v10984_v16 = vpop.f32.mrb[61].mxu1 }
 0xbf7   :  { %v10986_v47 = vpop.f32.mrb[62].mxu1 }
 0xbf8   :  { %v3740_v46 = vpack.c.bf16 %v10986_v47, %v10982_v5  ;;  %v10990_v31 = vpop.f32.mrb[63].mxu1  ;;  %v3536_v5 = vld [vmem:[%s13753_s8 + $0x18] sm:$0xff] }
 0xbf9   :  { %v3739_v17 = vpack.c.bf16 %v10990_v31, %v10984_v16  ;;  %v3537_v47 = vld [vmem:[%s13753_s8 + $0x38] sm:$0xff] }
 0xbfd   :  { %v10994_v49 = vpop.f32.mrb[64].mxu1 }
 0xbfe   :  { %v10996_v51 = vpop.f32.mrb[65].mxu1 }
 0xbff   :  { %v10998_v22 = vpop.f32.mrb[66].mxu1 }
 0xc00   :  { %v3742_v62 = vpack.c.bf16 %v10998_v22, %v10994_v49  ;;  %v11002_v33 = vpop.f32.mrb[67].mxu1  ;;  %v3538_v49 = vld [vmem:[%s13753_s8 + $0x58] sm:$0xff] }
 0xc01   :  { %v3741_v15 = vpack.c.bf16 %v11002_v33, %v10996_v51  ;;  %v3539_v51 = vld [vmem:[%s13753_s8 + $0x78] sm:$0xff] }
 0xc02   :  { %v3540_v22 = vld [vmem:[%s13753_s8 + $0x98] sm:$0xff] }
 0xc03   :  { %v3541_v33 = vld [vmem:[%s13753_s8 + $0xb8] sm:$0xff] }
 0xc05   :  { %v8819_v34 = vpop.f32.mrb[68].mxu1 }
 0xc06   :  { %v3858_v54 = vpop.f32.mrb[69].mxu1 }
 0xc07   :  { %v8820_v18 = vpop.f32.mrb[70].mxu1 }
 0xc08   :  { %v3922_v32 = vpack.c.bf16 %v8820_v18, %v8819_v34  ;;  %v3861_v43 = vpop.f32.mrb[71].mxu1  ;;  %v8306_v34 = vcombine.low %v3528_v21, %v3529_v63  ;;  %v3532_v18 = vld [vmem:[#allocation10 + $0x598] sm:$0xff] }
 0xc09   :  { %v3921_v57 = vpack.c.bf16 %v3861_v43, %v3858_v54  ;;  %v8309_v54 = vcombine.high %v3530_v42, %v3531_v41  ;;  %v8311_v43 = vcombine.high %v3532_v18, %v3533_v53  ;;  %v3542_v41 = vld [vmem:[%s13753_s8 + $0xd8] sm:$0xff] }
 0xc0b   :  { %4387 = vmatprep.mubr.bf16.mxu0 %v3921_v57 }
 0xc0c   :  { %4388 = vmatmul.mubr.bf16.vlgmr.msra.gmra.mrb[48].mxu0 %v3735_v60 }
 0xc0d   :  { %4397 = vmatprep.mubr.bf16.mxu0 %v3922_v32  ;;  %4469 = vmatpush1.bf16.msra.mxu0 %v8298_v24  ;;  %v8823_v61 = vpop.f32.mrb[72].mxu1  ;;  %v8307_v24 = vcombine.high %v3528_v21, %v3529_v63 }
 0xc0e   :  { %v3874_v45 = vpop.f32.mrb[73].mxu1  ;;  %4470 = vmatprep.subr.bf16.mxu0 %v8301_v58  ;;  %v3534_v58 = vld [vmem:[#allocation10 + $0x5d8] sm:$0xff] }
 0xc0f   :  { %v8824_v29 = vpop.f32.mrb[74].mxu1  ;;  %v8312_v26 = vcombine.low %v3534_v58, %v3535_v59 }
 0xc10   :  { %v3924_v20 = vpack.c.bf16 %v8824_v29, %v8823_v61  ;;  %v3877_v27 = vpop.f32.mrb[75].mxu1 }
 0xc11   :  { %v3923_v12 = vpack.c.bf16 %v3877_v27, %v3874_v45  ;;  %4471 = vmatpush1.bf16.msra.mxu0 %v8300_v1  ;;  %v8310_v45 = vcombine.low %v3532_v18, %v3533_v53  ;;  %v3546_v18 = vld [vmem:[%s13753_s8 + $0x158] sm:$0xff] }
 0xc12   :  { %4472 = vmatprep.subr.bf16.mxu0 %v8303_v3  ;;  %v8313_v3 = vcombine.high %v3534_v58, %v3535_v59  ;;  %v3547_v53 = vld [vmem:[%s13753_s8 + $0x178] sm:$0xff] }
 0xc13   :  { %v3551_v58 = vld [vmem:[%s13753_s8 + $0x1f8] sm:$0xff] }
 0xc14   :  { %4398 = vmatmul.mubr.bf16.gmra.mrb[52].mxu0 %v3736_v28 }
 0xc15   :  { %4407 = vmatprep.mubr.bf16.mxu0 %v3923_v12  ;;  %4473 = vmatpush1.bf16.msra.mxu0 %v8302_v8  ;;  %v8827_v30 = vpop.f32.mrb[76].mxu1 }
 0xc16   :  { %v3890_v19 = vpop.f32.mrb[77].mxu1  ;;  %4474 = vmatprep.subr.bf16.mxu0 %v8305_v7 }
 0xc17   :  { %v8828_v38 = vpop.f32.mrb[78].mxu1 }
 0xc18   :  { %v3926_v11 = vpack.c.bf16 %v8828_v38, %v8827_v30  ;;  %v3893_v23 = vpop.f32.mrb[79].mxu1 }
 0xc19   :  { %v3925_v60 = vpack.c.bf16 %v3893_v23, %v3890_v19  ;;  %4475 = vmatpush1.bf16.msra.mxu0 %v8304_v37 }
 0xc1a   :  { %4476 = vmatprep.subr.bf16.mxu0 %v8307_v24 }
 0xc1c   :  { %4408 = vmatmul.mubr.bf16.gmra.mrb[56].mxu0 %v3737_v50 }
 0xc1d   :  { %4417 = vmatprep.mubr.bf16.mxu0 %v3924_v20  ;;  %4477 = vmatpush1.bf16.msra.mxu0 %v8306_v34  ;;  %v8831_v28 = vpop.f32.mrb[80].mxu1  ;;  %v3545_v34 = vld [vmem:[%s13753_s8 + $0x138] sm:$0xff] }
 0xc1e   :  { %v3906_v32 = vpop.f32.mrb[81].mxu1  ;;  %4478 = vmatprep.subr.bf16.mxu0 %v8309_v54 }
 0xc1f   :  { %v8832_v57 = vpop.f32.mrb[82].mxu1 }
 0xc20   :  { %v3928_v35 = vpack.c.bf16 %v8832_v57, %v8831_v28  ;;  %v3909_v61 = vpop.f32.mrb[83].mxu1  ;;  %v9124_v28 = vpack.c.bf16 %v3547_v53, %v3546_v18 }
 0xc21   :  { %v3927_v1 = vpack.c.bf16 %v3909_v61, %v3906_v32  ;;  %4479 = vmatpush1.bf16.msra.mxu0 %v8308_v55  ;;  %v3548_v55 = vld [vmem:[%s13753_s8 + $0x198] sm:$0xff] }
 0xc22   :  { %4480 = vmatprep.subr.bf16.mxu0 %v8311_v43  ;;  %v3549_v32 = vld [vmem:[%s13753_s8 + $0x1b8] sm:$0xff] }
 0xc23   :  { %v3550_v43 = vld [vmem:[%s13753_s8 + $0x1d8] sm:$0xff]  ;;  %v9127_v57 = vpack.c.bf16 %v3549_v32, %v3548_v55 }
 0xc24   :  { %4418 = vmatmul.mubr.bf16.gmra.mrb[60].mxu0 %v3738_v44  ;;  %v9130_v59 = vpack.c.bf16 %v3551_v58, %v3550_v43 }
 0xc25   :  { %4427 = vmatprep.mubr.bf16.mxu0 %v3925_v60  ;;  %4481 = vmatpush1.bf16.msra.mxu0 %v8310_v45  ;;  %v8843_v48 = vpop.f32.mrb[84].mxu1  ;;  %v3544_v60 = vld [vmem:[%s13753_s8 + $0x118] sm:$0xff] }
 0xc26   :  { %v4044_v50 = vpop.f32.mrb[85].mxu1  ;;  %4482 = vmatprep.subr.bf16.mxu0 %v8313_v3  ;;  %v9121_v54 = vpack.c.bf16 %v3545_v34, %v3544_v60 }
 0xc27   :  { %v8844_v29 = vpop.f32.mrb[86].mxu1 }
 0xc28   :  { %v4108_v40 = vpack.c.bf16 %v8844_v29, %v8843_v48  ;;  %v4047_v6 = vpop.f32.mrb[87].mxu1 }
 0xc29   :  { %v4107_v20 = vpack.c.bf16 %v4047_v6, %v4044_v50  ;;  %4483 = vmatpush1.bf16.msra.mxu0 %v8312_v26 }
 0xc2c   :  { %4428 = vmatmul.mubr.bf16.gmra.mrb[64].mxu0 %v3739_v17 }
 0xc2d   :  { %4437 = vmatprep.mubr.bf16.mxu0 %v3926_v11  ;;  %v8847_v27 = vpop.f32.mrb[88].mxu1  ;;  %v3543_v11 = vld [vmem:[%s13753_s8 + $0xf8] sm:$0xff]  ;;  %s10042_s8 = smov [#allocation4]  }
 0xc2e   :  { %v4060_v12 = vpop.f32.mrb[89].mxu1  ;;  %v9118_v23 = vpack.c.bf16 %v3543_v11, %v3542_v41  ;;  %s145_s28 = sshll.u32 %s10042_s8, 4  ;;  %s146_s28 = int_to_ptr.vmem [resolvable:$true] %s145_s28 }
 0xc2f   :  { %v8848_v25 = vpop.f32.mrb[90].mxu1 }
 0xc30   :  { %v4110_v4 = vpack.c.bf16 %v8848_v25, %v8847_v27  ;;  %v4063_v44 = vpop.f32.mrb[91].mxu1 }
 0xc31   :  { %v4109_v8 = vpack.c.bf16 %v4063_v44, %v4060_v12 }
 0xc34   :  { %4438 = vmatmul.mubr.bf16.gmra.mrb[68].mxu0 %v3740_v46  ;;  %v9109_v46 = vpack.c.bf16 %v3537_v47, %v3536_v5 }
 0xc35   :  { %4447 = vmatprep.mubr.bf16.mxu0 %v3927_v1  ;;  %v8851_v7 = vpop.f32.mrb[92].mxu1 }
 0xc36   :  { %v4076_v21 = vpop.f32.mrb[93].mxu1  ;;  %9110 = vmatpush3.bf16.msra.mxu1 %v9109_v46 }
 0xc37   :  { %v8852_v63 = vpop.f32.mrb[94].mxu1  ;;  %9111 = vmatprep.subr.bf16.mxu1 %v10041_v52 }
 0xc38   :  { %v4112_v30 = vpack.c.bf16 %v8852_v63, %v8851_v7  ;;  %v4079_v37 = vpop.f32.mrb[95].mxu1 }
 0xc39   :  { %v4111_v19 = vpack.c.bf16 %v4079_v37, %v4076_v21 }
 0xc3c   :  { %4448 = vmatmul.mubr.bf16.gmra.mrb[72].mxu0 %v3741_v15  ;;  %v9115_v15 = vpack.c.bf16 %v3541_v33, %v3540_v22 }
 0xc3d   :  { %4457 = vmatprep.mubr.bf16.mxu0 %v3928_v35  ;;  %v8855_v16 = vpop.f32.mrb[96].mxu1 }
 0xc3e   :  { %v4092_v31 = vpop.f32.mrb[97].mxu1 }
 0xc3f   :  { %v8856_v17 = vpop.f32.mrb[98].mxu1 }
 0xc40   :  { %v4114_v24 = vpack.c.bf16 %v8856_v17, %v8855_v16  ;;  %v4095_v38 = vpop.f32.mrb[99].mxu1 }
 0xc41   :  { %v4113_v42 = vpack.c.bf16 %v4095_v38, %v4092_v31 }
 0xc44   :  { %4458 = vmatmul.mubr.bf16.gmra.mrb[76].mxu0 %v3742_v62  ;;  %v9112_v62 = vpack.c.bf16 %v3539_v51, %v3538_v49 }
 0xc45   :  { %4500 = vmatprep.mubr.bf16.mxu0 %v13759_v0 }
 0xc46   :  { %9113 = vmatpush3.bf16.msra.mxu1 %v9112_v62 }
 0xc47   :  { %9114 = vmatprep.subr.bf16.mxu1 %v10041_v52 }
 0xc4a   :  { %9116 = vmatpush3.bf16.msra.mxu1 %v9115_v15 }
 0xc4b   :  { %9117 = vmatprep.subr.bf16.mxu1 %v10041_v52 }
 0xc4c   :  { %4501 = vmatmul.mubr.bf16.vlgmr.msra.gmra.mrb[48].mxu0 %v4107_v20 }
 0xc4d   :  { %4510 = vmatprep.mubr.bf16.mxu0 %v13759_v0 }
 0xc4e   :  { %9119 = vmatpush3.bf16.msra.mxu1 %v9118_v23 }
 0xc4f   :  { %9120 = vmatprep.subr.bf16.mxu1 %v10041_v52 }
 0xc52   :  { %9122 = vmatpush3.bf16.msra.mxu1 %v9121_v54 }
 0xc53   :  { %9123 = vmatprep.subr.bf16.mxu1 %v10041_v52 }
 0xc54   :  { %4511 = vmatmul.mubr.bf16.gmra.mrb[52].mxu0 %v4108_v40 }
 0xc55   :  { %4520 = vmatprep.mubr.bf16.mxu0 %v13759_v0 }
 0xc56   :  { %9125 = vmatpush3.bf16.msra.mxu1 %v9124_v28 }
 0xc57   :  { %9126 = vmatprep.subr.bf16.mxu1 %v10041_v52 }
 0xc5a   :  { %9128 = vmatpush3.bf16.msra.mxu1 %v9127_v57 }
 0xc5b   :  { %9129 = vmatprep.subr.bf16.mxu1 %v10041_v52 }
 0xc5c   :  { %4521 = vmatmul.mubr.bf16.gmra.mrb[56].mxu0 %v4109_v8 }
 0xc5d   :  { %4530 = vmatprep.mubr.bf16.mxu0 %v13759_v0 }
 0xc5e   :  { %9131 = vmatpush3.bf16.msra.mxu1 %v9130_v59 }
 0xc64   :  { %4531 = vmatmul.mubr.bf16.gmra.mrb[60].mxu0 %v4110_v4 }
 0xc65   :  { %4540 = vmatprep.mubr.bf16.mxu0 %v13759_v0 }
 0xc6c   :  { %4541 = vmatmul.mubr.bf16.gmra.mrb[64].mxu0 %v4111_v19 }
 0xc6d   :  { %4550 = vmatprep.mubr.bf16.mxu0 %v13759_v0 }
 0xc74   :  { %4551 = vmatmul.mubr.bf16.gmra.mrb[68].mxu0 %v4112_v30 }
 0xc75   :  { %4560 = vmatprep.mubr.bf16.mxu0 %v13759_v0 }
 0xc7c   :  { %4561 = vmatmul.mubr.bf16.gmra.mrb[72].mxu0 %v4113_v42 }
 0xc7d   :  { %4570 = vmatprep.mubr.bf16.mxu0 %v13759_v0 }
 0xc84   :  { %4571 = vmatmul.mubr.bf16.gmra.mrb[76].mxu0 %v4114_v24 }
 0xd1f   :  { %v11087_v35 = vpop.f32.mrb[48].mxu0 }
 0xd20   :  { %v11089_v61 = vpop.f32.mrb[49].mxu0  ;;  %v4602_v45 = vmul.f32 %v11087_v35, %v11087_v35 }
 0xd21   :  { %v11091_v1 = vpop.f32.mrb[50].mxu0  ;;  %v4660_v52 = vmul.f32 %v11089_v61, %v11089_v61 }
 0xd22   :  { %v4581_v3 = vadd.f32 %v11091_v1, %v11087_v35  ;;  %v4603_v48 = vmul.f32 %v11091_v1, %v11091_v1  ;;  %v11099_v26 = vpop.f32.mrb[51].mxu0 }
 0xd23   :  { %v4639_v50 = vadd.f32 %v11099_v26, %v11089_v61  ;;  %v4661_v29 = vmul.f32 %v11099_v26, %v11099_v26 }
 0xd24   :  { %v4618_v40 = vadd.f32 %v4603_v48, %v4602_v45 }
 0xd25   :  { %v4676_v6 = vadd.f32 %v4661_v29, %v4660_v52 }
 0xd27   :  { %v11107_v20 = vpop.f32.mrb[52].mxu0 }
 0xd28   :  { %v4582_v27 = vadd.f32 %v4581_v3, %v11107_v20  ;;  %v4604_v12 = vmul.f32 %v11107_v20, %v11107_v20  ;;  %v11112_v25 = vpop.f32.mrb[53].mxu0 }
 0xd29   :  { %v4640_v4 = vadd.f32 %v4639_v50, %v11112_v25  ;;  %v4662_v44 = vmul.f32 %v11112_v25, %v11112_v25  ;;  %v11117_v8 = vpop.f32.mrb[54].mxu0 }
 0xd2a   :  { %v4619_v7 = vadd.f32 %v4618_v40, %v4604_v12  ;;  %v4583_v21 = vadd.f32 %v4582_v27, %v11117_v8  ;;  %v4605_v63 = vmul.f32 %v11117_v8, %v11117_v8  ;;  %v11122_v30 = vpop.f32.mrb[55].mxu0 }
 0xd2b   :  { %v4677_v37 = vadd.f32 %v4676_v6, %v4662_v44  ;;  %v4641_v19 = vadd.f32 %v4640_v4, %v11122_v30  ;;  %v4663_v16 = vmul.f32 %v11122_v30, %v11122_v30 }
 0xd2c   :  { %v4620_v31 = vadd.f32 %v4619_v7, %v4605_v63 }
 0xd2d   :  { %v4678_v17 = vadd.f32 %v4677_v37, %v4663_v16 }
 0xd2f   :  { %v11127_v24 = vpop.f32.mrb[56].mxu0 }
 0xd30   :  { %v4584_v38 = vadd.f32 %v4583_v21, %v11127_v24  ;;  %v4606_v42 = vmul.f32 %v11127_v24, %v11127_v24  ;;  %v11132_v5 = vpop.f32.mrb[57].mxu0 }
 0xd31   :  { %v4642_v47 = vadd.f32 %v4641_v19, %v11132_v5  ;;  %v4664_v46 = vmul.f32 %v11132_v5, %v11132_v5  ;;  %v11137_v49 = vpop.f32.mrb[58].mxu0 }
 0xd32   :  { %v4621_v51 = vadd.f32 %v4620_v31, %v4606_v42  ;;  %v4585_v22 = vadd.f32 %v4584_v38, %v11137_v49  ;;  %v4607_v62 = vmul.f32 %v11137_v49, %v11137_v49  ;;  %v11142_v33 = vpop.f32.mrb[59].mxu0 }
 0xd33   :  { %v4679_v15 = vadd.f32 %v4678_v17, %v4664_v46  ;;  %v4643_v41 = vadd.f32 %v4642_v47, %v11142_v33  ;;  %v4665_v11 = vmul.f32 %v11142_v33, %v11142_v33 }
 0xd34   :  { %v4622_v23 = vadd.f32 %v4621_v51, %v4607_v62 }
 0xd35   :  { %v4680_v60 = vadd.f32 %v4679_v15, %v4665_v11 }
 0xd37   :  { %v11147_v34 = vpop.f32.mrb[60].mxu0 }
 0xd38   :  { %v4586_v54 = vadd.f32 %v4585_v22, %v11147_v34  ;;  %v4608_v18 = vmul.f32 %v11147_v34, %v11147_v34  ;;  %v11152_v53 = vpop.f32.mrb[61].mxu0 }
 0xd39   :  { %v4644_v28 = vadd.f32 %v4643_v41, %v11152_v53  ;;  %v4666_v55 = vmul.f32 %v11152_v53, %v11152_v53  ;;  %v11157_v32 = vpop.f32.mrb[62].mxu0 }
 0xd3a   :  { %v4623_v43 = vadd.f32 %v4622_v23, %v4608_v18  ;;  %v4587_v57 = vadd.f32 %v4586_v54, %v11157_v32  ;;  %v4609_v58 = vmul.f32 %v11157_v32, %v11157_v32  ;;  %v11162_v59 = vpop.f32.mrb[63].mxu0 }
 0xd3b   :  { %v4681_v45 = vadd.f32 %v4680_v60, %v4666_v55  ;;  %v4645_v3 = vadd.f32 %v4644_v28, %v11162_v59  ;;  %v4667_v48 = vmul.f32 %v11162_v59, %v11162_v59 }
 0xd3c   :  { %v4624_v52 = vadd.f32 %v4623_v43, %v4609_v58 }
 0xd3d   :  { %v4682_v50 = vadd.f32 %v4681_v45, %v4667_v48 }
 0xd3f   :  { %v11167_v29 = vpop.f32.mrb[64].mxu0 }
 0xd40   :  { %v4588_v40 = vadd.f32 %v4587_v57, %v11167_v29  ;;  %v4610_v6 = vmul.f32 %v11167_v29, %v11167_v29  ;;  %v11172_v27 = vpop.f32.mrb[65].mxu0 }
 0xd41   :  { %v4646_v12 = vadd.f32 %v4645_v3, %v11172_v27  ;;  %v4668_v4 = vmul.f32 %v11172_v27, %v11172_v27  ;;  %v11177_v44 = vpop.f32.mrb[66].mxu0 }
 0xd42   :  { %v4625_v7 = vadd.f32 %v4624_v52, %v4610_v6  ;;  %v4589_v21 = vadd.f32 %v4588_v40, %v11177_v44  ;;  %v4611_v63 = vmul.f32 %v11177_v44, %v11177_v44  ;;  %v11182_v37 = vpop.f32.mrb[67].mxu0 }
 0xd43   :  { %v4683_v19 = vadd.f32 %v4682_v50, %v4668_v4  ;;  %v4647_v16 = vadd.f32 %v4646_v12, %v11182_v37  ;;  %v4669_v31 = vmul.f32 %v11182_v37, %v11182_v37 }
 0xd44   :  { %v4626_v17 = vadd.f32 %v4625_v7, %v4611_v63 }
 0xd45   :  { %v4684_v38 = vadd.f32 %v4683_v19, %v4669_v31 }
 0xd47   :  { %v11187_v42 = vpop.f32.mrb[68].mxu0 }
 0xd48   :  { %v4590_v47 = vadd.f32 %v4589_v21, %v11187_v42  ;;  %v4612_v46 = vmul.f32 %v11187_v42, %v11187_v42  ;;  %v11192_v51 = vpop.f32.mrb[69].mxu0 }
 0xd49   :  { %v4648_v22 = vadd.f32 %v4647_v16, %v11192_v51  ;;  %v4670_v62 = vmul.f32 %v11192_v51, %v11192_v51  ;;  %v11197_v15 = vpop.f32.mrb[70].mxu0 }
 0xd4a   :  { %v4627_v41 = vadd.f32 %v4626_v17, %v4612_v46  ;;  %v4591_v11 = vadd.f32 %v4590_v47, %v11197_v15  ;;  %v4613_v23 = vmul.f32 %v11197_v15, %v11197_v15  ;;  %v11202_v60 = vpop.f32.mrb[71].mxu0 }
 0xd4b   :  { %v4685_v54 = vadd.f32 %v4684_v38, %v4670_v62  ;;  %v4649_v18 = vadd.f32 %v4648_v22, %v11202_v60  ;;  %v4671_v28 = vmul.f32 %v11202_v60, %v11202_v60 }
 0xd4c   :  { %v4628_v55 = vadd.f32 %v4627_v41, %v4613_v23 }
 0xd4d   :  { %v4686_v43 = vadd.f32 %v4685_v54, %v4671_v28 }
 0xd4f   :  { %v11207_v57 = vpop.f32.mrb[72].mxu0 }
 0xd50   :  { %v4592_v58 = vadd.f32 %v4591_v11, %v11207_v57  ;;  %v4614_v45 = vmul.f32 %v11207_v57, %v11207_v57  ;;  %v11212_v3 = vpop.f32.mrb[73].mxu0 }
 0xd51   :  { %v4650_v48 = vadd.f32 %v4649_v18, %v11212_v3  ;;  %v4672_v52 = vmul.f32 %v11212_v3, %v11212_v3  ;;  %v11217_v50 = vpop.f32.mrb[74].mxu0 }
 0xd52   :  { %v4629_v40 = vadd.f32 %v4628_v55, %v4614_v45  ;;  %v4593_v6 = vadd.f32 %v4592_v58, %v11217_v50  ;;  %v4615_v12 = vmul.f32 %v11217_v50, %v11217_v50  ;;  %v11222_v4 = vpop.f32.mrb[75].mxu0 }
 0xd53   :  { %v4687_v7 = vadd.f32 %v4686_v43, %v4672_v52  ;;  %v4651_v21 = vadd.f32 %v4650_v48, %v11222_v4  ;;  %v4673_v63 = vmul.f32 %v11222_v4, %v11222_v4 }
 0xd54   :  { %v4630_v19 = vadd.f32 %v4629_v40, %v4615_v12 }
 0xd55   :  { %v4688_v16 = vadd.f32 %v4687_v7, %v4673_v63 }
 0xd57   :  { %v11227_v31 = vpop.f32.mrb[76].mxu0 }
 0xd58   :  { %v4594_v17 = vadd.f32 %v4593_v6, %v11227_v31  ;;  %v4616_v38 = vmul.f32 %v11227_v31, %v11227_v31  ;;  %v11232_v47 = vpop.f32.mrb[77].mxu0 }
 0xd59   :  { %v4652_v46 = vadd.f32 %v4651_v21, %v11232_v47  ;;  %v4674_v22 = vmul.f32 %v11232_v47, %v11232_v47  ;;  %v11237_v62 = vpop.f32.mrb[78].mxu0 }
 0xd5a   :  { %v4631_v41 = vadd.f32 %v4630_v19, %v4616_v38  ;;  %v4595_v11 = vadd.f32 %v4594_v17, %v11237_v62  ;;  %v4617_v23 = vmul.f32 %v11237_v62, %v11237_v62  ;;  %v11242_v54 = vpop.f32.mrb[79].mxu0 }
 0xd5b   :  { %v4689_v18 = vadd.f32 %v4688_v16, %v4674_v22  ;;  %v4653_v28 = vadd.f32 %v4652_v46, %v11242_v54  ;;  %v4675_v55 = vmul.f32 %v11242_v54, %v11242_v54 }
 0xd5c   :  { %v4596_v43 = vrot.slane %v4595_v11, 4  ;;  %v4632_v58 = vadd.f32 %v4631_v41, %v4617_v23 }
 0xd5d   :  { %v4654_v45 = vrot.slane %v4653_v28, 4  ;;  %v4690_v48 = vadd.f32 %v4689_v18, %v4675_v55 }
 0xd5e   :  { %v4597_v52 = vadd.f32 %v4596_v43, %v4595_v11  ;;  %v4633_v40 = vrot.slane %v4632_v58, 4 }
 0xd5f   :  { %v4655_v6 = vadd.f32 %v4654_v45, %v4653_v28  ;;  %v4691_v12 = vrot.slane %v4690_v48, 4 }
 0xd60   :  { %v4598_v7 = vrot.slane %v4597_v52, 2  ;;  %v4634_v21 = vadd.f32 %v4633_v40, %v4632_v58 }
 0xd61   :  { %v4656_v63 = vrot.slane %v4655_v6, 2  ;;  %v4692_v19 = vadd.f32 %v4691_v12, %v4690_v48 }
 0xd62   :  { %v4599_v17 = vadd.f32 %v4598_v7, %v4597_v52  ;;  %v4635_v38 = vrot.slane %v4634_v21, 2 }
 0xd63   :  { %v4657_v16 = vadd.f32 %v4656_v63, %v4655_v6  ;;  %v4693_v22 = vrot.slane %v4692_v19, 2 }
 0xd64   :  { %v4600_v46 = vrot.slane %v4599_v17, 1  ;;  %v4636_v0 = vadd.f32 %v4635_v38, %v4634_v21 }
 0xd65   :  { %v4658_v56 = vrot.slane %v4657_v16, 1  ;;  %v4694_v39 = vadd.f32 %v4693_v22, %v4692_v19 }
 0xd66   :  { %v4637_v14 = vrot.slane %v4636_v0, 1  ;;  %v4601_v23 = vadd.f32 %v4600_v46, %v4599_v17 }
 0xd67   :  { %v4695_v41 = vrot.slane %v4694_v39, 1  ;;  %v4659_v11 = vadd.f32 %v4658_v56, %v4657_v16 }
 0xd68   :  { %v4638_v18 = vadd.f32 %v4637_v14, %v4636_v0 }
 0xd69   :  { %v4696_v55 = vadd.f32 %v4695_v41, %v4694_v39 }
 0xd6a   :  { %v4697_v28 = vsel %vm1488_vm6, %v4601_v23, %v4638_v18 }
 0xd6b   :  { %v4698_v43 = vsel %vm418_vm2, %v4697_v28, %v4659_v11 }
 0xd6c   :  { %v4699_v58 = vsel %vm1491_vm7, %v4698_v43, %v4696_v55 }
 0xd6d   :  { %8890 = vmatmul.mubr.f32.vlgmr.msra.gmra.mrb[100].mxu1 %v4699_v58 }
 0xd6e   :  { %9997 = shalt.err (!%p9994_p0)  }
 0xd6f   :  { %s9998_s19 = scalar_lea.vmem %s146_s28, 8192  ;;  %p10003_p2 = scmp.lt.s32.totalorder %s146_s28, %s146_s28 }
 0xd70   :  { %p9999_p1 = scmp.ne.s32.totalorder %s146_s28, %s9998_s19  ;;  %p10004_p3 = scmp.lt.s32.totalorder %s9998_s19, %s9998_s19 }
 0xd72   :  { %p10005_p4 = por %p10004_p3, %p10003_p2 }
 0xd74   :  { %p10006_p5 = pnand %p10005_p4, %p9999_p1 }
 0xd76   :  { %10009 = shalt.err (!%p10006_p5)  }
 0xd77   :  { %148 = dma.hbm_to_vmem [thread:$0]  %s13757_s12, 8192, %s146_s28, [#allocation5 + $0x2]  ;;  %v3552_v6 = vld [vmem:[#allocation11 + $0xc] sm:$0xf] }
 0xe40   :  { %v4766_v0 = vpop.f32.mrb[100].mxu1 }
 0xe41   :  { %v4770_v14 = vmul.f32 %v4766_v0, %v4766_v0  ;;  %v8891_v56 = vpop.f32.mrb[101].mxu1 }
 0xe43   :  { %v4772_v39 = vrot.slane %v4770_v14, 7 }
 0xe45   :  { %v4774_v45 = vsub.f32 %v4766_v0, %v4772_v39 }
 0xe47   :  { %v4775_v48 = vmax.f32 %v4774_v45, 0.0 }
 0xe49   :  { %v4776_v52 = vadd.f32 1e-05, %v4775_v48 }
 0xe4b   :  { %9552 = vrsqrt.f32 %v4776_v52 }
 0xe55   :  { %v9553_v40 = vpop.eup %9552 }
 0xe56   :  { %v8314_v12 = vrot.slane %v9553_v40, 9 }
 0xe58   :  { %v4782_v7 = vmul.f32 %v8314_v12, %v3552_v6 }
 0xe5a   :  { %v4786_v21 = vrot.slane %v4782_v7, %v10311_v9  ;;  %v4803_v63 = vmul.f32 %v4782_v7, %v4766_v0  ;;  %v4831_v19 = vrot.slane %v4782_v7, %v10314_v10 }
 0xe5c   :  { %v4787_v17 = vmul.f32 %v4786_v21, %v11087_v35  ;;  %v4788_v38 = vmul.f32 %v4786_v21, %v11091_v1  ;;  %v4789_v16 = vmul.f32 %v4786_v21, %v11107_v20  ;;  %v4790_v22 = vmul.f32 %v4786_v21, %v11117_v8 }
 0xe5d   :  { %v4791_v46 = vmul.f32 %v4786_v21, %v11127_v24  ;;  %v4792_v41 = vmul.f32 %v4786_v21, %v11137_v49  ;;  %v4793_v23 = vmul.f32 %v4786_v21, %v11147_v34  ;;  %v4794_v18 = vmul.f32 %v4786_v21, %v11157_v32 }
 0xe5e   :  { %v4795_v11 = vmul.f32 %v4786_v21, %v11167_v29  ;;  %v4796_v55 = vmul.f32 %v4786_v21, %v11177_v44  ;;  %v4797_v35 = vmul.f32 %v4786_v21, %v11187_v42  ;;  %v4798_v1 = vmul.f32 %v4786_v21, %v11197_v15 }
 0xe5f   :  { %v4799_v20 = vmul.f32 %v4786_v21, %v11207_v57  ;;  %v4800_v8 = vmul.f32 %v4786_v21, %v11217_v50  ;;  %v4801_v24 = vmul.f32 %v4786_v21, %v11227_v31  ;;  %v4802_v49 = vmul.f32 %v4786_v21, %v11237_v62 }
 0xe60   :  { %v4805_v28 = vrot.slane %v4803_v63, 7  ;;  %v4832_v34 = vmul.f32 %v4831_v19, %v11089_v61  ;;  %v4833_v32 = vmul.f32 %v4831_v19, %v11099_v26  ;;  %v4834_v29 = vmul.f32 %v4831_v19, %v11112_v25 }
 0xe61   :  { %v4835_v44 = vmul.f32 %v4831_v19, %v11122_v30  ;;  %v4836_v42 = vmul.f32 %v4831_v19, %v11132_v5  ;;  %v4837_v15 = vmul.f32 %v4831_v19, %v11142_v33  ;;  %v4838_v57 = vmul.f32 %v4831_v19, %v11152_v53 }
 0xe62   :  { %v4807_v50 = vsub.f32 %v3552_v6, %v4805_v28  ;;  %v4839_v31 = vmul.f32 %v4831_v19, %v11162_v59  ;;  %v4840_v62 = vmul.f32 %v4831_v19, %v11172_v27  ;;  %v4841_v43 = vmul.f32 %v4831_v19, %v11182_v37 }
 0xe63   :  { %v4842_v61 = vmul.f32 %v4831_v19, %v11192_v51  ;;  %v4843_v26 = vmul.f32 %v4831_v19, %v11202_v60  ;;  %v4844_v25 = vmul.f32 %v4831_v19, %v11212_v3  ;;  %v4845_v30 = vmul.f32 %v4831_v19, %v11222_v4 }
 0xe64   :  { %v4811_v5 = vrot.slane %v4807_v50, %v10343_v2  ;;  %v4846_v33 = vmul.f32 %v4831_v19, %v11232_v47  ;;  %v4847_v53 = vmul.f32 %v4831_v19, %v11242_v54  ;;  %v4851_v59 = vrot.slane %v4807_v50, %v10349_v36 }
 0xe66   :  { %v11298_v58 = vadd.f32 %v4811_v5, %v4787_v17  ;;  %v11300_v27 = vadd.f32 %v4811_v5, %v4788_v38  ;;  %v11302_v37 = vadd.f32 %v4811_v5, %v4789_v16  ;;  %v11304_v51 = vadd.f32 %v4811_v5, %v4790_v22 }
 0xe67   :  { %v11306_v60 = vadd.f32 %v4811_v5, %v4791_v46  ;;  %v11308_v3 = vadd.f32 %v4811_v5, %v4792_v41  ;;  %v11310_v4 = vadd.f32 %v4811_v5, %v4793_v23  ;;  %v11312_v0 = vadd.f32 %v4811_v5, %v4794_v18 }
 0xe68   :  { %v11314_v47 = vadd.f32 %v4811_v5, %v4795_v11  ;;  %v11316_v54 = vadd.f32 %v4811_v5, %v4796_v55  ;;  %v11318_v14 = vadd.f32 %v4811_v5, %v4797_v35  ;;  %v11320_v56 = vadd.f32 %v4811_v5, %v4798_v1 }
 0xe69   :  { %v11322_v39 = vadd.f32 %v4811_v5, %v4799_v20  ;;  %v11324_v45 = vadd.f32 %v4811_v5, %v4800_v8  ;;  %v11326_v48 = vadd.f32 %v4811_v5, %v4801_v24  ;;  %v11328_v52 = vadd.f32 %v4811_v5, %v4802_v49 }
 0xe6a   :  { %v4852_v40 = vadd.f32 %v4851_v59, %v4832_v34  ;;  %v4853_v6 = vadd.f32 %v4851_v59, %v4833_v32  ;;  %v4854_v12 = vadd.f32 %v4851_v59, %v4834_v29  ;;  %v4855_v7 = vadd.f32 %v4851_v59, %v4835_v44 }
 0xe6b   :  { %v4856_v21 = vadd.f32 %v4851_v59, %v4836_v42  ;;  %v4857_v63 = vadd.f32 %v4851_v59, %v4837_v15  ;;  %v4858_v19 = vadd.f32 %v4851_v59, %v4838_v57  ;;  %v4859_v17 = vadd.f32 %v4851_v59, %v4839_v31 }
 0xe6c   :  { %v4860_v38 = vadd.f32 %v4851_v59, %v4840_v62  ;;  %v4861_v16 = vadd.f32 %v4851_v59, %v4841_v43  ;;  %v4862_v22 = vadd.f32 %v4851_v59, %v4842_v61  ;;  %v4863_v46 = vadd.f32 %v4851_v59, %v4843_v26 }
 0xe6d   :  { %v4864_v41 = vadd.f32 %v4851_v59, %v4844_v25  ;;  %v4865_v23 = vadd.f32 %v4851_v59, %v4845_v30  ;;  %v4866_v18 = vadd.f32 %v4851_v59, %v4846_v33  ;;  %v4867_v11 = vadd.f32 %v4851_v59, %v4847_v53 }
 0xe6e   :  { %v8315_v55 = vmul.f32 -1.442695, %v4852_v40  ;;  %v8316_v35 = vmul.f32 -1.442695, %v4853_v6  ;;  %v8317_v1 = vmul.f32 -1.442695, %v4854_v12 }
 0xe6f   :  { %v8318_v20 = vmul.f32 -1.442695, %v4855_v7  ;;  %v8319_v8 = vmul.f32 -1.442695, %v4856_v21  ;;  %v8320_v24 = vmul.f32 -1.442695, %v4857_v63 }
 0xe70   :  { %9554 = vpow2.f32 %v8315_v55  ;;  %v8321_v49 = vmul.f32 -1.442695, %v4858_v19  ;;  %v8322_v28 = vmul.f32 -1.442695, %v4859_v17  ;;  %v8323_v34 = vmul.f32 -1.442695, %v4860_v38 }
 0xe71   :  { %9556 = vpow2.f32 %v8316_v35  ;;  %v8324_v32 = vmul.f32 -1.442695, %v4861_v16  ;;  %v8325_v29 = vmul.f32 -1.442695, %v4862_v22  ;;  %v8326_v44 = vmul.f32 -1.442695, %v4863_v46 }
 0xe72   :  { %9558 = vpow2.f32 %v8317_v1  ;;  %v8327_v42 = vmul.f32 -1.442695, %v4864_v41  ;;  %v8328_v15 = vmul.f32 -1.442695, %v4865_v23  ;;  %v8329_v50 = vmul.f32 -1.442695, %v4866_v18 }
 0xe73   :  { %9560 = vpow2.f32 %v8318_v20  ;;  %v8330_v62 = vmul.f32 -1.442695, %v4867_v11 }
 0xe74   :  { %9562 = vpow2.f32 %v8319_v8 }
 0xe75   :  { %9564 = vpow2.f32 %v8320_v24 }
 0xe76   :  { %9566 = vpow2.f32 %v8321_v49 }
 0xe77   :  { %9568 = vpow2.f32 %v8322_v28 }
 0xe78   :  { %9570 = vpow2.f32 %v8323_v34 }
 0xe79   :  { %9572 = vpow2.f32 %v8324_v32 }
 0xe7a   :  { %v9555_v57 = vpop.eup %9554  ;;  %9574 = vpow2.f32 %v8325_v29 }
 0xe7b   :  { %v9557_v31 = vpop.eup %9556  ;;  %9576 = vpow2.f32 %v8326_v44  ;;  %v4916_v61 = vadd.f32 1.0, %v9555_v57 }
 0xe7c   :  { %v9559_v43 = vpop.eup %9558  ;;  %9578 = vpow2.f32 %v8327_v42  ;;  %v4917_v25 = vadd.f32 1.0, %v9557_v31 }
 0xe7d   :  { %v9561_v26 = vpop.eup %9560  ;;  %9580 = vpow2.f32 %v8328_v15  ;;  %v4918_v5 = vadd.f32 1.0, %v9559_v43 }
 0xe7e   :  { %v9563_v30 = vpop.eup %9562  ;;  %9582 = vpow2.f32 %v8329_v50  ;;  %v4919_v53 = vadd.f32 1.0, %v9561_v26 }
 0xe7f   :  { %v9565_v33 = vpop.eup %9564  ;;  %9584 = vpow2.f32 %v8330_v62  ;;  %v4920_v40 = vadd.f32 1.0, %v9563_v30 }
 0xe80   :  { %v9567_v59 = vpop.eup %9566  ;;  %9586 = vrcp.f32 %v4916_v61  ;;  %v4921_v12 = vadd.f32 1.0, %v9565_v33 }
 0xe81   :  { %v9569_v6 = vpop.eup %9568  ;;  %9588 = vrcp.f32 %v4917_v25  ;;  %v4922_v21 = vadd.f32 1.0, %v9567_v59 }
 0xe82   :  { %v9571_v7 = vpop.eup %9570  ;;  %9590 = vrcp.f32 %v4918_v5  ;;  %v4923_v19 = vadd.f32 1.0, %v9569_v6 }
 0xe83   :  { %v9573_v63 = vpop.eup %9572  ;;  %9592 = vrcp.f32 %v4919_v53  ;;  %v4924_v38 = vadd.f32 1.0, %v9571_v7 }
 0xe84   :  { %v9575_v17 = vpop.eup %9574  ;;  %9594 = vrcp.f32 %v4920_v40  ;;  %v4925_v22 = vadd.f32 1.0, %v9573_v63 }
 0xe85   :  { %v9577_v16 = vpop.eup %9576  ;;  %9596 = vrcp.f32 %v4921_v12  ;;  %v4926_v41 = vadd.f32 1.0, %v9575_v17 }
 0xe86   :  { %v9579_v46 = vpop.eup %9578  ;;  %9598 = vrcp.f32 %v4922_v21  ;;  %v4927_v18 = vadd.f32 1.0, %v9577_v16 }
 0xe87   :  { %v9581_v23 = vpop.eup %9580  ;;  %9600 = vrcp.f32 %v4923_v19  ;;  %v4928_v55 = vadd.f32 1.0, %v9579_v46 }
 0xe88   :  { %v9583_v11 = vpop.eup %9582  ;;  %9602 = vrcp.f32 %v4924_v38  ;;  %v4929_v1 = vadd.f32 1.0, %v9581_v23 }
 0xe89   :  { %v9585_v35 = vpop.eup %9584  ;;  %9604 = vrcp.f32 %v4925_v22  ;;  %v4930_v8 = vadd.f32 1.0, %v9583_v11 }
 0xe8a   :  { %v9587_v20 = vpop.eup %9586  ;;  %9606 = vrcp.f32 %v4926_v41  ;;  %v4931_v49 = vadd.f32 1.0, %v9585_v35 }
 0xe8b   :  { %v9589_v24 = vpop.eup %9588  ;;  %9608 = vrcp.f32 %v4927_v18  ;;  %v4964_v28 = vmul.f32 %v9587_v20, %v11298_v58 }
 0xe8c   :  { %v9591_v34 = vpop.eup %9590  ;;  %9610 = vrcp.f32 %v4928_v55  ;;  %v4965_v32 = vmul.f32 %v9589_v24, %v11300_v27 }
 0xe8d   :  { %v9593_v29 = vpop.eup %9592  ;;  %9612 = vrcp.f32 %v4929_v1  ;;  %v4966_v44 = vmul.f32 %v9591_v34, %v11302_v37 }
 0xe8e   :  { %v9595_v42 = vpop.eup %9594  ;;  %9614 = vrcp.f32 %v4930_v8  ;;  %v4967_v15 = vmul.f32 %v9593_v29, %v11304_v51 }
 0xe8f   :  { %v9597_v57 = vpop.eup %9596  ;;  %9616 = vrcp.f32 %v4931_v49  ;;  %v4968_v50 = vmul.f32 %v9595_v42, %v11306_v60 }
 0xe90   :  { %v9599_v31 = vpop.eup %9598  ;;  %v4969_v62 = vmul.f32 %v9597_v57, %v11308_v3 }
 0xe91   :  { %v9601_v58 = vpop.eup %9600  ;;  %v4970_v43 = vmul.f32 %v9599_v31, %v11310_v4 }
 0xe92   :  { %v9603_v61 = vpop.eup %9602  ;;  %v4971_v27 = vmul.f32 %v9601_v58, %v11312_v0 }
 0xe93   :  { %v9605_v26 = vpop.eup %9604  ;;  %v4972_v37 = vmul.f32 %v9603_v61, %v11314_v47 }
 0xe94   :  { %v9607_v25 = vpop.eup %9606  ;;  %v4973_v30 = vmul.f32 %v9605_v26, %v11316_v54 }
 0xe95   :  { %v9609_v51 = vpop.eup %9608  ;;  %v4974_v5 = vmul.f32 %v9607_v25, %v11318_v14 }
 0xe96   :  { %v9611_v33 = vpop.eup %9610  ;;  %v4975_v60 = vmul.f32 %v9609_v51, %v11320_v56 }
 0xe97   :  { %v9613_v53 = vpop.eup %9612  ;;  %v4976_v3 = vmul.f32 %v9611_v33, %v11322_v39 }
 0xe98   :  { %v9615_v59 = vpop.eup %9614  ;;  %v4977_v4 = vmul.f32 %v9613_v53, %v11324_v45 }
 0xe99   :  { %v9617_v40 = vpop.eup %9616  ;;  %v4978_v0 = vmul.f32 %v9615_v59, %v11326_v48 }
 0xe9a   :  { %v4979_v47 = vmul.f32 %v9617_v40, %v11328_v52 }
 0xe9b   :  { %10016 = dma.done.wait [#allocation5], 6144 }
 0xe9c   :  { %10017 = vsyncadd [#allocation5], 4294961152 }
 0xe9d   :  { %10018 = dma.done.wait [#allocation5 + $0x1], 12288 }
 0xe9e   :  { %10019 = vsyncadd [#allocation5 + $0x1], 4294955008  ;;  %v5154_v54 = vpack.c.bf16 %v4965_v32, %v4964_v28  ;;  %v5155_v14 = vpack.c.bf16 %v4967_v15, %v4966_v44 }
 0xe9f   :  { %10020 = dma.done.wait [#allocation5 + $0x2], 8192 }
 0xea0   :  { %10021 = vsyncadd [#allocation5 + $0x2], 4294959104  ;;  %8892 = vmatprep.subr.bf16.mxu1 %v5154_v54  ;;  %8988 = vmatprep.subr.bf16.mxu0 %v5154_v54  ;;  %v5156_v56 = vpack.c.bf16 %v4969_v62, %v4968_v50  ;;  %v5162_v39 = vld [vmem:[#allocation2] sm:$0xff]  ;;  %v5157_v45 = vpack.c.bf16 %v4971_v27, %v4970_v43  ;;  %v5158_v48 = vpack.c.bf16 %v4973_v30, %v4972_v37  ;;  %v5163_v21 = vld [vmem:[#allocation2 + $0x8] sm:$0xff] }
 0xea1   :  { %8893 = vmatpush3.bf16.msra.mxu1 %v5154_v54  ;;  %8989 = vmatpush3.bf16.msra.mxu0 %v5154_v54  ;;  %v5159_v52 = vpack.c.bf16 %v4975_v60, %v4974_v5  ;;  %v5160_v6 = vpack.c.bf16 %v4977_v4, %v4976_v3  ;;  %v5161_v12 = vpack.c.bf16 %v4979_v47, %v4978_v0  ;;  %v5550_v7 = vld [vmem:[#allocation2 + $0x100] sm:$0xff]  ;;  %v5551_v63 = vld [vmem:[#allocation2 + $0x108] sm:$0xff]  ;;  %v5164_v19 = vld [vmem:[#allocation2 + $0x10] sm:$0xff] }
 0xea2   :  { %8894 = vmatprep.subr.bf16.mxu1 %v5155_v14  ;;  %8990 = vmatprep.subr.bf16.mxu0 %v5155_v14  ;;  %v5552_v17 = vld [vmem:[#allocation2 + $0x110] sm:$0xff]  ;;  %v5165_v38 = vld [vmem:[#allocation2 + $0x18] sm:$0xff]  ;;  %v5166_v22 = vld [vmem:[#allocation2 + $0x20] sm:$0xff] }
 0xea3   :  { %8908 = vmatprep.mubr.bf16.mxu1 %v5162_v39  ;;  %9004 = vmatprep.mubr.bf16.mxu0 %v5550_v7  ;;  %v5553_v16 = vld [vmem:[#allocation2 + $0x118] sm:$0xff]  ;;  %v5167_v46 = vld [vmem:[#allocation2 + $0x28] sm:$0xff]  ;;  %v5168_v41 = vld [vmem:[#allocation2 + $0x30] sm:$0xff] }
 0xea4   :  { %v5169_v23 = vld [vmem:[#allocation2 + $0x38] sm:$0xff]  ;;  %v5170_v18 = vld [vmem:[#allocation2 + $0x40] sm:$0xff]  ;;  %v5171_v11 = vld [vmem:[#allocation2 + $0x48] sm:$0xff] }
 0xea5   :  { %8895 = vmatpush3.bf16.msra.mxu1 %v5155_v14  ;;  %8991 = vmatpush3.bf16.msra.mxu0 %v5155_v14  ;;  %v5172_v55 = vld [vmem:[#allocation2 + $0x50] sm:$0xff]  ;;  %v5173_v35 = vld [vmem:[#allocation2 + $0x58] sm:$0xff]  ;;  %v5174_v1 = vld [vmem:[#allocation2 + $0x60] sm:$0xff] }
 0xea6   :  { %8896 = vmatprep.subr.bf16.mxu1 %v5156_v56  ;;  %8992 = vmatprep.subr.bf16.mxu0 %v5156_v56  ;;  %v5175_v20 = vld [vmem:[#allocation2 + $0x68] sm:$0xff]  ;;  %v5176_v8 = vld [vmem:[#allocation2 + $0x70] sm:$0xff]  ;;  %v5177_v24 = vld [vmem:[#allocation2 + $0x78] sm:$0xff] }
 0xea7   :  { %v5356_v49 = vld [vmem:[#allocation2 + $0x80] sm:$0xff]  ;;  %v5357_v28 = vld [vmem:[#allocation2 + $0x88] sm:$0xff]  ;;  %v5358_v34 = vld [vmem:[#allocation2 + $0x90] sm:$0xff] }
 0xea8   :  { %v5359_v32 = vld [vmem:[#allocation2 + $0x98] sm:$0xff]  ;;  %v5360_v29 = vld [vmem:[#allocation2 + $0xa0] sm:$0xff]  ;;  %v5361_v44 = vld [vmem:[#allocation2 + $0xa8] sm:$0xff] }
 0xea9   :  { %8897 = vmatpush3.bf16.msra.mxu1 %v5156_v56  ;;  %8993 = vmatpush3.bf16.msra.mxu0 %v5156_v56  ;;  %v5362_v42 = vld [vmem:[#allocation2 + $0xb0] sm:$0xff]  ;;  %v5363_v15 = vld [vmem:[#allocation2 + $0xb8] sm:$0xff]  ;;  %v5364_v57 = vld [vmem:[#allocation2 + $0xc0] sm:$0xff] }
 0xeaa   :  { %8898 = vmatprep.subr.bf16.mxu1 %v5157_v45  ;;  %8994 = vmatprep.subr.bf16.mxu0 %v5157_v45  ;;  %v4994_v50 = vld [vmem:[#allocation3 + $0x8] sm:$0xff]  ;;  %v4996_v31 = vld [vmem:[#allocation3 + $0x18] sm:$0xff]  ;;  %v4993_v62 = vld [vmem:[#allocation3] sm:$0xff] }
 0xeab   :  { %v4995_v58 = vld [vmem:[#allocation3 + $0x10] sm:$0xff]  ;;  %v5365_v43 = vld [vmem:[#allocation2 + $0xc8] sm:$0xff]  ;;  %v5554_v61 = vld [vmem:[#allocation2 + $0x120] sm:$0xff] }
 0xeac   :  { %v4998_v27 = vld [vmem:[#allocation3 + $0x28] sm:$0xff]  ;;  %v5000_v26 = vld [vmem:[#allocation3 + $0x38] sm:$0xff]  ;;  %v5366_v25 = vld [vmem:[#allocation2 + $0xd0] sm:$0xff] }
 0xead   :  { %8899 = vmatpush3.bf16.msra.mxu1 %v5157_v45  ;;  %8995 = vmatpush3.bf16.msra.mxu0 %v5157_v45  ;;  %v5555_v37 = vld [vmem:[#allocation2 + $0x128] sm:$0xff]  ;;  %v4997_v30 = vld [vmem:[#allocation3 + $0x20] sm:$0xff]  ;;  %v4999_v51 = vld [vmem:[#allocation3 + $0x30] sm:$0xff] }
 0xeae   :  { %8900 = vmatprep.subr.bf16.mxu1 %v5158_v48  ;;  %8996 = vmatprep.subr.bf16.mxu0 %v5158_v48  ;;  %v5002_v5 = vld [vmem:[#allocation3 + $0x48] sm:$0xff]  ;;  %v5004_v33 = vld [vmem:[#allocation3 + $0x58] sm:$0xff]  ;;  %v5001_v60 = vld [vmem:[#allocation3 + $0x40] sm:$0xff] }
 0xeaf   :  { %v5003_v53 = vld [vmem:[#allocation3 + $0x50] sm:$0xff]  ;;  %v5367_v3 = vld [vmem:[#allocation2 + $0xd8] sm:$0xff]  ;;  %v5006_v59 = vld [vmem:[#allocation3 + $0x68] sm:$0xff] }
 0xeb0   :  { %v5008_v4 = vld [vmem:[#allocation3 + $0x78] sm:$0xff]  ;;  %v5368_v40 = vld [vmem:[#allocation2 + $0xe0] sm:$0xff]  ;;  %v5007_v47 = vld [vmem:[#allocation3 + $0x70] sm:$0xff] }
 0xeb1   :  { %8901 = vmatpush3.bf16.msra.mxu1 %v5158_v48  ;;  %8997 = vmatpush3.bf16.msra.mxu0 %v5158_v48  ;;  %v5005_v0 = vld [vmem:[#allocation3 + $0x60] sm:$0xff]  ;;  %v5011_v39 = vld [vmem:[#allocation3 + $0x90] sm:$0xff] }
 0xeb2   :  { %8902 = vmatprep.subr.bf16.mxu1 %v5159_v52  ;;  %8998 = vmatprep.subr.bf16.mxu0 %v5159_v52  ;;  %v5370_v7 = vld [vmem:[#allocation2 + $0xf0] sm:$0xff] }
 0xeb5   :  { %8903 = vmatpush3.bf16.msra.mxu1 %v5159_v52  ;;  %8999 = vmatpush3.bf16.msra.mxu0 %v5159_v52 }
 0xeb6   :  { %8904 = vmatprep.subr.bf16.mxu1 %v5160_v6  ;;  %9000 = vmatprep.subr.bf16.mxu0 %v5160_v6 }
 0xeb9   :  { %8905 = vmatpush3.bf16.msra.mxu1 %v5160_v6  ;;  %9001 = vmatpush3.bf16.msra.mxu0 %v5160_v6 }
 0xeba   :  { %8906 = vmatprep.subr.bf16.mxu1 %v5161_v12  ;;  %9002 = vmatprep.subr.bf16.mxu0 %v5161_v12 }
 0xebd   :  { %8907 = vmatpush3.bf16.msra.mxu1 %v5161_v12  ;;  %9003 = vmatpush3.bf16.msra.mxu0 %v5161_v12 }
 0xebe   :  { %8940 = vmatprep.subr.bf16.mxu1 %v5154_v54  ;;  %6129 = vmatprep.subr.bf16.mxu0 %v4996_v31  ;;  %v5040_v31 = vld [vmem:[#allocation3 + $0x178] sm:$0xff] }
 0xec0   :  { %8909 = vmatmul.mubr.bf16.vlgmr.msra.gmra.mrb[104].mxu1 %v5163_v21  ;;  %9005 = vmatmul.mubr.bf16.vlgmr.msra.gmra.mrb[80].mxu0 %v5551_v63  ;;  %v5013_v21 = vld [vmem:[#allocation3 + $0xa0] sm:$0xff]  ;;  %v5015_v63 = vld [vmem:[#allocation3 + $0xb0] sm:$0xff] }
 0xec1   :  { %8941 = vmatpush3.bf16.msra.mxu1 %v5154_v54  ;;  %8912 = vmatprep.mubr.bf16.mxu1 %v5164_v19  ;;  %v5010_v54 = vld [vmem:[#allocation3 + $0x88] sm:$0xff] }
 0xec2   :  { %8942 = vmatprep.subr.bf16.mxu1 %v5155_v14  ;;  %9008 = vmatprep.mubr.bf16.mxu0 %v5552_v17  ;;  %v5018_v19 = vld [vmem:[#allocation3 + $0xc8] sm:$0xff]  ;;  %v5020_v17 = vld [vmem:[#allocation3 + $0xd8] sm:$0xff] }
 0xec3   :  { %6130 = vmatpush1.bf16.msra.mxu0 %v4995_v58  ;;  %v5039_v58 = vld [vmem:[#allocation3 + $0x170] sm:$0xff] }
 0xec4   :  { %6131 = vmatprep.subr.bf16.mxu0 %v5000_v26  ;;  %v5044_v26 = vld [vmem:[#allocation3 + $0x198] sm:$0xff] }
 0xec5   :  { %8943 = vmatpush3.bf16.msra.mxu1 %v5155_v14  ;;  %v5012_v14 = vld [vmem:[#allocation3 + $0x98] sm:$0xff] }
 0xec6   :  { %8944 = vmatprep.subr.bf16.mxu1 %v5156_v56 }
 0xec7   :  { %6132 = vmatpush1.bf16.msra.mxu0 %v4999_v51  ;;  %v5048_v51 = vld [vmem:[#allocation3 + $0x1b8] sm:$0xff] }
 0xec8   :  { %8913 = vmatmul.mubr.bf16.gmra.mrb[108].mxu1 %v5165_v38  ;;  %9009 = vmatmul.mubr.bf16.gmra.mrb[84].mxu0 %v5553_v16  ;;  %v5017_v38 = vld [vmem:[#allocation3 + $0xc0] sm:$0xff]  ;;  %v5019_v16 = vld [vmem:[#allocation3 + $0xd0] sm:$0xff] }
 0xec9   :  { %8916 = vmatprep.mubr.bf16.mxu1 %v5166_v22  ;;  %8945 = vmatpush3.bf16.msra.mxu1 %v5156_v56  ;;  %v5009_v56 = vld [vmem:[#allocation3 + $0x80] sm:$0xff]  ;;  %v5371_v22 = vld [vmem:[#allocation2 + $0xf8] sm:$0xff] }
 0xeca   :  { %8946 = vmatprep.subr.bf16.mxu1 %v5157_v45  ;;  %9012 = vmatprep.mubr.bf16.mxu0 %v5554_v61  ;;  %v5563_v61 = vld [vmem:[#allocation2 + $0x168] sm:$0xff] }
 0xecb   :  { %6133 = vmatprep.subr.bf16.mxu0 %v5004_v33  ;;  %v5047_v33 = vld [vmem:[#allocation3 + $0x1b0] sm:$0xff] }
 0xecc   :  { %6134 = vmatpush1.bf16.msra.mxu0 %v5003_v53  ;;  %v5565_v53 = vld [vmem:[#allocation2 + $0x178] sm:$0xff] }
 0xecd   :  { %8947 = vmatpush3.bf16.msra.mxu1 %v5157_v45  ;;  %6135 = vmatprep.subr.bf16.mxu0 %v5008_v4  ;;  %v5369_v45 = vld [vmem:[#allocation2 + $0xe8] sm:$0xff]  ;;  %v5049_v4 = vld [vmem:[#allocation3 + $0x1c0] sm:$0xff] }
 0xece   :  { %8948 = vmatprep.subr.bf16.mxu1 %v5158_v48 }
 0xed0   :  { %8917 = vmatmul.mubr.bf16.gmra.mrb[112].mxu1 %v5167_v46  ;;  %9013 = vmatmul.mubr.bf16.gmra.mrb[88].mxu0 %v5555_v37  ;;  %v5022_v46 = vld [vmem:[#allocation3 + $0xe8] sm:$0xff]  ;;  %v5041_v37 = vld [vmem:[#allocation3 + $0x180] sm:$0xff] }
 0xed1   :  { %8920 = vmatprep.mubr.bf16.mxu1 %v5168_v41  ;;  %8949 = vmatpush3.bf16.msra.mxu1 %v5158_v48  ;;  %v5556_v48 = vld [vmem:[#allocation2 + $0x130] sm:$0xff]  ;;  %v5024_v41 = vld [vmem:[#allocation3 + $0xf8] sm:$0xff] }
 0xed2   :  { %8950 = vmatprep.subr.bf16.mxu1 %v5159_v52  ;;  %6136 = vmatpush1.bf16.msra.mxu0 %v5007_v47  ;;  %v5056_v47 = vld [vmem:[#allocation3 + $0x1f8] sm:$0xff] }
 0xed3   :  { %6137 = vmatprep.subr.bf16.mxu0 %v5012_v14  ;;  %9016 = vmatprep.mubr.bf16.mxu0 %v5556_v48  ;;  %v5055_v14 = vld [vmem:[#allocation3 + $0x1f0] sm:$0xff] }
 0xed5   :  { %8951 = vmatpush3.bf16.msra.mxu1 %v5159_v52  ;;  %v5014_v52 = vld [vmem:[#allocation3 + $0xa8] sm:$0xff] }
 0xed6   :  { %8952 = vmatprep.subr.bf16.mxu1 %v5160_v6  ;;  %6138 = vmatpush1.bf16.msra.mxu0 %v5011_v39  ;;  %v5060_v39 = vld [vmem:[#allocation3 + $0x218] sm:$0xff] }
 0xed8   :  { %8921 = vmatmul.mubr.bf16.gmra.mrb[116].mxu1 %v5169_v23  ;;  %v5021_v23 = vld [vmem:[#allocation3 + $0xe0] sm:$0xff] }
 0xed9   :  { %8924 = vmatprep.mubr.bf16.mxu1 %v5170_v18  ;;  %8953 = vmatpush3.bf16.msra.mxu1 %v5160_v6  ;;  %v5016_v6 = vld [vmem:[#allocation3 + $0xb8] sm:$0xff]  ;;  %v5023_v18 = vld [vmem:[#allocation3 + $0xf0] sm:$0xff] }
 0xeda   :  { %8954 = vmatprep.subr.bf16.mxu1 %v5161_v12  ;;  %6139 = vmatprep.subr.bf16.mxu0 %v5016_v6 }
 0xedb   :  { %6140 = vmatpush1.bf16.msra.mxu0 %v5015_v63 }
 0xedc   :  { %6141 = vmatprep.subr.bf16.mxu0 %v5020_v17 }
 0xedd   :  { %8955 = vmatpush3.bf16.msra.mxu1 %v5161_v12  ;;  %v5557_v12 = vld [vmem:[#allocation2 + $0x138] sm:$0xff] }
 0xede   :  { %5743 = vmatprep.subr.bf16.mxu1 %v4994_v50  ;;  %9017 = vmatmul.mubr.bf16.gmra.mrb[92].mxu0 %v5557_v12  ;;  %v5038_v50 = vld [vmem:[#allocation3 + $0x168] sm:$0xff] }
 0xedf   :  { %6142 = vmatpush1.bf16.msra.mxu0 %v5019_v16 }
 0xee0   :  { %8925 = vmatmul.mubr.bf16.gmra.mrb[120].mxu1 %v5171_v11  ;;  %6143 = vmatprep.subr.bf16.mxu0 %v5024_v41  ;;  %v5558_v11 = vld [vmem:[#allocation2 + $0x140] sm:$0xff] }
 0xee1   :  { %8928 = vmatprep.mubr.bf16.mxu1 %v5172_v55  ;;  %v5559_v55 = vld [vmem:[#allocation2 + $0x148] sm:$0xff]  ;;  %9020 = vmatprep.mubr.bf16.mxu0 %v5558_v11 }
 0xee3   :  { %6144 = vmatpush1.bf16.msra.mxu0 %v5023_v18 }
 0xee6   :  { %9021 = vmatmul.mubr.bf16.gmra.mrb[96].mxu0 %v5559_v55 }
 0xee8   :  { %8929 = vmatmul.mubr.bf16.gmra.mrb[124].mxu1 %v5173_v35  ;;  %v5026_v35 = vld [vmem:[#allocation3 + $0x108] sm:$0xff] }
 0xee9   :  { %8932 = vmatprep.mubr.bf16.mxu1 %v5174_v1  ;;  %v5028_v1 = vld [vmem:[#allocation3 + $0x118] sm:$0xff] }
 0xeea   :  { %6145 = vmatprep.subr.bf16.mxu0 %v5028_v1 }
 0xef0   :  { %8933 = vmatmul.mubr.bf16.gmra.mrb[128].mxu1 %v5175_v20  ;;  %v5025_v20 = vld [vmem:[#allocation3 + $0x100] sm:$0xff] }
 0xef1   :  { %8936 = vmatprep.mubr.bf16.mxu1 %v5176_v8  ;;  %v5027_v8 = vld [vmem:[#allocation3 + $0x110] sm:$0xff] }
 0xef2   :  { %6146 = vmatpush1.bf16.msra.mxu0 %v5027_v8 }
 0xef8   :  { %8937 = vmatmul.mubr.bf16.gmra.mrb[132].mxu1 %v5177_v24  ;;  %v5030_v24 = vld [vmem:[#allocation3 + $0x128] sm:$0xff] }
 0xef9   :  { %8956 = vmatprep.mubr.bf16.mxu1 %v5356_v49  ;;  %v5032_v49 = vld [vmem:[#allocation3 + $0x138] sm:$0xff] }
 0xefa   :  { %6147 = vmatprep.subr.bf16.mxu0 %v5032_v49 }
 0xf00   :  { %8957 = vmatmul.mubr.bf16.vlgmr.msra.gmra.mrb[136].mxu1 %v5357_v28  ;;  %v5029_v28 = vld [vmem:[#allocation3 + $0x120] sm:$0xff] }
 0xf01   :  { %8960 = vmatprep.mubr.bf16.mxu1 %v5358_v34  ;;  %5744 = vmatpush1.bf16.msra.mxu1 %v4993_v62  ;;  %v5031_v34 = vld [vmem:[#allocation3 + $0x130] sm:$0xff]  ;;  %v5037_v62 = vld [vmem:[#allocation3 + $0x160] sm:$0xff] }
 0xf02   :  { %5745 = vmatprep.subr.bf16.mxu1 %v4998_v27  ;;  %6148 = vmatpush1.bf16.msra.mxu0 %v5031_v34  ;;  %v5042_v27 = vld [vmem:[#allocation3 + $0x188] sm:$0xff] }
 0xf05   :  { %5746 = vmatpush1.bf16.msra.mxu1 %v4997_v30  ;;  %v5046_v30 = vld [vmem:[#allocation3 + $0x1a8] sm:$0xff] }
 0xf06   :  { %5747 = vmatprep.subr.bf16.mxu1 %v5002_v5  ;;  %v5045_v5 = vld [vmem:[#allocation3 + $0x1a0] sm:$0xff] }
 0xf08   :  { %8961 = vmatmul.mubr.bf16.gmra.mrb[140].mxu1 %v5359_v32  ;;  %v5560_v32 = vld [vmem:[#allocation2 + $0x150] sm:$0xff] }
 0xf09   :  { %8964 = vmatprep.mubr.bf16.mxu1 %v5360_v29  ;;  %5748 = vmatpush1.bf16.msra.mxu1 %v5001_v60  ;;  %v5561_v29 = vld [vmem:[#allocation2 + $0x158] sm:$0xff]  ;;  %v5564_v60 = vld [vmem:[#allocation2 + $0x170] sm:$0xff] }
 0xf0a   :  { %5749 = vmatprep.subr.bf16.mxu1 %v5006_v59  ;;  %9024 = vmatprep.mubr.bf16.mxu0 %v5560_v32  ;;  %v5052_v59 = vld [vmem:[#allocation3 + $0x1d8] sm:$0xff] }
 0xf0b   :  { %9025 = vmatmul.mubr.bf16.gmra.mrb[100].mxu0 %v5561_v29 }
 0xf0d   :  { %5750 = vmatpush1.bf16.msra.mxu1 %v5005_v0  ;;  %v5054_v0 = vld [vmem:[#allocation3 + $0x1e8] sm:$0xff] }
 0xf0e   :  { %5751 = vmatprep.subr.bf16.mxu1 %v5010_v54  ;;  %v5053_v54 = vld [vmem:[#allocation3 + $0x1e0] sm:$0xff] }
 0xf10   :  { %8965 = vmatmul.mubr.bf16.gmra.mrb[144].mxu1 %v5361_v44  ;;  %v5034_v44 = vld [vmem:[#allocation3 + $0x148] sm:$0xff] }
 0xf11   :  { %8968 = vmatprep.mubr.bf16.mxu1 %v5362_v42  ;;  %5752 = vmatpush1.bf16.msra.mxu1 %v5009_v56  ;;  %v5036_v42 = vld [vmem:[#allocation3 + $0x158] sm:$0xff]  ;;  %v5058_v56 = vld [vmem:[#allocation3 + $0x208] sm:$0xff] }
 0xf12   :  { %5753 = vmatprep.subr.bf16.mxu1 %v5014_v52  ;;  %6149 = vmatprep.subr.bf16.mxu0 %v5036_v42 }
 0xf15   :  { %5754 = vmatpush1.bf16.msra.mxu1 %v5013_v21 }
 0xf16   :  { %5755 = vmatprep.subr.bf16.mxu1 %v5018_v19 }
 0xf18   :  { %8969 = vmatmul.mubr.bf16.gmra.mrb[148].mxu1 %v5363_v15  ;;  %v5033_v15 = vld [vmem:[#allocation3 + $0x140] sm:$0xff] }
 0xf19   :  { %8972 = vmatprep.mubr.bf16.mxu1 %v5364_v57  ;;  %5756 = vmatpush1.bf16.msra.mxu1 %v5017_v38  ;;  %v5035_v57 = vld [vmem:[#allocation3 + $0x150] sm:$0xff] }
 0xf1a   :  { %5757 = vmatprep.subr.bf16.mxu1 %v5022_v46  ;;  %6150 = vmatpush1.bf16.msra.mxu0 %v5035_v57 }
 0xf1b   :  { %6151 = vmatprep.subr.bf16.mxu0 %v5040_v31 }
 0xf1d   :  { %5758 = vmatpush1.bf16.msra.mxu1 %v5021_v23 }
 0xf1e   :  { %5759 = vmatprep.subr.bf16.mxu1 %v5026_v35  ;;  %6152 = vmatpush1.bf16.msra.mxu0 %v5039_v58 }
 0xf1f   :  { %6153 = vmatprep.subr.bf16.mxu0 %v5044_v26 }
 0xf20   :  { %8973 = vmatmul.mubr.bf16.gmra.mrb[152].mxu1 %v5365_v43  ;;  %v5562_v43 = vld [vmem:[#allocation2 + $0x160] sm:$0xff] }
 0xf21   :  { %8976 = vmatprep.mubr.bf16.mxu1 %v5366_v25  ;;  %5760 = vmatpush1.bf16.msra.mxu1 %v5025_v20  ;;  %v5043_v25 = vld [vmem:[#allocation3 + $0x190] sm:$0xff] }
 0xf22   :  { %5761 = vmatprep.subr.bf16.mxu1 %v5030_v24  ;;  %9028 = vmatprep.mubr.bf16.mxu0 %v5562_v43 }
 0xf23   :  { %9029 = vmatmul.mubr.bf16.gmra.mrb[104].mxu0 %v5563_v61 }
 0xf24   :  { %6154 = vmatpush1.bf16.msra.mxu0 %v5043_v25  ;;  %9032 = vmatprep.mubr.bf16.mxu0 %v5564_v60 }
 0xf25   :  { %5762 = vmatpush1.bf16.msra.mxu1 %v5029_v28  ;;  %6155 = vmatprep.subr.bf16.mxu0 %v5048_v51 }
 0xf26   :  { %5763 = vmatprep.subr.bf16.mxu1 %v5034_v44 }
 0xf28   :  { %8977 = vmatmul.mubr.bf16.gmra.mrb[156].mxu1 %v5367_v3  ;;  %v5050_v3 = vld [vmem:[#allocation3 + $0x1c8] sm:$0xff]  ;;  %6156 = vmatpush1.bf16.msra.mxu0 %v5047_v33 }
 0xf29   :  { %8980 = vmatprep.mubr.bf16.mxu1 %v5368_v40  ;;  %5764 = vmatpush1.bf16.msra.mxu1 %v5033_v15  ;;  %v5051_v40 = vld [vmem:[#allocation3 + $0x1d0] sm:$0xff] }
 0xf2a   :  { %5765 = vmatprep.subr.bf16.mxu1 %v5038_v50  ;;  %6157 = vmatprep.subr.bf16.mxu0 %v5052_v59 }
 0xf2b   :  { %9033 = vmatmul.mubr.bf16.gmra.mrb[108].mxu0 %v5565_v53 }
 0xf2c   :  { %6158 = vmatpush1.bf16.msra.mxu0 %v5051_v40 }
 0xf2d   :  { %5766 = vmatpush1.bf16.msra.mxu1 %v5037_v62  ;;  %6159 = vmatprep.subr.bf16.mxu0 %v5056_v47 }
 0xf2e   :  { %5767 = vmatprep.subr.bf16.mxu1 %v5042_v27 }
 0xf30   :  { %8981 = vmatmul.mubr.bf16.gmra.mrb[160].mxu1 %v5369_v45  ;;  %6160 = vmatpush1.bf16.msra.mxu0 %v5055_v14 }
 0xf31   :  { %8984 = vmatprep.mubr.bf16.mxu1 %v5370_v7  ;;  %5768 = vmatpush1.bf16.msra.mxu1 %v5041_v37 }
 0xf32   :  { %5769 = vmatprep.subr.bf16.mxu1 %v5046_v30  ;;  %6322 = vmatprep.subr.bf16.mxu0 %v5060_v39 }
 0xf35   :  { %5770 = vmatpush1.bf16.msra.mxu1 %v5045_v5 }
 0xf36   :  { %5771 = vmatprep.subr.bf16.mxu1 %v5050_v3 }
 0xf38   :  { %8985 = vmatmul.mubr.bf16.gmra.mrb[164].mxu1 %v5371_v22 }
 0xf39   :  { %5772 = vmatpush1.bf16.msra.mxu1 %v5049_v4 }
 0xf3a   :  { %5773 = vmatprep.subr.bf16.mxu1 %v5054_v0 }
 0xf3d   :  { %5774 = vmatpush1.bf16.msra.mxu1 %v5053_v54 }
 0xf3e   :  { %5936 = vmatprep.subr.bf16.mxu1 %v5058_v56 }
 0xf93   :  { %v8910_v45 = vpop.f32.mrb[104].mxu1  ;;  %v9006_v30 = vpop.f32.mrb[80].mxu0 }
 0xf94   :  { %v5212_v48 = vpop.f32.mrb[105].mxu1  ;;  %v5600_v3 = vpop.f32.mrb[81].mxu0 }
 0xf95   :  { %v8911_v52 = vpop.f32.mrb[106].mxu1  ;;  %v9007_v4 = vpop.f32.mrb[82].mxu0 }
 0xf96   :  { %v11346_v6 = vpack.c.bf16 %v8911_v52, %v8910_v45  ;;  %v5215_v12 = vpop.f32.mrb[107].mxu1  ;;  %v11376_v0 = vpack.c.bf16 %v9007_v4, %v9006_v30  ;;  %v5603_v47 = vpop.f32.mrb[83].mxu0  ;;  %v5059_v52 = vld [vmem:[#allocation3 + $0x210] sm:$0xff]  ;;  %v5078_v4 = vld [vmem:[#allocation3 + $0x2a8] sm:$0xff] }
 0xf97   :  { %v5339_v7 = vpack.c.bf16 %v5215_v12, %v5212_v48  ;;  %v11378_v14 = vpack.c.bf16 %v5603_v47, %v5600_v3  ;;  %v5057_v48 = vld [vmem:[#allocation3 + $0x200] sm:$0xff]  ;;  %v5062_v12 = vld [vmem:[#allocation3 + $0x228] sm:$0xff] }
 0xf98   :  { %v5073_v3 = vld [vmem:[#allocation3 + $0x280] sm:$0xff] }
 0xf9b   :  { %v8914_v21 = vpop.f32.mrb[108].mxu1 }
 0xf9c   :  { %v5228_v63 = vpop.f32.mrb[109].mxu1 }
 0xf9d   :  { %v8915_v19 = vpop.f32.mrb[110].mxu1 }
 0xf9e   :  { %v11348_v17 = vpack.c.bf16 %v8915_v19, %v8914_v21  ;;  %v5231_v38 = vpop.f32.mrb[111].mxu1  ;;  %v5064_v21 = vld [vmem:[#allocation3 + $0x238] sm:$0xff]  ;;  %v9010_v19 = vpop.f32.mrb[84].mxu0 }
 0xf9f   :  { %v11350_v16 = vpack.c.bf16 %v5231_v38, %v5228_v63 }
 0xfa3   :  { %v8918_v22 = vpop.f32.mrb[112].mxu1 }
 0xfa4   :  { %v5244_v46 = vpop.f32.mrb[113].mxu1 }
 0xfa5   :  { %v8919_v41 = vpop.f32.mrb[114].mxu1 }
 0xfa6   :  { %v11352_v23 = vpack.c.bf16 %v8919_v41, %v8918_v22  ;;  %v5247_v18 = vpop.f32.mrb[115].mxu1  ;;  %v5061_v22 = vld [vmem:[#allocation3 + $0x220] sm:$0xff]  ;;  %v5063_v41 = vld [vmem:[#allocation3 + $0x230] sm:$0xff] }
 0xfa7   :  { %v11354_v11 = vpack.c.bf16 %v5247_v18, %v5244_v46  ;;  %v5066_v18 = vld [vmem:[#allocation3 + $0x248] sm:$0xff] }
 0xfab   :  { %v8922_v55 = vpop.f32.mrb[116].mxu1 }
 0xfac   :  { %v5260_v35 = vpop.f32.mrb[117].mxu1 }
 0xfad   :  { %v8923_v1 = vpop.f32.mrb[118].mxu1 }
 0xfae   :  { %v11356_v20 = vpack.c.bf16 %v8923_v1, %v8922_v55  ;;  %v5263_v8 = vpop.f32.mrb[119].mxu1  ;;  %v5068_v1 = vld [vmem:[#allocation3 + $0x258] sm:$0xff] }
 0xfaf   :  { %v11358_v24 = vpack.c.bf16 %v5263_v8, %v5260_v35 }
 0xfb3   :  { %v8926_v49 = vpop.f32.mrb[120].mxu1 }
 0xfb4   :  { %v5276_v28 = vpop.f32.mrb[121].mxu1 }
 0xfb5   :  { %v8927_v34 = vpop.f32.mrb[122].mxu1 }
 0xfb6   :  { %v11360_v32 = vpack.c.bf16 %v8927_v34, %v8926_v49  ;;  %v5279_v29 = vpop.f32.mrb[123].mxu1  ;;  %v5067_v49 = vld [vmem:[#allocation3 + $0x250] sm:$0xff]  ;;  %v5072_v34 = vld [vmem:[#allocation3 + $0x278] sm:$0xff] }
 0xfb7   :  { %v11362_v44 = vpack.c.bf16 %v5279_v29, %v5276_v28  ;;  %v5070_v28 = vld [vmem:[#allocation3 + $0x268] sm:$0xff]  ;;  %v5616_v29 = vpop.f32.mrb[85].mxu0 }
 0xfbb   :  { %v8930_v42 = vpop.f32.mrb[124].mxu1 }
 0xfbc   :  { %v5292_v15 = vpop.f32.mrb[125].mxu1 }
 0xfbd   :  { %v8931_v57 = vpop.f32.mrb[126].mxu1 }
 0xfbe   :  { %v11364_v50 = vpack.c.bf16 %v8931_v57, %v8930_v42  ;;  %v5295_v31 = vpop.f32.mrb[127].mxu1 }
 0xfbf   :  { %v11366_v62 = vpack.c.bf16 %v5295_v31, %v5292_v15  ;;  %v9011_v15 = vpop.f32.mrb[86].mxu0 }
 0xfc0   :  { %v11382_v31 = vpack.c.bf16 %v9011_v15, %v9010_v19  ;;  %v5083_v19 = vld [vmem:[#allocation3 + $0x2d0] sm:$0xff] }
 0xfc3   :  { %v8934_v58 = vpop.f32.mrb[128].mxu1 }
 0xfc4   :  { %v5308_v43 = vpop.f32.mrb[129].mxu1 }
 0xfc5   :  { %v8935_v61 = vpop.f32.mrb[130].mxu1 }
 0xfc6   :  { %v11368_v27 = vpack.c.bf16 %v8935_v61, %v8934_v58  ;;  %v5311_v26 = vpop.f32.mrb[131].mxu1  ;;  %v5619_v58 = vpop.f32.mrb[87].mxu0  ;;  %v5069_v61 = vld [vmem:[#allocation3 + $0x260] sm:$0xff] }
 0xfc7   :  { %v11370_v37 = vpack.c.bf16 %v5311_v26, %v5308_v43  ;;  %v5071_v26 = vld [vmem:[#allocation3 + $0x270] sm:$0xff] }
 0xfcb   :  { %v8938_v25 = vpop.f32.mrb[132].mxu1 }
 0xfcc   :  { %v5324_v51 = vpop.f32.mrb[133].mxu1 }
 0xfcd   :  { %v8939_v5 = vpop.f32.mrb[134].mxu1 }
 0xfce   :  { %v11372_v33 = vpack.c.bf16 %v8939_v5, %v8938_v25  ;;  %v5327_v60 = vpop.f32.mrb[135].mxu1  ;;  %v11384_v25 = vpack.c.bf16 %v5619_v58, %v5616_v29  ;;  %v5076_v5 = vld [vmem:[#allocation3 + $0x298] sm:$0xff] }
 0xfcf   :  { %v11374_v53 = vpack.c.bf16 %v5327_v60, %v5324_v51  ;;  %v5074_v51 = vld [vmem:[#allocation3 + $0x288] sm:$0xff] }
 0xfd3   :  { %v8958_v59 = vpop.f32.mrb[136].mxu1 }
 0xfd4   :  { %v5406_v40 = vpop.f32.mrb[137].mxu1 }
 0xfd5   :  { %v8959_v54 = vpop.f32.mrb[138].mxu1 }
 0xfd6   :  { %v5534_v56 = vpack.c.bf16 %v8959_v54, %v8958_v59  ;;  %v5409_v39 = vpop.f32.mrb[139].mxu1  ;;  %v5075_v59 = vld [vmem:[#allocation3 + $0x290] sm:$0xff] }
 0xfd7   :  { %v5533_v45 = vpack.c.bf16 %v5409_v39, %v5406_v40  ;;  %v5080_v40 = vld [vmem:[#allocation3 + $0x2b8] sm:$0xff]  ;;  %v5077_v39 = vld [vmem:[#allocation3 + $0x2a0] sm:$0xff] }
 0xfd9   :  { %5775 = vmatprep.mubr.bf16.mxu1 %v5533_v45  ;;  %6161 = vmatprep.mubr.bf16.mxu0 %v5533_v45  ;;  %v5079_v45 = vld [vmem:[#allocation3 + $0x2b0] sm:$0xff] }
 0xfda   :  { %5776 = vmatmul.mubr.bf16.vlgmr.msra.gmra.mrb[168].mxu1 %v5339_v7  ;;  %6162 = vmatmul.mubr.bf16.vlgmr.msra.gmra.mrb[112].mxu0 %v5339_v7  ;;  %v5065_v7 = vld [vmem:[#allocation3 + $0x240] sm:$0xff] }
 0xfdb   :  { %5785 = vmatprep.mubr.bf16.mxu1 %v5534_v56  ;;  %5937 = vmatpush1.bf16.msra.mxu1 %v5057_v48  ;;  %v8962_v63 = vpop.f32.mrb[140].mxu1 }
 0xfdc   :  { %6171 = vmatprep.mubr.bf16.mxu0 %v5534_v56  ;;  %6323 = vmatpush1.bf16.msra.mxu0 %v5059_v52  ;;  %v5422_v38 = vpop.f32.mrb[141].mxu1 }
 0xfdd   :  { %v8963_v46 = vpop.f32.mrb[142].mxu1  ;;  %5938 = vmatprep.subr.bf16.mxu1 %v5062_v12  ;;  %6324 = vmatprep.subr.bf16.mxu0 %v5064_v21  ;;  %v5082_v12 = vld [vmem:[#allocation3 + $0x2c8] sm:$0xff]  ;;  %v5084_v21 = vld [vmem:[#allocation3 + $0x2d8] sm:$0xff] }
 0xfde   :  { %v5536_v55 = vpack.c.bf16 %v8963_v46, %v8962_v63  ;;  %v5425_v35 = vpop.f32.mrb[143].mxu1  ;;  %v9014_v46 = vpop.f32.mrb[88].mxu0 }
 0xfdf   :  { %v5535_v8 = vpack.c.bf16 %v5425_v35, %v5422_v38  ;;  %5939 = vmatpush1.bf16.msra.mxu1 %v5061_v22  ;;  %v5086_v38 = vld [vmem:[#allocation3 + $0x2e8] sm:$0xff]  ;;  %v5088_v22 = vld [vmem:[#allocation3 + $0x2f8] sm:$0xff] }
 0xfe0   :  { %6325 = vmatpush1.bf16.msra.mxu0 %v5063_v41  ;;  %5940 = vmatprep.subr.bf16.mxu1 %v5066_v18  ;;  %v5632_v18 = vpop.f32.mrb[89].mxu0 }
 0xfe1   :  { %6326 = vmatprep.subr.bf16.mxu0 %v5068_v1  ;;  %v9015_v35 = vpop.f32.mrb[90].mxu0 }
 0xfe2   :  { %5786 = vmatmul.mubr.bf16.gmra.mrb[172].mxu1 %v11346_v6  ;;  %6172 = vmatmul.mubr.bf16.gmra.mrb[116].mxu0 %v11346_v6 }
 0xfe3   :  { %5795 = vmatprep.mubr.bf16.mxu1 %v5535_v8  ;;  %6181 = vmatprep.mubr.bf16.mxu0 %v5535_v8  ;;  %v8966_v42 = vpop.f32.mrb[144].mxu1  ;;  %v5085_v8 = vld [vmem:[#allocation3 + $0x2e0] sm:$0xff] }
 0xfe4   :  { %v5438_v57 = vpop.f32.mrb[145].mxu1  ;;  %5941 = vmatpush1.bf16.msra.mxu1 %v5065_v7  ;;  %6327 = vmatpush1.bf16.msra.mxu0 %v5067_v49  ;;  %v5087_v7 = vld [vmem:[#allocation3 + $0x2f0] sm:$0xff]  ;;  %v11394_v49 = vpack.c.bf16 %v9015_v35, %v9014_v46 }
 0xfe5   :  { %v8967_v43 = vpop.f32.mrb[146].mxu1  ;;  %5942 = vmatprep.subr.bf16.mxu1 %v5070_v28  ;;  %6328 = vmatprep.subr.bf16.mxu0 %v5072_v34  ;;  %v5635_v28 = vpop.f32.mrb[91].mxu0 }
 0xfe6   :  { %v11386_v6 = vpack.c.bf16 %v8967_v43, %v8966_v42  ;;  %v5441_v30 = vpop.f32.mrb[147].mxu1  ;;  %v11396_v29 = vpack.c.bf16 %v5635_v28, %v5632_v18 }
 0xfe7   :  { %v5537_v60 = vpack.c.bf16 %v5441_v30, %v5438_v57  ;;  %v9018_v30 = vpop.f32.mrb[92].mxu0 }
 0xfe8   :  { %5943 = vmatpush1.bf16.msra.mxu1 %v5069_v61  ;;  %6329 = vmatpush1.bf16.msra.mxu0 %v5071_v26 }
 0xfe9   :  { %5944 = vmatprep.subr.bf16.mxu1 %v5074_v51  ;;  %6330 = vmatprep.subr.bf16.mxu0 %v5076_v5 }
 0xfea   :  { %5796 = vmatmul.mubr.bf16.gmra.mrb[176].mxu1 %v11350_v16  ;;  %6182 = vmatmul.mubr.bf16.gmra.mrb[120].mxu0 %v11350_v16  ;;  %v5081_v16 = vld [vmem:[#allocation3 + $0x2c0] sm:$0xff] }
 0xfeb   :  { %5805 = vmatprep.mubr.bf16.mxu1 %v5536_v55  ;;  %6191 = vmatprep.mubr.bf16.mxu0 %v5536_v55  ;;  %v8970_v47 = vpop.f32.mrb[148].mxu1 }
 0xfec   :  { %v5454_v54 = vpop.f32.mrb[149].mxu1  ;;  %5945 = vmatpush1.bf16.msra.mxu1 %v5073_v3  ;;  %6331 = vmatpush1.bf16.msra.mxu0 %v5075_v59 }
 0xfed   :  { %v8971_v56 = vpop.f32.mrb[150].mxu1  ;;  %5946 = vmatprep.subr.bf16.mxu1 %v5078_v4  ;;  %6332 = vmatprep.subr.bf16.mxu0 %v5080_v40 }
 0xfee   :  { %v11390_v48 = vpack.c.bf16 %v8971_v56, %v8970_v47  ;;  %v5457_v52 = vpop.f32.mrb[151].mxu1 }
 0xfef   :  { %v5539_v63 = vpack.c.bf16 %v5457_v52, %v5454_v54 }
 0xff0   :  { %5947 = vmatpush1.bf16.msra.mxu1 %v5077_v39  ;;  %6333 = vmatpush1.bf16.msra.mxu0 %v5079_v45 }
 0xff1   :  { %5948 = vmatprep.subr.bf16.mxu1 %v5082_v12  ;;  %6334 = vmatprep.subr.bf16.mxu0 %v5084_v21 }
 0xff2   :  { %5806 = vmatmul.mubr.bf16.gmra.mrb[180].mxu1 %v11348_v17  ;;  %6192 = vmatmul.mubr.bf16.gmra.mrb[124].mxu0 %v11348_v17 }
 0xff3   :  { %5815 = vmatprep.mubr.bf16.mxu1 %v5537_v60  ;;  %6201 = vmatprep.mubr.bf16.mxu0 %v5537_v60  ;;  %v8974_v41 = vpop.f32.mrb[152].mxu1 }
 0xff4   :  { %v5470_v55 = vpop.f32.mrb[153].mxu1  ;;  %5949 = vmatpush1.bf16.msra.mxu1 %v5081_v16  ;;  %6335 = vmatpush1.bf16.msra.mxu0 %v5083_v19 }
 0xff5   :  { %v8975_v1 = vpop.f32.mrb[154].mxu1  ;;  %5950 = vmatprep.subr.bf16.mxu1 %v5086_v38  ;;  %6336 = vmatprep.subr.bf16.mxu0 %v5088_v22 }
 0xff6   :  { %v5542_v17 = vpack.c.bf16 %v8975_v1, %v8974_v41  ;;  %v5473_v34 = vpop.f32.mrb[155].mxu1 }
 0xff7   :  { %v5541_v42 = vpack.c.bf16 %v5473_v34, %v5470_v55 }
 0xff8   :  { %5951 = vmatpush1.bf16.msra.mxu1 %v5085_v8  ;;  %6337 = vmatpush1.bf16.msra.mxu0 %v5087_v7 }
 0xffa   :  { %5816 = vmatmul.mubr.bf16.gmra.mrb[184].mxu1 %v11354_v11  ;;  %6202 = vmatmul.mubr.bf16.gmra.mrb[128].mxu0 %v11354_v11  ;;  %v5648_v11 = vpop.f32.mrb[93].mxu0 }
 0xffb   :  { %5825 = vmatprep.mubr.bf16.mxu1 %v11386_v6  ;;  %6211 = vmatprep.mubr.bf16.mxu0 %v11386_v6  ;;  %v8978_v15 = vpop.f32.mrb[156].mxu1  ;;  %v9019_v60 = vpop.f32.mrb[94].mxu0 }
 0xffc   :  { %v5486_v57 = vpop.f32.mrb[157].mxu1  ;;  %v11406_v6 = vpack.c.bf16 %v9019_v60, %v9018_v30  ;;  %v5651_v59 = vpop.f32.mrb[95].mxu0  ;;  %v5099_v30 = vld [vmem:[#allocation4 + $0x50] sm:$0xff] }
 0xffd   :  { %v8979_v58 = vpop.f32.mrb[158].mxu1  ;;  %v11408_v47 = vpack.c.bf16 %v5651_v59, %v5648_v11  ;;  %v9022_v45 = vpop.f32.mrb[96].mxu0  ;;  %v5102_v11 = vld [vmem:[#allocation4 + $0x68] sm:$0xff] }
 0xffe   :  { %v11402_v43 = vpack.c.bf16 %v8979_v58, %v8978_v15  ;;  %v5489_v61 = vpop.f32.mrb[159].mxu1  ;;  %v5664_v21 = vpop.f32.mrb[97].mxu0  ;;  %v5098_v58 = vld [vmem:[#allocation4 + $0x48] sm:$0xff] }
 0xfff   :  { %v5543_v26 = vpack.c.bf16 %v5489_v61, %v5486_v57  ;;  %v9023_v16 = vpop.f32.mrb[98].mxu0 }
0x1000   :  { %v11414_v19 = vpack.c.bf16 %v9023_v16, %v9022_v45  ;;  %v5667_v38 = vpop.f32.mrb[99].mxu0  ;;  %v5112_v45 = vld [vmem:[#allocation4 + $0xb8] sm:$0xff]  ;;  %v5114_v16 = vld [vmem:[#allocation4 + $0xc8] sm:$0xff] }
0x1001   :  { %v11416_v22 = vpack.c.bf16 %v5667_v38, %v5664_v21  ;;  %v5111_v21 = vld [vmem:[#allocation4 + $0xb0] sm:$0xff] }
0x1002   :  { %5826 = vmatmul.mubr.bf16.gmra.mrb[188].mxu1 %v11352_v23  ;;  %6212 = vmatmul.mubr.bf16.gmra.mrb[132].mxu0 %v11352_v23 }
0x1003   :  { %5835 = vmatprep.mubr.bf16.mxu1 %v5539_v63  ;;  %6221 = vmatprep.mubr.bf16.mxu0 %v5539_v63  ;;  %v8982_v51 = vpop.f32.mrb[160].mxu1 }
0x1004   :  { %v5502_v5 = vpop.f32.mrb[161].mxu1 }
0x1005   :  { %v8983_v3 = vpop.f32.mrb[162].mxu1 }
0x1006   :  { %v5546_v4 = vpack.c.bf16 %v8983_v3, %v8982_v51  ;;  %v5505_v40 = vpop.f32.mrb[163].mxu1  ;;  %v5101_v3 = vld [vmem:[#allocation4 + $0x60] sm:$0xff] }
0x1007   :  { %v5545_v54 = vpack.c.bf16 %v5505_v40, %v5502_v5  ;;  %v5104_v5 = vld [vmem:[#allocation4 + $0x78] sm:$0xff] }
0x1008   :  { %v9144_v60 = vpack.c.bf16 %v5104_v5, %v5102_v11  ;;  %v5108_v40 = vld [vmem:[#allocation4 + $0x98] sm:$0xff]  ;;  %v5142_v5 = vld [vmem:[#allocation4 + $0x1a8] sm:$0xff] }
0x100a   :  { %5836 = vmatmul.mubr.bf16.gmra.mrb[192].mxu1 %v11358_v24  ;;  %6222 = vmatmul.mubr.bf16.gmra.mrb[136].mxu0 %v11358_v24  ;;  %v9026_v24 = vpop.f32.mrb[100].mxu0 }
0x100b   :  { %5845 = vmatprep.mubr.bf16.mxu1 %v11390_v48  ;;  %6231 = vmatprep.mubr.bf16.mxu0 %v11390_v48  ;;  %v8986_v23 = vpop.f32.mrb[164].mxu1  ;;  %v5680_v48 = vpop.f32.mrb[101].mxu0 }
0x100c   :  { %v5518_v56 = vpop.f32.mrb[165].mxu1  ;;  %v9027_v46 = vpop.f32.mrb[102].mxu0 }
0x100d   :  { %v8987_v39 = vpop.f32.mrb[166].mxu1  ;;  %v11420_v41 = vpack.c.bf16 %v9027_v46, %v9026_v24  ;;  %v5683_v18 = vpop.f32.mrb[103].mxu0  ;;  %v5115_v24 = vld [vmem:[#allocation4 + $0xd0] sm:$0xff]  ;;  %v5118_v46 = vld [vmem:[#allocation4 + $0xe8] sm:$0xff] }
0x100e   :  { %v5548_v52 = vpack.c.bf16 %v8987_v39, %v8986_v23  ;;  %v5521_v12 = vpop.f32.mrb[167].mxu1  ;;  %v11422_v55 = vpack.c.bf16 %v5683_v18, %v5680_v48  ;;  %v9030_v35 = vpop.f32.mrb[104].mxu0  ;;  %v5107_v23 = vld [vmem:[#allocation4 + $0x90] sm:$0xff]  ;;  %v5110_v39 = vld [vmem:[#allocation4 + $0xa8] sm:$0xff] }
0x100f   :  { %v5547_v63 = vpack.c.bf16 %v5521_v12, %v5518_v56  ;;  %v5696_v1 = vpop.f32.mrb[105].mxu0  ;;  %v5109_v12 = vld [vmem:[#allocation4 + $0xa0] sm:$0xff] }
0x1010   :  { %v9031_v8 = vpop.f32.mrb[106].mxu0 }
0x1011   :  { %v5699_v7 = vpop.f32.mrb[107].mxu0 }
0x1012   :  { %5846 = vmatmul.mubr.bf16.gmra.mrb[196].mxu1 %v11356_v20  ;;  %6232 = vmatmul.mubr.bf16.gmra.mrb[140].mxu0 %v11356_v20  ;;  %v11426_v20 = vpack.c.bf16 %v9031_v8, %v9030_v35  ;;  %v11428_v28 = vpack.c.bf16 %v5699_v7, %v5696_v1  ;;  %v9034_v34 = vpop.f32.mrb[108].mxu0  ;;  %v5119_v35 = vld [vmem:[#allocation4 + $0xf0] sm:$0xff]  ;;  %v5122_v8 = vld [vmem:[#allocation4 + $0x108] sm:$0xff] }
0x1013   :  { %5855 = vmatprep.mubr.bf16.mxu1 %v5541_v42  ;;  %6241 = vmatprep.mubr.bf16.mxu0 %v5541_v42  ;;  %v5712_v42 = vpop.f32.mrb[109].mxu0 }
0x1014   :  { %v9035_v15 = vpop.f32.mrb[110].mxu0 }
0x101a   :  { %5856 = vmatmul.mubr.bf16.gmra.mrb[200].mxu1 %v11362_v44  ;;  %6242 = vmatmul.mubr.bf16.gmra.mrb[144].mxu0 %v11362_v44  ;;  %v11432_v44 = vpack.c.bf16 %v9035_v15, %v9034_v34  ;;  %v5123_v34 = vld [vmem:[#allocation4 + $0x110] sm:$0xff]  ;;  %v5126_v15 = vld [vmem:[#allocation4 + $0x128] sm:$0xff] }
0x101b   :  { %5865 = vmatprep.mubr.bf16.mxu1 %v5542_v17  ;;  %6251 = vmatprep.mubr.bf16.mxu0 %v5542_v17  ;;  %v5715_v17 = vpop.f32.mrb[111].mxu0 }
0x101c   :  { %v11434_v57 = vpack.c.bf16 %v5715_v17, %v5712_v42 }
0x1022   :  { %5866 = vmatmul.mubr.bf16.gmra.mrb[204].mxu1 %v11360_v32  ;;  %6252 = vmatmul.mubr.bf16.gmra.mrb[148].mxu0 %v11360_v32  ;;  %v13874_v32 = vmov 0  }
0x1023   :  { %5875 = vmatprep.mubr.bf16.mxu1 %v5543_v26  ;;  %6261 = vmatprep.mubr.bf16.mxu0 %v5543_v26  ;;  %v5097_v26 = vld [vmem:[#allocation4 + $0x40] sm:$0xff] }
0x1024   :  { %v9142_v51 = vpack.c.bf16 %v5099_v30, %v5097_v26  ;;  %v5137_v30 = vld [vmem:[#allocation4 + $0x180] sm:$0xff] }
0x102a   :  { %5876 = vmatmul.mubr.bf16.gmra.mrb[208].mxu1 %v11366_v62  ;;  %6262 = vmatmul.mubr.bf16.gmra.mrb[152].mxu0 %v11366_v62  ;;  %v5092_v62 = vld [vmem:[#allocation4 + $0x18] sm:$0xff] }
0x102b   :  { %5885 = vmatprep.mubr.bf16.mxu1 %v11402_v43  ;;  %6271 = vmatprep.mubr.bf16.mxu0 %v11402_v43  ;;  %v5100_v43 = vld [vmem:[#allocation4 + $0x58] sm:$0xff] }
0x102c   :  { %v9140_v61 = vpack.c.bf16 %v5100_v43, %v5098_v58  ;;  %v5138_v43 = vld [vmem:[#allocation4 + $0x188] sm:$0xff] }
0x1032   :  { %5886 = vmatmul.mubr.bf16.gmra.mrb[212].mxu1 %v11364_v50  ;;  %6272 = vmatmul.mubr.bf16.gmra.mrb[156].mxu0 %v11364_v50  ;;  %v5090_v50 = vld [vmem:[#allocation4 + $0x8] sm:$0xff] }
0x1033   :  { %5895 = vmatprep.mubr.bf16.mxu1 %v5545_v54  ;;  %6281 = vmatprep.mubr.bf16.mxu0 %v5545_v54  ;;  %v5105_v54 = vld [vmem:[#allocation4 + $0x80] sm:$0xff] }
0x1034   :  { %v9150_v56 = vpack.c.bf16 %v5107_v23, %v5105_v54 }
0x103a   :  { %5896 = vmatmul.mubr.bf16.gmra.mrb[216].mxu1 %v11370_v37  ;;  %6282 = vmatmul.mubr.bf16.gmra.mrb[160].mxu0 %v11370_v37  ;;  %v5089_v37 = vld [vmem:[#allocation4] sm:$0xff] }
0x103b   :  { %5905 = vmatprep.mubr.bf16.mxu1 %v5546_v4  ;;  %6291 = vmatprep.mubr.bf16.mxu0 %v5546_v4  ;;  %v5106_v4 = vld [vmem:[#allocation4 + $0x88] sm:$0xff] }
0x1042   :  { %5906 = vmatmul.mubr.bf16.gmra.mrb[220].mxu1 %v11368_v27  ;;  %6292 = vmatmul.mubr.bf16.gmra.mrb[164].mxu0 %v11368_v27  ;;  %v9132_v27 = vpack.c.bf16 %v5092_v62, %v5090_v50  ;;  %v5130_v62 = vld [vmem:[#allocation4 + $0x148] sm:$0xff] }
0x1043   :  { %5915 = vmatprep.mubr.bf16.mxu1 %v5547_v63  ;;  %6301 = vmatprep.mubr.bf16.mxu0 %v5547_v63  ;;  %v9154_v63 = vpack.c.bf16 %v5111_v21, %v5109_v12 }
0x1044   :  { %9133 = vmatprep.subr.bf16.mxu1 %v9132_v27  ;;  %v5132_v27 = vld [vmem:[#allocation4 + $0x158] sm:$0xff] }
0x104a   :  { %5916 = vmatmul.mubr.bf16.gmra.mrb[224].mxu1 %v11374_v53  ;;  %6302 = vmatmul.mubr.bf16.gmra.mrb[168].mxu0 %v11374_v53 }
0x104b   :  { %5925 = vmatprep.mubr.bf16.mxu1 %v5548_v52  ;;  %6311 = vmatprep.mubr.bf16.mxu0 %v5548_v52  ;;  %v9152_v52 = vpack.c.bf16 %v5112_v45, %v5110_v39 }
0x1052   :  { %5926 = vmatmul.mubr.bf16.gmra.mrb[228].mxu1 %v11372_v33  ;;  %6312 = vmatmul.mubr.bf16.gmra.mrb[172].mxu0 %v11372_v33  ;;  %v5091_v33 = vld [vmem:[#allocation4 + $0x10] sm:$0xff] }
0x1053   :  { %5968 = vmatprep.mubr.bf16.mxu1 %v13874_v32  ;;  %6354 = vmatprep.mubr.bf16.mxu0 %v13874_v32  ;;  %v9134_v53 = vpack.c.bf16 %v5091_v33, %v5089_v37  ;;  %v9172_v37 = vpack.c.bf16 %v5132_v27, %v5130_v62  ;;  %v5129_v33 = vld [vmem:[#allocation4 + $0x140] sm:$0xff] }
0x105a   :  { %5969 = vmatmul.mubr.bf16.vlgmr.msra.gmra.mrb[168].mxu1 %v11378_v14  ;;  %6355 = vmatmul.mubr.bf16.vlgmr.msra.gmra.mrb[112].mxu0 %v11378_v14  ;;  %v5096_v14 = vld [vmem:[#allocation4 + $0x38] sm:$0xff] }
0x105b   :  { %5978 = vmatprep.mubr.bf16.mxu1 %v13874_v32  ;;  %6364 = vmatprep.mubr.bf16.mxu0 %v13874_v32 }
0x105c   :  { %9135 = vmatpush1.bf16.msra.mxu1 %v9134_v53  ;;  %v5131_v53 = vld [vmem:[#allocation4 + $0x150] sm:$0xff] }
0x1062   :  { %5979 = vmatmul.mubr.bf16.gmra.mrb[172].mxu1 %v11376_v0  ;;  %6365 = vmatmul.mubr.bf16.gmra.mrb[116].mxu0 %v11376_v0  ;;  %v5094_v0 = vld [vmem:[#allocation4 + $0x28] sm:$0xff] }
0x1063   :  { %5988 = vmatprep.mubr.bf16.mxu1 %v13874_v32  ;;  %6374 = vmatprep.mubr.bf16.mxu0 %v13874_v32 }
0x106a   :  { %5989 = vmatmul.mubr.bf16.gmra.mrb[176].mxu1 %v11384_v25  ;;  %6375 = vmatmul.mubr.bf16.gmra.mrb[120].mxu0 %v11384_v25  ;;  %v5093_v25 = vld [vmem:[#allocation4 + $0x20] sm:$0xff] }
0x106b   :  { %5998 = vmatprep.mubr.bf16.mxu1 %v13874_v32  ;;  %6384 = vmatprep.mubr.bf16.mxu0 %v13874_v32 }
0x1072   :  { %5999 = vmatmul.mubr.bf16.gmra.mrb[180].mxu1 %v11382_v31  ;;  %6385 = vmatmul.mubr.bf16.gmra.mrb[124].mxu0 %v11382_v31  ;;  %v9136_v31 = vpack.c.bf16 %v5096_v14, %v5094_v0  ;;  %v9174_v0 = vpack.c.bf16 %v5131_v53, %v5129_v33  ;;  %v5134_v14 = vld [vmem:[#allocation4 + $0x168] sm:$0xff] }
0x1073   :  { %6008 = vmatprep.mubr.bf16.mxu1 %v13874_v32  ;;  %6394 = vmatprep.mubr.bf16.mxu0 %v13874_v32 }
0x1074   :  { %9137 = vmatprep.subr.bf16.mxu1 %v9136_v31  ;;  %v5136_v31 = vld [vmem:[#allocation4 + $0x178] sm:$0xff] }
0x107a   :  { %6009 = vmatmul.mubr.bf16.gmra.mrb[184].mxu1 %v11396_v29  ;;  %6395 = vmatmul.mubr.bf16.gmra.mrb[128].mxu0 %v11396_v29 }
0x107b   :  { %6018 = vmatprep.mubr.bf16.mxu1 %v13874_v32  ;;  %6404 = vmatprep.mubr.bf16.mxu0 %v13874_v32 }
0x1082   :  { %6019 = vmatmul.mubr.bf16.gmra.mrb[188].mxu1 %v11394_v49  ;;  %6405 = vmatmul.mubr.bf16.gmra.mrb[132].mxu0 %v11394_v49  ;;  %v5095_v49 = vld [vmem:[#allocation4 + $0x30] sm:$0xff] }
0x1083   :  { %6028 = vmatprep.mubr.bf16.mxu1 %v13874_v32  ;;  %6414 = vmatprep.mubr.bf16.mxu0 %v13874_v32  ;;  %v9138_v29 = vpack.c.bf16 %v5095_v49, %v5093_v25  ;;  %v9176_v25 = vpack.c.bf16 %v5136_v31, %v5134_v14  ;;  %v5133_v49 = vld [vmem:[#allocation4 + $0x160] sm:$0xff] }
0x1084   :  { %v5145_v14 = vld [vmem:[#allocation4 + $0x1c0] sm:$0xff] }
0x1085   :  { %9139 = vmatpush1.bf16.msra.mxu1 %v9138_v29  ;;  %v5135_v29 = vld [vmem:[#allocation4 + $0x170] sm:$0xff] }
0x1086   :  { %9141 = vmatprep.subr.bf16.mxu1 %v9140_v61  ;;  %v9178_v58 = vpack.c.bf16 %v5135_v29, %v5133_v49  ;;  %v5140_v61 = vld [vmem:[#allocation4 + $0x198] sm:$0xff] }
0x1087   :  { %v9180_v26 = vpack.c.bf16 %v5140_v61, %v5138_v43  ;;  %v5147_v61 = vld [vmem:[#allocation4 + $0x1d0] sm:$0xff] }
0x1089   :  { %9143 = vmatpush1.bf16.msra.mxu1 %v9142_v51  ;;  %v5139_v51 = vld [vmem:[#allocation4 + $0x190] sm:$0xff] }
0x108a   :  { %6029 = vmatmul.mubr.bf16.gmra.mrb[192].mxu1 %v11408_v47  ;;  %6415 = vmatmul.mubr.bf16.gmra.mrb[136].mxu0 %v11408_v47  ;;  %v9148_v47 = vpack.c.bf16 %v5108_v40, %v5106_v4  ;;  %v9182_v11 = vpack.c.bf16 %v5139_v51, %v5137_v30  ;;  %v5152_v30 = vld [vmem:[#allocation4 + $0x1f8] sm:$0xff] }
0x108b   :  { %6038 = vmatprep.mubr.bf16.mxu1 %v13874_v32  ;;  %6424 = vmatprep.mubr.bf16.mxu0 %v13874_v32 }
0x108c   :  { %9145 = vmatprep.subr.bf16.mxu1 %v9144_v60  ;;  %v5144_v60 = vld [vmem:[#allocation4 + $0x1b8] sm:$0xff] }
0x1092   :  { %6039 = vmatmul.mubr.bf16.gmra.mrb[196].mxu1 %v11406_v6  ;;  %6425 = vmatmul.mubr.bf16.gmra.mrb[140].mxu0 %v11406_v6  ;;  %v5103_v6 = vld [vmem:[#allocation4 + $0x70] sm:$0xff] }
0x1093   :  { %6048 = vmatprep.mubr.bf16.mxu1 %v13874_v32  ;;  %6434 = vmatprep.mubr.bf16.mxu0 %v13874_v32  ;;  %v9146_v59 = vpack.c.bf16 %v5103_v6, %v5101_v3  ;;  %v9184_v3 = vpack.c.bf16 %v5144_v60, %v5142_v5  ;;  %v5141_v6 = vld [vmem:[#allocation4 + $0x1a0] sm:$0xff] }
0x1095   :  { %9147 = vmatpush1.bf16.msra.mxu1 %v9146_v59  ;;  %v5143_v59 = vld [vmem:[#allocation4 + $0x1b0] sm:$0xff] }
0x1096   :  { %9149 = vmatprep.subr.bf16.mxu1 %v9148_v47  ;;  %v9186_v4 = vpack.c.bf16 %v5143_v59, %v5141_v6 }
0x1099   :  { %9151 = vmatpush1.bf16.msra.mxu1 %v9150_v56 }
0x109a   :  { %6049 = vmatmul.mubr.bf16.gmra.mrb[200].mxu1 %v11416_v22  ;;  %6435 = vmatmul.mubr.bf16.gmra.mrb[144].mxu0 %v11416_v22  ;;  %v5113_v22 = vld [vmem:[#allocation4 + $0xc0] sm:$0xff] }
0x109b   :  { %6058 = vmatprep.mubr.bf16.mxu1 %v13874_v32  ;;  %6444 = vmatprep.mubr.bf16.mxu0 %v13874_v32  ;;  %v9158_v48 = vpack.c.bf16 %v5115_v24, %v5113_v22 }
0x109c   :  { %9153 = vmatprep.subr.bf16.mxu1 %v9152_v52 }
0x109d   :  { %9155 = vmatpush1.bf16.msra.mxu1 %v9154_v63 }
0x10a2   :  { %6059 = vmatmul.mubr.bf16.gmra.mrb[204].mxu1 %v11414_v19  ;;  %6445 = vmatmul.mubr.bf16.gmra.mrb[148].mxu0 %v11414_v19  ;;  %v5116_v19 = vld [vmem:[#allocation4 + $0xd8] sm:$0xff] }
0x10a3   :  { %6068 = vmatprep.mubr.bf16.mxu1 %v13874_v32  ;;  %6454 = vmatprep.mubr.bf16.mxu0 %v13874_v32  ;;  %v9156_v38 = vpack.c.bf16 %v5116_v19, %v5114_v16 }
0x10a5   :  { %9157 = vmatprep.subr.bf16.mxu1 %v9156_v38 }
0x10a6   :  { %9159 = vmatpush1.bf16.msra.mxu1 %v9158_v48 }
0x10aa   :  { %6069 = vmatmul.mubr.bf16.gmra.mrb[208].mxu1 %v11422_v55  ;;  %6455 = vmatmul.mubr.bf16.gmra.mrb[152].mxu0 %v11422_v55  ;;  %v5117_v55 = vld [vmem:[#allocation4 + $0xe0] sm:$0xff] }
0x10ab   :  { %6078 = vmatprep.mubr.bf16.mxu1 %v13874_v32  ;;  %6464 = vmatprep.mubr.bf16.mxu0 %v13874_v32  ;;  %v9162_v1 = vpack.c.bf16 %v5119_v35, %v5117_v55 }
0x10b2   :  { %6079 = vmatmul.mubr.bf16.gmra.mrb[212].mxu1 %v11420_v41  ;;  %6465 = vmatmul.mubr.bf16.gmra.mrb[156].mxu0 %v11420_v41  ;;  %v5120_v41 = vld [vmem:[#allocation4 + $0xf8] sm:$0xff] }
0x10b3   :  { %6088 = vmatprep.mubr.bf16.mxu1 %v13874_v32  ;;  %6474 = vmatprep.mubr.bf16.mxu0 %v13874_v32  ;;  %v9160_v18 = vpack.c.bf16 %v5120_v41, %v5118_v46 }
0x10b5   :  { %9161 = vmatprep.subr.bf16.mxu1 %v9160_v18 }
0x10b6   :  { %9163 = vmatpush1.bf16.msra.mxu1 %v9162_v1 }
0x10ba   :  { %6089 = vmatmul.mubr.bf16.gmra.mrb[216].mxu1 %v11428_v28  ;;  %6475 = vmatmul.mubr.bf16.gmra.mrb[160].mxu0 %v11428_v28  ;;  %v5121_v28 = vld [vmem:[#allocation4 + $0x100] sm:$0xff] }
0x10bb   :  { %6098 = vmatprep.mubr.bf16.mxu1 %v13874_v32  ;;  %6484 = vmatprep.mubr.bf16.mxu0 %v13874_v32  ;;  %v9166_v42 = vpack.c.bf16 %v5123_v34, %v5121_v28 }
0x10c2   :  { %6099 = vmatmul.mubr.bf16.gmra.mrb[220].mxu1 %v11426_v20  ;;  %6485 = vmatmul.mubr.bf16.gmra.mrb[164].mxu0 %v11426_v20  ;;  %v5124_v20 = vld [vmem:[#allocation4 + $0x118] sm:$0xff] }
0x10c3   :  { %6108 = vmatprep.mubr.bf16.mxu1 %v13874_v32  ;;  %6494 = vmatprep.mubr.bf16.mxu0 %v13874_v32  ;;  %v9164_v7 = vpack.c.bf16 %v5124_v20, %v5122_v8  ;;  %v5146_v20 = vld [vmem:[#allocation4 + $0x1c8] sm:$0xff] }
0x10c5   :  { %9165 = vmatprep.subr.bf16.mxu1 %v9164_v7  ;;  %v5148_v7 = vld [vmem:[#allocation4 + $0x1d8] sm:$0xff] }
0x10c6   :  { %9167 = vmatpush1.bf16.msra.mxu1 %v9166_v42  ;;  %v9188_v42 = vpack.c.bf16 %v5148_v7, %v5146_v20 }
0x10ca   :  { %6109 = vmatmul.mubr.bf16.gmra.mrb[224].mxu1 %v11434_v57  ;;  %6495 = vmatmul.mubr.bf16.gmra.mrb[168].mxu0 %v11434_v57  ;;  %v5125_v57 = vld [vmem:[#allocation4 + $0x120] sm:$0xff] }
0x10cb   :  { %6118 = vmatprep.mubr.bf16.mxu1 %v13874_v32  ;;  %6504 = vmatprep.mubr.bf16.mxu0 %v13874_v32  ;;  %v5127_v32 = vld [vmem:[#allocation4 + $0x130] sm:$0xff] }
0x10cc   :  { %v9170_v50 = vpack.c.bf16 %v5127_v32, %v5125_v57 }
0x10d2   :  { %6119 = vmatmul.mubr.bf16.gmra.mrb[228].mxu1 %v11432_v44  ;;  %6505 = vmatmul.mubr.bf16.gmra.mrb[172].mxu0 %v11432_v44  ;;  %v5128_v44 = vld [vmem:[#allocation4 + $0x138] sm:$0xff] }
0x10d3   :  { %v9168_v17 = vpack.c.bf16 %v5128_v44, %v5126_v15 }
0x10d5   :  { %9169 = vmatprep.subr.bf16.mxu1 %v9168_v17 }
0x10d6   :  { %9171 = vmatpush1.bf16.msra.mxu1 %v9170_v50 }
0x10d7   :  { %9173 = vmatprep.subr.bf16.mxu1 %v9172_v37 }
0x10da   :  { %9175 = vmatpush1.bf16.msra.mxu1 %v9174_v0 }
0x10db   :  { %9177 = vmatprep.subr.bf16.mxu1 %v9176_v25 }
0x10de   :  { %9179 = vmatpush1.bf16.msra.mxu1 %v9178_v58 }
0x10df   :  { %9181 = vmatprep.subr.bf16.mxu1 %v9180_v26  ;;  %v5150_v26 = vld [vmem:[#allocation4 + $0x1e8] sm:$0xff] }
0x10e2   :  { %9183 = vmatpush1.bf16.msra.mxu1 %v9182_v11 }
0x10e3   :  { %9185 = vmatprep.subr.bf16.mxu1 %v9184_v3 }
0x10e6   :  { %9187 = vmatpush1.bf16.msra.mxu1 %v9186_v4 }
0x10e7   :  { %9189 = vmatprep.subr.bf16.mxu1 %v9188_v42 }
0x112d   :  { %v11514_v40 = vpop.f32.mrb[168].mxu1  ;;  %v11516_v47 = vpop.f32.mrb[112].mxu0 }
0x112e   :  { %13875 = vst [vmem:[#allocation32_spill] sm:$0xff] %v11516_v47  ;;  %v11518_v54 = vpop.f32.mrb[169].mxu1  ;;  %v11520_v23 = vpop.f32.mrb[113].mxu0  ;;  %v6589_v56 = vmul.f32 %v11514_v40, %v11514_v40  ;;  %v6801_v39 = vmul.f32 %v11516_v47, %v11516_v47 }
0x112f   :  { %13876 = vst [vmem:[#allocation33_spill] sm:$0xff] %v11520_v23  ;;  %v6590_v45 = vmul.f32 %v11518_v54, %v11518_v54  ;;  %v6802_v52 = vmul.f32 %v11520_v23, %v11520_v23  ;;  %v11530_v12 = vpop.f32.mrb[170].mxu1  ;;  %v11532_v21 = vpop.f32.mrb[114].mxu0 }
0x1130   :  { %13877 = vst [vmem:[#allocation34_spill] sm:$0xff] %v11532_v21  ;;  %v6515_v63 = vadd.f32 %v11530_v12, %v11514_v40  ;;  %v6591_v16 = vmul.f32 %v11530_v12, %v11530_v12  ;;  %v6727_v19 = vadd.f32 %v11532_v21, %v11516_v47  ;;  %v6803_v38 = vmul.f32 %v11532_v21, %v11532_v21  ;;  %v11542_v22 = vpop.f32.mrb[171].mxu1  ;;  %v11544_v24 = vpop.f32.mrb[115].mxu0 }
0x1131   :  { %13878 = vst [vmem:[#allocation35_spill] sm:$0xff] %v11544_v24  ;;  %v6552_v48 = vadd.f32 %v11542_v22, %v11518_v54  ;;  %v6592_v46 = vmul.f32 %v11542_v22, %v11542_v22  ;;  %v6764_v41 = vadd.f32 %v11544_v24, %v11520_v23  ;;  %v6804_v18 = vmul.f32 %v11544_v24, %v11544_v24 }
0x1132   :  { %v6653_v55 = vadd.f32 %v6591_v16, %v6589_v56  ;;  %v6865_v35 = vadd.f32 %v6803_v38, %v6801_v39  ;;  %v5149_v56 = vld [vmem:[#allocation4 + $0x1e0] sm:$0xff]  ;;  %v5151_v39 = vld [vmem:[#allocation4 + $0x1f0] sm:$0xff]  ;;  %v9192_v16 = vpack.c.bf16 %v5152_v30, %v5150_v26 }
0x1133   :  { %v6690_v1 = vadd.f32 %v6592_v46, %v6590_v45  ;;  %v6902_v8 = vadd.f32 %v6804_v18, %v6802_v52 }
0x1135   :  { %v11554_v28 = vpop.f32.mrb[172].mxu1  ;;  %v11556_v34 = vpop.f32.mrb[116].mxu0 }
0x1136   :  { %13879 = vst [vmem:[#allocation36_spill] sm:$0xff] %v11556_v34  ;;  %v6516_v15 = vadd.f32 %v6515_v63, %v11554_v28  ;;  %v6593_v44 = vmul.f32 %v11554_v28, %v11554_v28  ;;  %v6728_v17 = vadd.f32 %v6727_v19, %v11556_v34  ;;  %v6805_v57 = vmul.f32 %v11556_v34, %v11556_v34  ;;  %v11564_v32 = vpop.f32.mrb[173].mxu1  ;;  %v11566_v50 = vpop.f32.mrb[117].mxu0 }
0x1137   :  { %13880 = vst [vmem:[#allocation37_spill] sm:$0xff] %v11566_v50  ;;  %v6553_v62 = vadd.f32 %v6552_v48, %v11564_v32  ;;  %v6594_v27 = vmul.f32 %v11564_v32, %v11564_v32  ;;  %v6765_v37 = vadd.f32 %v6764_v41, %v11566_v50  ;;  %v6806_v33 = vmul.f32 %v11566_v50, %v11566_v50  ;;  %v11574_v53 = vpop.f32.mrb[174].mxu1  ;;  %v11576_v0 = vpop.f32.mrb[118].mxu0 }
0x1138   :  { %13881 = vst [vmem:[#allocation38_spill] sm:$0xff] %v11576_v0  ;;  %v6654_v31 = vadd.f32 %v6653_v55, %v6593_v44  ;;  %v6866_v25 = vadd.f32 %v6865_v35, %v6805_v57  ;;  %v6517_v49 = vadd.f32 %v6516_v15, %v11574_v53  ;;  %v6595_v29 = vmul.f32 %v11574_v53, %v11574_v53  ;;  %v11581_v58 = vpop.f32.mrb[175].mxu1  ;;  %v11583_v43 = vpop.f32.mrb[119].mxu0 }
0x1139   :  { %13882 = vst [vmem:[#allocation39_spill] sm:$0xff] %v11583_v43  ;;  %v6691_v51 = vadd.f32 %v6690_v1, %v6594_v27  ;;  %v6903_v11 = vadd.f32 %v6902_v8, %v6806_v33  ;;  %v6729_v5 = vadd.f32 %v6728_v17, %v11576_v0  ;;  %v6807_v60 = vmul.f32 %v11576_v0, %v11576_v0 }
0x113a   :  { %v6655_v3 = vadd.f32 %v6654_v31, %v6595_v29  ;;  %v6554_v6 = vadd.f32 %v6553_v62, %v11581_v58  ;;  %v6596_v59 = vmul.f32 %v11581_v58, %v11581_v58  ;;  %v6766_v4 = vadd.f32 %v6765_v37, %v11583_v43 }
0x113b   :  { %v6867_v45 = vadd.f32 %v6866_v25, %v6807_v60  ;;  %v6808_v52 = vmul.f32 %v11583_v43, %v11583_v43  ;;  %v9190_v63 = vpack.c.bf16 %v5147_v61, %v5145_v14  ;;  %v9194_v41 = vpack.c.bf16 %v5151_v39, %v5149_v56 }
0x113c   :  { %v6692_v19 = vadd.f32 %v6691_v51, %v6596_v59 }
0x113d   :  { %v6904_v38 = vadd.f32 %v6903_v11, %v6808_v52  ;;  %v11594_v48 = vpop.f32.mrb[176].mxu1  ;;  %v11596_v46 = vpop.f32.mrb[120].mxu0  ;;  %9191 = vmatpush1.bf16.msra.mxu1 %v9190_v63 }
0x113e   :  { %13883 = vst [vmem:[#allocation40_spill] sm:$0xff] %v11596_v46  ;;  %v6518_v18 = vadd.f32 %v6517_v49, %v11594_v48  ;;  %v6597_v55 = vmul.f32 %v11594_v48, %v11594_v48  ;;  %v6730_v35 = vadd.f32 %v6729_v5, %v11596_v46  ;;  %v6809_v1 = vmul.f32 %v11596_v46, %v11596_v46  ;;  %v11604_v8 = vpop.f32.mrb[177].mxu1  ;;  %v11606_v20 = vpop.f32.mrb[121].mxu0 }
0x113f   :  { %13884 = vst [vmem:[#allocation41_spill] sm:$0xff] %v11606_v20  ;;  %9193 = vmatprep.subr.bf16.mxu1 %v9192_v16  ;;  %v6555_v7 = vadd.f32 %v6554_v6, %v11604_v8  ;;  %v6598_v42 = vmul.f32 %v11604_v8, %v11604_v8  ;;  %v6767_v15 = vadd.f32 %v6766_v4, %v11606_v20  ;;  %v11614_v17 = vpop.f32.mrb[178].mxu1  ;;  %v11616_v57 = vpop.f32.mrb[122].mxu0 }
0x1140   :  { %v6810_v44 = vmul.f32 %v11606_v20, %v11606_v20  ;;  %13885 = vst [vmem:[#allocation42_spill] sm:$0xff] %v11616_v57  ;;  %v6656_v62 = vadd.f32 %v6655_v3, %v6597_v55  ;;  %v6868_v27 = vadd.f32 %v6867_v45, %v6809_v1  ;;  %v6519_v37 = vadd.f32 %v6518_v18, %v11614_v17  ;;  %v11621_v14 = vpop.f32.mrb[179].mxu1  ;;  %v11623_v31 = vpop.f32.mrb[123].mxu0 }
0x1141   :  { %v6599_v33 = vmul.f32 %v11614_v17, %v11614_v17  ;;  %13886 = vst [vmem:[#allocation43_spill] sm:$0xff] %v11623_v31  ;;  %v6693_v25 = vadd.f32 %v6692_v19, %v6598_v42  ;;  %v6731_v29 = vadd.f32 %v6730_v35, %v11616_v57  ;;  %v6811_v61 = vmul.f32 %v11616_v57, %v11616_v57 }
0x1142   :  { %v6905_v49 = vadd.f32 %v6904_v38, %v6810_v44  ;;  %9195 = vmatpush1.bf16.msra.mxu1 %v9194_v41  ;;  %v6556_v30 = vadd.f32 %v6555_v7, %v11621_v14  ;;  %v6600_v51 = vmul.f32 %v11621_v14, %v11621_v14  ;;  %v6768_v11 = vadd.f32 %v6767_v15, %v11623_v31 }
0x1143   :  { %v6657_v26 = vadd.f32 %v6656_v62, %v6599_v33  ;;  %v6869_v5 = vadd.f32 %v6868_v27, %v6811_v61  ;;  %v6812_v60 = vmul.f32 %v11623_v31, %v11623_v31 }
0x1144   :  { %v6694_v3 = vadd.f32 %v6693_v25, %v6600_v51 }
0x1145   :  { %v6906_v6 = vadd.f32 %v6905_v49, %v6812_v60  ;;  %v11634_v59 = vpop.f32.mrb[180].mxu1  ;;  %v11636_v4 = vpop.f32.mrb[124].mxu0 }
0x1146   :  { %13887 = vst [vmem:[#allocation44_spill] sm:$0xff] %v11636_v4  ;;  %v6520_v56 = vadd.f32 %v6519_v37, %v11634_v59  ;;  %v6601_v39 = vmul.f32 %v11634_v59, %v11634_v59  ;;  %v6732_v45 = vadd.f32 %v6731_v29, %v11636_v4  ;;  %v6813_v52 = vmul.f32 %v11636_v4, %v11636_v4  ;;  %v11644_v63 = vpop.f32.mrb[181].mxu1  ;;  %v11646_v16 = vpop.f32.mrb[125].mxu0 }
0x1147   :  { %13888 = vst [vmem:[#allocation45_spill] sm:$0xff] %v11646_v16  ;;  %v6557_v19 = vadd.f32 %v6556_v30, %v11644_v63  ;;  %v6602_v38 = vmul.f32 %v11644_v63, %v11644_v63  ;;  %v6769_v41 = vadd.f32 %v6768_v11, %v11646_v16  ;;  %v6814_v18 = vmul.f32 %v11646_v16, %v11646_v16  ;;  %v11654_v55 = vpop.f32.mrb[182].mxu1  ;;  %v11656_v35 = vpop.f32.mrb[126].mxu0 }
0x1148   :  { %13889 = vst [vmem:[#allocation46_spill] sm:$0xff] %v11656_v35  ;;  %v6658_v1 = vadd.f32 %v6657_v26, %v6601_v39  ;;  %v6870_v7 = vadd.f32 %v6869_v5, %v6813_v52  ;;  %v6521_v42 = vadd.f32 %v6520_v56, %v11654_v55  ;;  %v6603_v15 = vmul.f32 %v11654_v55, %v11654_v55  ;;  %v11661_v44 = vpop.f32.mrb[183].mxu1  ;;  %v11663_v62 = vpop.f32.mrb[127].mxu0 }
0x1149   :  { %13890 = vst [vmem:[#allocation47_spill] sm:$0xff] %v11663_v62  ;;  %v6695_v27 = vadd.f32 %v6694_v3, %v6602_v38  ;;  %v6907_v37 = vadd.f32 %v6906_v6, %v6814_v18  ;;  %v6733_v33 = vadd.f32 %v6732_v45, %v11656_v35  ;;  %v6815_v25 = vmul.f32 %v11656_v35, %v11656_v35 }
0x114a   :  { %v6659_v49 = vadd.f32 %v6658_v1, %v6603_v15  ;;  %v6558_v29 = vadd.f32 %v6557_v19, %v11661_v44  ;;  %v6604_v61 = vmul.f32 %v11661_v44, %v11661_v44  ;;  %v6770_v26 = vadd.f32 %v6769_v41, %v11663_v62 }
0x114b   :  { %v6871_v30 = vadd.f32 %v6870_v7, %v6815_v25  ;;  %v6816_v51 = vmul.f32 %v11663_v62, %v11663_v62 }
0x114c   :  { %v6696_v11 = vadd.f32 %v6695_v27, %v6604_v61 }
0x114d   :  { %v6908_v5 = vadd.f32 %v6907_v37, %v6816_v51  ;;  %v11674_v60 = vpop.f32.mrb[184].mxu1  ;;  %v11676_v3 = vpop.f32.mrb[128].mxu0 }
0x114e   :  { %13891 = vst [vmem:[#allocation48_spill] sm:$0xff] %v11676_v3  ;;  %v6522_v6 = vadd.f32 %v6521_v42, %v11674_v60  ;;  %v6605_v56 = vmul.f32 %v11674_v60, %v11674_v60  ;;  %v6734_v39 = vadd.f32 %v6733_v33, %v11676_v3  ;;  %v6817_v45 = vmul.f32 %v11676_v3, %v11676_v3  ;;  %v11684_v52 = vpop.f32.mrb[185].mxu1  ;;  %v11686_v19 = vpop.f32.mrb[129].mxu0 }
0x114f   :  { %13892 = vst [vmem:[#allocation49_spill] sm:$0xff] %v11686_v19  ;;  %v6559_v38 = vadd.f32 %v6558_v29, %v11684_v52  ;;  %v6606_v41 = vmul.f32 %v11684_v52, %v11684_v52  ;;  %v6771_v18 = vadd.f32 %v6770_v26, %v11686_v19  ;;  %v6818_v1 = vmul.f32 %v11686_v19, %v11686_v19  ;;  %v11694_v7 = vpop.f32.mrb[186].mxu1  ;;  %v11696_v42 = vpop.f32.mrb[130].mxu0 }
0x1150   :  { %13893 = vst [vmem:[#allocation50_spill] sm:$0xff] %v11696_v42  ;;  %v6660_v15 = vadd.f32 %v6659_v49, %v6605_v56  ;;  %v6872_v27 = vadd.f32 %v6871_v30, %v6817_v45  ;;  %v6523_v37 = vadd.f32 %v6522_v6, %v11694_v7  ;;  %v6607_v33 = vmul.f32 %v11694_v7, %v11694_v7  ;;  %v11701_v25 = vpop.f32.mrb[187].mxu1  ;;  %v11703_v29 = vpop.f32.mrb[131].mxu0 }
0x1151   :  { %13894 = vst [vmem:[#allocation51_spill] sm:$0xff] %v11703_v29  ;;  %v6697_v61 = vadd.f32 %v6696_v11, %v6606_v41  ;;  %v6909_v26 = vadd.f32 %v6908_v5, %v6818_v1  ;;  %v6735_v51 = vadd.f32 %v6734_v39, %v11696_v42  ;;  %v6819_v36 = vmul.f32 %v11696_v42, %v11696_v42 }
0x1152   :  { %v6661_v2 = vadd.f32 %v6660_v15, %v6607_v33  ;;  %v6560_v49 = vadd.f32 %v6559_v38, %v11701_v25  ;;  %v6608_v30 = vmul.f32 %v11701_v25, %v11701_v25  ;;  %v6772_v6 = vadd.f32 %v6771_v18, %v11703_v29 }
0x1153   :  { %v6873_v56 = vadd.f32 %v6872_v27, %v6819_v36  ;;  %v6820_v45 = vmul.f32 %v11703_v29, %v11703_v29 }
0x1154   :  { %v6698_v19 = vadd.f32 %v6697_v61, %v6608_v30 }
0x1155   :  { %v6910_v11 = vadd.f32 %v6909_v26, %v6820_v45  ;;  %v11714_v5 = vpop.f32.mrb[188].mxu1  ;;  %v11716_v39 = vpop.f32.mrb[132].mxu0 }
0x1156   :  { %13895 = vst [vmem:[#allocation52_spill] sm:$0xff] %v11716_v39  ;;  %v6524_v41 = vadd.f32 %v6523_v37, %v11714_v5  ;;  %v6609_v38 = vmul.f32 %v11714_v5, %v11714_v5  ;;  %v6736_v1 = vadd.f32 %v6735_v51, %v11716_v39  ;;  %v6821_v18 = vmul.f32 %v11716_v39, %v11716_v39  ;;  %v11724_v36 = vpop.f32.mrb[189].mxu1  ;;  %v11726_v15 = vpop.f32.mrb[133].mxu0 }
0x1157   :  { %13896 = vst [vmem:[#allocation53_spill] sm:$0xff] %v11726_v15  ;;  %v6561_v27 = vadd.f32 %v6560_v49, %v11724_v36  ;;  %v6610_v33 = vmul.f32 %v11724_v36, %v11724_v36  ;;  %v6773_v61 = vadd.f32 %v6772_v6, %v11726_v15  ;;  %v6822_v37 = vmul.f32 %v11726_v15, %v11726_v15  ;;  %v11734_v26 = vpop.f32.mrb[190].mxu1  ;;  %v11736_v51 = vpop.f32.mrb[134].mxu0 }
0x1158   :  { %13897 = vst [vmem:[#allocation54_spill] sm:$0xff] %v11736_v51  ;;  %v6662_v30 = vadd.f32 %v6661_v2, %v6609_v38  ;;  %v6874_v45 = vadd.f32 %v6873_v56, %v6821_v18  ;;  %v6525_v39 = vadd.f32 %v6524_v41, %v11734_v26  ;;  %v6611_v29 = vmul.f32 %v11734_v26, %v11734_v26  ;;  %v11741_v49 = vpop.f32.mrb[191].mxu1  ;;  %v11743_v42 = vpop.f32.mrb[135].mxu0 }
0x1159   :  { %13898 = vst [vmem:[#allocation55_spill] sm:$0xff] %v11743_v42  ;;  %v6699_v3 = vadd.f32 %v6698_v19, %v6610_v33  ;;  %v6911_v6 = vadd.f32 %v6910_v11, %v6822_v37  ;;  %v6737_v62 = vadd.f32 %v6736_v1, %v11736_v51  ;;  %v6823_v15 = vmul.f32 %v11736_v51, %v11736_v51 }
0x115a   :  { %v6663_v35 = vadd.f32 %v6662_v30, %v6611_v29  ;;  %v6562_v2 = vadd.f32 %v6561_v27, %v11741_v49  ;;  %v6612_v56 = vmul.f32 %v11741_v49, %v11741_v49  ;;  %v6774_v41 = vadd.f32 %v6773_v61, %v11743_v42 }
0x115b   :  { %v6875_v38 = vadd.f32 %v6874_v45, %v6823_v15  ;;  %v6824_v18 = vmul.f32 %v11743_v42, %v11743_v42 }
0x115c   :  { %v6700_v16 = vadd.f32 %v6699_v3, %v6612_v56 }
0x115d   :  { %v6912_v19 = vadd.f32 %v6911_v6, %v6824_v18  ;;  %v11754_v11 = vpop.f32.mrb[192].mxu1  ;;  %v11756_v1 = vpop.f32.mrb[136].mxu0 }
0x115e   :  { %13899 = vst [vmem:[#allocation56_spill] sm:$0xff] %v11756_v1  ;;  %v6526_v33 = vadd.f32 %v6525_v39, %v11754_v11  ;;  %v6613_v29 = vmul.f32 %v11754_v11, %v11754_v11  ;;  %v6738_v27 = vadd.f32 %v6737_v62, %v11756_v1  ;;  %v6825_v61 = vmul.f32 %v11756_v1, %v11756_v1  ;;  %v11764_v15 = vpop.f32.mrb[193].mxu1  ;;  %v11766_v37 = vpop.f32.mrb[137].mxu0 }
0x115f   :  { %13900 = vst [vmem:[#allocation57_spill] sm:$0xff] %v11766_v37  ;;  %v6563_v3 = vadd.f32 %v6562_v2, %v11764_v15  ;;  %v6614_v30 = vmul.f32 %v11764_v15, %v11764_v15  ;;  %v6775_v45 = vadd.f32 %v6774_v41, %v11766_v37  ;;  %v6826_v39 = vmul.f32 %v11766_v37, %v11766_v37  ;;  %v11774_v6 = vpop.f32.mrb[194].mxu1  ;;  %v11776_v62 = vpop.f32.mrb[138].mxu0 }
0x1160   :  { %13901 = vst [vmem:[#allocation58_spill] sm:$0xff] %v11776_v62  ;;  %v6664_v56 = vadd.f32 %v6663_v35, %v6613_v29  ;;  %v6876_v18 = vadd.f32 %v6875_v38, %v6825_v61  ;;  %v6527_v1 = vadd.f32 %v6526_v33, %v11774_v6  ;;  %v6615_v42 = vmul.f32 %v11774_v6, %v11774_v6  ;;  %v11781_v2 = vpop.f32.mrb[195].mxu1  ;;  %v11783_v51 = vpop.f32.mrb[139].mxu0 }
0x1161   :  { %13902 = vst [vmem:[#allocation59_spill] sm:$0xff] %v11783_v51  ;;  %v6701_v4 = vadd.f32 %v6700_v16, %v6614_v30  ;;  %v6913_v41 = vadd.f32 %v6912_v19, %v6826_v39  ;;  %v6739_v31 = vadd.f32 %v6738_v27, %v11776_v62  ;;  %v6827_v37 = vmul.f32 %v11776_v62, %v11776_v62 }
0x1162   :  { %v6665_v57 = vadd.f32 %v6664_v56, %v6615_v42  ;;  %v6564_v35 = vadd.f32 %v6563_v3, %v11781_v2  ;;  %v6616_v38 = vmul.f32 %v11781_v2, %v11781_v2  ;;  %v6776_v33 = vadd.f32 %v6775_v45, %v11783_v51 }
0x1163   :  { %v6877_v29 = vadd.f32 %v6876_v18, %v6827_v37  ;;  %v6828_v61 = vmul.f32 %v11783_v51, %v11783_v51 }
0x1164   :  { %v6702_v20 = vadd.f32 %v6701_v4, %v6616_v38 }
0x1165   :  { %v6914_v16 = vadd.f32 %v6913_v41, %v6828_v61  ;;  %v11794_v19 = vpop.f32.mrb[196].mxu1  ;;  %v11796_v27 = vpop.f32.mrb[140].mxu0 }
0x1166   :  { %13903 = vst [vmem:[#allocation60_spill] sm:$0xff] %v11794_v19  ;;  %13904 = vst [vmem:[#allocation61_spill] sm:$0xff] %v11796_v27  ;;  %v6528_v30 = vadd.f32 %v6527_v1, %v11794_v19  ;;  %v6617_v42 = vmul.f32 %v11794_v19, %v11794_v19  ;;  %v6740_v3 = vadd.f32 %v6739_v31, %v11796_v27  ;;  %v11804_v37 = vpop.f32.mrb[197].mxu1  ;;  %v11806_v39 = vpop.f32.mrb[141].mxu0 }
0x1167   :  { %v6829_v45 = vmul.f32 %v11796_v27, %v11796_v27  ;;  %13905 = vst [vmem:[#allocation62_spill] sm:$0xff] %v11804_v37  ;;  %13906 = vst [vmem:[#allocation63_spill] sm:$0xff] %v11806_v39  ;;  %v6565_v4 = vadd.f32 %v6564_v35, %v11804_v37  ;;  %v6618_v56 = vmul.f32 %v11804_v37, %v11804_v37  ;;  %v11814_v41 = vpop.f32.mrb[198].mxu1  ;;  %v11816_v31 = vpop.f32.mrb[142].mxu0 }
0x1168   :  { %v6777_v18 = vadd.f32 %v6776_v33, %v11806_v39  ;;  %v6830_v1 = vmul.f32 %v11806_v39, %v11806_v39  ;;  %13907 = vst [vmem:[#allocation64_spill] sm:$0xff] %v11814_v41  ;;  %13908 = vst [vmem:[#allocation65_spill] sm:$0xff] %v11816_v31  ;;  %v6666_v38 = vadd.f32 %v6665_v57, %v6617_v42  ;;  %v11821_v35 = vpop.f32.mrb[199].mxu1  ;;  %v11823_v62 = vpop.f32.mrb[143].mxu0 }
0x1169   :  { %v6878_v61 = vadd.f32 %v6877_v29, %v6829_v45  ;;  %v6529_v27 = vadd.f32 %v6528_v30, %v11814_v41  ;;  %v6619_v51 = vmul.f32 %v11814_v41, %v11814_v41  ;;  %13909 = vst [vmem:[#allocation66_spill] sm:$0xff] %v11821_v35  ;;  %13910 = vst [vmem:[#allocation67_spill] sm:$0xff] %v11823_v62 }
0x116a   :  { %v6703_v46 = vadd.f32 %v6702_v20, %v6618_v56  ;;  %v6915_v33 = vadd.f32 %v6914_v16, %v6830_v1  ;;  %v6741_v43 = vadd.f32 %v6740_v3, %v11816_v31  ;;  %v6831_v39 = vmul.f32 %v11816_v31, %v11816_v31 }
0x116b   :  { %v6667_v0 = vadd.f32 %v6666_v38, %v6619_v51  ;;  %v6566_v57 = vadd.f32 %v6565_v4, %v11821_v35  ;;  %v6620_v29 = vmul.f32 %v11821_v35, %v11821_v35  ;;  %v6778_v30 = vadd.f32 %v6777_v18, %v11823_v62 }
0x116c   :  { %v6879_v42 = vadd.f32 %v6878_v61, %v6831_v39  ;;  %v6832_v45 = vmul.f32 %v11823_v62, %v11823_v62 }
0x116d   :  { %v6704_v50 = vadd.f32 %v6703_v46, %v6620_v29  ;;  %v11834_v16 = vpop.f32.mrb[200].mxu1  ;;  %v11836_v3 = vpop.f32.mrb[144].mxu0 }
0x116e   :  { %v6916_v20 = vadd.f32 %v6915_v33, %v6832_v45  ;;  %13911 = vst [vmem:[#allocation68_spill] sm:$0xff] %v11834_v16  ;;  %13912 = vst [vmem:[#allocation69_spill] sm:$0xff] %v11836_v3  ;;  %v6530_v56 = vadd.f32 %v6529_v27, %v11834_v16  ;;  %v6621_v51 = vmul.f32 %v11834_v16, %v11834_v16  ;;  %v11844_v39 = vpop.f32.mrb[201].mxu1  ;;  %v11846_v1 = vpop.f32.mrb[145].mxu0 }
0x116f   :  { %v6742_v4 = vadd.f32 %v6741_v43, %v11836_v3  ;;  %v6833_v18 = vmul.f32 %v11836_v3, %v11836_v3  ;;  %13913 = vst [vmem:[#allocation70_spill] sm:$0xff] %v11844_v39  ;;  %13914 = vst [vmem:[#allocation71_spill] sm:$0xff] %v11846_v1  ;;  %v6567_v46 = vadd.f32 %v6566_v57, %v11844_v39  ;;  %v11854_v33 = vpop.f32.mrb[202].mxu1  ;;  %v11856_v43 = vpop.f32.mrb[146].mxu0 }
0x1170   :  { %v6622_v38 = vmul.f32 %v11844_v39, %v11844_v39  ;;  %v6779_v61 = vadd.f32 %v6778_v30, %v11846_v1  ;;  %v6834_v27 = vmul.f32 %v11846_v1, %v11846_v1  ;;  %13915 = vst [vmem:[#allocation72_spill] sm:$0xff] %v11854_v33  ;;  %13916 = vst [vmem:[#allocation73_spill] sm:$0xff] %v11856_v43  ;;  %v11861_v57 = vpop.f32.mrb[203].mxu1  ;;  %v11863_v31 = vpop.f32.mrb[147].mxu0 }
0x1171   :  { %v6668_v29 = vadd.f32 %v6667_v0, %v6621_v51  ;;  %v6880_v45 = vadd.f32 %v6879_v42, %v6833_v18  ;;  %v6531_v3 = vadd.f32 %v6530_v56, %v11854_v33  ;;  %v6623_v62 = vmul.f32 %v11854_v33, %v11854_v33  ;;  %13917 = vst [vmem:[#allocation74_spill] sm:$0xff] %v11861_v57 }
0x1172   :  { %13918 = vst [vmem:[#allocation75_spill] sm:$0xff] %v11863_v31  ;;  %v6705_v34 = vadd.f32 %v6704_v50, %v6622_v38  ;;  %v6917_v30 = vadd.f32 %v6916_v20, %v6834_v27  ;;  %v6743_v24 = vadd.f32 %v6742_v4, %v11856_v43  ;;  %v6835_v1 = vmul.f32 %v11856_v43, %v11856_v43 }
0x1173   :  { %v6669_v21 = vadd.f32 %v6668_v29, %v6623_v62  ;;  %v6568_v0 = vadd.f32 %v6567_v46, %v11861_v57  ;;  %v6624_v42 = vmul.f32 %v11861_v57, %v11861_v57  ;;  %v6780_v56 = vadd.f32 %v6779_v61, %v11863_v31 }
0x1174   :  { %v6881_v51 = vadd.f32 %v6880_v45, %v6835_v1  ;;  %v6836_v18 = vmul.f32 %v11863_v31, %v11863_v31 }
0x1175   :  { %v6706_v23 = vadd.f32 %v6705_v34, %v6624_v42  ;;  %v11874_v20 = vpop.f32.mrb[204].mxu1  ;;  %v11876_v4 = vpop.f32.mrb[148].mxu0 }
0x1176   :  { %v6918_v50 = vadd.f32 %v6917_v30, %v6836_v18  ;;  %13919 = vst [vmem:[#allocation76_spill] sm:$0xff] %v11874_v20  ;;  %13920 = vst [vmem:[#allocation77_spill] sm:$0xff] %v11876_v4  ;;  %v6532_v38 = vadd.f32 %v6531_v3, %v11874_v20  ;;  %v6625_v62 = vmul.f32 %v11874_v20, %v11874_v20  ;;  %v11884_v1 = vpop.f32.mrb[205].mxu1  ;;  %v11886_v27 = vpop.f32.mrb[149].mxu0 }
0x1177   :  { %v6744_v46 = vadd.f32 %v6743_v24, %v11876_v4  ;;  %v6837_v61 = vmul.f32 %v11876_v4, %v11876_v4  ;;  %13921 = vst [vmem:[#allocation78_spill] sm:$0xff] %v11884_v1  ;;  %13922 = vst [vmem:[#allocation79_spill] sm:$0xff] %v11886_v27  ;;  %v6569_v34 = vadd.f32 %v6568_v0, %v11884_v1  ;;  %v11894_v30 = vpop.f32.mrb[206].mxu1  ;;  %v11896_v24 = vpop.f32.mrb[150].mxu0 }
0x1178   :  { %v6626_v29 = vmul.f32 %v11884_v1, %v11884_v1  ;;  %v6781_v45 = vadd.f32 %v6780_v56, %v11886_v27  ;;  %v6838_v3 = vmul.f32 %v11886_v27, %v11886_v27  ;;  %13923 = vst [vmem:[#allocation80_spill] sm:$0xff] %v11894_v30  ;;  %13924 = vst [vmem:[#allocation81_spill] sm:$0xff] %v11896_v24  ;;  %v11901_v0 = vpop.f32.mrb[207].mxu1  ;;  %v11903_v43 = vpop.f32.mrb[151].mxu0 }
0x1179   :  { %v6670_v42 = vadd.f32 %v6669_v21, %v6625_v62  ;;  %v6882_v18 = vadd.f32 %v6881_v51, %v6837_v61  ;;  %v6533_v4 = vadd.f32 %v6532_v38, %v11894_v30  ;;  %v6627_v31 = vmul.f32 %v11894_v30, %v11894_v30  ;;  %13925 = vst [vmem:[#allocation82_spill] sm:$0xff] %v11901_v0 }
0x117a   :  { %13926 = vst [vmem:[#allocation83_spill] sm:$0xff] %v11903_v43  ;;  %v6707_v47 = vadd.f32 %v6706_v23, %v6626_v29  ;;  %v6919_v56 = vadd.f32 %v6918_v50, %v6838_v3  ;;  %v6745_v1 = vadd.f32 %v6744_v46, %v11896_v24  ;;  %v6839_v27 = vmul.f32 %v11896_v24, %v11896_v24 }
0x117b   :  { %v6671_v20 = vadd.f32 %v6670_v42, %v6627_v31  ;;  %v6570_v21 = vadd.f32 %v6569_v34, %v11901_v0  ;;  %v6628_v51 = vmul.f32 %v11901_v0, %v11901_v0  ;;  %v6782_v38 = vadd.f32 %v6781_v45, %v11903_v43 }
0x117c   :  { %v6883_v62 = vadd.f32 %v6882_v18, %v6839_v27  ;;  %v6840_v61 = vmul.f32 %v11903_v43, %v11903_v43 }
0x117d   :  { %v6708_v30 = vadd.f32 %v6707_v47, %v6628_v51  ;;  %v11914_v50 = vpop.f32.mrb[208].mxu1  ;;  %v11916_v46 = vpop.f32.mrb[152].mxu0 }
0x117e   :  { %v6920_v23 = vadd.f32 %v6919_v56, %v6840_v61  ;;  %13927 = vst [vmem:[#allocation84_spill] sm:$0xff] %v11914_v50  ;;  %13928 = vst [vmem:[#allocation85_spill] sm:$0xff] %v11916_v46  ;;  %v6534_v29 = vadd.f32 %v6533_v4, %v11914_v50  ;;  %v6629_v31 = vmul.f32 %v11914_v50, %v11914_v50  ;;  %v11924_v27 = vpop.f32.mrb[209].mxu1  ;;  %v11926_v3 = vpop.f32.mrb[153].mxu0 }
0x117f   :  { %v6746_v34 = vadd.f32 %v6745_v1, %v11916_v46  ;;  %v6841_v45 = vmul.f32 %v11916_v46, %v11916_v46  ;;  %13929 = vst [vmem:[#allocation86_spill] sm:$0xff] %v11924_v27  ;;  %13930 = vst [vmem:[#allocation87_spill] sm:$0xff] %v11926_v3  ;;  %v6571_v47 = vadd.f32 %v6570_v21, %v11924_v27  ;;  %v11934_v56 = vpop.f32.mrb[210].mxu1  ;;  %v11936_v1 = vpop.f32.mrb[154].mxu0 }
0x1180   :  { %v6630_v42 = vmul.f32 %v11924_v27, %v11924_v27  ;;  %v6783_v18 = vadd.f32 %v6782_v38, %v11926_v3  ;;  %v6842_v4 = vmul.f32 %v11926_v3, %v11926_v3  ;;  %13931 = vst [vmem:[#allocation88_spill] sm:$0xff] %v11934_v56  ;;  %13932 = vst [vmem:[#allocation89_spill] sm:$0xff] %v11936_v1  ;;  %v11941_v21 = vpop.f32.mrb[211].mxu1  ;;  %v11943_v24 = vpop.f32.mrb[155].mxu0 }
0x1181   :  { %v6672_v51 = vadd.f32 %v6671_v20, %v6629_v31  ;;  %v6884_v61 = vadd.f32 %v6883_v62, %v6841_v45  ;;  %v6535_v46 = vadd.f32 %v6534_v29, %v11934_v56  ;;  %v6631_v43 = vmul.f32 %v11934_v56, %v11934_v56  ;;  %13933 = vst [vmem:[#allocation90_spill] sm:$0xff] %v11941_v21 }
0x1182   :  { %13934 = vst [vmem:[#allocation91_spill] sm:$0xff] %v11943_v24  ;;  %v6709_v27 = vadd.f32 %v6708_v30, %v6630_v42  ;;  %v6921_v38 = vadd.f32 %v6920_v23, %v6842_v4  ;;  %v6747_v50 = vadd.f32 %v6746_v34, %v11936_v1  ;;  %v6843_v3 = vmul.f32 %v11936_v1, %v11936_v1 }
0x1183   :  { %v6673_v0 = vadd.f32 %v6672_v51, %v6631_v43  ;;  %v6572_v20 = vadd.f32 %v6571_v47, %v11941_v21  ;;  %v6632_v62 = vmul.f32 %v11941_v21, %v11941_v21  ;;  %v6784_v29 = vadd.f32 %v6783_v18, %v11943_v24 }
0x1184   :  { %v6885_v31 = vadd.f32 %v6884_v61, %v6843_v3  ;;  %v6844_v45 = vmul.f32 %v11943_v24, %v11943_v24 }
0x1185   :  { %v6710_v56 = vadd.f32 %v6709_v27, %v6632_v62  ;;  %v11954_v23 = vpop.f32.mrb[212].mxu1  ;;  %v11956_v34 = vpop.f32.mrb[156].mxu0 }
0x1186   :  { %v6922_v30 = vadd.f32 %v6921_v38, %v6844_v45  ;;  %13935 = vst [vmem:[#allocation92_spill] sm:$0xff] %v11954_v23  ;;  %13936 = vst [vmem:[#allocation93_spill] sm:$0xff] %v11956_v34  ;;  %v6536_v42 = vadd.f32 %v6535_v46, %v11954_v23  ;;  %v6633_v43 = vmul.f32 %v11954_v23, %v11954_v23  ;;  %v11964_v3 = vpop.f32.mrb[213].mxu1  ;;  %v11966_v4 = vpop.f32.mrb[157].mxu0 }
0x1187   :  { %v6748_v47 = vadd.f32 %v6747_v50, %v11956_v34  ;;  %v6845_v18 = vmul.f32 %v11956_v34, %v11956_v34  ;;  %13937 = vst [vmem:[#allocation94_spill] sm:$0xff] %v11964_v3  ;;  %13938 = vst [vmem:[#allocation95_spill] sm:$0xff] %v11966_v4  ;;  %v6573_v27 = vadd.f32 %v6572_v20, %v11964_v3  ;;  %v11974_v38 = vpop.f32.mrb[214].mxu1  ;;  %v11976_v50 = vpop.f32.mrb[158].mxu0 }
0x1188   :  { %v6634_v51 = vmul.f32 %v11964_v3, %v11964_v3  ;;  %v6785_v61 = vadd.f32 %v6784_v29, %v11966_v4  ;;  %v6846_v46 = vmul.f32 %v11966_v4, %v11966_v4  ;;  %13939 = vst [vmem:[#allocation96_spill] sm:$0xff] %v11974_v38  ;;  %13940 = vst [vmem:[#allocation97_spill] sm:$0xff] %v11976_v50  ;;  %v11981_v20 = vpop.f32.mrb[215].mxu1  ;;  %v11983_v1 = vpop.f32.mrb[159].mxu0 }
0x1189   :  { %v6674_v62 = vadd.f32 %v6673_v0, %v6633_v43  ;;  %v6886_v45 = vadd.f32 %v6885_v31, %v6845_v18  ;;  %v6537_v34 = vadd.f32 %v6536_v42, %v11974_v38  ;;  %v6635_v24 = vmul.f32 %v11974_v38, %v11974_v38  ;;  %13941 = vst [vmem:[#allocation98_spill] sm:$0xff] %v11981_v20 }
0x118a   :  { %13942 = vst [vmem:[#allocation99_spill] sm:$0xff] %v11983_v1  ;;  %v6711_v3 = vadd.f32 %v6710_v56, %v6634_v51  ;;  %v6923_v29 = vadd.f32 %v6922_v30, %v6846_v46  ;;  %v6749_v23 = vadd.f32 %v6748_v47, %v11976_v50  ;;  %v6847_v4 = vmul.f32 %v11976_v50, %v11976_v50 }
0x118b   :  { %v6675_v21 = vadd.f32 %v6674_v62, %v6635_v24  ;;  %v6574_v0 = vadd.f32 %v6573_v27, %v11981_v20  ;;  %v6636_v31 = vmul.f32 %v11981_v20, %v11981_v20  ;;  %v6786_v42 = vadd.f32 %v6785_v61, %v11983_v1 }
0x118c   :  { %v6887_v43 = vadd.f32 %v6886_v45, %v6847_v4  ;;  %v6848_v18 = vmul.f32 %v11983_v1, %v11983_v1 }
0x118d   :  { %v6712_v38 = vadd.f32 %v6711_v3, %v6636_v31  ;;  %v11994_v30 = vpop.f32.mrb[216].mxu1  ;;  %v11996_v47 = vpop.f32.mrb[160].mxu0 }
0x118e   :  { %v6924_v56 = vadd.f32 %v6923_v29, %v6848_v18  ;;  %13943 = vst [vmem:[#allocation100_spill] sm:$0xff] %v11994_v30  ;;  %13944 = vst [vmem:[#allocation101_spill] sm:$0xff] %v11996_v47  ;;  %v6538_v51 = vadd.f32 %v6537_v34, %v11994_v30  ;;  %v6637_v24 = vmul.f32 %v11994_v30, %v11994_v30  ;;  %v12004_v4 = vpop.f32.mrb[217].mxu1  ;;  %v12006_v46 = vpop.f32.mrb[161].mxu0 }
0x118f   :  { %v6750_v27 = vadd.f32 %v6749_v23, %v11996_v47  ;;  %v6849_v61 = vmul.f32 %v11996_v47, %v11996_v47  ;;  %13945 = vst [vmem:[#allocation102_spill] sm:$0xff] %v12004_v4  ;;  %13946 = vst [vmem:[#allocation103_spill] sm:$0xff] %v12006_v46  ;;  %v6575_v3 = vadd.f32 %v6574_v0, %v12004_v4  ;;  %v12014_v29 = vpop.f32.mrb[218].mxu1  ;;  %v12016_v23 = vpop.f32.mrb[162].mxu0 }
0x1190   :  { %v6638_v62 = vmul.f32 %v12004_v4, %v12004_v4  ;;  %v6787_v45 = vadd.f32 %v6786_v42, %v12006_v46  ;;  %v6850_v34 = vmul.f32 %v12006_v46, %v12006_v46  ;;  %13947 = vst [vmem:[#allocation104_spill] sm:$0xff] %v12014_v29  ;;  %13948 = vst [vmem:[#allocation105_spill] sm:$0xff] %v12016_v23  ;;  %v12021_v0 = vpop.f32.mrb[219].mxu1  ;;  %v12023_v50 = vpop.f32.mrb[163].mxu0 }
0x1191   :  { %v6676_v31 = vadd.f32 %v6675_v21, %v6637_v24  ;;  %v6888_v18 = vadd.f32 %v6887_v43, %v6849_v61  ;;  %v6539_v47 = vadd.f32 %v6538_v51, %v12014_v29  ;;  %v6639_v1 = vmul.f32 %v12014_v29, %v12014_v29  ;;  %13949 = vst [vmem:[#allocation106_spill] sm:$0xff] %v12021_v0 }
0x1192   :  { %13950 = vst [vmem:[#allocation107_spill] sm:$0xff] %v12023_v50  ;;  %v6713_v4 = vadd.f32 %v6712_v38, %v6638_v62  ;;  %v6925_v42 = vadd.f32 %v6924_v56, %v6850_v34  ;;  %v6751_v30 = vadd.f32 %v6750_v27, %v12016_v23  ;;  %v6851_v46 = vmul.f32 %v12016_v23, %v12016_v23 }
0x1193   :  { %v6677_v20 = vadd.f32 %v6676_v31, %v6639_v1  ;;  %v6576_v21 = vadd.f32 %v6575_v3, %v12021_v0  ;;  %v6640_v43 = vmul.f32 %v12021_v0, %v12021_v0  ;;  %v6788_v51 = vadd.f32 %v6787_v45, %v12023_v50 }
0x1194   :  { %v6889_v24 = vadd.f32 %v6888_v18, %v6851_v46  ;;  %v6852_v61 = vmul.f32 %v12023_v50, %v12023_v50 }
0x1195   :  { %v6714_v29 = vadd.f32 %v6713_v4, %v6640_v43  ;;  %v12034_v56 = vpop.f32.mrb[220].mxu1  ;;  %v12036_v27 = vpop.f32.mrb[164].mxu0 }
0x1196   :  { %v6926_v38 = vadd.f32 %v6925_v42, %v6852_v61  ;;  %13951 = vst [vmem:[#allocation108_spill] sm:$0xff] %v12034_v56  ;;  %13952 = vst [vmem:[#allocation109_spill] sm:$0xff] %v12036_v27  ;;  %v6540_v62 = vadd.f32 %v6539_v47, %v12034_v56  ;;  %v6641_v1 = vmul.f32 %v12034_v56, %v12034_v56  ;;  %v12044_v46 = vpop.f32.mrb[221].mxu1  ;;  %v12046_v34 = vpop.f32.mrb[165].mxu0 }
0x1197   :  { %v6752_v3 = vadd.f32 %v6751_v30, %v12036_v27  ;;  %v6853_v45 = vmul.f32 %v12036_v27, %v12036_v27  ;;  %13953 = vst [vmem:[#allocation110_spill] sm:$0xff] %v12044_v46  ;;  %13954 = vst [vmem:[#allocation111_spill] sm:$0xff] %v12046_v34  ;;  %v6577_v4 = vadd.f32 %v6576_v21, %v12044_v46  ;;  %v12054_v42 = vpop.f32.mrb[222].mxu1  ;;  %v12056_v30 = vpop.f32.mrb[166].mxu0 }
0x1198   :  { %v6642_v31 = vmul.f32 %v12044_v46, %v12044_v46  ;;  %v6789_v18 = vadd.f32 %v6788_v51, %v12046_v34  ;;  %v6854_v47 = vmul.f32 %v12046_v34, %v12046_v34  ;;  %13955 = vst [vmem:[#allocation112_spill] sm:$0xff] %v12054_v42  ;;  %13956 = vst [vmem:[#allocation113_spill] sm:$0xff] %v12056_v30  ;;  %v12061_v21 = vpop.f32.mrb[223].mxu1  ;;  %v12063_v23 = vpop.f32.mrb[167].mxu0 }
0x1199   :  { %v6678_v43 = vadd.f32 %v6677_v20, %v6641_v1  ;;  %v6890_v61 = vadd.f32 %v6889_v24, %v6853_v45  ;;  %v6541_v27 = vadd.f32 %v6540_v62, %v12054_v42  ;;  %v6643_v50 = vmul.f32 %v12054_v42, %v12054_v42  ;;  %13957 = vst [vmem:[#allocation114_spill] sm:$0xff] %v12061_v21 }
0x119a   :  { %13958 = vst [vmem:[#allocation115_spill] sm:$0xff] %v12063_v23  ;;  %v6715_v46 = vadd.f32 %v6714_v29, %v6642_v31  ;;  %v6927_v51 = vadd.f32 %v6926_v38, %v6854_v47  ;;  %v6753_v56 = vadd.f32 %v6752_v3, %v12056_v30  ;;  %v6855_v34 = vmul.f32 %v12056_v30, %v12056_v30 }
0x119b   :  { %v6679_v0 = vadd.f32 %v6678_v43, %v6643_v50  ;;  %v6578_v20 = vadd.f32 %v6577_v4, %v12061_v21  ;;  %v6644_v24 = vmul.f32 %v12061_v21, %v12061_v21  ;;  %v6790_v62 = vadd.f32 %v6789_v18, %v12063_v23 }
0x119c   :  { %v6891_v1 = vadd.f32 %v6890_v61, %v6855_v34  ;;  %v6856_v45 = vmul.f32 %v12063_v23, %v12063_v23 }
0x119d   :  { %v6716_v42 = vadd.f32 %v6715_v46, %v6644_v24  ;;  %v12074_v38 = vpop.f32.mrb[224].mxu1  ;;  %v12076_v3 = vpop.f32.mrb[168].mxu0 }
0x119e   :  { %v6928_v29 = vadd.f32 %v6927_v51, %v6856_v45  ;;  %13959 = vst [vmem:[#allocation116_spill] sm:$0xff] %v12074_v38  ;;  %13960 = vst [vmem:[#allocation117_spill] sm:$0xff] %v12076_v3  ;;  %v6542_v31 = vadd.f32 %v6541_v27, %v12074_v38  ;;  %v6645_v50 = vmul.f32 %v12074_v38, %v12074_v38  ;;  %v12084_v34 = vpop.f32.mrb[225].mxu1  ;;  %v12086_v47 = vpop.f32.mrb[169].mxu0 }
0x119f   :  { %v6754_v4 = vadd.f32 %v6753_v56, %v12076_v3  ;;  %v6857_v18 = vmul.f32 %v12076_v3, %v12076_v3  ;;  %13961 = vst [vmem:[#allocation118_spill] sm:$0xff] %v12084_v34  ;;  %13962 = vst [vmem:[#allocation119_spill] sm:$0xff] %v12086_v47  ;;  %v6579_v46 = vadd.f32 %v6578_v20, %v12084_v34  ;;  %v12094_v51 = vpop.f32.mrb[226].mxu1  ;;  %v12096_v56 = vpop.f32.mrb[170].mxu0 }
0x11a0   :  { %v6646_v43 = vmul.f32 %v12084_v34, %v12084_v34  ;;  %v6791_v61 = vadd.f32 %v6790_v62, %v12086_v47  ;;  %v6858_v27 = vmul.f32 %v12086_v47, %v12086_v47  ;;  %13963 = vst [vmem:[#allocation120_spill] sm:$0xff] %v12094_v51  ;;  %13964 = vst [vmem:[#allocation121_spill] sm:$0xff] %v12096_v56  ;;  %v12101_v20 = vpop.f32.mrb[227].mxu1  ;;  %v12103_v30 = vpop.f32.mrb[171].mxu0 }
0x11a1   :  { %v6680_v24 = vadd.f32 %v6679_v0, %v6645_v50  ;;  %v6892_v45 = vadd.f32 %v6891_v1, %v6857_v18  ;;  %v6543_v3 = vadd.f32 %v6542_v31, %v12094_v51  ;;  %v6647_v23 = vmul.f32 %v12094_v51, %v12094_v51  ;;  %13965 = vst [vmem:[#allocation122_spill] sm:$0xff] %v12101_v20 }
0x11a2   :  { %13966 = vst [vmem:[#allocation123_spill] sm:$0xff] %v12103_v30  ;;  %v6717_v34 = vadd.f32 %v6716_v42, %v6646_v43  ;;  %v6929_v62 = vadd.f32 %v6928_v29, %v6858_v27  ;;  %v6755_v38 = vadd.f32 %v6754_v4, %v12096_v56  ;;  %v6859_v47 = vmul.f32 %v12096_v56, %v12096_v56 }
0x11a3   :  { %v6681_v21 = vadd.f32 %v6680_v24, %v6647_v23  ;;  %v6580_v0 = vadd.f32 %v6579_v46, %v12101_v20  ;;  %v6648_v1 = vmul.f32 %v12101_v20, %v12101_v20  ;;  %v6792_v31 = vadd.f32 %v6791_v61, %v12103_v30 }
0x11a4   :  { %v6893_v50 = vadd.f32 %v6892_v45, %v6859_v47  ;;  %v6860_v18 = vmul.f32 %v12103_v30, %v12103_v30 }
0x11a5   :  { %v6718_v51 = vadd.f32 %v6717_v34, %v6648_v1  ;;  %v12114_v29 = vpop.f32.mrb[228].mxu1  ;;  %v12116_v4 = vpop.f32.mrb[172].mxu0 }
0x11a6   :  { %v6930_v42 = vadd.f32 %v6929_v62, %v6860_v18  ;;  %13967 = vst [vmem:[#allocation124_spill] sm:$0xff] %v12114_v29  ;;  %13968 = vst [vmem:[#allocation125_spill] sm:$0xff] %v12116_v4  ;;  %v6544_v43 = vadd.f32 %v6543_v3, %v12114_v29  ;;  %v6649_v23 = vmul.f32 %v12114_v29, %v12114_v29  ;;  %v12124_v47 = vpop.f32.mrb[229].mxu1  ;;  %v12126_v27 = vpop.f32.mrb[173].mxu0 }
0x11a7   :  { %v6756_v46 = vadd.f32 %v6755_v38, %v12116_v4  ;;  %v6861_v61 = vmul.f32 %v12116_v4, %v12116_v4  ;;  %13969 = vst [vmem:[#allocation126_spill] sm:$0xff] %v12124_v47  ;;  %13970 = vst [vmem:[#allocation127_spill] sm:$0xff] %v12126_v27  ;;  %v6581_v34 = vadd.f32 %v6580_v0, %v12124_v47  ;;  %v12134_v62 = vpop.f32.mrb[230].mxu1  ;;  %v12136_v38 = vpop.f32.mrb[174].mxu0 }
0x11a8   :  { %v6650_v24 = vmul.f32 %v12124_v47, %v12124_v47  ;;  %v6793_v45 = vadd.f32 %v6792_v31, %v12126_v27  ;;  %v6862_v3 = vmul.f32 %v12126_v27, %v12126_v27  ;;  %13971 = vst [vmem:[#allocation128_spill] sm:$0xff] %v12134_v62  ;;  %13972 = vst [vmem:[#allocation129_spill] sm:$0xff] %v12136_v38  ;;  %v12141_v0 = vpop.f32.mrb[231].mxu1  ;;  %v12143_v56 = vpop.f32.mrb[175].mxu0 }
0x11a9   :  { %v6682_v1 = vadd.f32 %v6681_v21, %v6649_v23  ;;  %v6894_v18 = vadd.f32 %v6893_v50, %v6861_v61  ;;  %v6545_v4 = vadd.f32 %v6544_v43, %v12134_v62  ;;  %v6651_v30 = vmul.f32 %v12134_v62, %v12134_v62  ;;  %13973 = vst [vmem:[#allocation130_spill] sm:$0xff] %v12141_v0 }
0x11aa   :  { %13974 = vst [vmem:[#allocation131_spill] sm:$0xff] %v12143_v56  ;;  %v6719_v47 = vadd.f32 %v6718_v51, %v6650_v24  ;;  %v6931_v31 = vadd.f32 %v6930_v42, %v6862_v3  ;;  %v6757_v29 = vadd.f32 %v6756_v46, %v12136_v38  ;;  %v6863_v27 = vmul.f32 %v12136_v38, %v12136_v38 }
0x11ab   :  { %v6546_v20 = vrot.slane %v6545_v4, 4  ;;  %v6683_v57 = vadd.f32 %v6682_v1, %v6651_v30  ;;  %v6582_v21 = vadd.f32 %v6581_v34, %v12141_v0  ;;  %v6652_v50 = vmul.f32 %v12141_v0, %v12141_v0 }
0x11ac   :  { %v6758_v43 = vrot.slane %v6757_v29, 4  ;;  %v6895_v23 = vadd.f32 %v6894_v18, %v6863_v27  ;;  %v6794_v61 = vadd.f32 %v6793_v45, %v12143_v56  ;;  %v6864_v51 = vmul.f32 %v12143_v56, %v12143_v56 }
0x11ad   :  { %v6547_v42 = vadd.f32 %v6546_v20, %v6545_v4  ;;  %v6684_v24 = vrot.slane %v6683_v57, 4  ;;  %v6583_v46 = vrot.slane %v6582_v21, 4  ;;  %v6720_v3 = vadd.f32 %v6719_v47, %v6652_v50 }
0x11ae   :  { %v6759_v62 = vadd.f32 %v6758_v43, %v6757_v29  ;;  %v6896_v38 = vrot.slane %v6895_v23, 4  ;;  %v6795_v33 = vrot.slane %v6794_v61, 4  ;;  %v6932_v30 = vadd.f32 %v6931_v31, %v6864_v51 }
0x11af   :  { %v6548_v1 = vrot.slane %v6547_v42, 2  ;;  %v6685_v34 = vadd.f32 %v6684_v24, %v6683_v57  ;;  %v6584_v39 = vadd.f32 %v6583_v46, %v6582_v21  ;;  %v6721_v16 = vrot.slane %v6720_v3, 4 }
0x11b0   :  { %v6760_v0 = vrot.slane %v6759_v62, 2  ;;  %v6897_v35 = vadd.f32 %v6896_v38, %v6895_v23  ;;  %v6796_v27 = vadd.f32 %v6795_v33, %v6794_v61  ;;  %v6933_v18 = vrot.slane %v6932_v30, 4 }
0x11b1   :  { %v6549_v45 = vadd.f32 %v6548_v1, %v6547_v42  ;;  %v6686_v41 = vrot.slane %v6685_v34, 2  ;;  %v6585_v37 = vrot.slane %v6584_v39, 2  ;;  %v6722_v56 = vadd.f32 %v6721_v16, %v6720_v3 }
0x11b2   :  { %v6761_v20 = vadd.f32 %v6760_v0, %v6759_v62  ;;  %v6898_v4 = vrot.slane %v6897_v35, 2  ;;  %v6797_v19 = vrot.slane %v6796_v27, 2  ;;  %v6934_v47 = vadd.f32 %v6933_v18, %v6932_v30 }
0x11b3   :  { %v6550_v29 = vrot.slane %v6549_v45, 1  ;;  %v6687_v50 = vadd.f32 %v6686_v41, %v6685_v34  ;;  %v6586_v43 = vadd.f32 %v6585_v37, %v6584_v39  ;;  %v6723_v31 = vrot.slane %v6722_v56, 2 }
0x11b4   :  { %v6762_v51 = vrot.slane %v6761_v20, 1  ;;  %v6899_v57 = vadd.f32 %v6898_v4, %v6897_v35  ;;  %v6798_v21 = vadd.f32 %v6797_v19, %v6796_v27  ;;  %v6935_v24 = vrot.slane %v6934_v47, 2 }
0x11b5   :  { %v6688_v46 = vrot.slane %v6687_v50, 1  ;;  %v6587_v38 = vrot.slane %v6586_v43, 1  ;;  %v6724_v33 = vadd.f32 %v6723_v31, %v6722_v56  ;;  %v6551_v1 = vadd.f32 %v6550_v29, %v6549_v45 }
0x11b6   :  { %v6799_v23 = vrot.slane %v6798_v21, 1  ;;  %v6936_v61 = vadd.f32 %v6935_v24, %v6934_v47  ;;  %v6900_v42 = vrot.slane %v6899_v57, 1  ;;  %v6763_v3 = vadd.f32 %v6762_v51, %v6761_v20 }
0x11b7   :  { %v6725_v16 = vrot.slane %v6724_v33, 1  ;;  %v6689_v62 = vadd.f32 %v6688_v46, %v6687_v50  ;;  %v6588_v30 = vadd.f32 %v6587_v38, %v6586_v43 }
0x11b8   :  { %v6937_v0 = vrot.slane %v6936_v61, 1  ;;  %v6901_v41 = vadd.f32 %v6900_v42, %v6899_v57  ;;  %v6800_v39 = vadd.f32 %v6799_v23, %v6798_v21 }
0x11b9   :  { %v6726_v18 = vadd.f32 %v6725_v16, %v6724_v33  ;;  %v6939_v37 = vsel %vm1488_vm6, %v6551_v1, %v6689_v62 }
0x11ba   :  { %v6941_v19 = vsel %vm418_vm2, %v6939_v37, %v6763_v3  ;;  %v6938_v35 = vadd.f32 %v6937_v0, %v6936_v61  ;;  %v12160_v61 = vld [vmem:[#allocation11 + $0x10] sm:$0xff]  ;;  %v13976_v3 = vld [vmem:[#allocation27_spill] sm:$0xff] }
0x11bb   :  { %v6940_v34 = vsel %vm1488_vm6, %v6588_v30, %v6726_v18  ;;  %v6943_v56 = vsel %vm1491_vm7, %v6941_v19, %v6901_v41  ;;  %13975 = vst [vmem:[#allocation132_spill] sm:$0xff] %v12160_v61 }
0x11bc   :  { %v6942_v27 = vsel %vm418_vm2, %v6940_v34, %v6800_v39 }
0x11bd   :  { %v6944_v45 = vsel %vm1491_vm7, %v6942_v27, %v6938_v35 }
0x11be   :  { %7009 = vmatprep.mubr.f32.mxu1 %v6944_v45 }
0x11bf   :  { %7010 = vmatmul.mubr.f32.vlgmr.msra.gmra.mrb[102].mxu1 %v6943_v56 }
0x1292   :  { %v7011_v20 = vpop.f32.mrb[102].mxu1 }
0x1293   :  { %v7016_v4 = vmul.f32 %v7011_v20, %v7011_v20  ;;  %v7013_v47 = vpop.f32.mrb[103].mxu1 }
0x1294   :  { %v7017_v29 = vmul.f32 %v7013_v47, %v7013_v47 }
0x1295   :  { %v7020_v50 = vrot.slane %v7016_v4, 7  ;;  %v13980_v4 = vld [vmem:[#allocation62_spill] sm:$0xff] }
0x1296   :  { %v7021_v43 = vrot.slane %v7017_v29, 7  ;;  %v13982_v29 = vld [vmem:[#allocation66_spill] sm:$0xff] }
0x1297   :  { %v7024_v31 = vsub.f32 %v7011_v20, %v7020_v50  ;;  %v13983_v50 = vld [vmem:[#allocation68_spill] sm:$0xff] }
0x1298   :  { %v7025_v51 = vsub.f32 %v7013_v47, %v7021_v43  ;;  %v13984_v43 = vld [vmem:[#allocation70_spill] sm:$0xff] }
0x1299   :  { %v7026_v57 = vmax.f32 %v7024_v31, 0.0 }
0x129a   :  { %v7027_v21 = vmax.f32 %v7025_v51, 0.0  ;;  %v13985_v51 = vld [vmem:[#allocation72_spill] sm:$0xff] }
0x129b   :  { %v7028_v24 = vadd.f32 1e-05, %v7026_v57 }
0x129c   :  { %v7029_v46 = vadd.f32 1e-05, %v7027_v21  ;;  %v13986_v21 = vld [vmem:[#allocation74_spill] sm:$0xff] }
0x129d   :  { %9618 = vrsqrt.f32 %v7028_v24 }
0x129e   :  { %9620 = vrsqrt.f32 %v7029_v46  ;;  %v13987_v46 = vld [vmem:[#allocation76_spill] sm:$0xff] }
0x12a7   :  { %v9619_v38 = vpop.eup %9618 }
0x12a8   :  { %v9621_v33 = vpop.eup %9620 }
0x12a9   :  { %v7034_v23 = vcombine.low %v9619_v38, %v9621_v33  ;;  %v13988_v33 = vld [vmem:[#allocation78_spill] sm:$0xff] }
0x12ab   :  { %v8331_v42 = vrot.slane %v7034_v23, 9 }
0x12ad   :  { %v7038_v1 = vmul.f32 %v8331_v42, %v12160_v61  ;;  %v13989_v42 = vld [vmem:[#allocation80_spill] sm:$0xff] }
0x12af   :  { %v7043_v16 = vrot.slane %v7038_v1, %v10311_v9  ;;  %v7047_v62 = vrot.slane %v7038_v1, %v10317_v13  ;;  %v7216_v0 = vrot.slane %v7038_v1, %v10314_v10  ;;  %v7220_v30 = vrot.slane %v7038_v1, %v13976_v3 }
0x12b1   :  { %v12168_v18 = vrot.slane %v7043_v16, %v10311_v9  ;;  %v12171_v41 = vrot.slane %v7047_v62, %v10311_v9  ;;  %v12173_v37 = vmul.f32 %v7043_v16, %v7011_v20  ;;  %v12175_v39 = vmul.f32 %v7047_v62, %v7013_v47  ;;  %v13990_v16 = vld [vmem:[#allocation82_spill] sm:$0xff] }
0x12b2   :  { %v12178_v19 = vrot.slane %v7216_v0, %v10314_v10  ;;  %v12181_v35 = vrot.slane %v7220_v30, %v10314_v10  ;;  %v12183_v13 = vmul.f32 %v7216_v0, %v7011_v20  ;;  %v12185_v34 = vmul.f32 %v7220_v30, %v7013_v47  ;;  %v13979_v20 = vld [vmem:[#allocation60_spill] sm:$0xff]  ;;  %v13992_v30 = vld [vmem:[#allocation86_spill] sm:$0xff] }
0x12b3   :  { %v12189_v56 = vmul.f32 %v12168_v18, %v11514_v40  ;;  %v12193_v9 = vmul.f32 %v12171_v41, %v11518_v54  ;;  %v12197_v27 = vmul.f32 %v12168_v18, %v11530_v12  ;;  %v12201_v10 = vmul.f32 %v12171_v41, %v11542_v22  ;;  %v13981_v47 = vld [vmem:[#allocation64_spill] sm:$0xff] }
0x12b4   :  { %13977 = vst [vmem:[#allocation27_spill] sm:$0xff] %v12183_v13  ;;  %13978 = vst [vmem:[#allocation133_spill] sm:$0xff] %v12185_v34  ;;  %v12205_v45 = vmul.f32 %v12168_v18, %v11554_v28  ;;  %v12209_v40 = vmul.f32 %v12171_v41, %v11564_v32  ;;  %v12213_v54 = vmul.f32 %v12168_v18, %v11574_v53  ;;  %v13991_v0 = vld [vmem:[#allocation84_spill] sm:$0xff]  ;;  %v14007_v34 = vld [vmem:[#allocation106_spill] sm:$0xff] }
0x12b5   :  { %v12217_v12 = vmul.f32 %v12171_v41, %v11581_v58  ;;  %v12221_v22 = vmul.f32 %v12168_v18, %v11594_v48  ;;  %v12225_v28 = vmul.f32 %v12171_v41, %v11604_v8  ;;  %v12229_v32 = vmul.f32 %v12168_v18, %v11614_v17  ;;  %v14005_v13 = vld [vmem:[#allocation104_spill] sm:$0xff] }
0x12b6   :  { %v12233_v53 = vmul.f32 %v12171_v41, %v11621_v14  ;;  %v12237_v58 = vmul.f32 %v12168_v18, %v11634_v59  ;;  %v12241_v48 = vmul.f32 %v12171_v41, %v11644_v63  ;;  %v12245_v8 = vmul.f32 %v12168_v18, %v11654_v55 }
0x12b7   :  { %v12249_v17 = vmul.f32 %v12171_v41, %v11661_v44  ;;  %v12253_v14 = vmul.f32 %v12168_v18, %v11674_v60  ;;  %v12257_v59 = vmul.f32 %v12171_v41, %v11684_v52  ;;  %v12261_v63 = vmul.f32 %v12168_v18, %v11694_v7 }
0x12b8   :  { %v12265_v55 = vmul.f32 %v12171_v41, %v11701_v25  ;;  %v12269_v44 = vmul.f32 %v12168_v18, %v11714_v5  ;;  %v12273_v60 = vmul.f32 %v12171_v41, %v11724_v36  ;;  %v12277_v52 = vmul.f32 %v12168_v18, %v11734_v26 }
0x12b9   :  { %v12281_v7 = vmul.f32 %v12171_v41, %v11741_v49  ;;  %v12285_v25 = vmul.f32 %v12168_v18, %v11754_v11  ;;  %v12289_v5 = vmul.f32 %v12171_v41, %v11764_v15  ;;  %v12293_v36 = vmul.f32 %v12168_v18, %v11774_v6 }
0x12ba   :  { %v12297_v26 = vmul.f32 %v12171_v41, %v11781_v2  ;;  %v12301_v49 = vmul.f32 %v12168_v18, %v13979_v20  ;;  %v12305_v11 = vmul.f32 %v12171_v41, %v13980_v4  ;;  %v12309_v15 = vmul.f32 %v12168_v18, %v13981_v47  ;;  %v13993_v4 = vld [vmem:[#allocation88_spill] sm:$0xff] }
0x12bb   :  { %v12313_v6 = vmul.f32 %v12171_v41, %v13982_v29  ;;  %v12317_v2 = vmul.f32 %v12168_v18, %v13983_v50  ;;  %v12321_v31 = vmul.f32 %v12171_v41, %v13984_v43  ;;  %v12325_v57 = vmul.f32 %v12168_v18, %v13985_v51  ;;  %v13994_v29 = vld [vmem:[#allocation90_spill] sm:$0xff]  ;;  %v13995_v43 = vld [vmem:[#allocation92_spill] sm:$0xff] }
0x12bc   :  { %v12329_v24 = vmul.f32 %v12171_v41, %v13986_v21  ;;  %v12333_v38 = vmul.f32 %v12168_v18, %v13987_v46  ;;  %v12337_v23 = vmul.f32 %v12171_v41, %v13988_v33  ;;  %v12341_v1 = vmul.f32 %v12168_v18, %v13989_v42  ;;  %v13996_v21 = vld [vmem:[#allocation94_spill] sm:$0xff]  ;;  %v13997_v33 = vld [vmem:[#allocation96_spill] sm:$0xff] }
0x12bd   :  { %v12345_v62 = vmul.f32 %v12171_v41, %v13990_v16  ;;  %v12349_v3 = vmul.f32 %v12168_v18, %v13991_v0  ;;  %v12353_v20 = vmul.f32 %v12171_v41, %v13992_v30  ;;  %v12357_v47 = vmul.f32 %v12168_v18, %v13993_v4  ;;  %v13999_v16 = vld [vmem:[#allocation98_spill] sm:$0xff]  ;;  %v14001_v30 = vld [vmem:[#allocation100_spill] sm:$0xff] }
0x12be   :  { %v12361_v50 = vmul.f32 %v12171_v41, %v13994_v29  ;;  %v12365_v51 = vmul.f32 %v12168_v18, %v13995_v43  ;;  %v12369_v46 = vmul.f32 %v12171_v41, %v13996_v21  ;;  %v12373_v42 = vmul.f32 %v12168_v18, %v13997_v33  ;;  %v14003_v29 = vld [vmem:[#allocation102_spill] sm:$0xff] }
0x12bf   :  { %v12377_v0 = vmul.f32 %v12171_v41, %v13999_v16  ;;  %v12381_v4 = vmul.f32 %v12168_v18, %v14001_v30  ;;  %v12385_v43 = vmul.f32 %v12171_v41, %v14003_v29  ;;  %v12389_v21 = vmul.f32 %v12168_v18, %v14005_v13 }
0x12c0   :  { %13998 = vst [vmem:[#allocation60_spill] sm:$0xff] %v12373_v42  ;;  %v12393_v33 = vmul.f32 %v12171_v41, %v14007_v34  ;;  %v14009_v42 = vld [vmem:[#allocation108_spill] sm:$0xff] }
0x12c1   :  { %14000 = vst [vmem:[#allocation62_spill] sm:$0xff] %v12377_v0  ;;  %14002 = vst [vmem:[#allocation64_spill] sm:$0xff] %v12381_v4  ;;  %v12397_v16 = vmul.f32 %v12168_v18, %v14009_v42  ;;  %v14011_v0 = vld [vmem:[#allocation110_spill] sm:$0xff]  ;;  %v14013_v4 = vld [vmem:[#allocation112_spill] sm:$0xff] }
0x12c2   :  { %14004 = vst [vmem:[#allocation66_spill] sm:$0xff] %v12385_v43  ;;  %14006 = vst [vmem:[#allocation68_spill] sm:$0xff] %v12389_v21  ;;  %v12401_v30 = vmul.f32 %v12171_v41, %v14011_v0  ;;  %v12405_v29 = vmul.f32 %v12168_v18, %v14013_v4  ;;  %v14015_v43 = vld [vmem:[#allocation114_spill] sm:$0xff]  ;;  %v14017_v21 = vld [vmem:[#allocation116_spill] sm:$0xff] }
0x12c3   :  { %14008 = vst [vmem:[#allocation70_spill] sm:$0xff] %v12393_v33  ;;  %14010 = vst [vmem:[#allocation72_spill] sm:$0xff] %v12397_v16  ;;  %v12409_v13 = vmul.f32 %v12171_v41, %v14015_v43  ;;  %v12413_v34 = vmul.f32 %v12168_v18, %v14017_v21  ;;  %v14019_v33 = vld [vmem:[#allocation118_spill] sm:$0xff]  ;;  %v14021_v16 = vld [vmem:[#allocation120_spill] sm:$0xff] }
0x12c4   :  { %14012 = vst [vmem:[#allocation74_spill] sm:$0xff] %v12401_v30  ;;  %14014 = vst [vmem:[#allocation76_spill] sm:$0xff] %v12405_v29  ;;  %v12417_v42 = vmul.f32 %v12171_v41, %v14019_v33  ;;  %v12421_v0 = vmul.f32 %v12168_v18, %v14021_v16  ;;  %v14023_v30 = vld [vmem:[#allocation122_spill] sm:$0xff]  ;;  %v14025_v29 = vld [vmem:[#allocation124_spill] sm:$0xff] }
0x12c5   :  { %14016 = vst [vmem:[#allocation78_spill] sm:$0xff] %v12409_v13  ;;  %14018 = vst [vmem:[#allocation80_spill] sm:$0xff] %v12413_v34  ;;  %v12425_v4 = vmul.f32 %v12171_v41, %v14023_v30  ;;  %v12429_v43 = vmul.f32 %v12168_v18, %v14025_v29  ;;  %v14027_v13 = vld [vmem:[#allocation126_spill] sm:$0xff]  ;;  %v14029_v34 = vld [vmem:[#allocation128_spill] sm:$0xff]  ;;  %v7126_v30 = vcombine.low %v12173_v37, %v12175_v39 }
0x12c6   :  { %14020 = vst [vmem:[#allocation82_spill] sm:$0xff] %v12417_v42  ;;  %14022 = vst [vmem:[#allocation84_spill] sm:$0xff] %v12421_v0  ;;  %v12433_v21 = vmul.f32 %v12171_v41, %v14027_v13  ;;  %v12437_v33 = vmul.f32 %v12168_v18, %v14029_v34  ;;  %v14030_v42 = vld [vmem:[#allocation130_spill] sm:$0xff]  ;;  %v14034_v29 = vld [vmem:[#allocation33_spill] sm:$0xff] }
0x12c7   :  { %14024 = vst [vmem:[#allocation86_spill] sm:$0xff] %v12425_v4  ;;  %14026 = vst [vmem:[#allocation88_spill] sm:$0xff] %v12429_v43  ;;  %v12441_v16 = vmul.f32 %v12171_v41, %v14030_v42  ;;  %v14032_v4 = vld [vmem:[#allocation32_spill] sm:$0xff]  ;;  %v12451_v43 = vmul.f32 %v12181_v35, %v14034_v29  ;;  %v14036_v13 = vld [vmem:[#allocation34_spill] sm:$0xff] }
0x12c8   :  { %14028 = vst [vmem:[#allocation90_spill] sm:$0xff] %v12433_v21  ;;  %v12447_v0 = vmul.f32 %v12178_v19, %v14032_v4  ;;  %v12455_v21 = vmul.f32 %v12178_v19, %v14036_v13  ;;  %v14038_v18 = vld [vmem:[#allocation35_spill] sm:$0xff]  ;;  %v14040_v41 = vld [vmem:[#allocation36_spill] sm:$0xff]  ;;  %v14042_v37 = vld [vmem:[#allocation37_spill] sm:$0xff] }
0x12c9   :  { %14031 = vst [vmem:[#allocation92_spill] sm:$0xff] %v12441_v16  ;;  %14035 = vst [vmem:[#allocation96_spill] sm:$0xff] %v12451_v43  ;;  %v12459_v34 = vmul.f32 %v12181_v35, %v14038_v18  ;;  %v12463_v42 = vmul.f32 %v12178_v19, %v14040_v41  ;;  %v12467_v39 = vmul.f32 %v12181_v35, %v14042_v37  ;;  %v14044_v4 = vld [vmem:[#allocation38_spill] sm:$0xff]  ;;  %v7127_v43 = vrot.slane %v7126_v30, 7  ;;  %v14056_v30 = vld [vmem:[#allocation44_spill] sm:$0xff] }
0x12ca   :  { %14033 = vst [vmem:[#allocation94_spill] sm:$0xff] %v12447_v0  ;;  %14037 = vst [vmem:[#allocation98_spill] sm:$0xff] %v12455_v21  ;;  %v12471_v29 = vmul.f32 %v12178_v19, %v14044_v4  ;;  %v14046_v0 = vld [vmem:[#allocation39_spill] sm:$0xff]  ;;  %v14048_v21 = vld [vmem:[#allocation40_spill] sm:$0xff] }
0x12cb   :  { %14039 = vst [vmem:[#allocation100_spill] sm:$0xff] %v12459_v34  ;;  %14041 = vst [vmem:[#allocation102_spill] sm:$0xff] %v12463_v42  ;;  %v12475_v13 = vmul.f32 %v12181_v35, %v14046_v0  ;;  %v12479_v18 = vmul.f32 %v12178_v19, %v14048_v21  ;;  %v14050_v34 = vld [vmem:[#allocation41_spill] sm:$0xff]  ;;  %v14052_v42 = vld [vmem:[#allocation42_spill] sm:$0xff]  ;;  %v12495_v0 = vmul.f32 %v12178_v19, %v14056_v30 }
0x12cc   :  { %14043 = vst [vmem:[#allocation104_spill] sm:$0xff] %v12467_v39  ;;  %14045 = vst [vmem:[#allocation106_spill] sm:$0xff] %v12471_v29  ;;  %v12483_v41 = vmul.f32 %v12181_v35, %v14050_v34  ;;  %v12487_v37 = vmul.f32 %v12178_v19, %v14052_v42  ;;  %v14054_v39 = vld [vmem:[#allocation43_spill] sm:$0xff]  ;;  %v14060_v34 = vld [vmem:[#allocation46_spill] sm:$0xff] }
0x12cd   :  { %14047 = vst [vmem:[#allocation108_spill] sm:$0xff] %v12475_v13  ;;  %14049 = vst [vmem:[#allocation110_spill] sm:$0xff] %v12479_v18  ;;  %v12491_v4 = vmul.f32 %v12181_v35, %v14054_v39  ;;  %v14058_v13 = vld [vmem:[#allocation45_spill] sm:$0xff]  ;;  %v7129_v18 = vsub.f32 %v12160_v61, %v7127_v43  ;;  %v14062_v42 = vld [vmem:[#allocation47_spill] sm:$0xff] }
0x12ce   :  { %14051 = vst [vmem:[#allocation112_spill] sm:$0xff] %v12483_v41  ;;  %14053 = vst [vmem:[#allocation114_spill] sm:$0xff] %v12487_v37  ;;  %v12499_v21 = vmul.f32 %v12181_v35, %v14058_v13  ;;  %v12504_v41 = vmul.f32 %v12178_v19, %v14060_v34  ;;  %v12508_v37 = vmul.f32 %v12181_v35, %v14062_v42  ;;  %v14064_v39 = vld [vmem:[#allocation48_spill] sm:$0xff]  ;;  %v14066_v30 = vld [vmem:[#allocation49_spill] sm:$0xff] }
0x12cf   :  { %14055 = vst [vmem:[#allocation116_spill] sm:$0xff] %v12491_v4  ;;  %14057 = vst [vmem:[#allocation118_spill] sm:$0xff] %v12495_v0  ;;  %v12512_v4 = vmul.f32 %v12178_v19, %v14064_v39  ;;  %v12516_v0 = vmul.f32 %v12181_v35, %v14066_v30  ;;  %v14068_v13 = vld [vmem:[#allocation50_spill] sm:$0xff]  ;;  %v14070_v43 = vld [vmem:[#allocation51_spill] sm:$0xff] }
0x12d0   :  { %14059 = vst [vmem:[#allocation120_spill] sm:$0xff] %v12499_v21  ;;  %14061 = vst [vmem:[#allocation122_spill] sm:$0xff] %v12504_v41  ;;  %v12520_v21 = vmul.f32 %v12178_v19, %v14068_v13  ;;  %v12524_v34 = vmul.f32 %v12181_v35, %v14070_v43  ;;  %v14072_v41 = vld [vmem:[#allocation52_spill] sm:$0xff]  ;;  %v14075_v39 = vld [vmem:[#allocation31_spill] sm:$0xff] }
0x12d1   :  { %14063 = vst [vmem:[#allocation124_spill] sm:$0xff] %v12508_v37  ;;  %14065 = vst [vmem:[#allocation126_spill] sm:$0xff] %v12512_v4  ;;  %v12528_v42 = vmul.f32 %v12178_v19, %v14072_v41  ;;  %v14074_v37 = vld [vmem:[#allocation28_spill] sm:$0xff]  ;;  %v7138_v4 = vrot.slane %v7129_v18, %v14075_v39  ;;  %v14076_v61 = vld [vmem:[#allocation53_spill] sm:$0xff] }
0x12d2   :  { %14067 = vst [vmem:[#allocation128_spill] sm:$0xff] %v12516_v0  ;;  %14069 = vst [vmem:[#allocation130_spill] sm:$0xff] %v12520_v21  ;;  %v7134_v29 = vrot.slane %v7129_v18, %v14074_v37  ;;  %v12534_v30 = vmul.f32 %v12181_v35, %v14076_v61  ;;  %v14077_v0 = vld [vmem:[#allocation54_spill] sm:$0xff]  ;;  %v14078_v21 = vld [vmem:[#allocation55_spill] sm:$0xff] }
0x12d3   :  { %14071 = vst [vmem:[#allocation32_spill] sm:$0xff] %v12524_v34  ;;  %14073 = vst [vmem:[#allocation33_spill] sm:$0xff] %v12528_v42  ;;  %v12538_v13 = vmul.f32 %v12178_v19, %v14077_v0  ;;  %v12542_v43 = vmul.f32 %v12181_v35, %v14078_v21  ;;  %v14080_v34 = vld [vmem:[#allocation56_spill] sm:$0xff]  ;;  %v14082_v42 = vld [vmem:[#allocation57_spill] sm:$0xff]  ;;  %v12560_v0 = vrot.slane %v7138_v4, %v14074_v37 }
0x12d4   :  { %v12546_v41 = vmul.f32 %v12178_v19, %v14080_v34  ;;  %v12550_v16 = vmul.f32 %v12181_v35, %v14082_v42  ;;  %v14084_v18 = vld [vmem:[#allocation58_spill] sm:$0xff]  ;;  %v12557_v39 = vrot.slane %v7134_v29, %v14074_v37  ;;  %v14086_v21 = vld [vmem:[#allocation59_spill] sm:$0xff]  ;;  %v14087_v34 = vld [vmem:[#allocation61_spill] sm:$0xff] }
0x12d5   :  { %14079 = vst [vmem:[#allocation34_spill] sm:$0xff] %v12542_v43  ;;  %v12554_v61 = vmul.f32 %v12178_v19, %v14084_v18  ;;  %v12564_v43 = vmul.f32 %v12181_v35, %v14086_v21  ;;  %v14088_v42 = vld [vmem:[#allocation63_spill] sm:$0xff]  ;;  %v14089_v18 = vld [vmem:[#allocation65_spill] sm:$0xff] }
0x12d6   :  { %14081 = vst [vmem:[#allocation35_spill] sm:$0xff] %v12546_v41  ;;  %14083 = vst [vmem:[#allocation36_spill] sm:$0xff] %v12550_v16  ;;  %v12568_v41 = vmul.f32 %v12178_v19, %v14087_v34  ;;  %v12572_v16 = vmul.f32 %v12181_v35, %v14088_v42  ;;  %v14090_v29 = vld [vmem:[#allocation67_spill] sm:$0xff]  ;;  %v14091_v4 = vld [vmem:[#allocation69_spill] sm:$0xff]  ;;  %v12588_v34 = vadd.f32 %v12557_v39, %v12189_v56 }
0x12d7   :  { %14085 = vst [vmem:[#allocation37_spill] sm:$0xff] %v12554_v61  ;;  %v12576_v61 = vmul.f32 %v12178_v19, %v14089_v18  ;;  %v12580_v37 = vmul.f32 %v12181_v35, %v14090_v29  ;;  %v12584_v21 = vmul.f32 %v12178_v19, %v14091_v4  ;;  %v12592_v42 = vadd.f32 %v12560_v0, %v12193_v9 }
0x12d8   :  { %14092 = vst [vmem:[#allocation38_spill] sm:$0xff] %v12588_v34  ;;  %v12596_v18 = vadd.f32 %v12557_v39, %v12197_v27  ;;  %v12600_v29 = vadd.f32 %v12560_v0, %v12201_v10  ;;  %v12604_v4 = vadd.f32 %v12557_v39, %v12205_v45  ;;  %v12608_v56 = vadd.f32 %v12560_v0, %v12209_v40 }
0x12d9   :  { %14093 = vst [vmem:[#allocation39_spill] sm:$0xff] %v12592_v42  ;;  %v12612_v9 = vadd.f32 %v12557_v39, %v12213_v54  ;;  %v12616_v27 = vadd.f32 %v12560_v0, %v12217_v12  ;;  %v12620_v10 = vadd.f32 %v12557_v39, %v12221_v22  ;;  %v12624_v45 = vadd.f32 %v12560_v0, %v12225_v28  ;;  %v14228_v42 = vld [vmem:[#allocation126_spill] sm:$0xff]  ;;  %v14229_v34 = vld [vmem:[#allocation128_spill] sm:$0xff] }
0x12da   :  { %14094 = vst [vmem:[#allocation40_spill] sm:$0xff] %v12596_v18  ;;  %14095 = vst [vmem:[#allocation41_spill] sm:$0xff] %v12600_v29  ;;  %v12628_v40 = vadd.f32 %v12557_v39, %v12229_v32  ;;  %v12632_v54 = vadd.f32 %v12560_v0, %v12233_v53  ;;  %v12636_v12 = vadd.f32 %v12557_v39, %v12237_v58  ;;  %v14225_v29 = vld [vmem:[#allocation122_spill] sm:$0xff]  ;;  %v14227_v18 = vld [vmem:[#allocation124_spill] sm:$0xff] }
0x12db   :  { %14096 = vst [vmem:[#allocation42_spill] sm:$0xff] %v12604_v4  ;;  %14097 = vst [vmem:[#allocation43_spill] sm:$0xff] %v12608_v56  ;;  %v12640_v22 = vadd.f32 %v12560_v0, %v12241_v48  ;;  %v12644_v28 = vadd.f32 %v12557_v39, %v12245_v8  ;;  %v12648_v32 = vadd.f32 %v12560_v0, %v12249_v17  ;;  %v14221_v56 = vld [vmem:[#allocation118_spill] sm:$0xff]  ;;  %v14223_v4 = vld [vmem:[#allocation120_spill] sm:$0xff] }
0x12dc   :  { %14098 = vst [vmem:[#allocation44_spill] sm:$0xff] %v12612_v9  ;;  %14099 = vst [vmem:[#allocation45_spill] sm:$0xff] %v12616_v27  ;;  %v12652_v53 = vadd.f32 %v12557_v39, %v12253_v14  ;;  %v12656_v58 = vadd.f32 %v12560_v0, %v12257_v59  ;;  %v12660_v48 = vadd.f32 %v12557_v39, %v12261_v63  ;;  %v14219_v27 = vld [vmem:[#allocation114_spill] sm:$0xff]  ;;  %v14220_v9 = vld [vmem:[#allocation116_spill] sm:$0xff] }
0x12dd   :  { %14100 = vst [vmem:[#allocation46_spill] sm:$0xff] %v12620_v10  ;;  %14101 = vst [vmem:[#allocation47_spill] sm:$0xff] %v12624_v45  ;;  %v12664_v8 = vadd.f32 %v12560_v0, %v12265_v55  ;;  %v12668_v17 = vadd.f32 %v12557_v39, %v12269_v44  ;;  %v12672_v14 = vadd.f32 %v12560_v0, %v12273_v60  ;;  %v14217_v45 = vld [vmem:[#allocation110_spill] sm:$0xff]  ;;  %v14218_v10 = vld [vmem:[#allocation112_spill] sm:$0xff] }
0x12de   :  { %14102 = vst [vmem:[#allocation48_spill] sm:$0xff] %v12628_v40  ;;  %14103 = vst [vmem:[#allocation49_spill] sm:$0xff] %v12632_v54  ;;  %v12676_v59 = vadd.f32 %v12557_v39, %v12277_v52  ;;  %v12680_v63 = vadd.f32 %v12560_v0, %v12281_v7  ;;  %v12684_v55 = vadd.f32 %v12557_v39, %v12285_v25  ;;  %v14208_v54 = vld [vmem:[#allocation29_spill] sm:$0xff] }
0x12df   :  { %14104 = vst [vmem:[#allocation50_spill] sm:$0xff] %v12636_v12  ;;  %14105 = vst [vmem:[#allocation51_spill] sm:$0xff] %v12640_v22  ;;  %v12688_v44 = vadd.f32 %v12560_v0, %v12289_v5  ;;  %v12692_v60 = vadd.f32 %v12557_v39, %v12293_v36  ;;  %v12696_v52 = vadd.f32 %v12560_v0, %v12297_v26 }
0x12e0   :  { %14106 = vst [vmem:[#allocation52_spill] sm:$0xff] %v12644_v28  ;;  %14107 = vst [vmem:[#allocation28_spill] sm:$0xff] %v12648_v32  ;;  %v12700_v7 = vadd.f32 %v12557_v39, %v12301_v49  ;;  %v12704_v25 = vadd.f32 %v12560_v0, %v12305_v11  ;;  %v12708_v5 = vadd.f32 %v12557_v39, %v12309_v15  ;;  %v14206_v28 = vld [vmem:[#allocation132_spill] sm:$0xff] }
0x12e1   :  { %14108 = vst [vmem:[#allocation31_spill] sm:$0xff] %v12652_v53  ;;  %14109 = vst [vmem:[#allocation53_spill] sm:$0xff] %v12656_v58  ;;  %v12712_v36 = vadd.f32 %v12560_v0, %v12313_v6  ;;  %v12716_v26 = vadd.f32 %v12557_v39, %v12317_v2  ;;  %v12720_v49 = vadd.f32 %v12560_v0, %v12321_v31  ;;  %v14204_v58 = vld [vmem:[#allocation133_spill] sm:$0xff]  ;;  %v14205_v53 = vld [vmem:[#allocation27_spill] sm:$0xff] }
0x12e2   :  { %14110 = vst [vmem:[#allocation54_spill] sm:$0xff] %v12660_v48  ;;  %14111 = vst [vmem:[#allocation55_spill] sm:$0xff] %v12664_v8  ;;  %v12724_v11 = vadd.f32 %v12557_v39, %v12325_v57  ;;  %v12728_v15 = vadd.f32 %v12560_v0, %v12329_v24  ;;  %v12732_v6 = vadd.f32 %v12557_v39, %v12333_v38  ;;  %v14202_v8 = vld [vmem:[#allocation129_spill] sm:$0xff]  ;;  %v14203_v48 = vld [vmem:[#allocation131_spill] sm:$0xff] }
0x12e3   :  { %14112 = vst [vmem:[#allocation56_spill] sm:$0xff] %v12668_v17  ;;  %14113 = vst [vmem:[#allocation57_spill] sm:$0xff] %v12672_v14  ;;  %v12736_v2 = vadd.f32 %v12560_v0, %v12337_v23  ;;  %v12740_v31 = vadd.f32 %v12557_v39, %v12341_v1  ;;  %v12744_v57 = vadd.f32 %v12560_v0, %v12345_v62  ;;  %v14200_v14 = vld [vmem:[#allocation125_spill] sm:$0xff]  ;;  %v14201_v17 = vld [vmem:[#allocation127_spill] sm:$0xff] }
0x12e4   :  { %14114 = vst [vmem:[#allocation58_spill] sm:$0xff] %v12676_v59  ;;  %14115 = vst [vmem:[#allocation59_spill] sm:$0xff] %v12680_v63  ;;  %v12748_v24 = vadd.f32 %v12557_v39, %v12349_v3  ;;  %v12752_v38 = vadd.f32 %v12560_v0, %v12353_v20  ;;  %v12756_v23 = vadd.f32 %v12557_v39, %v12357_v47  ;;  %v14198_v63 = vld [vmem:[#allocation121_spill] sm:$0xff]  ;;  %v14199_v59 = vld [vmem:[#allocation123_spill] sm:$0xff] }
0x12e5   :  { %14116 = vst [vmem:[#allocation61_spill] sm:$0xff] %v12684_v55  ;;  %14117 = vst [vmem:[#allocation63_spill] sm:$0xff] %v12688_v44  ;;  %v12760_v1 = vadd.f32 %v12560_v0, %v12361_v50  ;;  %v12764_v62 = vadd.f32 %v12557_v39, %v12365_v51  ;;  %v12768_v3 = vadd.f32 %v12560_v0, %v12369_v46  ;;  %v14196_v44 = vld [vmem:[#allocation117_spill] sm:$0xff]  ;;  %v14197_v55 = vld [vmem:[#allocation119_spill] sm:$0xff] }
0x12e6   :  { %14118 = vst [vmem:[#allocation65_spill] sm:$0xff] %v12692_v60  ;;  %14119 = vst [vmem:[#allocation67_spill] sm:$0xff] %v12696_v52  ;;  %v14194_v52 = vld [vmem:[#allocation113_spill] sm:$0xff]  ;;  %v14195_v60 = vld [vmem:[#allocation115_spill] sm:$0xff] }
0x12e7   :  { %14120 = vst [vmem:[#allocation69_spill] sm:$0xff] %v12700_v7  ;;  %14121 = vst [vmem:[#allocation134_spill] sm:$0xff] %v12704_v25  ;;  %v14192_v25 = vld [vmem:[#allocation109_spill] sm:$0xff]  ;;  %v14193_v7 = vld [vmem:[#allocation111_spill] sm:$0xff] }
0x12e8   :  { %14122 = vst [vmem:[#allocation135_spill] sm:$0xff] %v12708_v5  ;;  %14123 = vst [vmem:[#allocation136_spill] sm:$0xff] %v12712_v36  ;;  %v14190_v36 = vld [vmem:[#allocation105_spill] sm:$0xff]  ;;  %v14191_v5 = vld [vmem:[#allocation107_spill] sm:$0xff] }
0x12e9   :  { %14124 = vst [vmem:[#allocation137_spill] sm:$0xff] %v12716_v26  ;;  %14125 = vst [vmem:[#allocation138_spill] sm:$0xff] %v12720_v49  ;;  %v14188_v49 = vld [vmem:[#allocation101_spill] sm:$0xff]  ;;  %v14189_v26 = vld [vmem:[#allocation103_spill] sm:$0xff] }
0x12ea   :  { %14126 = vst [vmem:[#allocation139_spill] sm:$0xff] %v12724_v11  ;;  %14127 = vst [vmem:[#allocation140_spill] sm:$0xff] %v12728_v15  ;;  %v14186_v15 = vld [vmem:[#allocation97_spill] sm:$0xff]  ;;  %v14187_v11 = vld [vmem:[#allocation99_spill] sm:$0xff] }
0x12eb   :  { %14128 = vst [vmem:[#allocation141_spill] sm:$0xff] %v12732_v6  ;;  %14129 = vst [vmem:[#allocation142_spill] sm:$0xff] %v12736_v2  ;;  %v14184_v2 = vld [vmem:[#allocation93_spill] sm:$0xff]  ;;  %v14185_v6 = vld [vmem:[#allocation95_spill] sm:$0xff] }
0x12ec   :  { %14130 = vst [vmem:[#allocation143_spill] sm:$0xff] %v12740_v31  ;;  %14131 = vst [vmem:[#allocation144_spill] sm:$0xff] %v12744_v57  ;;  %v14182_v57 = vld [vmem:[#allocation89_spill] sm:$0xff]  ;;  %v14183_v31 = vld [vmem:[#allocation91_spill] sm:$0xff] }
0x12ed   :  { %14132 = vst [vmem:[#allocation145_spill] sm:$0xff] %v12748_v24  ;;  %14133 = vst [vmem:[#allocation146_spill] sm:$0xff] %v12752_v38  ;;  %v14138_v24 = vld [vmem:[#allocation60_spill] sm:$0xff]  ;;  %v14140_v38 = vld [vmem:[#allocation62_spill] sm:$0xff] }
0x12ee   :  { %14134 = vst [vmem:[#allocation147_spill] sm:$0xff] %v12756_v23  ;;  %14135 = vst [vmem:[#allocation148_spill] sm:$0xff] %v12760_v1  ;;  %v12772_v20 = vadd.f32 %v12557_v39, %v14138_v24  ;;  %v12776_v47 = vadd.f32 %v12560_v0, %v14140_v38  ;;  %v14142_v23 = vld [vmem:[#allocation64_spill] sm:$0xff]  ;;  %v14144_v1 = vld [vmem:[#allocation66_spill] sm:$0xff] }
0x12ef   :  { %14136 = vst [vmem:[#allocation149_spill] sm:$0xff] %v12764_v62  ;;  %14137 = vst [vmem:[#allocation150_spill] sm:$0xff] %v12768_v3  ;;  %v12780_v50 = vadd.f32 %v12557_v39, %v14142_v23  ;;  %v12784_v51 = vadd.f32 %v12560_v0, %v14144_v1  ;;  %v14146_v62 = vld [vmem:[#allocation68_spill] sm:$0xff]  ;;  %v14148_v3 = vld [vmem:[#allocation70_spill] sm:$0xff] }
0x12f0   :  { %14139 = vst [vmem:[#allocation60_spill] sm:$0xff] %v12772_v20  ;;  %14141 = vst [vmem:[#allocation62_spill] sm:$0xff] %v12776_v47  ;;  %v12788_v46 = vadd.f32 %v12557_v39, %v14146_v62  ;;  %v12792_v24 = vadd.f32 %v12560_v0, %v14148_v3  ;;  %v14150_v20 = vld [vmem:[#allocation72_spill] sm:$0xff]  ;;  %v14152_v47 = vld [vmem:[#allocation74_spill] sm:$0xff] }
0x12f1   :  { %14143 = vst [vmem:[#allocation64_spill] sm:$0xff] %v12780_v50  ;;  %14145 = vst [vmem:[#allocation66_spill] sm:$0xff] %v12784_v51  ;;  %v12796_v38 = vadd.f32 %v12557_v39, %v14150_v20  ;;  %v12800_v23 = vadd.f32 %v12560_v0, %v14152_v47  ;;  %v14154_v50 = vld [vmem:[#allocation76_spill] sm:$0xff]  ;;  %v14156_v51 = vld [vmem:[#allocation78_spill] sm:$0xff] }
0x12f2   :  { %14147 = vst [vmem:[#allocation68_spill] sm:$0xff] %v12788_v46  ;;  %14149 = vst [vmem:[#allocation70_spill] sm:$0xff] %v12792_v24  ;;  %v12804_v1 = vadd.f32 %v12557_v39, %v14154_v50  ;;  %v12808_v62 = vadd.f32 %v12560_v0, %v14156_v51  ;;  %v14158_v46 = vld [vmem:[#allocation80_spill] sm:$0xff]  ;;  %v14160_v24 = vld [vmem:[#allocation82_spill] sm:$0xff] }
0x12f3   :  { %14151 = vst [vmem:[#allocation72_spill] sm:$0xff] %v12796_v38  ;;  %14153 = vst [vmem:[#allocation74_spill] sm:$0xff] %v12800_v23  ;;  %v12812_v3 = vadd.f32 %v12557_v39, %v14158_v46  ;;  %v12816_v20 = vadd.f32 %v12560_v0, %v14160_v24  ;;  %v14162_v38 = vld [vmem:[#allocation84_spill] sm:$0xff]  ;;  %v14164_v23 = vld [vmem:[#allocation86_spill] sm:$0xff]  ;;  %v12836_v24 = vadd.f32 %v12557_v39, %v12437_v33 }
0x12f4   :  { %14155 = vst [vmem:[#allocation76_spill] sm:$0xff] %v12804_v1  ;;  %14157 = vst [vmem:[#allocation78_spill] sm:$0xff] %v12808_v62  ;;  %v12820_v47 = vadd.f32 %v12557_v39, %v14162_v38  ;;  %v12824_v50 = vadd.f32 %v12560_v0, %v14164_v23  ;;  %v14166_v1 = vld [vmem:[#allocation88_spill] sm:$0xff]  ;;  %v14168_v62 = vld [vmem:[#allocation90_spill] sm:$0xff] }
0x12f5   :  { %14159 = vst [vmem:[#allocation80_spill] sm:$0xff] %v12812_v3  ;;  %14161 = vst [vmem:[#allocation82_spill] sm:$0xff] %v12816_v20  ;;  %v12828_v51 = vadd.f32 %v12557_v39, %v14166_v1  ;;  %v12832_v46 = vadd.f32 %v12560_v0, %v14168_v62  ;;  %v14171_v20 = vld [vmem:[#allocation92_spill] sm:$0xff]  ;;  %v14177_v39 = vld [vmem:[#allocation79_spill] sm:$0xff] }
0x12f6   :  { %14163 = vst [vmem:[#allocation84_spill] sm:$0xff] %v12820_v47  ;;  %14165 = vst [vmem:[#allocation86_spill] sm:$0xff] %v12824_v50  ;;  %v12840_v38 = vadd.f32 %v12560_v0, %v14171_v20  ;;  %v14173_v47 = vld [vmem:[#allocation71_spill] sm:$0xff]  ;;  %v14174_v50 = vld [vmem:[#allocation73_spill] sm:$0xff]  ;;  %v12860_v0 = vmul.f32 %v12181_v35, %v14177_v39  ;;  %v12880_v39 = vmul.f32 %v12178_v19, %v14182_v57 }
0x12f7   :  { %14167 = vst [vmem:[#allocation88_spill] sm:$0xff] %v12828_v51  ;;  %14169 = vst [vmem:[#allocation90_spill] sm:$0xff] %v12832_v46  ;;  %v12844_v23 = vmul.f32 %v12181_v35, %v14173_v47  ;;  %v12848_v1 = vmul.f32 %v12178_v19, %v14174_v50  ;;  %v14175_v51 = vld [vmem:[#allocation75_spill] sm:$0xff]  ;;  %v14176_v46 = vld [vmem:[#allocation77_spill] sm:$0xff]  ;;  %v12900_v57 = vmul.f32 %v12181_v35, %v14187_v11 }
0x12f8   :  { %14170 = vst [vmem:[#allocation151_spill] sm:$0xff] %v12836_v24  ;;  %14172 = vst [vmem:[#allocation92_spill] sm:$0xff] %v12840_v38  ;;  %v12852_v62 = vmul.f32 %v12181_v35, %v14175_v51  ;;  %v12856_v33 = vmul.f32 %v12178_v19, %v14176_v46  ;;  %v14178_v20 = vld [vmem:[#allocation81_spill] sm:$0xff]  ;;  %v14179_v38 = vld [vmem:[#allocation83_spill] sm:$0xff]  ;;  %v12920_v11 = vmul.f32 %v12178_v19, %v14192_v25 }
0x12f9   :  { %v12864_v47 = vmul.f32 %v12178_v19, %v14178_v20  ;;  %v12868_v50 = vmul.f32 %v12181_v35, %v14179_v38  ;;  %v14180_v24 = vld [vmem:[#allocation85_spill] sm:$0xff]  ;;  %v14181_v3 = vld [vmem:[#allocation87_spill] sm:$0xff]  ;;  %v12884_v20 = vmul.f32 %v12181_v35, %v14183_v31  ;;  %v12888_v38 = vmul.f32 %v12178_v19, %v14184_v2 }
0x12fa   :  { %v12872_v51 = vmul.f32 %v12178_v19, %v14180_v24  ;;  %v12876_v46 = vmul.f32 %v12181_v35, %v14181_v3  ;;  %v12892_v24 = vmul.f32 %v12181_v35, %v14185_v6  ;;  %v12896_v3 = vmul.f32 %v12178_v19, %v14186_v15 }
0x12fb   :  { %v12904_v31 = vmul.f32 %v12178_v19, %v14188_v49  ;;  %v12908_v2 = vmul.f32 %v12181_v35, %v14189_v26  ;;  %v12912_v6 = vmul.f32 %v12178_v19, %v14190_v36  ;;  %v12916_v15 = vmul.f32 %v12181_v35, %v14191_v5 }
0x12fc   :  { %v12924_v49 = vmul.f32 %v12181_v35, %v14193_v7  ;;  %v12928_v26 = vmul.f32 %v12178_v19, %v14194_v52  ;;  %v12932_v36 = vmul.f32 %v12181_v35, %v14195_v60  ;;  %v12936_v5 = vmul.f32 %v12178_v19, %v14196_v44 }
0x12fd   :  { %v12940_v25 = vmul.f32 %v12181_v35, %v14197_v55  ;;  %v12944_v7 = vmul.f32 %v12178_v19, %v14198_v63  ;;  %v12948_v52 = vmul.f32 %v12181_v35, %v14199_v59  ;;  %v12952_v60 = vmul.f32 %v12178_v19, %v14200_v14  ;;  %v14207_v14 = vld [vmem:[#allocation30_spill] sm:$0xff] }
0x12fe   :  { %v12956_v44 = vmul.f32 %v12181_v35, %v14201_v17  ;;  %v12960_v55 = vmul.f32 %v12178_v19, %v14202_v8  ;;  %v12964_v63 = vmul.f32 %v12181_v35, %v14203_v48  ;;  %v7299_v59 = vcombine.low %v14205_v53, %v14204_v58  ;;  %v14209_v8 = vld [vmem:[#allocation94_spill] sm:$0xff]  ;;  %v14210_v48 = vld [vmem:[#allocation96_spill] sm:$0xff] }
0x12ff   :  { %v14211_v58 = vld [vmem:[#allocation98_spill] sm:$0xff] }
0x1300   :  { %v7300_v32 = vrot.slane %v7299_v59, 7 }
0x1302   :  { %v7302_v22 = vsub.f32 %v14206_v28, %v7300_v32  ;;  %v14212_v32 = vld [vmem:[#allocation100_spill] sm:$0xff] }
0x1304   :  { %v7307_v12 = vrot.slane %v7302_v22, %v14207_v14  ;;  %v7311_v40 = vrot.slane %v7302_v22, %v14208_v54  ;;  %v14214_v22 = vld [vmem:[#allocation104_spill] sm:$0xff] }
0x1306   :  { %v12972_v17 = vrot.slane %v7307_v12, %v14207_v14  ;;  %v12975_v19 = vrot.slane %v7311_v40, %v14207_v14  ;;  %v14213_v12 = vld [vmem:[#allocation102_spill] sm:$0xff] }
0x1307   :  { %v14215_v14 = vld [vmem:[#allocation106_spill] sm:$0xff] }
0x1308   :  { %v12979_v35 = vadd.f32 %v12972_v17, %v14209_v8  ;;  %v12983_v53 = vadd.f32 %v12975_v19, %v14210_v48  ;;  %v12987_v28 = vadd.f32 %v12972_v17, %v14211_v58  ;;  %v12991_v54 = vadd.f32 %v12975_v19, %v14212_v32  ;;  %v14216_v48 = vld [vmem:[#allocation108_spill] sm:$0xff] }
0x1309   :  { %v12995_v40 = vadd.f32 %v12972_v17, %v14213_v12  ;;  %v12999_v59 = vadd.f32 %v12975_v19, %v14214_v22  ;;  %v13003_v8 = vadd.f32 %v12972_v17, %v14215_v14  ;;  %v13007_v58 = vadd.f32 %v12975_v19, %v14216_v48 }
0x130a   :  { %v13011_v32 = vadd.f32 %v12972_v17, %v14217_v45  ;;  %v13015_v12 = vadd.f32 %v12975_v19, %v14218_v10  ;;  %v13019_v22 = vadd.f32 %v12972_v17, %v14219_v27  ;;  %v13023_v14 = vadd.f32 %v12975_v19, %v14220_v9 }
0x130b   :  { %v13027_v48 = vadd.f32 %v12972_v17, %v14221_v56  ;;  %v13031_v45 = vadd.f32 %v12975_v19, %v14223_v4  ;;  %v13035_v10 = vadd.f32 %v12972_v17, %v14225_v29  ;;  %v13039_v27 = vadd.f32 %v12975_v19, %v14227_v18 }
0x130c   :  { %v13043_v9 = vadd.f32 %v12972_v17, %v14228_v42  ;;  %v13047_v56 = vadd.f32 %v12975_v19, %v14229_v34  ;;  %v13063_v42 = vadd.f32 %v12975_v19, %v12534_v30  ;;  %v13067_v34 = vadd.f32 %v12972_v17, %v12538_v13 }
0x130d   :  { %14222 = vst [vmem:[#allocation71_spill] sm:$0xff] %v13027_v48  ;;  %14224 = vst [vmem:[#allocation73_spill] sm:$0xff] %v13031_v45  ;;  %v14231_v48 = vld [vmem:[#allocation130_spill] sm:$0xff]  ;;  %v14233_v45 = vld [vmem:[#allocation32_spill] sm:$0xff]  ;;  %v13087_v13 = vadd.f32 %v12975_v19, %v12564_v43  ;;  %v13107_v43 = vadd.f32 %v12972_v17, %v12584_v21  ;;  %v13127_v21 = vadd.f32 %v12975_v19, %v12860_v0 }
0x130e   :  { %14226 = vst [vmem:[#allocation75_spill] sm:$0xff] %v13035_v10  ;;  %14230 = vst [vmem:[#allocation77_spill] sm:$0xff] %v13047_v56  ;;  %v13051_v4 = vadd.f32 %v12972_v17, %v14231_v48  ;;  %v13055_v29 = vadd.f32 %v12975_v19, %v14233_v45  ;;  %v14235_v10 = vld [vmem:[#allocation33_spill] sm:$0xff]  ;;  %v14237_v56 = vld [vmem:[#allocation34_spill] sm:$0xff]  ;;  %v13147_v0 = vadd.f32 %v12972_v17, %v12880_v39 }
0x130f   :  { %v13059_v18 = vadd.f32 %v12972_v17, %v14235_v10  ;;  %v13071_v48 = vadd.f32 %v12975_v19, %v14237_v56  ;;  %v13091_v56 = vadd.f32 %v12972_v17, %v12568_v41  ;;  %v13111_v41 = vadd.f32 %v12975_v19, %v12844_v23 }
0x1310   :  { %14232 = vst [vmem:[#allocation79_spill] sm:$0xff] %v13051_v4  ;;  %14234 = vst [vmem:[#allocation81_spill] sm:$0xff] %v13055_v29  ;;  %v14238_v4 = vld [vmem:[#allocation35_spill] sm:$0xff]  ;;  %v14239_v29 = vld [vmem:[#allocation36_spill] sm:$0xff]  ;;  %v13131_v23 = vadd.f32 %v12972_v17, %v12864_v47  ;;  %v13151_v47 = vadd.f32 %v12975_v19, %v12884_v20  ;;  %v13167_v39 = vadd.f32 %v12975_v19, %v12900_v57 }
0x1311   :  { %14236 = vst [vmem:[#allocation83_spill] sm:$0xff] %v13059_v18  ;;  %v13075_v45 = vadd.f32 %v12972_v17, %v14238_v4  ;;  %v13079_v10 = vadd.f32 %v12975_v19, %v14239_v29  ;;  %v14240_v18 = vld [vmem:[#allocation37_spill] sm:$0xff]  ;;  %v13095_v4 = vadd.f32 %v12975_v19, %v12572_v16  ;;  %v13099_v29 = vadd.f32 %v12972_v17, %v12576_v61 }
0x1312   :  { %v13083_v30 = vadd.f32 %v12972_v17, %v14240_v18  ;;  %v13103_v18 = vadd.f32 %v12975_v19, %v12580_v37  ;;  %v13115_v16 = vadd.f32 %v12972_v17, %v12848_v1  ;;  %v13119_v61 = vadd.f32 %v12975_v19, %v12852_v62 }
0x1313   :  { %v13123_v37 = vadd.f32 %v12972_v17, %v12856_v33  ;;  %v13135_v1 = vadd.f32 %v12975_v19, %v12868_v50  ;;  %v13139_v62 = vadd.f32 %v12972_v17, %v12872_v51  ;;  %v13143_v33 = vadd.f32 %v12975_v19, %v12876_v46 }
0x1314   :  { %v13155_v50 = vadd.f32 %v12972_v17, %v12888_v38  ;;  %v13159_v51 = vadd.f32 %v12975_v19, %v12892_v24  ;;  %v13163_v46 = vadd.f32 %v12972_v17, %v12896_v3  ;;  %v13171_v20 = vadd.f32 %v12972_v17, %v12904_v31 }
0x1315   :  { %v13175_v38 = vadd.f32 %v12975_v19, %v12908_v2  ;;  %v13179_v24 = vadd.f32 %v12972_v17, %v12912_v6  ;;  %v13183_v3 = vadd.f32 %v12975_v19, %v12916_v15  ;;  %v13187_v57 = vadd.f32 %v12972_v17, %v12920_v11 }
0x1316   :  { %v13191_v31 = vadd.f32 %v12975_v19, %v12924_v49  ;;  %v13195_v2 = vadd.f32 %v12972_v17, %v12928_v26  ;;  %v13199_v6 = vadd.f32 %v12975_v19, %v12932_v36  ;;  %v13203_v15 = vadd.f32 %v12972_v17, %v12936_v5 }
0x1317   :  { %v13207_v11 = vadd.f32 %v12975_v19, %v12940_v25  ;;  %v13211_v49 = vadd.f32 %v12972_v17, %v12944_v7  ;;  %v13215_v26 = vadd.f32 %v12975_v19, %v12948_v52  ;;  %v13219_v36 = vadd.f32 %v12972_v17, %v12952_v60 }
0x1318   :  { %v13223_v5 = vadd.f32 %v12975_v19, %v12956_v44  ;;  %v13227_v25 = vadd.f32 %v12972_v17, %v12960_v55  ;;  %v13231_v7 = vadd.f32 %v12975_v19, %v12964_v63  ;;  %v8333_v52 = vmul.f32 -1.442695, %v12983_v53 }
0x1319   :  { %14241 = vst [vmem:[#allocation85_spill] sm:$0xff] %v13211_v49  ;;  %14242 = vst [vmem:[#allocation87_spill] sm:$0xff] %v13215_v26  ;;  %v8332_v49 = vmul.f32 -1.442695, %v12979_v35  ;;  %v8334_v26 = vmul.f32 -1.442695, %v12987_v28 }
0x131a   :  { %14243 = vst [vmem:[#allocation89_spill] sm:$0xff] %v13223_v5  ;;  %v8335_v60 = vmul.f32 -1.442695, %v12991_v54  ;;  %v8336_v44 = vmul.f32 -1.442695, %v12995_v40  ;;  %v14244_v28 = vld [vmem:[#allocation71_spill] sm:$0xff] }
0x131b   :  { %9622 = vpow2.f32 %v8332_v49  ;;  %v8337_v5 = vmul.f32 -1.442695, %v12999_v59  ;;  %v8338_v55 = vmul.f32 -1.442695, %v13003_v8  ;;  %v8339_v63 = vmul.f32 -1.442695, %v13007_v58 }
0x131c   :  { %9624 = vpow2.f32 %v8333_v52  ;;  %v8340_v17 = vmul.f32 -1.442695, %v13011_v32  ;;  %v8341_v19 = vmul.f32 -1.442695, %v13015_v12  ;;  %v8342_v35 = vmul.f32 -1.442695, %v13019_v22 }
0x131d   :  { %9626 = vpow2.f32 %v8334_v26  ;;  %v8343_v53 = vmul.f32 -1.442695, %v13023_v14  ;;  %v8344_v54 = vmul.f32 -1.442695, %v14244_v28  ;;  %v14245_v40 = vld [vmem:[#allocation73_spill] sm:$0xff]  ;;  %v14246_v58 = vld [vmem:[#allocation75_spill] sm:$0xff] }
0x131e   :  { %9628 = vpow2.f32 %v8335_v60  ;;  %v8345_v59 = vmul.f32 -1.442695, %v14245_v40  ;;  %v8346_v32 = vmul.f32 -1.442695, %v14246_v58  ;;  %v8347_v12 = vmul.f32 -1.442695, %v13039_v27 }
0x131f   :  { %9630 = vpow2.f32 %v8336_v44  ;;  %v8348_v14 = vmul.f32 -1.442695, %v13043_v9  ;;  %v14248_v44 = vld [vmem:[#allocation79_spill] sm:$0xff]  ;;  %v8353_v28 = vmul.f32 -1.442695, %v13063_v42 }
0x1320   :  { %9632 = vpow2.f32 %v8337_v5  ;;  %v14247_v5 = vld [vmem:[#allocation77_spill] sm:$0xff]  ;;  %v8354_v40 = vmul.f32 -1.442695, %v13067_v34  ;;  %v8355_v58 = vmul.f32 -1.442695, %v13071_v48 }
0x1321   :  { %9634 = vpow2.f32 %v8338_v55  ;;  %v8349_v52 = vmul.f32 -1.442695, %v14247_v5  ;;  %v8350_v55 = vmul.f32 -1.442695, %v14248_v44  ;;  %v8357_v42 = vmul.f32 -1.442695, %v13079_v10 }
0x1322   :  { %9636 = vpow2.f32 %v8339_v63  ;;  %v8358_v34 = vmul.f32 -1.442695, %v13083_v30  ;;  %v8359_v48 = vmul.f32 -1.442695, %v13087_v13  ;;  %v8361_v10 = vmul.f32 -1.442695, %v13095_v4 }
0x1323   :  { %9638 = vpow2.f32 %v8340_v17  ;;  %v14249_v17 = vld [vmem:[#allocation81_spill] sm:$0xff]  ;;  %v8362_v30 = vmul.f32 -1.442695, %v13099_v29  ;;  %v8363_v13 = vmul.f32 -1.442695, %v13103_v18 }
0x1324   :  { %9640 = vpow2.f32 %v8341_v19  ;;  %v8351_v27 = vmul.f32 -1.442695, %v14249_v17  ;;  %v8365_v4 = vmul.f32 -1.442695, %v13111_v41  ;;  %v8366_v29 = vmul.f32 -1.442695, %v13115_v16 }
0x1325   :  { %v13247_v8 = vpop.eup %9622  ;;  %9642 = vpow2.f32 %v8342_v35  ;;  %v14250_v35 = vld [vmem:[#allocation83_spill] sm:$0xff]  ;;  %v8367_v18 = vmul.f32 -1.442695, %v13119_v61  ;;  %v8369_v41 = vmul.f32 -1.442695, %v13127_v21 }
0x1326   :  { %v13250_v49 = vpop.eup %9624  ;;  %9644 = vpow2.f32 %v8343_v53  ;;  %v8352_v9 = vmul.f32 -1.442695, %v14250_v35  ;;  %v8370_v16 = vmul.f32 -1.442695, %v13131_v23  ;;  %v8371_v61 = vmul.f32 -1.442695, %v13135_v1 }
0x1327   :  { %v13253_v22 = vpop.eup %9626  ;;  %9646 = vpow2.f32 %v8344_v54  ;;  %v8373_v21 = vmul.f32 -1.442695, %v13143_v33  ;;  %v8374_v23 = vmul.f32 -1.442695, %v13147_v0  ;;  %v8375_v1 = vmul.f32 -1.442695, %v13151_v47 }
0x1328   :  { %v13256_v26 = vpop.eup %9628  ;;  %9648 = vpow2.f32 %v8345_v59  ;;  %v8377_v33 = vmul.f32 -1.442695, %v13159_v51  ;;  %v8378_v0 = vmul.f32 -1.442695, %v13163_v46  ;;  %v8379_v47 = vmul.f32 -1.442695, %v13167_v39 }
0x1329   :  { %v13259_v60 = vpop.eup %9630  ;;  %9650 = vpow2.f32 %v8346_v32  ;;  %v8381_v51 = vmul.f32 -1.442695, %v13175_v38  ;;  %v8382_v46 = vmul.f32 -1.442695, %v13179_v24  ;;  %v8383_v39 = vmul.f32 -1.442695, %v13183_v3 }
0x132a   :  { %v13262_v63 = vpop.eup %9632  ;;  %9652 = vpow2.f32 %v8347_v12  ;;  %v8356_v12 = vmul.f32 -1.442695, %v13075_v45  ;;  %v8360_v45 = vmul.f32 -1.442695, %v13091_v56  ;;  %v8364_v56 = vmul.f32 -1.442695, %v13107_v43 }
0x132b   :  { %v13265_v19 = vpop.eup %9634  ;;  %9654 = vpow2.f32 %v8348_v14  ;;  %v8368_v43 = vmul.f32 -1.442695, %v13123_v37  ;;  %v8372_v37 = vmul.f32 -1.442695, %v13139_v62  ;;  %v8376_v62 = vmul.f32 -1.442695, %v13155_v50 }
0x132c   :  { %v13268_v53 = vpop.eup %9636  ;;  %9656 = vpow2.f32 %v8349_v52  ;;  %v8380_v50 = vmul.f32 -1.442695, %v13171_v20  ;;  %v8384_v20 = vmul.f32 -1.442695, %v13187_v57  ;;  %v8385_v38 = vmul.f32 -1.442695, %v13191_v31 }
0x132d   :  { %v13271_v54 = vpop.eup %9638  ;;  %9658 = vpow2.f32 %v8350_v55  ;;  %v8386_v24 = vmul.f32 -1.442695, %v13195_v2  ;;  %v8387_v3 = vmul.f32 -1.442695, %v13199_v6  ;;  %v8388_v57 = vmul.f32 -1.442695, %v13203_v15 }
0x132e   :  { %v13274_v59 = vpop.eup %9640  ;;  %9660 = vpow2.f32 %v8351_v27  ;;  %v8389_v31 = vmul.f32 -1.442695, %v13207_v11  ;;  %v8392_v15 = vmul.f32 -1.442695, %v13219_v36  ;;  %v7578_v36 = vadd.f32 1.0, %v13247_v8 }
0x132f   :  { %v13277_v32 = vpop.eup %9642  ;;  %9662 = vpow2.f32 %v8352_v9 }
0x1330   :  { %v13280_v14 = vpop.eup %9644  ;;  %9664 = vpow2.f32 %v8353_v28 }
0x1331   :  { %v13283_v5 = vpop.eup %9646  ;;  %9666 = vpow2.f32 %v8354_v40 }
0x1332   :  { %v13286_v52 = vpop.eup %9648  ;;  %9668 = vpow2.f32 %v8355_v58 }
0x1333   :  { %v13289_v44 = vpop.eup %9650  ;;  %9670 = vpow2.f32 %v8356_v12 }
0x1334   :  { %v13292_v55 = vpop.eup %9652  ;;  %9672 = vpow2.f32 %v8357_v42 }
0x1335   :  { %v13295_v17 = vpop.eup %9654  ;;  %9674 = vpow2.f32 %v8358_v34 }
0x1336   :  { %v13298_v27 = vpop.eup %9656  ;;  %9676 = vpow2.f32 %v8359_v48 }
0x1337   :  { %v13301_v35 = vpop.eup %9658  ;;  %9678 = vpow2.f32 %v8360_v45 }
0x1338   :  { %v13304_v9 = vpop.eup %9660  ;;  %9680 = vpow2.f32 %v8361_v10 }
0x1339   :  { %v13307_v28 = vpop.eup %9662  ;;  %9682 = vpow2.f32 %v8362_v30 }
0x133a   :  { %v13310_v40 = vpop.eup %9664  ;;  %9684 = vpow2.f32 %v8363_v13 }
0x133b   :  { %v13313_v58 = vpop.eup %9666  ;;  %9686 = vpow2.f32 %v8364_v56 }
0x133c   :  { %v13316_v12 = vpop.eup %9668  ;;  %9688 = vpow2.f32 %v8365_v4 }
0x133d   :  { %v13319_v42 = vpop.eup %9670  ;;  %9690 = vpow2.f32 %v8366_v29 }
0x133e   :  { %v13322_v34 = vpop.eup %9672  ;;  %9692 = vpow2.f32 %v8367_v18 }
0x133f   :  { %v13325_v48 = vpop.eup %9674  ;;  %9694 = vpow2.f32 %v8368_v43 }
0x1340   :  { %v13328_v45 = vpop.eup %9676  ;;  %9696 = vpow2.f32 %v8369_v41 }
0x1341   :  { %v13331_v10 = vpop.eup %9678  ;;  %9698 = vpow2.f32 %v8370_v16 }
0x1342   :  { %v13334_v30 = vpop.eup %9680  ;;  %9700 = vpow2.f32 %v8371_v61 }
0x1343   :  { %v13337_v13 = vpop.eup %9682  ;;  %9702 = vpow2.f32 %v8372_v37 }
0x1344   :  { %v13340_v56 = vpop.eup %9684  ;;  %9704 = vpow2.f32 %v8373_v21 }
0x1345   :  { %v13343_v4 = vpop.eup %9686  ;;  %9706 = vpow2.f32 %v8374_v23 }
0x1346   :  { %v13346_v29 = vpop.eup %9688  ;;  %9708 = vpow2.f32 %v8375_v1 }
0x1347   :  { %v13349_v18 = vpop.eup %9690  ;;  %9710 = vpow2.f32 %v8376_v62 }
0x1348   :  { %v13352_v43 = vpop.eup %9692  ;;  %9712 = vpow2.f32 %v8377_v33 }
0x1349   :  { %v13355_v41 = vpop.eup %9694  ;;  %9714 = vpow2.f32 %v8378_v0  ;;  %v14251_v0 = vld [vmem:[#allocation85_spill] sm:$0xff] }
0x134a   :  { %v13358_v16 = vpop.eup %9696  ;;  %9716 = vpow2.f32 %v8379_v47  ;;  %v8390_v2 = vmul.f32 -1.442695, %v14251_v0 }
0x134b   :  { %v13361_v61 = vpop.eup %9698  ;;  %9718 = vpow2.f32 %v8380_v50  ;;  %v14252_v50 = vld [vmem:[#allocation87_spill] sm:$0xff] }
0x134c   :  { %v13364_v37 = vpop.eup %9700  ;;  %9720 = vpow2.f32 %v8381_v51  ;;  %v8391_v6 = vmul.f32 -1.442695, %v14252_v50 }
0x134d   :  { %v13367_v21 = vpop.eup %9702  ;;  %9722 = vpow2.f32 %v8382_v46 }
0x134e   :  { %v13370_v23 = vpop.eup %9704  ;;  %9724 = vpow2.f32 %v8383_v39  ;;  %v14253_v39 = vld [vmem:[#allocation89_spill] sm:$0xff] }
0x134f   :  { %v13373_v1 = vpop.eup %9706  ;;  %9726 = vpow2.f32 %v8384_v20  ;;  %v8393_v11 = vmul.f32 -1.442695, %v14253_v39  ;;  %v7583_v39 = vadd.f32 1.0, %v13262_v63  ;;  %v7587_v63 = vadd.f32 1.0, %v13274_v59 }
0x1350   :  { %v13376_v62 = vpop.eup %9708  ;;  %9728 = vpow2.f32 %v8385_v38  ;;  %v8394_v38 = vmul.f32 -1.442695, %v13227_v25  ;;  %v7580_v25 = vadd.f32 1.0, %v13253_v22  ;;  %v7591_v59 = vadd.f32 1.0, %v13286_v52 }
0x1351   :  { %v13379_v33 = vpop.eup %9710  ;;  %9730 = vpow2.f32 %v8386_v24  ;;  %v7595_v52 = vadd.f32 1.0, %v13298_v27  ;;  %v7597_v27 = vadd.f32 1.0, %v13304_v9  ;;  %v7599_v9 = vadd.f32 1.0, %v13310_v40 }
0x1352   :  { %v13382_v47 = vpop.eup %9712  ;;  %9732 = vpow2.f32 %v8387_v3  ;;  %v8395_v3 = vmul.f32 -1.442695, %v13231_v7  ;;  %v7581_v7 = vadd.f32 1.0, %v13256_v26  ;;  %v7601_v40 = vadd.f32 1.0, %v13316_v12 }
0x1353   :  { %v13385_v51 = vpop.eup %9714  ;;  %9734 = vpow2.f32 %v8388_v57  ;;  %v7603_v12 = vadd.f32 1.0, %v13322_v34  ;;  %v7605_v34 = vadd.f32 1.0, %v13328_v45  ;;  %v7607_v45 = vadd.f32 1.0, %v13334_v30 }
0x1354   :  { %v13388_v46 = vpop.eup %9716  ;;  %9736 = vpow2.f32 %v8389_v31  ;;  %v7579_v31 = vadd.f32 1.0, %v13250_v49  ;;  %v7609_v30 = vadd.f32 1.0, %v13340_v56  ;;  %v7611_v56 = vadd.f32 1.0, %v13346_v29 }
0x1355   :  { %v13391_v20 = vpop.eup %9718  ;;  %9738 = vpow2.f32 %v8390_v2  ;;  %v7613_v29 = vadd.f32 1.0, %v13352_v43  ;;  %v7615_v43 = vadd.f32 1.0, %v13358_v16  ;;  %v7617_v16 = vadd.f32 1.0, %v13364_v37 }
0x1356   :  { %v13394_v24 = vpop.eup %9720  ;;  %9740 = vpow2.f32 %v8391_v6  ;;  %v7619_v37 = vadd.f32 1.0, %v13370_v23  ;;  %v7621_v23 = vadd.f32 1.0, %v13376_v62  ;;  %v7623_v62 = vadd.f32 1.0, %v13382_v47 }
0x1357   :  { %v13397_v0 = vpop.eup %9722  ;;  %9742 = vpow2.f32 %v8392_v15  ;;  %v7582_v15 = vadd.f32 1.0, %v13259_v60  ;;  %v7586_v60 = vadd.f32 1.0, %v13271_v54  ;;  %v7590_v54 = vadd.f32 1.0, %v13283_v5  ;;  %v14259_v5 = vld [vmem:[#allocation39_spill] sm:$0xff] }
0x1358   :  { %v13400_v57 = vpop.eup %9724  ;;  %9744 = vpow2.f32 %v8393_v11  ;;  %v7584_v11 = vadd.f32 1.0, %v13265_v19  ;;  %v7588_v19 = vadd.f32 1.0, %v13277_v32  ;;  %v7625_v47 = vadd.f32 1.0, %v13388_v46 }
0x1359   :  { %v13403_v50 = vpop.eup %9726  ;;  %9746 = vpow2.f32 %v8394_v38  ;;  %v7585_v38 = vadd.f32 1.0, %v13268_v53  ;;  %v7589_v53 = vadd.f32 1.0, %v13280_v14  ;;  %v14258_v14 = vld [vmem:[#allocation38_spill] sm:$0xff]  ;;  %v7627_v46 = vadd.f32 1.0, %v13394_v24 }
0x135a   :  { %v13406_v2 = vpop.eup %9728  ;;  %9748 = vpow2.f32 %v8395_v3  ;;  %v7629_v24 = vadd.f32 1.0, %v13400_v57 }
0x135b   :  { %v13409_v6 = vpop.eup %9730  ;;  %9750 = vrcp.f32 %v7578_v36  ;;  %v7631_v57 = vadd.f32 1.0, %v13406_v2 }
0x135c   :  { %v13412_v8 = vpop.eup %9732  ;;  %9752 = vrcp.f32 %v7579_v31 }
0x135d   :  { %v13415_v49 = vpop.eup %9734  ;;  %9754 = vrcp.f32 %v7580_v25  ;;  %v7633_v2 = vadd.f32 1.0, %v13412_v8 }
0x135e   :  { %v13418_v22 = vpop.eup %9736  ;;  %9756 = vrcp.f32 %v7581_v7 }
0x135f   :  { %v13421_v26 = vpop.eup %9738  ;;  %9758 = vrcp.f32 %v7582_v15  ;;  %v7635_v8 = vadd.f32 1.0, %v13418_v22 }
0x1360   :  { %v13424_v3 = vpop.eup %9740  ;;  %9760 = vrcp.f32 %v7583_v39  ;;  %v7592_v39 = vadd.f32 1.0, %v13289_v44 }
0x1361   :  { %v13427_v36 = vpop.eup %9742  ;;  %9762 = vrcp.f32 %v7584_v11  ;;  %v7593_v11 = vadd.f32 1.0, %v13292_v55  ;;  %v7596_v55 = vadd.f32 1.0, %v13301_v35  ;;  %v7598_v35 = vadd.f32 1.0, %v13307_v28 }
0x1362   :  { %14254 = vst [vmem:[#allocation91_spill] sm:$0xff] %v13427_v36  ;;  %v13430_v31 = vpop.eup %9744  ;;  %9764 = vrcp.f32 %v7585_v38  ;;  %v7600_v28 = vadd.f32 1.0, %v13313_v58  ;;  %v7602_v58 = vadd.f32 1.0, %v13319_v42  ;;  %v7604_v42 = vadd.f32 1.0, %v13325_v48 }
0x1363   :  { %14255 = vst [vmem:[#allocation93_spill] sm:$0xff] %v13430_v31  ;;  %v13433_v25 = vpop.eup %9746  ;;  %9766 = vrcp.f32 %v7586_v60  ;;  %v7606_v48 = vadd.f32 1.0, %v13331_v10  ;;  %v7608_v10 = vadd.f32 1.0, %v13337_v13  ;;  %v7610_v13 = vadd.f32 1.0, %v13343_v4 }
0x1364   :  { %14256 = vst [vmem:[#allocation95_spill] sm:$0xff] %v13433_v25  ;;  %v13436_v7 = vpop.eup %9748  ;;  %9768 = vrcp.f32 %v7587_v63  ;;  %v7594_v25 = vadd.f32 1.0, %v13295_v17  ;;  %v14260_v63 = vld [vmem:[#allocation40_spill] sm:$0xff]  ;;  %v7612_v4 = vadd.f32 1.0, %v13349_v18  ;;  %v7614_v18 = vadd.f32 1.0, %v13355_v41 }
0x1365   :  { %14257 = vst [vmem:[#allocation97_spill] sm:$0xff] %v13436_v7  ;;  %v9751_v15 = vpop.eup %9750  ;;  %9770 = vrcp.f32 %v7588_v19  ;;  %v14261_v19 = vld [vmem:[#allocation41_spill] sm:$0xff]  ;;  %v7616_v41 = vadd.f32 1.0, %v13361_v61  ;;  %v7618_v61 = vadd.f32 1.0, %v13367_v21  ;;  %v7620_v21 = vadd.f32 1.0, %v13373_v1 }
0x1366   :  { %v9753_v32 = vpop.eup %9752  ;;  %9772 = vrcp.f32 %v7589_v53  ;;  %v7770_v38 = vmul.f32 %v9751_v15, %v14258_v14  ;;  %v14263_v15 = vld [vmem:[#allocation43_spill] sm:$0xff]  ;;  %v7622_v1 = vadd.f32 1.0, %v13379_v33  ;;  %v7624_v33 = vadd.f32 1.0, %v13385_v51 }
0x1367   :  { %v9755_v31 = vpop.eup %9754  ;;  %9774 = vrcp.f32 %v7590_v54  ;;  %v7771_v60 = vmul.f32 %v9753_v32, %v14259_v5  ;;  %v14262_v54 = vld [vmem:[#allocation42_spill] sm:$0xff]  ;;  %v14264_v32 = vld [vmem:[#allocation44_spill] sm:$0xff]  ;;  %v7626_v51 = vadd.f32 1.0, %v13391_v20  ;;  %v7628_v20 = vadd.f32 1.0, %v13397_v0 }
0x1368   :  { %v9757_v7 = vpop.eup %9756  ;;  %9776 = vrcp.f32 %v7591_v59  ;;  %v7772_v36 = vmul.f32 %v9755_v31, %v14260_v63  ;;  %7834 = vst [vmem:[%s13758_s13] sm:$0xff] %v7770_v38  ;;  %v14266_v5 = vld [vmem:[#allocation46_spill] sm:$0xff]  ;;  %v14267_v63 = vld [vmem:[#allocation47_spill] sm:$0xff]  ;;  %v7630_v0 = vadd.f32 1.0, %v13403_v50  ;;  %v7632_v50 = vadd.f32 1.0, %v13409_v6 }
0x1369   :  { %v9759_v44 = vpop.eup %9758  ;;  %9778 = vrcp.f32 %v7592_v39  ;;  %v7773_v53 = vmul.f32 %v9757_v7, %v14261_v19  ;;  %7835 = vst [vmem:[%s13758_s13 + $0x8] sm:$0xff] %v7771_v60  ;;  %v14268_v19 = vld [vmem:[#allocation48_spill] sm:$0xff]  ;;  %v7634_v6 = vadd.f32 1.0, %v13415_v49  ;;  %v7636_v49 = vadd.f32 1.0, %v13421_v26 }
0x136a   :  { %v9761_v17 = vpop.eup %9760  ;;  %9780 = vrcp.f32 %v7593_v11  ;;  %v7774_v31 = vmul.f32 %v9759_v44, %v14262_v54  ;;  %7836 = vst [vmem:[%s13758_s13 + $0x10] sm:$0xff] %v7772_v36  ;;  %v7637_v22 = vadd.f32 1.0, %v13424_v3 }
0x136b   :  { %v9763_v59 = vpop.eup %9762  ;;  %9782 = vrcp.f32 %v7594_v25  ;;  %v7775_v7 = vmul.f32 %v9761_v17, %v14263_v15  ;;  %7837 = vst [vmem:[%s13758_s13 + $0x18] sm:$0xff] %v7773_v53  ;;  %v14265_v25 = vld [vmem:[#allocation45_spill] sm:$0xff] }
0x136c   :  { %v9765_v39 = vpop.eup %9764  ;;  %9784 = vrcp.f32 %v7595_v52  ;;  %v7776_v11 = vmul.f32 %v9763_v59, %v14264_v32  ;;  %7838 = vst [vmem:[%s13758_s13 + $0x20] sm:$0xff] %v7774_v31  ;;  %v14270_v59 = vld [vmem:[#allocation50_spill] sm:$0xff]  ;;  %v14272_v32 = vld [vmem:[#allocation52_spill] sm:$0xff] }
0x136d   :  { %v9767_v36 = vpop.eup %9766  ;;  %9786 = vrcp.f32 %v7596_v55  ;;  %v7777_v14 = vmul.f32 %v9765_v39, %v14265_v25  ;;  %7839 = vst [vmem:[%s13758_s13 + $0x28] sm:$0xff] %v7775_v7  ;;  %v14271_v7 = vld [vmem:[#allocation51_spill] sm:$0xff] }
0x136e   :  { %v9769_v38 = vpop.eup %9768  ;;  %9788 = vrcp.f32 %v7597_v27  ;;  %v7778_v60 = vmul.f32 %v9767_v36, %v14266_v5  ;;  %7840 = vst [vmem:[%s13758_s13 + $0x30] sm:$0xff] %v7776_v11  ;;  %v14269_v27 = vld [vmem:[#allocation49_spill] sm:$0xff] }
0x136f   :  { %v9771_v52 = vpop.eup %9770  ;;  %9790 = vrcp.f32 %v7598_v35  ;;  %v7779_v44 = vmul.f32 %v9769_v38, %v14267_v63  ;;  %7841 = vst [vmem:[%s13758_s13 + $0x38] sm:$0xff] %v7777_v14  ;;  %v14274_v38 = vld [vmem:[#allocation31_spill] sm:$0xff]  ;;  %v14276_v63 = vld [vmem:[#allocation54_spill] sm:$0xff] }
0x1370   :  { %v9773_v55 = vpop.eup %9772  ;;  %9792 = vrcp.f32 %v7599_v9  ;;  %v7780_v53 = vmul.f32 %v9771_v52, %v14268_v19  ;;  %7842 = vst [vmem:[%s13758_s13 + $0x40] sm:$0xff] %v7778_v60  ;;  %v14275_v60 = vld [vmem:[#allocation53_spill] sm:$0xff] }
0x1371   :  { %v9775_v17 = vpop.eup %9774  ;;  %9794 = vrcp.f32 %v7600_v28  ;;  %v7781_v54 = vmul.f32 %v9773_v55, %v14269_v27  ;;  %7843 = vst [vmem:[%s13758_s13 + $0x48] sm:$0xff] %v7779_v44  ;;  %v14273_v28 = vld [vmem:[#allocation28_spill] sm:$0xff] }
0x1372   :  { %v9777_v31 = vpop.eup %9776  ;;  %9796 = vrcp.f32 %v7601_v40  ;;  %v7782_v35 = vmul.f32 %v9775_v17, %v14270_v59  ;;  %7844 = vst [vmem:[%s13758_s13 + $0x50] sm:$0xff] %v7780_v53  ;;  %v14278_v17 = vld [vmem:[#allocation56_spill] sm:$0xff]  ;;  %v14280_v59 = vld [vmem:[#allocation58_spill] sm:$0xff] }
0x1373   :  { %v9779_v15 = vpop.eup %9778  ;;  %9798 = vrcp.f32 %v7602_v58  ;;  %v7783_v39 = vmul.f32 %v9777_v31, %v14271_v7  ;;  %7845 = vst [vmem:[%s13758_s13 + $0x58] sm:$0xff] %v7781_v54  ;;  %v14279_v54 = vld [vmem:[#allocation57_spill] sm:$0xff] }
0x1374   :  { %v9781_v9 = vpop.eup %9780  ;;  %9800 = vrcp.f32 %v7603_v12  ;;  %v7784_v11 = vmul.f32 %v9779_v15, %v14272_v32  ;;  %7846 = vst [vmem:[%s13758_s13 + $0x60] sm:$0xff] %v7782_v35  ;;  %v14277_v12 = vld [vmem:[#allocation55_spill] sm:$0xff] }
0x1375   :  { %v9783_v36 = vpop.eup %9782  ;;  %9802 = vrcp.f32 %v7604_v42  ;;  %v7785_v25 = vmul.f32 %v9781_v9, %v14273_v28  ;;  %7847 = vst [vmem:[%s13758_s13 + $0x68] sm:$0xff] %v7783_v39  ;;  %v14282_v9 = vld [vmem:[#allocation61_spill] sm:$0xff] }
0x1376   :  { %v9785_v14 = vpop.eup %9784  ;;  %9804 = vrcp.f32 %v7605_v34  ;;  %v7786_v40 = vmul.f32 %v9783_v36, %v14274_v38  ;;  %7848 = vst [vmem:[%s13758_s13 + $0x70] sm:$0xff] %v7784_v11  ;;  %v14283_v11 = vld [vmem:[#allocation63_spill] sm:$0xff]  ;;  %v14284_v28 = vld [vmem:[#allocation65_spill] sm:$0xff] }
0x1377   :  { %v9787_v5 = vpop.eup %9786  ;;  %9806 = vrcp.f32 %v7606_v48  ;;  %v7787_v52 = vmul.f32 %v9785_v14, %v14275_v60  ;;  %7849 = vst [vmem:[%s13758_s13 + $0x78] sm:$0xff] %v7785_v25  ;;  %v14281_v48 = vld [vmem:[#allocation59_spill] sm:$0xff] }
0x1378   :  { %v9789_v58 = vpop.eup %9788  ;;  %9808 = vrcp.f32 %v7607_v45  ;;  %v7788_v44 = vmul.f32 %v9787_v5, %v14276_v63  ;;  %7850 = vst [vmem:[%s13758_s13 + $0x80] sm:$0xff] %v7786_v40  ;;  %v14286_v5 = vld [vmem:[#allocation69_spill] sm:$0xff]  ;;  %v14288_v63 = vld [vmem:[#allocation135_spill] sm:$0xff] }
0x1379   :  { %v9791_v55 = vpop.eup %9790  ;;  %9810 = vrcp.f32 %v7608_v10  ;;  %v7789_v19 = vmul.f32 %v9789_v58, %v14277_v12  ;;  %7851 = vst [vmem:[%s13758_s13 + $0x88] sm:$0xff] %v7787_v52  ;;  %v14287_v52 = vld [vmem:[#allocation134_spill] sm:$0xff] }
0x137a   :  { %v9793_v53 = vpop.eup %9792  ;;  %9812 = vrcp.f32 %v7609_v30  ;;  %v7790_v42 = vmul.f32 %v9791_v55, %v14278_v17  ;;  %7852 = vst [vmem:[%s13758_s13 + $0x90] sm:$0xff] %v7788_v44  ;;  %v14285_v30 = vld [vmem:[#allocation67_spill] sm:$0xff] }
0x137b   :  { %v9795_v27 = vpop.eup %9794  ;;  %9814 = vrcp.f32 %v7610_v13  ;;  %v7791_v31 = vmul.f32 %v9793_v53, %v14279_v54  ;;  %7853 = vst [vmem:[%s13758_s13 + $0x98] sm:$0xff] %v7789_v19  ;;  %v14290_v53 = vld [vmem:[#allocation137_spill] sm:$0xff]  ;;  %v14292_v54 = vld [vmem:[#allocation139_spill] sm:$0xff] }
0x137c   :  { %v9797_v34 = vpop.eup %9796  ;;  %9816 = vrcp.f32 %v7611_v56  ;;  %v7792_v35 = vmul.f32 %v9795_v27, %v14280_v59  ;;  %7854 = vst [vmem:[%s13758_s13 + $0xa0] sm:$0xff] %v7790_v42  ;;  %v14291_v42 = vld [vmem:[#allocation138_spill] sm:$0xff] }
0x137d   :  { %v9799_v15 = vpop.eup %9798  ;;  %9818 = vrcp.f32 %v7612_v4  ;;  %v7793_v7 = vmul.f32 %v9797_v34, %v14281_v48  ;;  %7855 = vst [vmem:[%s13758_s13 + $0xa8] sm:$0xff] %v7791_v31  ;;  %v14289_v4 = vld [vmem:[#allocation136_spill] sm:$0xff] }
0x137e   :  { %v9801_v39 = vpop.eup %9800  ;;  %9820 = vrcp.f32 %v7613_v29  ;;  %v7794_v45 = vmul.f32 %v9799_v15, %v14282_v9  ;;  %7856 = vst [vmem:[%s13758_s13 + $0xb0] sm:$0xff] %v7792_v35  ;;  %v14294_v15 = vld [vmem:[#allocation141_spill] sm:$0xff]  ;;  %v14296_v9 = vld [vmem:[#allocation143_spill] sm:$0xff] }
0x137f   :  { %v9803_v32 = vpop.eup %9802  ;;  %9822 = vrcp.f32 %v7614_v18  ;;  %v7795_v36 = vmul.f32 %v9801_v39, %v14283_v11  ;;  %7857 = vst [vmem:[%s13758_s13 + $0xb8] sm:$0xff] %v7793_v7  ;;  %v14295_v7 = vld [vmem:[#allocation142_spill] sm:$0xff] }
0x1380   :  { %v9805_v10 = vpop.eup %9804  ;;  %9824 = vrcp.f32 %v7615_v43  ;;  %v7796_v25 = vmul.f32 %v9803_v32, %v14284_v28  ;;  %7858 = vst [vmem:[%s13758_s13 + $0xc0] sm:$0xff] %v7794_v45  ;;  %v14293_v43 = vld [vmem:[#allocation140_spill] sm:$0xff] }
0x1381   :  { %v9807_v14 = vpop.eup %9806  ;;  %9826 = vrcp.f32 %v7616_v41  ;;  %v7797_v38 = vmul.f32 %v9805_v10, %v14285_v30  ;;  %7859 = vst [vmem:[%s13758_s13 + $0xc8] sm:$0xff] %v7795_v36  ;;  %v14298_v10 = vld [vmem:[#allocation145_spill] sm:$0xff]  ;;  %v14300_v30 = vld [vmem:[#allocation147_spill] sm:$0xff] }
0x1382   :  { %v9809_v40 = vpop.eup %9808  ;;  %9828 = vrcp.f32 %v7617_v16  ;;  %v7798_v13 = vmul.f32 %v9807_v14, %v14286_v5  ;;  %7860 = vst [vmem:[%s13758_s13 + $0xd0] sm:$0xff] %v7796_v25  ;;  %v14299_v25 = vld [vmem:[#allocation146_spill] sm:$0xff] }
0x1383   :  { %v9811_v60 = vpop.eup %9810  ;;  %9830 = vrcp.f32 %v7618_v61  ;;  %v7799_v58 = vmul.f32 %v9809_v40, %v14287_v52  ;;  %7861 = vst [vmem:[%s13758_s13 + $0xd8] sm:$0xff] %v7797_v38  ;;  %v14297_v61 = vld [vmem:[#allocation144_spill] sm:$0xff] }
0x1384   :  { %v9813_v56 = vpop.eup %9812  ;;  %9832 = vrcp.f32 %v7619_v37  ;;  %v7800_v44 = vmul.f32 %v9811_v60, %v14288_v63  ;;  %7862 = vst [vmem:[%s13758_s13 + $0xe0] sm:$0xff] %v7798_v13  ;;  %v14302_v60 = vld [vmem:[#allocation149_spill] sm:$0xff] }
0x1385   :  { %v9815_v55 = vpop.eup %9814  ;;  %9834 = vrcp.f32 %v7620_v21  ;;  %v7801_v12 = vmul.f32 %v9813_v56, %v14289_v4  ;;  %7863 = vst [vmem:[%s13758_s13 + $0xe8] sm:$0xff] %v7799_v58  ;;  %v14303_v58 = vld [vmem:[#allocation91_spill] sm:$0xff]  ;;  %v14304_v56 = vld [vmem:[#allocation150_spill] sm:$0xff] }
0x1386   :  { %v9817_v19 = vpop.eup %9816  ;;  %9836 = vrcp.f32 %v7621_v23  ;;  %v7802_v29 = vmul.f32 %v9815_v55, %v14290_v53  ;;  %7864 = vst [vmem:[%s13758_s13 + $0xf0] sm:$0xff] %v7800_v44  ;;  %v14301_v23 = vld [vmem:[#allocation148_spill] sm:$0xff]  ;;  %v7638_v26 = vadd.f32 1.0, %v14303_v58  ;;  %v14305_v44 = vld [vmem:[#allocation93_spill] sm:$0xff] }
0x1387   :  { %v9819_v17 = vpop.eup %9818  ;;  %9838 = vrcp.f32 %v7622_v1  ;;  %v7803_v27 = vmul.f32 %v9817_v19, %v14291_v42  ;;  %7865 = vst [vmem:[%s13758_s13 + $0xf8] sm:$0xff] %v7801_v12  ;;  %v7639_v3 = vadd.f32 1.0, %v14305_v44  ;;  %v14306_v55 = vld [vmem:[#allocation60_spill] sm:$0xff]  ;;  %v14307_v12 = vld [vmem:[#allocation95_spill] sm:$0xff] }
0x1388   :  { %v9821_v18 = vpop.eup %9820  ;;  %9840 = vrcp.f32 %v7623_v62  ;;  %v7804_v31 = vmul.f32 %v9819_v17, %v14292_v54  ;;  %7866 = vst [vmem:[%s13758_s13 + $0x100] sm:$0xff] %v7802_v29  ;;  %v7640_v19 = vadd.f32 1.0, %v14307_v12  ;;  %v14309_v17 = vld [vmem:[#allocation97_spill] sm:$0xff]  ;;  %v14310_v42 = vld [vmem:[#allocation64_spill] sm:$0xff] }
0x1389   :  { %v9823_v34 = vpop.eup %9822  ;;  %9842 = vrcp.f32 %v7624_v33  ;;  %v7805_v59 = vmul.f32 %v9821_v18, %v14293_v43  ;;  %7867 = vst [vmem:[%s13758_s13 + $0x108] sm:$0xff] %v7803_v27 }
0x138a   :  { %v9825_v35 = vpop.eup %9824  ;;  %9844 = vrcp.f32 %v7625_v47  ;;  %v7806_v41 = vmul.f32 %v9823_v34, %v14294_v15  ;;  %7868 = vst [vmem:[%s13758_s13 + $0x110] sm:$0xff] %v7804_v31  ;;  %v14308_v47 = vld [vmem:[#allocation62_spill] sm:$0xff]  ;;  %v14312_v34 = vld [vmem:[#allocation68_spill] sm:$0xff] }
0x138b   :  { %v9827_v48 = vpop.eup %9826  ;;  %9846 = vrcp.f32 %v7626_v51  ;;  %v7807_v39 = vmul.f32 %v9825_v35, %v14295_v7  ;;  %7869 = vst [vmem:[%s13758_s13 + $0x118] sm:$0xff] %v7805_v59  ;;  %v7641_v51 = vadd.f32 1.0, %v14309_v17  ;;  %v14313_v59 = vld [vmem:[#allocation70_spill] sm:$0xff]  ;;  %v14314_v15 = vld [vmem:[#allocation72_spill] sm:$0xff] }
0x138c   :  { %v9829_v16 = vpop.eup %9828  ;;  %9848 = vrcp.f32 %v7627_v46  ;;  %v7808_v45 = vmul.f32 %v9827_v48, %v14296_v9  ;;  %7870 = vst [vmem:[%s13758_s13 + $0x120] sm:$0xff] %v7806_v41  ;;  %v14311_v46 = vld [vmem:[#allocation66_spill] sm:$0xff] }
0x138d   :  { %v9831_v32 = vpop.eup %9830  ;;  %9850 = vrcp.f32 %v7628_v20  ;;  %v7809_v11 = vmul.f32 %v9829_v16, %v14297_v61  ;;  %7871 = vst [vmem:[%s13758_s13 + $0x128] sm:$0xff] %v7807_v39  ;;  %v14316_v16 = vld [vmem:[#allocation76_spill] sm:$0xff] }
0x138e   :  { %v9833_v36 = vpop.eup %9832  ;;  %9852 = vrcp.f32 %v7629_v24  ;;  %v7810_v37 = vmul.f32 %v9831_v32, %v14298_v10  ;;  %7872 = vst [vmem:[%s13758_s13 + $0x130] sm:$0xff] %v7808_v45  ;;  %v14317_v45 = vld [vmem:[#allocation78_spill] sm:$0xff]  ;;  %v14318_v61 = vld [vmem:[#allocation80_spill] sm:$0xff] }
0x138f   :  { %v9835_v28 = vpop.eup %9834  ;;  %9854 = vrcp.f32 %v7630_v0  ;;  %v7811_v14 = vmul.f32 %v9833_v36, %v14299_v25  ;;  %7873 = vst [vmem:[%s13758_s13 + $0x138] sm:$0xff] %v7809_v11  ;;  %v14315_v0 = vld [vmem:[#allocation74_spill] sm:$0xff] }
0x1390   :  { %v9837_v21 = vpop.eup %9836  ;;  %9856 = vrcp.f32 %v7631_v57  ;;  %v7812_v38 = vmul.f32 %v9835_v28, %v14300_v30  ;;  %7874 = vst [vmem:[%s13758_s13 + $0x140] sm:$0xff] %v7810_v37  ;;  %v14320_v28 = vld [vmem:[#allocation84_spill] sm:$0xff] }
0x1391   :  { %v9839_v40 = vpop.eup %9838  ;;  %9858 = vrcp.f32 %v7632_v50  ;;  %v7813_v5 = vmul.f32 %v9837_v21, %v14301_v23  ;;  %7875 = vst [vmem:[%s13758_s13 + $0x148] sm:$0xff] %v7811_v14  ;;  %v14321_v14 = vld [vmem:[#allocation86_spill] sm:$0xff]  ;;  %v14322_v30 = vld [vmem:[#allocation88_spill] sm:$0xff] }
0x1392   :  { %v9841_v13 = vpop.eup %9840  ;;  %9860 = vrcp.f32 %v7633_v2  ;;  %v7814_v1 = vmul.f32 %v9839_v40, %v14302_v60  ;;  %7876 = vst [vmem:[%s13758_s13 + $0x150] sm:$0xff] %v7812_v38  ;;  %v14319_v2 = vld [vmem:[#allocation82_spill] sm:$0xff]  ;;  %v14325_v60 = vld [vmem:[#allocation92_spill] sm:$0xff] }
0x1393   :  { %v9843_v52 = vpop.eup %9842  ;;  %9862 = vrcp.f32 %v7634_v6  ;;  %v7815_v62 = vmul.f32 %v9841_v13, %v14304_v56  ;;  %7877 = vst [vmem:[%s13758_s13 + $0x158] sm:$0xff] %v7813_v5  ;;  %v14324_v13 = vld [vmem:[#allocation151_spill] sm:$0xff] }
0x1394   :  { %v9845_v63 = vpop.eup %9844  ;;  %9864 = vrcp.f32 %v7635_v8  ;;  %v7816_v33 = vmul.f32 %v9843_v52, %v14306_v55  ;;  %7878 = vst [vmem:[%s13758_s13 + $0x160] sm:$0xff] %v7814_v1 }
0x1395   :  { %v9847_v4 = vpop.eup %9846  ;;  %9866 = vrcp.f32 %v7636_v49  ;;  %v7817_v53 = vmul.f32 %v9845_v63, %v14308_v47  ;;  %7879 = vst [vmem:[%s13758_s13 + $0x168] sm:$0xff] %v7815_v62  ;;  %v14323_v49 = vld [vmem:[#allocation90_spill] sm:$0xff] }
0x1396   :  { %v9849_v29 = vpop.eup %9848  ;;  %9868 = vrcp.f32 %v7637_v22  ;;  %v7818_v27 = vmul.f32 %v9847_v4, %v14310_v42  ;;  %7880 = vst [vmem:[%s13758_s13 + $0x170] sm:$0xff] %v7816_v33 }
0x1397   :  { %v9851_v18 = vpop.eup %9850  ;;  %9870 = vrcp.f32 %v7638_v26  ;;  %v7819_v54 = vmul.f32 %v9849_v29, %v14311_v46  ;;  %7881 = vst [vmem:[%s13758_s13 + $0x178] sm:$0xff] %v7817_v53 }
0x1398   :  { %v9853_v31 = vpop.eup %9852  ;;  %9872 = vrcp.f32 %v7639_v3  ;;  %v7820_v20 = vmul.f32 %v9851_v18, %v14312_v34  ;;  %7882 = vst [vmem:[%s13758_s13 + $0x180] sm:$0xff] %v7818_v27 }
0x1399   :  { %v9855_v43 = vpop.eup %9854  ;;  %9874 = vrcp.f32 %v7640_v19  ;;  %v7821_v35 = vmul.f32 %v9853_v31, %v14313_v59  ;;  %7883 = vst [vmem:[%s13758_s13 + $0x188] sm:$0xff] %v7819_v54 }
0x139a   :  { %v9857_v24 = vpop.eup %9856  ;;  %9876 = vrcp.f32 %v7641_v51  ;;  %v7822_v41 = vmul.f32 %v9855_v43, %v14314_v15  ;;  %7884 = vst [vmem:[%s13758_s13 + $0x190] sm:$0xff] %v7820_v20 }
0x139b   :  { %v9859_v48 = vpop.eup %9858  ;;  %v7823_v7 = vmul.f32 %v9857_v24, %v14315_v0  ;;  %7885 = vst [vmem:[%s13758_s13 + $0x198] sm:$0xff] %v7821_v35 }
0x139c   :  { %v9861_v39 = vpop.eup %9860  ;;  %v7824_v57 = vmul.f32 %v9859_v48, %v14316_v16  ;;  %7886 = vst [vmem:[%s13758_s13 + $0x1a0] sm:$0xff] %v7822_v41 }
0x139d   :  { %v9863_v9 = vpop.eup %9862  ;;  %v7825_v32 = vmul.f32 %v9861_v39, %v14317_v45  ;;  %7887 = vst [vmem:[%s13758_s13 + $0x1a8] sm:$0xff] %v7823_v7 }
0x139e   :  { %v9865_v50 = vpop.eup %9864  ;;  %v7826_v11 = vmul.f32 %v9863_v9, %v14318_v61  ;;  %7888 = vst [vmem:[%s13758_s13 + $0x1b0] sm:$0xff] %v7824_v57 }
0x139f   :  { %v9867_v36 = vpop.eup %9866  ;;  %v7827_v10 = vmul.f32 %v9865_v50, %v14319_v2  ;;  %7889 = vst [vmem:[%s13758_s13 + $0x1b8] sm:$0xff] %v7825_v32 }
0x13a0   :  { %v9869_v37 = vpop.eup %9868  ;;  %v7828_v6 = vmul.f32 %v9867_v36, %v14320_v28  ;;  %7890 = vst [vmem:[%s13758_s13 + $0x1c0] sm:$0xff] %v7826_v11 }
0x13a1   :  { %v9871_v25 = vpop.eup %9870  ;;  %v7829_v21 = vmul.f32 %v9869_v37, %v14321_v14  ;;  %7891 = vst [vmem:[%s13758_s13 + $0x1c8] sm:$0xff] %v7827_v10 }
0x13a2   :  { %v9873_v8 = vpop.eup %9872  ;;  %v7830_v38 = vmul.f32 %v9871_v25, %v14322_v30  ;;  %7892 = vst [vmem:[%s13758_s13 + $0x1d0] sm:$0xff] %v7828_v6 }
0x13a3   :  { %v9875_v40 = vpop.eup %9874  ;;  %v7831_v23 = vmul.f32 %v9873_v8, %v14323_v49  ;;  %7893 = vst [vmem:[%s13758_s13 + $0x1d8] sm:$0xff] %v7829_v21 }
0x13a4   :  { %v9877_v5 = vpop.eup %9876  ;;  %v7832_v22 = vmul.f32 %v9875_v40, %v14324_v13  ;;  %7894 = vst [vmem:[%s13758_s13 + $0x1e0] sm:$0xff] %v7830_v38 }
0x13a5   :  { %v7833_v1 = vmul.f32 %v9877_v5, %v14325_v60  ;;  %7895 = vst [vmem:[%s13758_s13 + $0x1e8] sm:$0xff] %v7831_v23 }
0x13a6   :  { %7896 = vst [vmem:[%s13758_s13 + $0x1f0] sm:$0xff] %v7832_v22 }
0x13a7   :  { %7897 = vst [vmem:[%s13758_s13 + $0x1f8] sm:$0xff] %v7833_v1 }
0x13a8   :  { %7902 = vsyncpa [#allocation7], 1 }
0x13a9   :  { %7903 = vsyncpa [#allocation9], 1 }
0x13aa   :  { %7904 = vsyncpa [#allocation12], 1 }
0x13ab   :  { %7905 = vsyncmov [#allocation5] }
0x13ae   :  { %s7906_s9 = vpop.sfrf %7905 }
0x13af   :  { %p8396_p6 = scmp.ne.s32.totalorder %s7906_s9, 0 }
0x13b1   :  { %7910 = shalt.err (%p8396_p6)  }
0x13b2   :  { %7912 = vsyncmov [#allocation5 + $0x1] }
0x13b5   :  { %s7913_s10 = vpop.sfrf %7912 }
0x13b6   :  { %p8397_p7 = scmp.ne.s32.totalorder %s7913_s10, 0 }
0x13b8   :  { %7917 = shalt.err (%p8397_p7)  }
0x13b9   :  { %7919 = vsyncmov [#allocation5 + $0x2] }
0x13bc   :  { %s7920_s20 = vpop.sfrf %7919 }
0x13bd   :  { %p8398_p8 = scmp.ne.s32.totalorder %s7920_s20, 0 }
0x13bf   :  { %7924 = shalt.err (%p8398_p8)  }

</bundles_post_ra>
